<compile_context>
chip_gen: v7x
topology: tpu7x:2x2x1
jax: 0.10.0
libtpu: 0.0.40
codegen_flags: <defaults>
</compile_context>

<pallas_src>
import functools
import math

import jax
import jax.numpy as jnp
from jax.experimental import pallas as pl
from jax.experimental.pallas import tpu as pltpu


# ---------------------------------------------------------------------------
# Pallas kernel: one batch element per grid step, everything fused.
# ---------------------------------------------------------------------------
def _mdfa_kernel(H, W, pad, dils,
                 x_ref, br5_ref,
                 w1_ref, b1_ref, w2_ref, b2_ref, w3_ref, b3_ref, w4_ref, b4_ref,
                 wk_ref, bk_ref, wt_ref, bt_ref, wc_ref, bc_ref,
                 o_ref):
    f32 = jnp.float32
    HW = H * W
    Cin = x_ref.shape[-1]
    Cp = wc_ref.shape[-1]          # lane-padded channel count

    def tap(ky, kx, d):
        # (H, W, Cin) window of the zero-padded input for kernel tap (ky, kx)
        # at dilation d, flattened to (HW, Cin).
        r0 = pad + (ky - 1) * d
        c0 = pad + (kx - 1) * d
        win = x_ref[0, pl.ds(r0, H), pl.ds(c0, W), :]
        return win.reshape(HW, Cin)

    # branch 1: 1x1 conv (+folded BN, ReLU) on the center window.
    xc = tap(1, 1, 0)
    br1 = jnp.maximum(
        jnp.dot(xc, w1_ref[...], preferred_element_type=f32) + b1_ref[...], 0.0)

    # branches 2-4: dilated 3x3 convs as 9 accumulated tap matmuls each
    # (in-kernel im2col; no HBM-materialized patch tensors).
    def dilated_branch(w_ref_, b_ref_, d):
        acc = None
        idx = 0
        for ky in range(3):
            for kx in range(3):
                contrib = jnp.dot(tap(ky, kx, d), w_ref_[idx],
                                  preferred_element_type=f32)
                acc = contrib if acc is None else acc + contrib
                idx += 1
        return jnp.maximum(acc + b_ref_[...], 0.0)

    br2 = dilated_branch(w2_ref, b2_ref, dils[0])
    br3 = dilated_branch(w3_ref, b3_ref, dils[1])
    br4 = dilated_branch(w4_ref, b4_ref, dils[2])

    # branch 5: precomputed per-image (1, Cp) vector (GAP -> 1x1 conv -> BN ->
    # ReLU); its bilinear upsample from a 1x1 map is just a broadcast.
    br5 = jnp.broadcast_to(br5_ref[0], (HW, Cp))

    # Concatenate along the (128-aligned) lane axis -> (HW, 5*Cp).
    feat = jnp.concatenate([br1, br2, br3, br4, br5], axis=-1)

    # hebing.kongjian: per-pixel sigmoid gate over the concatenated features.
    s_logit = jnp.sum(feat * wk_ref[...], axis=-1, keepdims=True) + bk_ref[...]
    s = 1.0 / (1.0 + jnp.exp(-s_logit))                       # (HW, 1)
    # (pl.reciprocal(..., approx=True) would move the divide to the EUP, but
    #  its approximation error is too close to the 1e-3 validation tolerance.)

    # hebing.tongdao: per-image ReLU gate on the GAP of the concatenated feats.
    gap = jnp.mean(feat, axis=0, keepdims=True)               # (1, 5*Cp)
    t_logit = jnp.sum(gap * wt_ref[...], axis=-1, keepdims=True) + bt_ref[...]
    t_gate = jnp.maximum(t_logit, 0.0)                        # (1, 1)

    # larry = max(feat*t, feat*s) = feat * max(t, s)   (feat >= 0 post-ReLU)
    # gated = larry * feat ; result = ReLU(gated @ Wc + bc)  (one fused matmul)
    g = jnp.maximum(s, t_gate)                                # (HW, 1)
    gated = (feat * g) * feat                                 # (HW, 5*Cp)
    out = jnp.dot(gated, wc_ref[...], preferred_element_type=f32) + bc_ref[...]
    o_ref[0] = jnp.maximum(out, 0.0).astype(o_ref.dtype)


# ---------------------------------------------------------------------------
# Wrapper: layout plumbing (NHWC, spatial zero-pad, BN folding, lane padding).
# ---------------------------------------------------------------------------
def _bn_scale_shift(g, b, m, v, eps=1e-5):
    scale = g / jnp.sqrt(v + eps)
    shift = b - m * scale
    return scale, shift


def _fold_1x1(w, b, bn):
    # w: (C_out, C_in, 1, 1) -> (C_in, C_out) matmul weight, BN folded.
    mat = jnp.transpose(w[:, :, 0, 0], (1, 0))
    scale, shift = _bn_scale_shift(*bn)
    mat = mat * scale[None, :]
    b = b * scale + shift
    return mat, b.reshape(1, -1)


def _fold_3x3_taps(w, b, bn):
    # w: (C_out, C_in, 3, 3) -> (9, C_in, C_out) tap stack, ky-major/kx-minor
    # (must match the in-kernel tap order).  BN folded.
    scale, shift = _bn_scale_shift(*bn)
    taps = jnp.stack([jnp.transpose(w[:, :, ky, kx], (1, 0)) * scale[None, :]
                      for ky in range(3) for kx in range(3)], axis=0)
    bb = (b * scale + shift).reshape(1, -1)
    return taps, bb


def mdfa_forward(x, p, *, rate=1):
    """x: (B, C_in, H, W) NCHW; p: dict of raw conv/BN parameters (eval BN)."""
    B, Cin, H, W = x.shape
    Cout = p["b1_w"].shape[0]
    HW = H * W
    dils = (6 * rate, 12 * rate, 18 * rate)
    PAD = max(dils)
    Hp, Wp = H + 2 * PAD, W + 2 * PAD
    Cp = ((Cout + 127) // 128) * 128            # lane-dense channel padding

    f32 = jnp.float32
    x_nhwc = jnp.transpose(x, (0, 2, 3, 1)).astype(f32)
    x_pad = jnp.pad(x_nhwc, ((0, 0), (PAD, PAD), (PAD, PAD), (0, 0)))

    def pad_c(a):                               # zero-pad trailing Cout -> Cp
        return jnp.pad(a, [(0, 0)] * (a.ndim - 1) + [(0, Cp - Cout)])

    bn = lambda n: (p[n + "_bn_g"], p[n + "_bn_b"], p[n + "_bn_m"], p[n + "_bn_v"])

    w1, b1 = map(pad_c, _fold_1x1(p["b1_w"], p["b1_b"], bn("b1")))
    w2, b2 = map(pad_c, _fold_3x3_taps(p["b2_w"], p["b2_b"], bn("b2")))
    w3, b3 = map(pad_c, _fold_3x3_taps(p["b3_w"], p["b3_b"], bn("b3")))
    w4, b4 = map(pad_c, _fold_3x3_taps(p["b4_w"], p["b4_b"], bn("b4")))

    # branch 5 (global path): mean-then-matmul, O(Cin*Cout) flops, fuses with
    # the transpose/pad pre-pass; the kernel only broadcasts the result.
    w5, b5 = _fold_1x1(p["b5_w"], p["b5_b"], bn("b5"))
    x_mean = jnp.mean(x_nhwc, axis=(1, 2))                                # (B, Cin)
    br5 = jnp.maximum(jnp.einsum("bc,cd->bd", x_mean, w5,
                                 precision=jax.lax.Precision.HIGHEST) + b5, 0.0)
    br5 = pad_c(br5).reshape(B, 1, Cp)

    # hebing gate weights, block order matching the in-kernel feat concat.
    wk = pad_c(p["k_w"][:, :, 0, 0].reshape(5, Cout)).reshape(1, 5 * Cp)
    bk = p["k_b"].reshape(1, 1)
    wt = pad_c(p["t_w"][:, :, 0, 0].reshape(5, Cout)).reshape(1, 5 * Cp)
    bt = p["t_b"].reshape(1, 1)

    # conv_cat, padded on both the 5*C input-channel blocks and the output.
    wc, bc = _fold_1x1(p["c_w"], p["c_b"], bn("c"))                       # (5C, C)
    wc = pad_c(wc).reshape(5, Cout, Cp)
    wc = jnp.pad(wc, ((0, 0), (0, Cp - Cout), (0, 0))).reshape(5 * Cp, Cp)
    bc = pad_c(bc)

    # VMEM budget: double-buffered blocks + resident weights + kernel temps,
    # capped below the chip's physical VMEM (v7x-safe, v5e/v6e not clamped).
    weights = (w1, b1, w2, b2, w3, b3, w4, b4, wk, bk, wt, bt, wc, bc)
    w_bytes = 4 * sum(int(a.size) for a in weights)
    blk_bytes = 4 * (Hp * Wp * Cin + Cp + HW * Cp)       # x_pad + br5 + out blocks
    tmp_bytes = 4 * 4 * HW * 5 * Cp                      # feat/gated/branch temps
    needed = 2 * (blk_bytes + w_bytes) + tmp_bytes + (2 << 20)
    try:
        phys_vmem = int(pltpu.get_tpu_info().vmem_capacity_bytes)
    except Exception:
        phys_vmem = 64 << 20                             # v7x-safe fallback
    vmem_limit = int(min(max(needed, 16 << 20), phys_vmem * 7 // 8))

    const2 = lambda shape: pl.BlockSpec(shape, lambda b: (0, 0))
    const3 = lambda shape: pl.BlockSpec(shape, lambda b: (0, 0, 0))

    kernel = functools.partial(_mdfa_kernel, H, W, PAD, dils)
    out_flat = pl.pallas_call(
        kernel,
        out_shape=jax.ShapeDtypeStruct((B, HW, Cp), f32),
        grid=(B,),
        in_specs=[
            pl.BlockSpec((1, Hp, Wp, Cin), lambda b: (b, 0, 0, 0)),   # padded x
            pl.BlockSpec((1, 1, Cp), lambda b: (b, 0, 0)),            # branch 5
            const2((Cin, Cp)), const2((1, Cp)),                       # branch 1
            const3((9, Cin, Cp)), const2((1, Cp)),                    # branch 2
            const3((9, Cin, Cp)), const2((1, Cp)),                    # branch 3
            const3((9, Cin, Cp)), const2((1, Cp)),                    # branch 4
            const2((1, 5 * Cp)), const2((1, 1)),                      # kongjian
            const2((1, 5 * Cp)), const2((1, 1)),                      # tongdao
            const2((5 * Cp, Cp)), const2((1, Cp)),                    # conv_cat
        ],
        out_specs=pl.BlockSpec((1, HW, Cp), lambda b: (b, 0, 0)),
        compiler_params=pltpu.CompilerParams(
            dimension_semantics=("parallel",),
            vmem_limit_bytes=vmem_limit),
    )(x_pad, br5, w1, b1, w2, b2, w3, b3, w4, b4, wk, bk, wt, bt, wc, bc)

    out = out_flat[:, :, :Cout].reshape(B, H, W, Cout)
    return jnp.transpose(out, (0, 3, 1, 2))


# ---------------------------------------------------------------------------
# Pure-JAX reference mirroring the PyTorch module (eval-mode BN).
# ---------------------------------------------------------------------------
def mdfa_reference(x, p):
    eps = 1e-5

    def conv(inp, w, b, dilation=1, padding=0):
        y = jax.lax.conv_general_dilated(
            inp, w, window_strides=(1, 1),
            padding=((padding, padding), (padding, padding)),
            rhs_dilation=(dilation, dilation),
            dimension_numbers=("NCHW", "OIHW", "NCHW"),
            precision=jax.lax.Precision.HIGHEST)
        return y + b[None, :, None, None]

    def bn(y, g, bt_, m, v):
        scale = g / jnp.sqrt(v + eps)
        shift = bt_ - m * scale
        return y * scale[None, :, None, None] + shift[None, :, None, None]

    def branch(name, dilation, padding):
        y = conv(x, p[name + "_w"], p[name + "_b"], dilation, padding)
        y = bn(y, p[name + "_bn_g"], p[name + "_bn_b"],
               p[name + "_bn_m"], p[name + "_bn_v"])
        return jnp.maximum(y, 0.0)

    c1 = branch("b1", 1, 0)
    c2 = branch("b2", 6, 6)
    c3 = branch("b3", 12, 12)
    c4 = branch("b4", 18, 18)

    g = jnp.mean(x, axis=2, keepdims=True)
    g = jnp.mean(g, axis=3, keepdims=True)
    g = conv(g, p["b5_w"], p["b5_b"])
    g = bn(g, p["b5_bn_g"], p["b5_bn_b"], p["b5_bn_m"], p["b5_bn_v"])
    g = jnp.maximum(g, 0.0)
    g = jnp.broadcast_to(g, c1.shape)            # bilinear upsample of 1x1 map

    feat = jnp.concatenate([c1, c2, c3, c4, g], axis=1)

    s = 1.0 / (1.0 + jnp.exp(-conv(feat, p["k_w"], p["k_b"])))  # kongjian
    u_k = feat * s
    gap = jnp.mean(feat, axis=(2, 3), keepdims=True)            # tongdao
    t = jnp.maximum(conv(gap, p["t_w"], p["t_b"]), 0.0)
    u_t = feat * t
    larry = jnp.maximum(u_t, u_k)

    gated = larry * feat
    out = conv(gated, p["c_w"], p["c_b"])
    out = bn(out, p["c_bn_g"], p["c_bn_b"], p["c_bn_m"], p["c_bn_v"])
    return jnp.maximum(out, 0.0)


# ---------------------------------------------------------------------------
# Deterministic parameter construction + smoke test.
# ---------------------------------------------------------------------------
def make_params(key, cin, cout):
    p = {}
    keys = iter(jax.random.split(key, 16))

    def conv_init(k, co, ci, ks):
        k1, k2 = jax.random.split(k)
        bound = 1.0 / math.sqrt(ci * ks * ks)
        w = jax.random.uniform(k1, (co, ci, ks, ks), jnp.float32, -bound, bound)
        b = jax.random.uniform(k2, (co,), jnp.float32, -bound, bound)
        return w, b

    def bn_init(k, c):
        k1, k2, k3, k4 = jax.random.split(k, 4)
        return (jax.random.uniform(k1, (c,), jnp.float32, 0.5, 1.5),
                0.1 * jax.random.normal(k2, (c,), jnp.float32),
                0.1 * jax.random.normal(k3, (c,), jnp.float32),
                jax.random.uniform(k4, (c,), jnp.float32, 0.5, 1.5))

    for name, ks in (("b1", 1), ("b2", 3), ("b3", 3), ("b4", 3), ("b5", 1)):
        p[name + "_w"], p[name + "_b"] = conv_init(next(keys), cout, cin, ks)
        g, bt_, m, v = bn_init(next(keys), cout)
        p[name + "_bn_g"], p[name + "_bn_b"] = g, bt_
        p[name + "_bn_m"], p[name + "_bn_v"] = m, v

    p["k_w"], p["k_b"] = conv_init(next(keys), 1, 5 * cout, 1)     # kongjian
    p["t_w"], p["t_b"] = conv_init(next(keys), 1, 5 * cout, 1)     # tongdao
    p["c_w"], p["c_b"] = conv_init(next(keys), cout, 5 * cout, 1)  # conv_cat
    g, bt_, m, v = bn_init(next(keys), cout)
    p["c_bn_g"], p["c_bn_b"], p["c_bn_m"], p["c_bn_v"] = g, bt_, m, v
    return p


if __name__ == "__main__":
    B, Cin, Cout, H, W = 2, 8, 8, 16, 16

    key = jax.random.PRNGKey(0)
    kx, kp = jax.random.split(key)
    x = jax.random.normal(kx, (B, Cin, H, W), jnp.float32)
    params = make_params(kp, Cin, Cout)

    out = mdfa_forward(x, params)
    out = jax.block_until_ready(out)

    ref = mdfa_reference(x, params)
    assert out.shape == (B, Cout, H, W)
    err = float(jnp.max(jnp.abs(out - ref)))
    assert err < 1e-3, f"mismatch vs reference: max abs err = {err}"

    print("KERNEL_OK")
</pallas_src>

<mosaic_0001>
module attributes {stable_mosaic.version = 11 : i64} {
  func.func @_mdfa_kernel(%arg0: i32, %arg1: memref<1x52x52x8xf32, #tpu.memory_space<vmem>>, %arg2: memref<1x1x128xf32, #tpu.memory_space<vmem>>, %arg3: memref<8x128xf32, #tpu.memory_space<vmem>>, %arg4: memref<1x128xf32, #tpu.memory_space<vmem>>, %arg5: memref<9x8x128xf32, #tpu.memory_space<vmem>>, %arg6: memref<1x128xf32, #tpu.memory_space<vmem>>, %arg7: memref<9x8x128xf32, #tpu.memory_space<vmem>>, %arg8: memref<1x128xf32, #tpu.memory_space<vmem>>, %arg9: memref<9x8x128xf32, #tpu.memory_space<vmem>>, %arg10: memref<1x128xf32, #tpu.memory_space<vmem>>, %arg11: memref<1x640xf32, #tpu.memory_space<vmem>>, %arg12: memref<1x1xf32, #tpu.memory_space<vmem>>, %arg13: memref<1x640xf32, #tpu.memory_space<vmem>>, %arg14: memref<1x1xf32, #tpu.memory_space<vmem>>, %arg15: memref<640x128xf32, #tpu.memory_space<vmem>>, %arg16: memref<1x128xf32, #tpu.memory_space<vmem>>, %arg17: memref<1x256x128xf32, #tpu.memory_space<vmem>>) attributes {dimension_semantics = [#tpu.dimension_semantics<parallel>], iteration_bounds = array<i64: 2>, scalar_prefetch = 0 : i64, scratch_operands = 0 : i64, tpu.core_type = #tpu.core_type<tc>, window_params = [{transform_indices = @transform_0, window_bounds = array<i64: 1, 52, 52, 8>}, {transform_indices = @transform_1, window_bounds = array<i64: 1, 1, 128>}, {pipeline_mode = #tpu.pipeline_mode<synchronous>, transform_indices = @transform_2, window_bounds = array<i64: 8, 128>}, {pipeline_mode = #tpu.pipeline_mode<synchronous>, transform_indices = @transform_3, window_bounds = array<i64: 1, 128>}, {pipeline_mode = #tpu.pipeline_mode<synchronous>, transform_indices = @transform_4, window_bounds = array<i64: 9, 8, 128>}, {pipeline_mode = #tpu.pipeline_mode<synchronous>, transform_indices = @transform_5, window_bounds = array<i64: 1, 128>}, {pipeline_mode = #tpu.pipeline_mode<synchronous>, transform_indices = @transform_6, window_bounds = array<i64: 9, 8, 128>}, {pipeline_mode = #tpu.pipeline_mode<synchronous>, transform_indices = @transform_7, window_bounds = array<i64: 1, 128>}, {pipeline_mode = #tpu.pipeline_mode<synchronous>, transform_indices = @transform_8, window_bounds = array<i64: 9, 8, 128>}, {pipeline_mode = #tpu.pipeline_mode<synchronous>, transform_indices = @transform_9, window_bounds = array<i64: 1, 128>}, {pipeline_mode = #tpu.pipeline_mode<synchronous>, transform_indices = @transform_10, window_bounds = array<i64: 1, 640>}, {pipeline_mode = #tpu.pipeline_mode<synchronous>, transform_indices = @transform_11, window_bounds = array<i64: 1, 1>}, {pipeline_mode = #tpu.pipeline_mode<synchronous>, transform_indices = @transform_12, window_bounds = array<i64: 1, 640>}, {pipeline_mode = #tpu.pipeline_mode<synchronous>, transform_indices = @transform_13, window_bounds = array<i64: 1, 1>}, {pipeline_mode = #tpu.pipeline_mode<synchronous>, transform_indices = @transform_14, window_bounds = array<i64: 640, 128>}, {pipeline_mode = #tpu.pipeline_mode<synchronous>, transform_indices = @transform_15, window_bounds = array<i64: 1, 128>}, {transform_indices = @transform_16, window_bounds = array<i64: 1, 256, 128>}]} {
    %c0 = arith.constant 0 : index
    %c18 = arith.constant 18 : index
    %c18_0 = arith.constant 18 : index
    %c0_1 = arith.constant 0 : index
    %0 = vector.load %arg1[%c0, %c18, %c18_0, %c0_1] : memref<1x52x52x8xf32, #tpu.memory_space<vmem>>, vector<1x16x16x8xf32>
    %1 = vector.shape_cast %0 : vector<1x16x16x8xf32> to vector<16x16x8xf32>
    %2 = vector.shape_cast %1 : vector<16x16x8xf32> to vector<256x8xf32>
    %c0_2 = arith.constant 0 : index
    %c0_3 = arith.constant 0 : index
    %3 = vector.load %arg3[%c0_2, %c0_3] : memref<8x128xf32, #tpu.memory_space<vmem>>, vector<8x128xf32>
    %cst = arith.constant dense<0.000000e+00> : vector<256x128xf32>
    %4 = tpu.matmul %2, %3, %cst {dimension_numbers = #tpu.dot_dimension_numbers<[1], [0], [0], [1], [0, 0, 1, 1], [], []>} : vector<256x8xf32>, vector<8x128xf32>, vector<256x128xf32> -> vector<256x128xf32>
    %c0_4 = arith.constant 0 : index
    %c0_5 = arith.constant 0 : index
    %5 = vector.load %arg4[%c0_4, %c0_5] : memref<1x128xf32, #tpu.memory_space<vmem>>, vector<1x128xf32>
    %6 = vector.broadcast %5 : vector<1x128xf32> to vector<256x128xf32>
    %7 = arith.addf %4, %6 : vector<256x128xf32>
    %cst_6 = arith.constant 0.000000e+00 : f32
    %8 = vector.broadcast %cst_6 : f32 to vector<256x128xf32>
    %9 = arith.maximumf %7, %8 : vector<256x128xf32>
    %c0_7 = arith.constant 0 : index
    %c12 = arith.constant 12 : index
    %c12_8 = arith.constant 12 : index
    %c0_9 = arith.constant 0 : index
    %10 = vector.load %arg1[%c0_7, %c12, %c12_8, %c0_9] : memref<1x52x52x8xf32, #tpu.memory_space<vmem>>, vector<1x16x16x8xf32>
    %11 = vector.shape_cast %10 : vector<1x16x16x8xf32> to vector<16x16x8xf32>
    %12 = vector.shape_cast %11 : vector<16x16x8xf32> to vector<256x8xf32>
    %c0_10 = arith.constant 0 : index
    %c0_11 = arith.constant 0 : index
    %c0_12 = arith.constant 0 : index
    %13 = vector.load %arg5[%c0_10, %c0_11, %c0_12] : memref<9x8x128xf32, #tpu.memory_space<vmem>>, vector<1x8x128xf32>
    %14 = vector.shape_cast %13 : vector<1x8x128xf32> to vector<8x128xf32>
    %cst_13 = arith.constant dense<0.000000e+00> : vector<256x128xf32>
    %15 = tpu.matmul %12, %14, %cst_13 {dimension_numbers = #tpu.dot_dimension_numbers<[1], [0], [0], [1], [0, 0, 1, 1], [], []>} : vector<256x8xf32>, vector<8x128xf32>, vector<256x128xf32> -> vector<256x128xf32>
    %c0_14 = arith.constant 0 : index
    %c12_15 = arith.constant 12 : index
    %c18_16 = arith.constant 18 : index
    %c0_17 = arith.constant 0 : index
    %16 = vector.load %arg1[%c0_14, %c12_15, %c18_16, %c0_17] : memref<1x52x52x8xf32, #tpu.memory_space<vmem>>, vector<1x16x16x8xf32>
    %17 = vector.shape_cast %16 : vector<1x16x16x8xf32> to vector<16x16x8xf32>
    %18 = vector.shape_cast %17 : vector<16x16x8xf32> to vector<256x8xf32>
    %c1 = arith.constant 1 : index
    %c0_18 = arith.constant 0 : index
    %c0_19 = arith.constant 0 : index
    %19 = vector.load %arg5[%c1, %c0_18, %c0_19] : memref<9x8x128xf32, #tpu.memory_space<vmem>>, vector<1x8x128xf32>
    %20 = vector.shape_cast %19 : vector<1x8x128xf32> to vector<8x128xf32>
    %cst_20 = arith.constant dense<0.000000e+00> : vector<256x128xf32>
    %21 = tpu.matmul %18, %20, %cst_20 {dimension_numbers = #tpu.dot_dimension_numbers<[1], [0], [0], [1], [0, 0, 1, 1], [], []>} : vector<256x8xf32>, vector<8x128xf32>, vector<256x128xf32> -> vector<256x128xf32>
    %22 = arith.addf %15, %21 : vector<256x128xf32>
    %c0_21 = arith.constant 0 : index
    %c12_22 = arith.constant 12 : index
    %c24 = arith.constant 24 : index
    %c0_23 = arith.constant 0 : index
    %23 = vector.load %arg1[%c0_21, %c12_22, %c24, %c0_23] : memref<1x52x52x8xf32, #tpu.memory_space<vmem>>, vector<1x16x16x8xf32>
    %24 = vector.shape_cast %23 : vector<1x16x16x8xf32> to vector<16x16x8xf32>
    %25 = vector.shape_cast %24 : vector<16x16x8xf32> to vector<256x8xf32>
    %c2 = arith.constant 2 : index
    %c0_24 = arith.constant 0 : index
    %c0_25 = arith.constant 0 : index
    %26 = vector.load %arg5[%c2, %c0_24, %c0_25] : memref<9x8x128xf32, #tpu.memory_space<vmem>>, vector<1x8x128xf32>
    %27 = vector.shape_cast %26 : vector<1x8x128xf32> to vector<8x128xf32>
    %cst_26 = arith.constant dense<0.000000e+00> : vector<256x128xf32>
    %28 = tpu.matmul %25, %27, %cst_26 {dimension_numbers = #tpu.dot_dimension_numbers<[1], [0], [0], [1], [0, 0, 1, 1], [], []>} : vector<256x8xf32>, vector<8x128xf32>, vector<256x128xf32> -> vector<256x128xf32>
    %29 = arith.addf %22, %28 : vector<256x128xf32>
    %c0_27 = arith.constant 0 : index
    %c18_28 = arith.constant 18 : index
    %c12_29 = arith.constant 12 : index
    %c0_30 = arith.constant 0 : index
    %30 = vector.load %arg1[%c0_27, %c18_28, %c12_29, %c0_30] : memref<1x52x52x8xf32, #tpu.memory_space<vmem>>, vector<1x16x16x8xf32>
    %31 = vector.shape_cast %30 : vector<1x16x16x8xf32> to vector<16x16x8xf32>
    %32 = vector.shape_cast %31 : vector<16x16x8xf32> to vector<256x8xf32>
    %c3 = arith.constant 3 : index
    %c0_31 = arith.constant 0 : index
    %c0_32 = arith.constant 0 : index
    %33 = vector.load %arg5[%c3, %c0_31, %c0_32] : memref<9x8x128xf32, #tpu.memory_space<vmem>>, vector<1x8x128xf32>
    %34 = vector.shape_cast %33 : vector<1x8x128xf32> to vector<8x128xf32>
    %cst_33 = arith.constant dense<0.000000e+00> : vector<256x128xf32>
    %35 = tpu.matmul %32, %34, %cst_33 {dimension_numbers = #tpu.dot_dimension_numbers<[1], [0], [0], [1], [0, 0, 1, 1], [], []>} : vector<256x8xf32>, vector<8x128xf32>, vector<256x128xf32> -> vector<256x128xf32>
    %36 = arith.addf %29, %35 : vector<256x128xf32>
    %c0_34 = arith.constant 0 : index
    %c18_35 = arith.constant 18 : index
    %c18_36 = arith.constant 18 : index
    %c0_37 = arith.constant 0 : index
    %37 = vector.load %arg1[%c0_34, %c18_35, %c18_36, %c0_37] : memref<1x52x52x8xf32, #tpu.memory_space<vmem>>, vector<1x16x16x8xf32>
    %38 = vector.shape_cast %37 : vector<1x16x16x8xf32> to vector<16x16x8xf32>
    %39 = vector.shape_cast %38 : vector<16x16x8xf32> to vector<256x8xf32>
    %c4 = arith.constant 4 : index
    %c0_38 = arith.constant 0 : index
    %c0_39 = arith.constant 0 : index
    %40 = vector.load %arg5[%c4, %c0_38, %c0_39] : memref<9x8x128xf32, #tpu.memory_space<vmem>>, vector<1x8x128xf32>
    %41 = vector.shape_cast %40 : vector<1x8x128xf32> to vector<8x128xf32>
    %cst_40 = arith.constant dense<0.000000e+00> : vector<256x128xf32>
    %42 = tpu.matmul %39, %41, %cst_40 {dimension_numbers = #tpu.dot_dimension_numbers<[1], [0], [0], [1], [0, 0, 1, 1], [], []>} : vector<256x8xf32>, vector<8x128xf32>, vector<256x128xf32> -> vector<256x128xf32>
    %43 = arith.addf %36, %42 : vector<256x128xf32>
    %c0_41 = arith.constant 0 : index
    %c18_42 = arith.constant 18 : index
    %c24_43 = arith.constant 24 : index
    %c0_44 = arith.constant 0 : index
    %44 = vector.load %arg1[%c0_41, %c18_42, %c24_43, %c0_44] : memref<1x52x52x8xf32, #tpu.memory_space<vmem>>, vector<1x16x16x8xf32>
    %45 = vector.shape_cast %44 : vector<1x16x16x8xf32> to vector<16x16x8xf32>
    %46 = vector.shape_cast %45 : vector<16x16x8xf32> to vector<256x8xf32>
    %c5 = arith.constant 5 : index
    %c0_45 = arith.constant 0 : index
    %c0_46 = arith.constant 0 : index
    %47 = vector.load %arg5[%c5, %c0_45, %c0_46] : memref<9x8x128xf32, #tpu.memory_space<vmem>>, vector<1x8x128xf32>
    %48 = vector.shape_cast %47 : vector<1x8x128xf32> to vector<8x128xf32>
    %cst_47 = arith.constant dense<0.000000e+00> : vector<256x128xf32>
    %49 = tpu.matmul %46, %48, %cst_47 {dimension_numbers = #tpu.dot_dimension_numbers<[1], [0], [0], [1], [0, 0, 1, 1], [], []>} : vector<256x8xf32>, vector<8x128xf32>, vector<256x128xf32> -> vector<256x128xf32>
    %50 = arith.addf %43, %49 : vector<256x128xf32>
    %c0_48 = arith.constant 0 : index
    %c24_49 = arith.constant 24 : index
    %c12_50 = arith.constant 12 : index
    %c0_51 = arith.constant 0 : index
    %51 = vector.load %arg1[%c0_48, %c24_49, %c12_50, %c0_51] : memref<1x52x52x8xf32, #tpu.memory_space<vmem>>, vector<1x16x16x8xf32>
    %52 = vector.shape_cast %51 : vector<1x16x16x8xf32> to vector<16x16x8xf32>
    %53 = vector.shape_cast %52 : vector<16x16x8xf32> to vector<256x8xf32>
    %c6 = arith.constant 6 : index
    %c0_52 = arith.constant 0 : index
    %c0_53 = arith.constant 0 : index
    %54 = vector.load %arg5[%c6, %c0_52, %c0_53] : memref<9x8x128xf32, #tpu.memory_space<vmem>>, vector<1x8x128xf32>
    %55 = vector.shape_cast %54 : vector<1x8x128xf32> to vector<8x128xf32>
    %cst_54 = arith.constant dense<0.000000e+00> : vector<256x128xf32>
    %56 = tpu.matmul %53, %55, %cst_54 {dimension_numbers = #tpu.dot_dimension_numbers<[1], [0], [0], [1], [0, 0, 1, 1], [], []>} : vector<256x8xf32>, vector<8x128xf32>, vector<256x128xf32> -> vector<256x128xf32>
    %57 = arith.addf %50, %56 : vector<256x128xf32>
    %c0_55 = arith.constant 0 : index
    %c24_56 = arith.constant 24 : index
    %c18_57 = arith.constant 18 : index
    %c0_58 = arith.constant 0 : index
    %58 = vector.load %arg1[%c0_55, %c24_56, %c18_57, %c0_58] : memref<1x52x52x8xf32, #tpu.memory_space<vmem>>, vector<1x16x16x8xf32>
    %59 = vector.shape_cast %58 : vector<1x16x16x8xf32> to vector<16x16x8xf32>
    %60 = vector.shape_cast %59 : vector<16x16x8xf32> to vector<256x8xf32>
    %c7 = arith.constant 7 : index
    %c0_59 = arith.constant 0 : index
    %c0_60 = arith.constant 0 : index
    %61 = vector.load %arg5[%c7, %c0_59, %c0_60] : memref<9x8x128xf32, #tpu.memory_space<vmem>>, vector<1x8x128xf32>
    %62 = vector.shape_cast %61 : vector<1x8x128xf32> to vector<8x128xf32>
    %cst_61 = arith.constant dense<0.000000e+00> : vector<256x128xf32>
    %63 = tpu.matmul %60, %62, %cst_61 {dimension_numbers = #tpu.dot_dimension_numbers<[1], [0], [0], [1], [0, 0, 1, 1], [], []>} : vector<256x8xf32>, vector<8x128xf32>, vector<256x128xf32> -> vector<256x128xf32>
    %64 = arith.addf %57, %63 : vector<256x128xf32>
    %c0_62 = arith.constant 0 : index
    %c24_63 = arith.constant 24 : index
    %c24_64 = arith.constant 24 : index
    %c0_65 = arith.constant 0 : index
    %65 = vector.load %arg1[%c0_62, %c24_63, %c24_64, %c0_65] : memref<1x52x52x8xf32, #tpu.memory_space<vmem>>, vector<1x16x16x8xf32>
    %66 = vector.shape_cast %65 : vector<1x16x16x8xf32> to vector<16x16x8xf32>
    %67 = vector.shape_cast %66 : vector<16x16x8xf32> to vector<256x8xf32>
    %c8 = arith.constant 8 : index
    %c0_66 = arith.constant 0 : index
    %c0_67 = arith.constant 0 : index
    %68 = vector.load %arg5[%c8, %c0_66, %c0_67] : memref<9x8x128xf32, #tpu.memory_space<vmem>>, vector<1x8x128xf32>
    %69 = vector.shape_cast %68 : vector<1x8x128xf32> to vector<8x128xf32>
    %cst_68 = arith.constant dense<0.000000e+00> : vector<256x128xf32>
    %70 = tpu.matmul %67, %69, %cst_68 {dimension_numbers = #tpu.dot_dimension_numbers<[1], [0], [0], [1], [0, 0, 1, 1], [], []>} : vector<256x8xf32>, vector<8x128xf32>, vector<256x128xf32> -> vector<256x128xf32>
    %71 = arith.addf %64, %70 : vector<256x128xf32>
    %c0_69 = arith.constant 0 : index
    %c0_70 = arith.constant 0 : index
    %72 = vector.load %arg6[%c0_69, %c0_70] : memref<1x128xf32, #tpu.memory_space<vmem>>, vector<1x128xf32>
    %73 = vector.broadcast %72 : vector<1x128xf32> to vector<256x128xf32>
    %74 = arith.addf %71, %73 : vector<256x128xf32>
    %cst_71 = arith.constant 0.000000e+00 : f32
    %75 = vector.broadcast %cst_71 : f32 to vector<256x128xf32>
    %76 = arith.maximumf %74, %75 : vector<256x128xf32>
    %c0_72 = arith.constant 0 : index
    %c6_73 = arith.constant 6 : index
    %c6_74 = arith.constant 6 : index
    %c0_75 = arith.constant 0 : index
    %77 = vector.load %arg1[%c0_72, %c6_73, %c6_74, %c0_75] : memref<1x52x52x8xf32, #tpu.memory_space<vmem>>, vector<1x16x16x8xf32>
    %78 = vector.shape_cast %77 : vector<1x16x16x8xf32> to vector<16x16x8xf32>
    %79 = vector.shape_cast %78 : vector<16x16x8xf32> to vector<256x8xf32>
    %c0_76 = arith.constant 0 : index
    %c0_77 = arith.constant 0 : index
    %c0_78 = arith.constant 0 : index
    %80 = vector.load %arg7[%c0_76, %c0_77, %c0_78] : memref<9x8x128xf32, #tpu.memory_space<vmem>>, vector<1x8x128xf32>
    %81 = vector.shape_cast %80 : vector<1x8x128xf32> to vector<8x128xf32>
    %cst_79 = arith.constant dense<0.000000e+00> : vector<256x128xf32>
    %82 = tpu.matmul %79, %81, %cst_79 {dimension_numbers = #tpu.dot_dimension_numbers<[1], [0], [0], [1], [0, 0, 1, 1], [], []>} : vector<256x8xf32>, vector<8x128xf32>, vector<256x128xf32> -> vector<256x128xf32>
    %c0_80 = arith.constant 0 : index
    %c6_81 = arith.constant 6 : index
    %c18_82 = arith.constant 18 : index
    %c0_83 = arith.constant 0 : index
    %83 = vector.load %arg1[%c0_80, %c6_81, %c18_82, %c0_83] : memref<1x52x52x8xf32, #tpu.memory_space<vmem>>, vector<1x16x16x8xf32>
    %84 = vector.shape_cast %83 : vector<1x16x16x8xf32> to vector<16x16x8xf32>
    %85 = vector.shape_cast %84 : vector<16x16x8xf32> to vector<256x8xf32>
    %c1_84 = arith.constant 1 : index
    %c0_85 = arith.constant 0 : index
    %c0_86 = arith.constant 0 : index
    %86 = vector.load %arg7[%c1_84, %c0_85, %c0_86] : memref<9x8x128xf32, #tpu.memory_space<vmem>>, vector<1x8x128xf32>
    %87 = vector.shape_cast %86 : vector<1x8x128xf32> to vector<8x128xf32>
    %cst_87 = arith.constant dense<0.000000e+00> : vector<256x128xf32>
    %88 = tpu.matmul %85, %87, %cst_87 {dimension_numbers = #tpu.dot_dimension_numbers<[1], [0], [0], [1], [0, 0, 1, 1], [], []>} : vector<256x8xf32>, vector<8x128xf32>, vector<256x128xf32> -> vector<256x128xf32>
    %89 = arith.addf %82, %88 : vector<256x128xf32>
    %c0_88 = arith.constant 0 : index
    %c6_89 = arith.constant 6 : index
    %c30 = arith.constant 30 : index
    %c0_90 = arith.constant 0 : index
    %90 = vector.load %arg1[%c0_88, %c6_89, %c30, %c0_90] : memref<1x52x52x8xf32, #tpu.memory_space<vmem>>, vector<1x16x16x8xf32>
    %91 = vector.shape_cast %90 : vector<1x16x16x8xf32> to vector<16x16x8xf32>
    %92 = vector.shape_cast %91 : vector<16x16x8xf32> to vector<256x8xf32>
    %c2_91 = arith.constant 2 : index
    %c0_92 = arith.constant 0 : index
    %c0_93 = arith.constant 0 : index
    %93 = vector.load %arg7[%c2_91, %c0_92, %c0_93] : memref<9x8x128xf32, #tpu.memory_space<vmem>>, vector<1x8x128xf32>
    %94 = vector.shape_cast %93 : vector<1x8x128xf32> to vector<8x128xf32>
    %cst_94 = arith.constant dense<0.000000e+00> : vector<256x128xf32>
    %95 = tpu.matmul %92, %94, %cst_94 {dimension_numbers = #tpu.dot_dimension_numbers<[1], [0], [0], [1], [0, 0, 1, 1], [], []>} : vector<256x8xf32>, vector<8x128xf32>, vector<256x128xf32> -> vector<256x128xf32>
    %96 = arith.addf %89, %95 : vector<256x128xf32>
    %c0_95 = arith.constant 0 : index
    %c18_96 = arith.constant 18 : index
    %c6_97 = arith.constant 6 : index
    %c0_98 = arith.constant 0 : index
    %97 = vector.load %arg1[%c0_95, %c18_96, %c6_97, %c0_98] : memref<1x52x52x8xf32, #tpu.memory_space<vmem>>, vector<1x16x16x8xf32>
    %98 = vector.shape_cast %97 : vector<1x16x16x8xf32> to vector<16x16x8xf32>
    %99 = vector.shape_cast %98 : vector<16x16x8xf32> to vector<256x8xf32>
    %c3_99 = arith.constant 3 : index
    %c0_100 = arith.constant 0 : index
    %c0_101 = arith.constant 0 : index
    %100 = vector.load %arg7[%c3_99, %c0_100, %c0_101] : memref<9x8x128xf32, #tpu.memory_space<vmem>>, vector<1x8x128xf32>
    %101 = vector.shape_cast %100 : vector<1x8x128xf32> to vector<8x128xf32>
    %cst_102 = arith.constant dense<0.000000e+00> : vector<256x128xf32>
    %102 = tpu.matmul %99, %101, %cst_102 {dimension_numbers = #tpu.dot_dimension_numbers<[1], [0], [0], [1], [0, 0, 1, 1], [], []>} : vector<256x8xf32>, vector<8x128xf32>, vector<256x128xf32> -> vector<256x128xf32>
    %103 = arith.addf %96, %102 : vector<256x128xf32>
    %c0_103 = arith.constant 0 : index
    %c18_104 = arith.constant 18 : index
    %c18_105 = arith.constant 18 : index
    %c0_106 = arith.constant 0 : index
    %104 = vector.load %arg1[%c0_103, %c18_104, %c18_105, %c0_106] : memref<1x52x52x8xf32, #tpu.memory_space<vmem>>, vector<1x16x16x8xf32>
    %105 = vector.shape_cast %104 : vector<1x16x16x8xf32> to vector<16x16x8xf32>
    %106 = vector.shape_cast %105 : vector<16x16x8xf32> to vector<256x8xf32>
    %c4_107 = arith.constant 4 : index
    %c0_108 = arith.constant 0 : index
    %c0_109 = arith.constant 0 : index
    %107 = vector.load %arg7[%c4_107, %c0_108, %c0_109] : memref<9x8x128xf32, #tpu.memory_space<vmem>>, vector<1x8x128xf32>
    %108 = vector.shape_cast %107 : vector<1x8x128xf32> to vector<8x128xf32>
    %cst_110 = arith.constant dense<0.000000e+00> : vector<256x128xf32>
    %109 = tpu.matmul %106, %108, %cst_110 {dimension_numbers = #tpu.dot_dimension_numbers<[1], [0], [0], [1], [0, 0, 1, 1], [], []>} : vector<256x8xf32>, vector<8x128xf32>, vector<256x128xf32> -> vector<256x128xf32>
    %110 = arith.addf %103, %109 : vector<256x128xf32>
    %c0_111 = arith.constant 0 : index
    %c18_112 = arith.constant 18 : index
    %c30_113 = arith.constant 30 : index
    %c0_114 = arith.constant 0 : index
    %111 = vector.load %arg1[%c0_111, %c18_112, %c30_113, %c0_114] : memref<1x52x52x8xf32, #tpu.memory_space<vmem>>, vector<1x16x16x8xf32>
    %112 = vector.shape_cast %111 : vector<1x16x16x8xf32> to vector<16x16x8xf32>
    %113 = vector.shape_cast %112 : vector<16x16x8xf32> to vector<256x8xf32>
    %c5_115 = arith.constant 5 : index
    %c0_116 = arith.constant 0 : index
    %c0_117 = arith.constant 0 : index
    %114 = vector.load %arg7[%c5_115, %c0_116, %c0_117] : memref<9x8x128xf32, #tpu.memory_space<vmem>>, vector<1x8x128xf32>
    %115 = vector.shape_cast %114 : vector<1x8x128xf32> to vector<8x128xf32>
    %cst_118 = arith.constant dense<0.000000e+00> : vector<256x128xf32>
    %116 = tpu.matmul %113, %115, %cst_118 {dimension_numbers = #tpu.dot_dimension_numbers<[1], [0], [0], [1], [0, 0, 1, 1], [], []>} : vector<256x8xf32>, vector<8x128xf32>, vector<256x128xf32> -> vector<256x128xf32>
    %117 = arith.addf %110, %116 : vector<256x128xf32>
    %c0_119 = arith.constant 0 : index
    %c30_120 = arith.constant 30 : index
    %c6_121 = arith.constant 6 : index
    %c0_122 = arith.constant 0 : index
    %118 = vector.load %arg1[%c0_119, %c30_120, %c6_121, %c0_122] : memref<1x52x52x8xf32, #tpu.memory_space<vmem>>, vector<1x16x16x8xf32>
    %119 = vector.shape_cast %118 : vector<1x16x16x8xf32> to vector<16x16x8xf32>
    %120 = vector.shape_cast %119 : vector<16x16x8xf32> to vector<256x8xf32>
    %c6_123 = arith.constant 6 : index
    %c0_124 = arith.constant 0 : index
    %c0_125 = arith.constant 0 : index
    %121 = vector.load %arg7[%c6_123, %c0_124, %c0_125] : memref<9x8x128xf32, #tpu.memory_space<vmem>>, vector<1x8x128xf32>
    %122 = vector.shape_cast %121 : vector<1x8x128xf32> to vector<8x128xf32>
    %cst_126 = arith.constant dense<0.000000e+00> : vector<256x128xf32>
    %123 = tpu.matmul %120, %122, %cst_126 {dimension_numbers = #tpu.dot_dimension_numbers<[1], [0], [0], [1], [0, 0, 1, 1], [], []>} : vector<256x8xf32>, vector<8x128xf32>, vector<256x128xf32> -> vector<256x128xf32>
    %124 = arith.addf %117, %123 : vector<256x128xf32>
    %c0_127 = arith.constant 0 : index
    %c30_128 = arith.constant 30 : index
    %c18_129 = arith.constant 18 : index
    %c0_130 = arith.constant 0 : index
    %125 = vector.load %arg1[%c0_127, %c30_128, %c18_129, %c0_130] : memref<1x52x52x8xf32, #tpu.memory_space<vmem>>, vector<1x16x16x8xf32>
    %126 = vector.shape_cast %125 : vector<1x16x16x8xf32> to vector<16x16x8xf32>
    %127 = vector.shape_cast %126 : vector<16x16x8xf32> to vector<256x8xf32>
    %c7_131 = arith.constant 7 : index
    %c0_132 = arith.constant 0 : index
    %c0_133 = arith.constant 0 : index
    %128 = vector.load %arg7[%c7_131, %c0_132, %c0_133] : memref<9x8x128xf32, #tpu.memory_space<vmem>>, vector<1x8x128xf32>
    %129 = vector.shape_cast %128 : vector<1x8x128xf32> to vector<8x128xf32>
    %cst_134 = arith.constant dense<0.000000e+00> : vector<256x128xf32>
    %130 = tpu.matmul %127, %129, %cst_134 {dimension_numbers = #tpu.dot_dimension_numbers<[1], [0], [0], [1], [0, 0, 1, 1], [], []>} : vector<256x8xf32>, vector<8x128xf32>, vector<256x128xf32> -> vector<256x128xf32>
    %131 = arith.addf %124, %130 : vector<256x128xf32>
    %c0_135 = arith.constant 0 : index
    %c30_136 = arith.constant 30 : index
    %c30_137 = arith.constant 30 : index
    %c0_138 = arith.constant 0 : index
    %132 = vector.load %arg1[%c0_135, %c30_136, %c30_137, %c0_138] : memref<1x52x52x8xf32, #tpu.memory_space<vmem>>, vector<1x16x16x8xf32>
    %133 = vector.shape_cast %132 : vector<1x16x16x8xf32> to vector<16x16x8xf32>
    %134 = vector.shape_cast %133 : vector<16x16x8xf32> to vector<256x8xf32>
    %c8_139 = arith.constant 8 : index
    %c0_140 = arith.constant 0 : index
    %c0_141 = arith.constant 0 : index
    %135 = vector.load %arg7[%c8_139, %c0_140, %c0_141] : memref<9x8x128xf32, #tpu.memory_space<vmem>>, vector<1x8x128xf32>
    %136 = vector.shape_cast %135 : vector<1x8x128xf32> to vector<8x128xf32>
    %cst_142 = arith.constant dense<0.000000e+00> : vector<256x128xf32>
    %137 = tpu.matmul %134, %136, %cst_142 {dimension_numbers = #tpu.dot_dimension_numbers<[1], [0], [0], [1], [0, 0, 1, 1], [], []>} : vector<256x8xf32>, vector<8x128xf32>, vector<256x128xf32> -> vector<256x128xf32>
    %138 = arith.addf %131, %137 : vector<256x128xf32>
    %c0_143 = arith.constant 0 : index
    %c0_144 = arith.constant 0 : index
    %139 = vector.load %arg8[%c0_143, %c0_144] : memref<1x128xf32, #tpu.memory_space<vmem>>, vector<1x128xf32>
    %140 = vector.broadcast %139 : vector<1x128xf32> to vector<256x128xf32>
    %141 = arith.addf %138, %140 : vector<256x128xf32>
    %cst_145 = arith.constant 0.000000e+00 : f32
    %142 = vector.broadcast %cst_145 : f32 to vector<256x128xf32>
    %143 = arith.maximumf %141, %142 : vector<256x128xf32>
    %c0_146 = arith.constant 0 : index
    %c0_147 = arith.constant 0 : index
    %c0_148 = arith.constant 0 : index
    %c0_149 = arith.constant 0 : index
    %144 = vector.load %arg1[%c0_146, %c0_147, %c0_148, %c0_149] : memref<1x52x52x8xf32, #tpu.memory_space<vmem>>, vector<1x16x16x8xf32>
    %145 = vector.shape_cast %144 : vector<1x16x16x8xf32> to vector<16x16x8xf32>
    %146 = vector.shape_cast %145 : vector<16x16x8xf32> to vector<256x8xf32>
    %c0_150 = arith.constant 0 : index
    %c0_151 = arith.constant 0 : index
    %c0_152 = arith.constant 0 : index
    %147 = vector.load %arg9[%c0_150, %c0_151, %c0_152] : memref<9x8x128xf32, #tpu.memory_space<vmem>>, vector<1x8x128xf32>
    %148 = vector.shape_cast %147 : vector<1x8x128xf32> to vector<8x128xf32>
    %cst_153 = arith.constant dense<0.000000e+00> : vector<256x128xf32>
    %149 = tpu.matmul %146, %148, %cst_153 {dimension_numbers = #tpu.dot_dimension_numbers<[1], [0], [0], [1], [0, 0, 1, 1], [], []>} : vector<256x8xf32>, vector<8x128xf32>, vector<256x128xf32> -> vector<256x128xf32>
    %c0_154 = arith.constant 0 : index
    %c0_155 = arith.constant 0 : index
    %c18_156 = arith.constant 18 : index
    %c0_157 = arith.constant 0 : index
    %150 = vector.load %arg1[%c0_154, %c0_155, %c18_156, %c0_157] : memref<1x52x52x8xf32, #tpu.memory_space<vmem>>, vector<1x16x16x8xf32>
    %151 = vector.shape_cast %150 : vector<1x16x16x8xf32> to vector<16x16x8xf32>
    %152 = vector.shape_cast %151 : vector<16x16x8xf32> to vector<256x8xf32>
    %c1_158 = arith.constant 1 : index
    %c0_159 = arith.constant 0 : index
    %c0_160 = arith.constant 0 : index
    %153 = vector.load %arg9[%c1_158, %c0_159, %c0_160] : memref<9x8x128xf32, #tpu.memory_space<vmem>>, vector<1x8x128xf32>
    %154 = vector.shape_cast %153 : vector<1x8x128xf32> to vector<8x128xf32>
    %cst_161 = arith.constant dense<0.000000e+00> : vector<256x128xf32>
    %155 = tpu.matmul %152, %154, %cst_161 {dimension_numbers = #tpu.dot_dimension_numbers<[1], [0], [0], [1], [0, 0, 1, 1], [], []>} : vector<256x8xf32>, vector<8x128xf32>, vector<256x128xf32> -> vector<256x128xf32>
    %156 = arith.addf %149, %155 : vector<256x128xf32>
    %c0_162 = arith.constant 0 : index
    %c0_163 = arith.constant 0 : index
    %c36 = arith.constant 36 : index
    %c0_164 = arith.constant 0 : index
    %157 = vector.load %arg1[%c0_162, %c0_163, %c36, %c0_164] : memref<1x52x52x8xf32, #tpu.memory_space<vmem>>, vector<1x16x16x8xf32>
    %158 = vector.shape_cast %157 : vector<1x16x16x8xf32> to vector<16x16x8xf32>
    %159 = vector.shape_cast %158 : vector<16x16x8xf32> to vector<256x8xf32>
    %c2_165 = arith.constant 2 : index
    %c0_166 = arith.constant 0 : index
    %c0_167 = arith.constant 0 : index
    %160 = vector.load %arg9[%c2_165, %c0_166, %c0_167] : memref<9x8x128xf32, #tpu.memory_space<vmem>>, vector<1x8x128xf32>
    %161 = vector.shape_cast %160 : vector<1x8x128xf32> to vector<8x128xf32>
    %cst_168 = arith.constant dense<0.000000e+00> : vector<256x128xf32>
    %162 = tpu.matmul %159, %161, %cst_168 {dimension_numbers = #tpu.dot_dimension_numbers<[1], [0], [0], [1], [0, 0, 1, 1], [], []>} : vector<256x8xf32>, vector<8x128xf32>, vector<256x128xf32> -> vector<256x128xf32>
    %163 = arith.addf %156, %162 : vector<256x128xf32>
    %c0_169 = arith.constant 0 : index
    %c18_170 = arith.constant 18 : index
    %c0_171 = arith.constant 0 : index
    %c0_172 = arith.constant 0 : index
    %164 = vector.load %arg1[%c0_169, %c18_170, %c0_171, %c0_172] : memref<1x52x52x8xf32, #tpu.memory_space<vmem>>, vector<1x16x16x8xf32>
    %165 = vector.shape_cast %164 : vector<1x16x16x8xf32> to vector<16x16x8xf32>
    %166 = vector.shape_cast %165 : vector<16x16x8xf32> to vector<256x8xf32>
    %c3_173 = arith.constant 3 : index
    %c0_174 = arith.constant 0 : index
    %c0_175 = arith.constant 0 : index
    %167 = vector.load %arg9[%c3_173, %c0_174, %c0_175] : memref<9x8x128xf32, #tpu.memory_space<vmem>>, vector<1x8x128xf32>
    %168 = vector.shape_cast %167 : vector<1x8x128xf32> to vector<8x128xf32>
    %cst_176 = arith.constant dense<0.000000e+00> : vector<256x128xf32>
    %169 = tpu.matmul %166, %168, %cst_176 {dimension_numbers = #tpu.dot_dimension_numbers<[1], [0], [0], [1], [0, 0, 1, 1], [], []>} : vector<256x8xf32>, vector<8x128xf32>, vector<256x128xf32> -> vector<256x128xf32>
    %170 = arith.addf %163, %169 : vector<256x128xf32>
    %c0_177 = arith.constant 0 : index
    %c18_178 = arith.constant 18 : index
    %c18_179 = arith.constant 18 : index
    %c0_180 = arith.constant 0 : index
    %171 = vector.load %arg1[%c0_177, %c18_178, %c18_179, %c0_180] : memref<1x52x52x8xf32, #tpu.memory_space<vmem>>, vector<1x16x16x8xf32>
    %172 = vector.shape_cast %171 : vector<1x16x16x8xf32> to vector<16x16x8xf32>
    %173 = vector.shape_cast %172 : vector<16x16x8xf32> to vector<256x8xf32>
    %c4_181 = arith.constant 4 : index
    %c0_182 = arith.constant 0 : index
    %c0_183 = arith.constant 0 : index
    %174 = vector.load %arg9[%c4_181, %c0_182, %c0_183] : memref<9x8x128xf32, #tpu.memory_space<vmem>>, vector<1x8x128xf32>
    %175 = vector.shape_cast %174 : vector<1x8x128xf32> to vector<8x128xf32>
    %cst_184 = arith.constant dense<0.000000e+00> : vector<256x128xf32>
    %176 = tpu.matmul %173, %175, %cst_184 {dimension_numbers = #tpu.dot_dimension_numbers<[1], [0], [0], [1], [0, 0, 1, 1], [], []>} : vector<256x8xf32>, vector<8x128xf32>, vector<256x128xf32> -> vector<256x128xf32>
    %177 = arith.addf %170, %176 : vector<256x128xf32>
    %c0_185 = arith.constant 0 : index
    %c18_186 = arith.constant 18 : index
    %c36_187 = arith.constant 36 : index
    %c0_188 = arith.constant 0 : index
    %178 = vector.load %arg1[%c0_185, %c18_186, %c36_187, %c0_188] : memref<1x52x52x8xf32, #tpu.memory_space<vmem>>, vector<1x16x16x8xf32>
    %179 = vector.shape_cast %178 : vector<1x16x16x8xf32> to vector<16x16x8xf32>
    %180 = vector.shape_cast %179 : vector<16x16x8xf32> to vector<256x8xf32>
    %c5_189 = arith.constant 5 : index
    %c0_190 = arith.constant 0 : index
    %c0_191 = arith.constant 0 : index
    %181 = vector.load %arg9[%c5_189, %c0_190, %c0_191] : memref<9x8x128xf32, #tpu.memory_space<vmem>>, vector<1x8x128xf32>
    %182 = vector.shape_cast %181 : vector<1x8x128xf32> to vector<8x128xf32>
    %cst_192 = arith.constant dense<0.000000e+00> : vector<256x128xf32>
    %183 = tpu.matmul %180, %182, %cst_192 {dimension_numbers = #tpu.dot_dimension_numbers<[1], [0], [0], [1], [0, 0, 1, 1], [], []>} : vector<256x8xf32>, vector<8x128xf32>, vector<256x128xf32> -> vector<256x128xf32>
    %184 = arith.addf %177, %183 : vector<256x128xf32>
    %c0_193 = arith.constant 0 : index
    %c36_194 = arith.constant 36 : index
    %c0_195 = arith.constant 0 : index
    %c0_196 = arith.constant 0 : index
    %185 = vector.load %arg1[%c0_193, %c36_194, %c0_195, %c0_196] : memref<1x52x52x8xf32, #tpu.memory_space<vmem>>, vector<1x16x16x8xf32>
    %186 = vector.shape_cast %185 : vector<1x16x16x8xf32> to vector<16x16x8xf32>
    %187 = vector.shape_cast %186 : vector<16x16x8xf32> to vector<256x8xf32>
    %c6_197 = arith.constant 6 : index
    %c0_198 = arith.constant 0 : index
    %c0_199 = arith.constant 0 : index
    %188 = vector.load %arg9[%c6_197, %c0_198, %c0_199] : memref<9x8x128xf32, #tpu.memory_space<vmem>>, vector<1x8x128xf32>
    %189 = vector.shape_cast %188 : vector<1x8x128xf32> to vector<8x128xf32>
    %cst_200 = arith.constant dense<0.000000e+00> : vector<256x128xf32>
    %190 = tpu.matmul %187, %189, %cst_200 {dimension_numbers = #tpu.dot_dimension_numbers<[1], [0], [0], [1], [0, 0, 1, 1], [], []>} : vector<256x8xf32>, vector<8x128xf32>, vector<256x128xf32> -> vector<256x128xf32>
    %191 = arith.addf %184, %190 : vector<256x128xf32>
    %c0_201 = arith.constant 0 : index
    %c36_202 = arith.constant 36 : index
    %c18_203 = arith.constant 18 : index
    %c0_204 = arith.constant 0 : index
    %192 = vector.load %arg1[%c0_201, %c36_202, %c18_203, %c0_204] : memref<1x52x52x8xf32, #tpu.memory_space<vmem>>, vector<1x16x16x8xf32>
    %193 = vector.shape_cast %192 : vector<1x16x16x8xf32> to vector<16x16x8xf32>
    %194 = vector.shape_cast %193 : vector<16x16x8xf32> to vector<256x8xf32>
    %c7_205 = arith.constant 7 : index
    %c0_206 = arith.constant 0 : index
    %c0_207 = arith.constant 0 : index
    %195 = vector.load %arg9[%c7_205, %c0_206, %c0_207] : memref<9x8x128xf32, #tpu.memory_space<vmem>>, vector<1x8x128xf32>
    %196 = vector.shape_cast %195 : vector<1x8x128xf32> to vector<8x128xf32>
    %cst_208 = arith.constant dense<0.000000e+00> : vector<256x128xf32>
    %197 = tpu.matmul %194, %196, %cst_208 {dimension_numbers = #tpu.dot_dimension_numbers<[1], [0], [0], [1], [0, 0, 1, 1], [], []>} : vector<256x8xf32>, vector<8x128xf32>, vector<256x128xf32> -> vector<256x128xf32>
    %198 = arith.addf %191, %197 : vector<256x128xf32>
    %c0_209 = arith.constant 0 : index
    %c36_210 = arith.constant 36 : index
    %c36_211 = arith.constant 36 : index
    %c0_212 = arith.constant 0 : index
    %199 = vector.load %arg1[%c0_209, %c36_210, %c36_211, %c0_212] : memref<1x52x52x8xf32, #tpu.memory_space<vmem>>, vector<1x16x16x8xf32>
    %200 = vector.shape_cast %199 : vector<1x16x16x8xf32> to vector<16x16x8xf32>
    %201 = vector.shape_cast %200 : vector<16x16x8xf32> to vector<256x8xf32>
    %c8_213 = arith.constant 8 : index
    %c0_214 = arith.constant 0 : index
    %c0_215 = arith.constant 0 : index
    %202 = vector.load %arg9[%c8_213, %c0_214, %c0_215] : memref<9x8x128xf32, #tpu.memory_space<vmem>>, vector<1x8x128xf32>
    %203 = vector.shape_cast %202 : vector<1x8x128xf32> to vector<8x128xf32>
    %cst_216 = arith.constant dense<0.000000e+00> : vector<256x128xf32>
    %204 = tpu.matmul %201, %203, %cst_216 {dimension_numbers = #tpu.dot_dimension_numbers<[1], [0], [0], [1], [0, 0, 1, 1], [], []>} : vector<256x8xf32>, vector<8x128xf32>, vector<256x128xf32> -> vector<256x128xf32>
    %205 = arith.addf %198, %204 : vector<256x128xf32>
    %c0_217 = arith.constant 0 : index
    %c0_218 = arith.constant 0 : index
    %206 = vector.load %arg10[%c0_217, %c0_218] : memref<1x128xf32, #tpu.memory_space<vmem>>, vector<1x128xf32>
    %207 = vector.broadcast %206 : vector<1x128xf32> to vector<256x128xf32>
    %208 = arith.addf %205, %207 : vector<256x128xf32>
    %cst_219 = arith.constant 0.000000e+00 : f32
    %209 = vector.broadcast %cst_219 : f32 to vector<256x128xf32>
    %210 = arith.maximumf %208, %209 : vector<256x128xf32>
    %c0_220 = arith.constant 0 : index
    %c0_221 = arith.constant 0 : index
    %c0_222 = arith.constant 0 : index
    %211 = vector.load %arg2[%c0_220, %c0_221, %c0_222] : memref<1x1x128xf32, #tpu.memory_space<vmem>>, vector<1x1x128xf32>
    %212 = vector.shape_cast %211 : vector<1x1x128xf32> to vector<1x128xf32>
    %213 = vector.shape_cast %212 : vector<1x128xf32> to vector<1x128xf32>
    %214 = vector.broadcast %213 : vector<1x128xf32> to vector<256x128xf32>
    %215 = tpu.concatenate %9, %76, %143, %210, %214 in 1 : vector<256x128xf32>, vector<256x128xf32>, vector<256x128xf32>, vector<256x128xf32>, vector<256x128xf32> -> vector<256x640xf32>
    %c0_223 = arith.constant 0 : index
    %c0_224 = arith.constant 0 : index
    %216 = vector.load %arg11[%c0_223, %c0_224] : memref<1x640xf32, #tpu.memory_space<vmem>>, vector<1x640xf32>
    %217 = vector.broadcast %216 : vector<1x640xf32> to vector<256x640xf32>
    %218 = arith.mulf %215, %217 : vector<256x640xf32>
    %cst_225 = arith.constant dense<0.000000e+00> : vector<256xf32>
    %219 = vector.multi_reduction <add>, %218, %cst_225 [1] : vector<256x640xf32> to vector<256xf32>
    %220 = vector.shape_cast %219 : vector<256xf32> to vector<256x1xf32>
    %c0_226 = arith.constant 0 : index
    %c0_227 = arith.constant 0 : index
    %221 = vector.load %arg12[%c0_226, %c0_227] : memref<1x1xf32, #tpu.memory_space<vmem>>, vector<1x1xf32>
    %222 = vector.broadcast %221 : vector<1x1xf32> to vector<256x1xf32>
    %223 = arith.addf %220, %222 : vector<256x1xf32>
    %cst_228 = arith.constant 0.000000e+00 : f32
    %224 = vector.broadcast %cst_228 : f32 to vector<256x1xf32>
    %225 = arith.subf %224, %223 : vector<256x1xf32>
    %226 = math.exp %225 : vector<256x1xf32>
    %cst_229 = arith.constant 1.000000e+00 : f32
    %227 = vector.broadcast %cst_229 : f32 to vector<256x1xf32>
    %228 = arith.addf %227, %226 : vector<256x1xf32>
    %cst_230 = arith.constant 1.000000e+00 : f32
    %229 = vector.broadcast %cst_230 : f32 to vector<256x1xf32>
    %230 = arith.divf %229, %228 : vector<256x1xf32>
    %cst_231 = arith.constant dense<0.000000e+00> : vector<640xf32>
    %231 = vector.multi_reduction <add>, %215, %cst_231 [0] : vector<256x640xf32> to vector<640xf32>
    %232 = vector.shape_cast %231 : vector<640xf32> to vector<1x640xf32>
    %cst_232 = arith.constant 2.560000e+02 : f32
    %233 = vector.broadcast %cst_232 : f32 to vector<1x640xf32>
    %234 = arith.divf %232, %233 : vector<1x640xf32>
    %c0_233 = arith.constant 0 : index
    %c0_234 = arith.constant 0 : index
    %235 = vector.load %arg13[%c0_233, %c0_234] : memref<1x640xf32, #tpu.memory_space<vmem>>, vector<1x640xf32>
    %236 = arith.mulf %234, %235 : vector<1x640xf32>
    %cst_235 = arith.constant dense<0.000000e+00> : vector<1xf32>
    %237 = vector.multi_reduction <add>, %236, %cst_235 [1] : vector<1x640xf32> to vector<1xf32>
    %238 = vector.shape_cast %237 : vector<1xf32> to vector<1x1xf32>
    %c0_236 = arith.constant 0 : index
    %c0_237 = arith.constant 0 : index
    %239 = vector.load %arg14[%c0_236, %c0_237] : memref<1x1xf32, #tpu.memory_space<vmem>>, vector<1x1xf32>
    %240 = arith.addf %238, %239 : vector<1x1xf32>
    %cst_238 = arith.constant 0.000000e+00 : f32
    %241 = vector.broadcast %cst_238 : f32 to vector<1x1xf32>
    %242 = arith.maximumf %240, %241 : vector<1x1xf32>
    %243 = vector.broadcast %242 : vector<1x1xf32> to vector<256x1xf32>
    %244 = arith.maximumf %230, %243 : vector<256x1xf32>
    %245 = vector.broadcast %244 : vector<256x1xf32> to vector<256x640xf32>
    %246 = arith.mulf %215, %245 : vector<256x640xf32>
    %247 = arith.mulf %246, %215 : vector<256x640xf32>
    %c0_239 = arith.constant 0 : index
    %c0_240 = arith.constant 0 : index
    %248 = vector.load %arg15[%c0_239, %c0_240] : memref<640x128xf32, #tpu.memory_space<vmem>>, vector<640x128xf32>
    %cst_241 = arith.constant dense<0.000000e+00> : vector<256x128xf32>
    %249 = tpu.matmul %247, %248, %cst_241 {dimension_numbers = #tpu.dot_dimension_numbers<[1], [0], [0], [1], [0, 0, 1, 1], [], []>} : vector<256x640xf32>, vector<640x128xf32>, vector<256x128xf32> -> vector<256x128xf32>
    %c0_242 = arith.constant 0 : index
    %c0_243 = arith.constant 0 : index
    %250 = vector.load %arg16[%c0_242, %c0_243] : memref<1x128xf32, #tpu.memory_space<vmem>>, vector<1x128xf32>
    %251 = vector.broadcast %250 : vector<1x128xf32> to vector<256x128xf32>
    %252 = arith.addf %249, %251 : vector<256x128xf32>
    %cst_244 = arith.constant 0.000000e+00 : f32
    %253 = vector.broadcast %cst_244 : f32 to vector<256x128xf32>
    %254 = arith.maximumf %252, %253 : vector<256x128xf32>
    %c0_245 = arith.constant 0 : index
    %c0_246 = arith.constant 0 : index
    %c0_247 = arith.constant 0 : index
    %255 = vector.load %arg17[%c0_245, %c0_246, %c0_247] : memref<1x256x128xf32, #tpu.memory_space<vmem>>, vector<1x256x128xf32>
    %256 = vector.shape_cast %255 : vector<1x256x128xf32> to vector<256x128xf32>
    %257 = vector.shape_cast %254 : vector<256x128xf32> to vector<1x256x128xf32>
    tpu.vector_store %arg17[%c0_245, %c0_246, %c0_247], %257 {strides = array<i32>} : memref<1x256x128xf32, #tpu.memory_space<vmem>>, vector<1x256x128xf32>,
    return
  }
  func.func @transform_0(%arg0: i32) -> (i32, i32, i32, i32) {
    %c0_i32 = arith.constant 0 : i32
    %c0_i32_0 = arith.constant 0 : i32
    %c0_i32_1 = arith.constant 0 : i32
    %c0_i32_2 = arith.constant 0 : i32
    return %arg0, %c0_i32, %c0_i32_0, %c0_i32_1 : i32, i32, i32, i32
  }
  func.func @transform_1(%arg0: i32) -> (i32, i32, i32) {
    %c0_i32 = arith.constant 0 : i32
    %c0_i32_0 = arith.constant 0 : i32
    %c0_i32_1 = arith.constant 0 : i32
    return %arg0, %c0_i32, %c0_i32_0 : i32, i32, i32
  }
  func.func @transform_2(%arg0: i32) -> (i32, i32) {
    %c0_i32 = arith.constant 0 : i32
    %c0_i32_0 = arith.constant 0 : i32
    %c0_i32_1 = arith.constant 0 : i32
    return %c0_i32, %c0_i32_0 : i32, i32
  }
  func.func @transform_3(%arg0: i32) -> (i32, i32) {
    %c0_i32 = arith.constant 0 : i32
    %c0_i32_0 = arith.constant 0 : i32
    %c0_i32_1 = arith.constant 0 : i32
    return %c0_i32, %c0_i32_0 : i32, i32
  }
  func.func @transform_4(%arg0: i32) -> (i32, i32, i32) {
    %c0_i32 = arith.constant 0 : i32
    %c0_i32_0 = arith.constant 0 : i32
    %c0_i32_1 = arith.constant 0 : i32
    %c0_i32_2 = arith.constant 0 : i32
    return %c0_i32, %c0_i32_0, %c0_i32_1 : i32, i32, i32
  }
  func.func @transform_5(%arg0: i32) -> (i32, i32) {
    %c0_i32 = arith.constant 0 : i32
    %c0_i32_0 = arith.constant 0 : i32
    %c0_i32_1 = arith.constant 0 : i32
    return %c0_i32, %c0_i32_0 : i32, i32
  }
  func.func @transform_6(%arg0: i32) -> (i32, i32, i32) {
    %c0_i32 = arith.constant 0 : i32
    %c0_i32_0 = arith.constant 0 : i32
    %c0_i32_1 = arith.constant 0 : i32
    %c0_i32_2 = arith.constant 0 : i32
    return %c0_i32, %c0_i32_0, %c0_i32_1 : i32, i32, i32
  }
  func.func @transform_7(%arg0: i32) -> (i32, i32) {
    %c0_i32 = arith.constant 0 : i32
    %c0_i32_0 = arith.constant 0 : i32
    %c0_i32_1 = arith.constant 0 : i32
    return %c0_i32, %c0_i32_0 : i32, i32
  }
  func.func @transform_8(%arg0: i32) -> (i32, i32, i32) {
    %c0_i32 = arith.constant 0 : i32
    %c0_i32_0 = arith.constant 0 : i32
    %c0_i32_1 = arith.constant 0 : i32
    %c0_i32_2 = arith.constant 0 : i32
    return %c0_i32, %c0_i32_0, %c0_i32_1 : i32, i32, i32
  }
  func.func @transform_9(%arg0: i32) -> (i32, i32) {
    %c0_i32 = arith.constant 0 : i32
    %c0_i32_0 = arith.constant 0 : i32
    %c0_i32_1 = arith.constant 0 : i32
    return %c0_i32, %c0_i32_0 : i32, i32
  }
  func.func @transform_10(%arg0: i32) -> (i32, i32) {
    %c0_i32 = arith.constant 0 : i32
    %c0_i32_0 = arith.constant 0 : i32
    %c0_i32_1 = arith.constant 0 : i32
    return %c0_i32, %c0_i32_0 : i32, i32
  }
  func.func @transform_11(%arg0: i32) -> (i32, i32) {
    %c0_i32 = arith.constant 0 : i32
    %c0_i32_0 = arith.constant 0 : i32
    %c0_i32_1 = arith.constant 0 : i32
    return %c0_i32, %c0_i32_0 : i32, i32
  }
  func.func @transform_12(%arg0: i32) -> (i32, i32) {
    %c0_i32 = arith.constant 0 : i32
    %c0_i32_0 = arith.constant 0 : i32
    %c0_i32_1 = arith.constant 0 : i32
    return %c0_i32, %c0_i32_0 : i32, i32
  }
  func.func @transform_13(%arg0: i32) -> (i32, i32) {
    %c0_i32 = arith.constant 0 : i32
    %c0_i32_0 = arith.constant 0 : i32
    %c0_i32_1 = arith.constant 0 : i32
    return %c0_i32, %c0_i32_0 : i32, i32
  }
  func.func @transform_14(%arg0: i32) -> (i32, i32) {
    %c0_i32 = arith.constant 0 : i32
    %c0_i32_0 = arith.constant 0 : i32
    %c0_i32_1 = arith.constant 0 : i32
    return %c0_i32, %c0_i32_0 : i32, i32
  }
  func.func @transform_15(%arg0: i32) -> (i32, i32) {
    %c0_i32 = arith.constant 0 : i32
    %c0_i32_0 = arith.constant 0 : i32
    %c0_i32_1 = arith.constant 0 : i32
    return %c0_i32, %c0_i32_0 : i32, i32
  }
  func.func @transform_16(%arg0: i32) -> (i32, i32, i32) {
    %c0_i32 = arith.constant 0 : i32
    %c0_i32_0 = arith.constant 0 : i32
    %c0_i32_1 = arith.constant 0 : i32
    return %arg0, %c0_i32, %c0_i32_0 : i32, i32, i32
  }
}

</mosaic_0001>

<bundles_post_ra>
// kernel: tpu_custom_call.1
= control target key start
LH: loop header
LB: loop body
LE: loop exit
PB: predicated region body
PF: predicated region fallthrough
CT: control target
= control target key end

     0   :  { %s23906_s0 = inlined_call_operand.vmem [shape: f32[2,52,52,8], index: 0, kind: input, shape index: {}]   ;;  %s23907_s1 = inlined_call_operand.vmem [shape: f32[2,1,128], index: 1, kind: input, shape index: {}]   ;;  %s23908_s2 = inlined_call_operand.vmem [shape: f32[8,128], index: 2, kind: input, shape index: {}]   ;;  %s23909_s3 = inlined_call_operand.vmem [shape: f32[1,128], index: 3, kind: input, shape index: {}]   ;;  %s23910_s4 = inlined_call_operand.vmem [shape: f32[9,8,128], index: 4, kind: input, shape index: {}]   ;;  %s23911_s5 = inlined_call_operand.vmem [shape: f32[1,128], index: 5, kind: input, shape index: {}]   ;;  %s23912_s6 = inlined_call_operand.vmem [shape: f32[9,8,128], index: 6, kind: input, shape index: {}]   ;;  %s23913_s7 = inlined_call_operand.vmem [shape: f32[1,128], index: 7, kind: input, shape index: {}]   ;;  %s23914_s8 = inlined_call_operand.vmem [shape: f32[9,8,128], index: 8, kind: input, shape index: {}]   ;;  %s23915_s9 = inlined_call_operand.vmem [shape: f32[1,128], index: 9, kind: input, shape index: {}]   ;;  %s23916_s10 = inlined_call_operand.vmem [shape: f32[1,640], index: 10, kind: input, shape index: {}]   ;;  %s23917_s11 = inlined_call_operand.<no memory space> [shape: f32[1,1], index: 11, kind: input, shape index: {}]   ;;  %s23918_s12 = inlined_call_operand.vmem [shape: f32[1,640], index: 12, kind: input, shape index: {}]   ;;  %s23919_s14 = inlined_call_operand.vmem [shape: f32[640,128], index: 14, kind: input, shape index: {}]   ;;  %s23920_s15 = inlined_call_operand.vmem [shape: f32[1,128], index: 15, kind: input, shape index: {}]   ;;  %s23921_s16 = inlined_call_operand.hbm [shape: f32[2,256,128], index: 16, kind: output, shape index: {}]   ;;  %s23922_s13 = inlined_call_operand.<no memory space> [shape: f32[1,1], index: 13, kind: input, shape index: {}]  }
   0x1   :  { %24184 = sst [smem:[#allocation117_spill]] %s23906_s0  ;;  %v21_v0 = vstv %s23917_s11  ;;  %v23_v1 = vstv %s23922_s13 }
   0x2   :  { %24185 = sst [smem:[#allocation118_spill]] %s23908_s2  ;;  %22 = vst [vmem:[#allocation2] sm:$0x1] %v21_v0  ;;  %24 = vst [vmem:[#allocation3] sm:$0x1] %v23_v1 }
   0x3   :  { %25 = vsyncpa [#allocation5], 0 }
   0x4   :  { %27 = vsyncpa [#allocation5 + $0x1], 0  ;;  %s18764_s25 = smov 0   ;;  %s18766_s26 = smov 0  }
   0x5   :  { %s18768_s27 = smov 0   ;;  %s18770_s28 = smov 0  }
   0x6 LB: > { %s18785_s11 = sadd.s32 4294967295, %s18666_s28   ;;  %s13272_s13 = sadd.s32 4294967294, %s18666_s28   ;;  %s18666_s28 = sphi %s18770_s28, %s24615_s28   ;;  %s18662_s27 = sphi %s18768_s27, %s24614_s27   ;;  %s18658_s26 = sphi %s18766_s26, %s24613_s26   ;;  %s18654_s25 = sphi %s18764_s25, %s24612_s25  }
   0x7   : > { %s18789_s29 = sadd.s32 1, %s18666_s28   ;;  %s386_s30 = sadd.s32 1, %s18662_s27 }
   0x8   : > { %s383_s0 = ssub.s32 %s18666_s28, %s18789_s29  ;;  %p396_p0 = scmp.ne.s32.totalorder %s18662_s27, %s18658_s26 }
   0x9   : > { %p384_p1 = scmp.eq.s32.totalorder %s383_s0, 0  ;;  %p397_p2 = scmp.eq.s32.totalorder %s18785_s11, 1 }
   0xa   : > { %p402_p3 = scmp.ne.s32.totalorder %s18658_s26, %s18654_s25  ;;  %p403_p4 = scmp.eq.s32.totalorder %s13272_s13, 1 }
   0xb   : > { %s18800_s17 = scalar_select %p384_p1, %s18662_s27, %s386_s30  }
   0xc   : > { %p18802_p5 = por %p397_p2, %p396_p0  ;;  %p18806_p6 = por %p403_p4, %p402_p3 }
   0xd   : > { %24186 = sst [smem:[#allocation7_spill]] %s18800_s17  ;;  %p13275_p7 = scmp.ge.s32.totalorder %s18666_s28, 1 }
   0xe   : > { %p477_p8 = scmp.lt.s32.totalorder %s18666_s28, 3 }
  0x10   : > { %p478_p9 = pnand %p13275_p7, %p477_p8 }
  0x12   : > { %481 = sbr.rel (%p478_p9) target bundleno = 2255 (0x8cf), region = 84 }
  0x19   : > { %v18815_v2 = vld [vmem:[%s23910_s4] sm:$0xff]  ;;  %s24189_s2 = sld [smem:[#allocation118_spill]]  ;;  %p530_p10 = scmp.lt.s32.totalorder %s18785_s11, 1  ;;  %v13504_v4 = vld [vmem:[%s23910_s4 + $0x10] sm:$0xff]  ;;  %v13407_v5 = vld [vmem:[%s23910_s4 + $0x8] sm:$0xff]  ;;  %vm579_vm0 = vcmask 64512  }
  0x1a   : > { %17495 = vmatprep.subr.mxu1 %v18815_v2  ;;  %s24190_s24 = sld [smem:[#allocation117_spill]]  ;;  %v18841_v6 = vld [vmem:[%s23910_s4 + $0x18] sm:$0xff]  ;;  %v19023_v45 = vld [vmem:[%s23910_s4 + $0x20] sm:$0xff]  ;;  %vm11830_vm1 = vcmask 1040384   ;;  %s18670_s17 = smov [#allocation4]  }
  0x1b   : > { %17496 = vmatpush3.msra.mxu1 %v18815_v2  ;;  %s18830_s20 = scalar_select %p530_p10, %s18785_s11, 1 }
  0x1c   : > { %16037 = vmatprep.subr.mxu1 %v13504_v4 }
  0x1d   : > { %s18361_s21 = smul.u32 2912, %s18830_s20  ;;  %s21838_s0 = scalar_lea.vmem %s23907_s1, %s18830_s20 }
  0x1f   : > { %v571_v3 = vld [vmem:[%s24189_s2] sm:$0xff] }
  0x20   : > { %15887 = vmatprep.subr.mxu0 %v571_v3  ;;  %s18836_s13 = scalar_lea.vmem %s24190_s24, %s18361_s21  ;;  %s14914_s21 = sshll.u32 %s18785_s11, 12 }
  0x21   : > { %15888 = vmatpush3.msra.mxu0 %v571_v3  ;;  %v18844_v7 = vld [vmem:[%s18836_s13 + $0x402] sm:$0xff]  ;;  %v18847_v8 = vld [vmem:[%s18836_s13 + $0x46c] sm:$0xff]  ;;  %v18857_v10 = vld [vmem:[%s18836_s13 + $0x474] sm:$0xff] }
  0x22   : > { %15937 = vmatprep.subr.mxu0 %v13407_v5  ;;  %v18850_v9 = vld [vmem:[%s18836_s13 + $0x40a] sm:$0xff]  ;;  %15889 = vmatprep.mubr.msk.f32.mxu0 %vm579_vm0, %v18844_v7  ;;  %v18860_v11 = vld [vmem:[%s18836_s13 + $0x43a] sm:$0xff]  ;;  %v18872_v13 = vld [vmem:[%s18836_s13 + $0x442] sm:$0xff] }
  0x23   : > { %16013 = vmatprep.mubr.msk.f32.mxu1 %vm579_vm0, %v18847_v8  ;;  %v18863_v12 = vld [vmem:[%s18836_s13 + $0x4a4] sm:$0xff]  ;;  %15890 = vmatmul.mubr.msk.f32.vlgmr.msra.gmra.mrb[0].mxu0 %vm579_vm0, %v18850_v9  ;;  %v18875_v14 = vld [vmem:[%s18836_s13 + $0x4ac] sm:$0xff]  ;;  %v18883_v16 = vld [vmem:[%s18836_s13 + $0x4dc] sm:$0xff] }
  0x24   : > { %16014 = vmatmul.mubr.msk.f32.vlgmr.msra.gmra.mrb[0].mxu1 %vm579_vm0, %v18857_v10  ;;  %15892 = vmatprep.mubr.msk.f32.mxu0 %vm579_vm0, %v18860_v11  ;;  %v18880_v15 = vld [vmem:[%s18836_s13 + $0x472] sm:$0xff]  ;;  %v18895_v17 = vld [vmem:[%s18836_s13 + $0x47a] sm:$0xff]  ;;  %v18898_v18 = vld [vmem:[%s18836_s13 + $0x4e4] sm:$0xff] }
  0x25   : > { %16038 = vmatpush3.msra.mxu1 %v13504_v4  ;;  %16016 = vmatprep.mubr.msk.f32.mxu1 %vm579_vm0, %v18863_v12  ;;  %v18901_v19 = vld [vmem:[%s18836_s13 + $0x4aa] sm:$0xff]  ;;  %v18904_v20 = vld [vmem:[%s18836_s13 + $0x514] sm:$0xff]  ;;  %v18919_v22 = vld [vmem:[%s18836_s13 + $0x51c] sm:$0xff] }
  0x26   : > { %16087 = vmatprep.subr.mxu1 %v18841_v6  ;;  %15938 = vmatpush3.msra.mxu0 %v13407_v5  ;;  %v18916_v21 = vld [vmem:[%s18836_s13 + $0x4b2] sm:$0xff]  ;;  %v18922_v23 = vld [vmem:[%s18836_s13 + $0x4e2] sm:$0xff]  ;;  %v18936_v25 = vld [vmem:[%s18836_s13 + $0x4ea] sm:$0xff] }
  0x27   : > { %15893 = vmatmul.mubr.msk.f32.gmra.mrb[2].mxu0 %vm579_vm0, %v18872_v13  ;;  %15987 = vmatprep.subr.mxu0 %v18815_v2  ;;  %v18925_v24 = vld [vmem:[%s18836_s13 + $0x54c] sm:$0xff]  ;;  %v18939_v26 = vld [vmem:[%s18836_s13 + $0x554] sm:$0xff]  ;;  %v18945_v28 = vld [vmem:[%s18836_s13 + $0x584] sm:$0xff] }
  0x28   : > { %16017 = vmatmul.mubr.msk.f32.gmra.mrb[2].mxu1 %vm579_vm0, %v18875_v14  ;;  %15895 = vmatprep.mubr.msk.f32.mxu0 %vm579_vm0, %v18880_v15  ;;  %v18942_v27 = vld [vmem:[%s18836_s13 + $0x51a] sm:$0xff]  ;;  %v18956_v29 = vld [vmem:[%s18836_s13 + $0x522] sm:$0xff]  ;;  %v18959_v30 = vld [vmem:[%s18836_s13 + $0x58c] sm:$0xff] }
  0x29   : > { %16019 = vmatprep.mubr.msk.f32.mxu1 %vm579_vm0, %v18883_v16  ;;  %v18962_v31 = vld [vmem:[%s18836_s13 + $0x552] sm:$0xff]  ;;  %v18965_v32 = vld [vmem:[%s18836_s13 + $0x5bc] sm:$0xff]  ;;  %v18979_v34 = vld [vmem:[%s18836_s13 + $0x5c4] sm:$0xff] }
  0x2a   : > { %v18976_v33 = vld [vmem:[%s18836_s13 + $0x55a] sm:$0xff]  ;;  %v18982_v35 = vld [vmem:[%s18836_s13 + $0x58a] sm:$0xff]  ;;  %v18996_v37 = vld [vmem:[%s18836_s13 + $0x592] sm:$0xff] }
  0x2b   : > { %15896 = vmatmul.mubr.msk.f32.gmra.mrb[4].mxu0 %vm579_vm0, %v18895_v17  ;;  %v18985_v36 = vld [vmem:[%s18836_s13 + $0x5f4] sm:$0xff]  ;;  %v18999_v38 = vld [vmem:[%s18836_s13 + $0x5fc] sm:$0xff]  ;;  %v19013_v41 = vld [vmem:[%s18836_s13 + $0x5ca] sm:$0xff] }
  0x2c   : > { %16020 = vmatmul.mubr.msk.f32.gmra.mrb[4].mxu1 %vm579_vm0, %v18898_v18  ;;  %15898 = vmatprep.mubr.msk.f32.mxu0 %vm579_vm0, %v18901_v19  ;;  %v19002_v39 = vld [vmem:[%s18836_s13 + $0x5c2] sm:$0xff]  ;;  %v13472_v40 = vld [vmem:[%s18836_s13 + $0x2b8] sm:$0xff]  ;;  %v13474_v44 = vld [vmem:[%s18836_s13 + $0x2f0] sm:$0xff] }
  0x2d   : > { %16022 = vmatprep.mubr.msk.f32.mxu1 %vm579_vm0, %v18904_v20  ;;  %v13473_v42 = vld [vmem:[%s18836_s13 + $0x2c0] sm:$0xff]  ;;  %v13475_v47 = vld [vmem:[%s18836_s13 + $0x2f8] sm:$0xff]  ;;  %v13476_v49 = vld [vmem:[%s18836_s13 + $0x328] sm:$0xff] }
  0x2e   : > { %v19017_v43 = vld [vmem:[%s18836_s13 + $0x5fa] sm:$0xff]  ;;  %v19032_v46 = vld [vmem:[%s18836_s13 + $0x602] sm:$0xff]  ;;  %v19037_v48 = vld [vmem:[%s18836_s13 + $0x632] sm:$0xff] }
  0x2f   : > { %15899 = vmatmul.mubr.msk.f32.gmra.mrb[6].mxu0 %vm579_vm0, %v18916_v21  ;;  %v19048_v50 = vld [vmem:[%s18836_s13 + $0x63a] sm:$0xff]  ;;  %v13477_v51 = vld [vmem:[%s18836_s13 + $0x330] sm:$0xff]  ;;  %v13479_v55 = vld [vmem:[%s18836_s13 + $0x368] sm:$0xff] }
  0x30   : > { %16023 = vmatmul.mubr.msk.f32.gmra.mrb[6].mxu1 %vm579_vm0, %v18919_v22  ;;  %15901 = vmatprep.mubr.msk.f32.mxu0 %vm579_vm0, %v18922_v23  ;;  %v19052_v52 = vld [vmem:[%s18836_s13 + $0x66a] sm:$0xff]  ;;  %v13478_v53 = vld [vmem:[%s18836_s13 + $0x360] sm:$0xff]  ;;  %v19062_v54 = vld [vmem:[%s18836_s13 + $0x672] sm:$0xff] }
  0x31   : > { %16025 = vmatprep.mubr.msk.f32.mxu1 %vm579_vm0, %v18925_v24  ;;  %v19066_v56 = vld [vmem:[%s18836_s13 + $0x6a2] sm:$0xff]  ;;  %v13480_v57 = vld [vmem:[%s18836_s13 + $0x398] sm:$0xff]  ;;  %v19076_v58 = vld [vmem:[%s18836_s13 + $0x6aa] sm:$0xff] }
  0x32   : > { %v13481_v59 = vld [vmem:[%s18836_s13 + $0x3a0] sm:$0xff]  ;;  %v13482_v61 = vld [vmem:[%s18836_s13 + $0x3d0] sm:$0xff]  ;;  %v13483_v63 = vld [vmem:[%s18836_s13 + $0x3d8] sm:$0xff] }
  0x33   : > { %15902 = vmatmul.mubr.msk.f32.gmra.mrb[8].mxu0 %vm579_vm0, %v18936_v25  ;;  %v19080_v60 = vld [vmem:[%s18836_s13 + $0x6da] sm:$0xff]  ;;  %v19090_v62 = vld [vmem:[%s18836_s13 + $0x6e2] sm:$0xff]  ;;  %v19094_v0 = vld [vmem:[%s18836_s13 + $0x712] sm:$0xff] }
  0x34   : > { %16026 = vmatmul.mubr.msk.f32.gmra.mrb[8].mxu1 %vm579_vm0, %v18939_v26  ;;  %15904 = vmatprep.mubr.msk.f32.mxu0 %vm579_vm0, %v18942_v27  ;;  %v19097_v1 = vld [vmem:[%s18836_s13 + $0x408] sm:$0xff]  ;;  %v19107_v3 = vld [vmem:[%s18836_s13 + $0x71a] sm:$0xff]  ;;  %v19110_v4 = vld [vmem:[%s18836_s13 + $0x410] sm:$0xff] }
  0x35   : > { %16028 = vmatprep.mubr.msk.f32.mxu1 %vm579_vm0, %v18945_v28  ;;  %24191 = vst [vmem:[#allocation8_spill] sm:$0xff] %v19097_v1  ;;  %24192 = vst [vmem:[#allocation9_spill] sm:$0xff] %v19107_v3  ;;  %v19113_v5 = vld [vmem:[%s18836_s13 + $0x74a] sm:$0xff] }
  0x36   : > { %24193 = vst [vmem:[#allocation10_spill] sm:$0xff] %v19110_v4  ;;  %24194 = vst [vmem:[#allocation11_spill] sm:$0xff] %v19113_v5 }
  0x37   : > { %15905 = vmatmul.mubr.msk.f32.gmra.mrb[10].mxu0 %vm579_vm0, %v18956_v29 }
  0x38   : > { %16029 = vmatmul.mubr.msk.f32.gmra.mrb[10].mxu1 %vm579_vm0, %v18959_v30  ;;  %15907 = vmatprep.mubr.msk.f32.mxu0 %vm579_vm0, %v18962_v31 }
  0x39   : > { %16031 = vmatprep.mubr.msk.f32.mxu1 %vm579_vm0, %v18965_v32 }
  0x3b   : > { %15908 = vmatmul.mubr.msk.f32.gmra.mrb[12].mxu0 %vm579_vm0, %v18976_v33 }
  0x3c   : > { %16032 = vmatmul.mubr.msk.f32.gmra.mrb[12].mxu1 %vm579_vm0, %v18979_v34  ;;  %15910 = vmatprep.mubr.msk.f32.mxu0 %vm579_vm0, %v18982_v35 }
  0x3d   : > { %16034 = vmatprep.mubr.msk.f32.mxu1 %vm579_vm0, %v18985_v36 }
  0x3f   : > { %15911 = vmatmul.mubr.msk.f32.gmra.mrb[14].mxu0 %vm579_vm0, %v18996_v37 }
  0x40   : > { %16035 = vmatmul.mubr.msk.f32.gmra.mrb[14].mxu1 %vm579_vm0, %v18999_v38  ;;  %15913 = vmatprep.mubr.msk.f32.mxu0 %vm579_vm0, %v19002_v39 }
  0x41   : > { %16039 = vmatprep.mubr.msk.f32.mxu1 %vm579_vm0, %v13472_v40  ;;  %v19127_v40 = vld [vmem:[%s18836_s13 + $0x752] sm:$0xff] }
  0x42   : > { %24196 = vst [vmem:[#allocation13_spill] sm:$0xff] %v19127_v40 }
  0x43   : > { %15914 = vmatmul.mubr.msk.f32.gmra.mrb[16].mxu0 %vm579_vm0, %v19013_v41 }
  0x44   : > { %16040 = vmatmul.mubr.msk.f32.vlgmr.msra.gmra.mrb[16].mxu1 %vm579_vm0, %v13473_v42  ;;  %15916 = vmatprep.mubr.msk.f32.mxu0 %vm579_vm0, %v19017_v43  ;;  %v19130_v42 = vld [vmem:[%s18836_s13 + $0x448] sm:$0xff] }
  0x45   : > { %16088 = vmatpush3.msra.mxu1 %v18841_v6  ;;  %16042 = vmatprep.mubr.msk.f32.mxu1 %vm579_vm0, %v13474_v44  ;;  %v19116_v6 = vld [vmem:[%s18836_s13 + $0x440] sm:$0xff]  ;;  %24197 = vst [vmem:[#allocation14_spill] sm:$0xff] %v19130_v42  ;;  %v19133_v44 = vld [vmem:[%s18836_s13 + $0x2b2] sm:$0xff] }
  0x46   : > { %16137 = vmatprep.subr.mxu1 %v19023_v45  ;;  %24195 = vst [vmem:[#allocation12_spill] sm:$0xff] %v19116_v6 }
  0x47   : > { %15917 = vmatmul.mubr.msk.f32.gmra.mrb[18].mxu0 %vm579_vm0, %v19032_v46 }
  0x48   : > { %16043 = vmatmul.mubr.msk.f32.gmra.mrb[18].mxu1 %vm579_vm0, %v13475_v47  ;;  %15919 = vmatprep.mubr.msk.f32.mxu0 %vm579_vm0, %v19037_v48  ;;  %v19136_v47 = vld [vmem:[%s18836_s13 + $0x478] sm:$0xff] }
  0x49   : > { %16045 = vmatprep.mubr.msk.f32.mxu1 %vm579_vm0, %v13476_v49  ;;  %24198 = vst [vmem:[#allocation15_spill] sm:$0xff] %v19136_v47  ;;  %v19147_v49 = vld [vmem:[%s18836_s13 + $0x2ba] sm:$0xff] }
  0x4b   : > { %15920 = vmatmul.mubr.msk.f32.gmra.mrb[20].mxu0 %vm579_vm0, %v19048_v50 }
  0x4c   : > { %16046 = vmatmul.mubr.msk.f32.gmra.mrb[20].mxu1 %vm579_vm0, %v13477_v51  ;;  %15922 = vmatprep.mubr.msk.f32.mxu0 %vm579_vm0, %v19052_v52  ;;  %v19150_v51 = vld [vmem:[%s18836_s13 + $0x480] sm:$0xff] }
  0x4d   : > { %16048 = vmatprep.mubr.msk.f32.mxu1 %vm579_vm0, %v13478_v53  ;;  %24199 = vst [vmem:[#allocation16_spill] sm:$0xff] %v19150_v51  ;;  %v19153_v53 = vld [vmem:[%s18836_s13 + $0x2ea] sm:$0xff] }
  0x4f   : > { %15923 = vmatmul.mubr.msk.f32.gmra.mrb[22].mxu0 %vm579_vm0, %v19062_v54 }
  0x50   : > { %16049 = vmatmul.mubr.msk.f32.gmra.mrb[22].mxu1 %vm579_vm0, %v13479_v55  ;;  %15925 = vmatprep.mubr.msk.f32.mxu0 %vm579_vm0, %v19066_v56  ;;  %v19156_v55 = vld [vmem:[%s18836_s13 + $0x4b0] sm:$0xff] }
  0x51   : > { %16051 = vmatprep.mubr.msk.f32.mxu1 %vm579_vm0, %v13480_v57  ;;  %24200 = vst [vmem:[#allocation17_spill] sm:$0xff] %v19156_v55  ;;  %v19165_v57 = vld [vmem:[%s23912_s6 + $0x8] sm:$0xff] }
  0x53   : > { %15926 = vmatmul.mubr.msk.f32.gmra.mrb[24].mxu0 %vm579_vm0, %v19076_v58 }
  0x54   : > { %16052 = vmatmul.mubr.msk.f32.gmra.mrb[24].mxu1 %vm579_vm0, %v13481_v59  ;;  %15928 = vmatprep.mubr.msk.f32.mxu0 %vm579_vm0, %v19080_v60  ;;  %v19172_v59 = vld [vmem:[%s18836_s13 + $0x2f2] sm:$0xff] }
  0x55   : > { %16054 = vmatprep.mubr.msk.f32.mxu1 %vm579_vm0, %v13482_v61  ;;  %v19175_v61 = vld [vmem:[%s18836_s13 + $0x4b8] sm:$0xff] }
  0x56   : > { %24201 = vst [vmem:[#allocation18_spill] sm:$0xff] %v19175_v61 }
  0x57   : > { %15929 = vmatmul.mubr.msk.f32.gmra.mrb[26].mxu0 %vm579_vm0, %v19090_v62 }
  0x58   : > { %16055 = vmatmul.mubr.msk.f32.gmra.mrb[26].mxu1 %vm579_vm0, %v13483_v63  ;;  %15931 = vmatprep.mubr.msk.f32.mxu0 %vm579_vm0, %v19094_v0  ;;  %v19178_v63 = vld [vmem:[%s18836_s13 + $0x322] sm:$0xff] }
  0x59   : > { %16057 = vmatprep.mubr.msk.f32.mxu1 %vm579_vm0, %v19097_v1  ;;  %v19240_v1 = vld [vmem:[%s18836_s13 + $0x3ca] sm:$0xff] }
  0x5b   : > { %15932 = vmatmul.mubr.msk.f32.gmra.mrb[28].mxu0 %vm579_vm0, %v19107_v3  ;;  %v19302_v3 = vld [vmem:[%s18836_s13 + $0x434] sm:$0xff] }
  0x5c   : > { %16058 = vmatmul.mubr.msk.f32.gmra.mrb[28].mxu1 %vm579_vm0, %v19110_v4  ;;  %15934 = vmatprep.mubr.msk.f32.mxu0 %vm579_vm0, %v19113_v5  ;;  %v19223_v4 = vld [vmem:[%s18836_s13 + $0x558] sm:$0xff]  ;;  %v19260_v5 = vld [vmem:[%s18836_s13 + $0x5c8] sm:$0xff] }
  0x5d   : > { %16060 = vmatprep.mubr.msk.f32.mxu1 %vm579_vm0, %v19116_v6  ;;  %v19220_v6 = vld [vmem:[%s18836_s13 + $0x392] sm:$0xff]  ;;  %24206 = vst [vmem:[#allocation23_spill] sm:$0xff] %v19223_v4  ;;  %24210 = vst [vmem:[#allocation27_spill] sm:$0xff] %v19260_v5 }
  0x5f   : > { %15935 = vmatmul.mubr.msk.f32.gmra.mrb[30].mxu0 %vm579_vm0, %v19127_v40  ;;  %v19243_v40 = vld [vmem:[%s18836_s13 + $0x590] sm:$0xff] }
  0x60   : > { %16061 = vmatmul.mubr.msk.f32.gmra.mrb[30].mxu1 %vm579_vm0, %v19130_v42  ;;  %15939 = vmatprep.mubr.msk.f32.mxu0 %vm579_vm0, %v19133_v44  ;;  %v19203_v42 = vld [vmem:[%s18836_s13 + $0x520] sm:$0xff]  ;;  %24208 = vst [vmem:[#allocation25_spill] sm:$0xff] %v19243_v40 }
  0x61   : > { %16063 = vmatprep.mubr.msk.f32.mxu1 %vm579_vm0, %v19136_v47  ;;  %v19200_v47 = vld [vmem:[%s18836_s13 + $0x35a] sm:$0xff]  ;;  %24204 = vst [vmem:[#allocation21_spill] sm:$0xff] %v19203_v42 }
  0x63   : > { %15940 = vmatmul.mubr.msk.f32.vlgmr.msra.gmra.mrb[32].mxu0 %vm579_vm0, %v19147_v49 }
  0x64   : > { %16064 = vmatmul.mubr.msk.f32.gmra.mrb[0].mxu1 %vm579_vm0, %v19150_v51  ;;  %15942 = vmatprep.mubr.msk.f32.mxu0 %vm579_vm0, %v19153_v53  ;;  %v19181_v51 = vld [vmem:[%s18836_s13 + $0x4e8] sm:$0xff] }
  0x65   : > { %16066 = vmatprep.mubr.msk.f32.mxu1 %vm579_vm0, %v19156_v55  ;;  %24202 = vst [vmem:[#allocation19_spill] sm:$0xff] %v19181_v51  ;;  %15988 = vmatpush3.msra.mxu0 %v18815_v2  ;;  %v19194_v55 = vld [vmem:[%s18836_s13 + $0x32a] sm:$0xff] }
  0x66   : > { %16387 = vmatprep.subr.mxu0 %v19165_v57  ;;  %v19197_v2 = vld [vmem:[%s18836_s13 + $0x4f0] sm:$0xff] }
  0x67   : > { %15943 = vmatmul.mubr.msk.f32.gmra.mrb[34].mxu0 %vm579_vm0, %v19172_v59  ;;  %24203 = vst [vmem:[#allocation20_spill] sm:$0xff] %v19197_v2 }
  0x68   : > { %16067 = vmatmul.mubr.msk.f32.gmra.mrb[2].mxu1 %vm579_vm0, %v19175_v61  ;;  %15945 = vmatprep.mubr.msk.f32.mxu0 %vm579_vm0, %v19178_v63  ;;  %v19217_v61 = vld [vmem:[%s18836_s13 + $0x528] sm:$0xff] }
  0x69   : > { %16069 = vmatprep.mubr.msk.f32.mxu1 %vm579_vm0, %v19181_v51  ;;  %v19214_v51 = vld [vmem:[%s18836_s13 + $0x362] sm:$0xff]  ;;  %24205 = vst [vmem:[#allocation22_spill] sm:$0xff] %v19217_v61 }
  0x6b   : > { %15946 = vmatmul.mubr.msk.f32.gmra.mrb[36].mxu0 %vm579_vm0, %v19194_v55 }
  0x6c   : > { %16070 = vmatmul.mubr.msk.f32.gmra.mrb[4].mxu1 %vm579_vm0, %v19197_v2  ;;  %15948 = vmatprep.mubr.msk.f32.mxu0 %vm579_vm0, %v19200_v47  ;;  %v19237_v2 = vld [vmem:[%s18836_s13 + $0x560] sm:$0xff] }
  0x6d   : > { %16072 = vmatprep.mubr.msk.f32.mxu1 %vm579_vm0, %v19203_v42  ;;  %v19234_v42 = vld [vmem:[%s18836_s13 + $0x39a] sm:$0xff]  ;;  %24207 = vst [vmem:[#allocation24_spill] sm:$0xff] %v19237_v2 }
  0x6f   : > { %15949 = vmatmul.mubr.msk.f32.gmra.mrb[38].mxu0 %vm579_vm0, %v19214_v51 }
  0x70   : > { %16073 = vmatmul.mubr.msk.f32.gmra.mrb[6].mxu1 %vm579_vm0, %v19217_v61  ;;  %15951 = vmatprep.mubr.msk.f32.mxu0 %vm579_vm0, %v19220_v6  ;;  %v19257_v61 = vld [vmem:[%s18836_s13 + $0x598] sm:$0xff] }
  0x71   : > { %16075 = vmatprep.mubr.msk.f32.mxu1 %vm579_vm0, %v19223_v4  ;;  %v19254_v4 = vld [vmem:[%s18836_s13 + $0x3d2] sm:$0xff]  ;;  %24209 = vst [vmem:[#allocation26_spill] sm:$0xff] %v19257_v61 }
  0x73   : > { %15952 = vmatmul.mubr.msk.f32.gmra.mrb[40].mxu0 %vm579_vm0, %v19234_v42 }
  0x74   : > { %16076 = vmatmul.mubr.msk.f32.gmra.mrb[8].mxu1 %vm579_vm0, %v19237_v2  ;;  %15954 = vmatprep.mubr.msk.f32.mxu0 %vm579_vm0, %v19240_v1  ;;  %v19274_v2 = vld [vmem:[%s18836_s13 + $0x600] sm:$0xff] }
  0x75   : > { %16078 = vmatprep.mubr.msk.f32.mxu1 %vm579_vm0, %v19243_v40  ;;  %v19271_v40 = vld [vmem:[%s18836_s13 + $0x5d0] sm:$0xff]  ;;  %24212 = vst [vmem:[#allocation29_spill] sm:$0xff] %v19274_v2 }
  0x76   : > { %24211 = vst [vmem:[#allocation28_spill] sm:$0xff] %v19271_v40 }
  0x77   : > { %15955 = vmatmul.mubr.msk.f32.gmra.mrb[42].mxu0 %vm579_vm0, %v19254_v4 }
  0x78   : > { %16079 = vmatmul.mubr.msk.f32.gmra.mrb[10].mxu1 %vm579_vm0, %v19257_v61  ;;  %15957 = vmatprep.mubr.msk.f32.mxu0 %vm579_vm0, %v18844_v7  ;;  %v19285_v61 = vld [vmem:[%s18836_s13 + $0x608] sm:$0xff] }
  0x79   : > { %16081 = vmatprep.mubr.msk.f32.mxu1 %vm579_vm0, %v19260_v5  ;;  %24213 = vst [vmem:[#allocation30_spill] sm:$0xff] %v19285_v61  ;;  %v19288_v5 = vld [vmem:[%s18836_s13 + $0x3fc] sm:$0xff] }
  0x7b   : > { %15958 = vmatmul.mubr.msk.f32.gmra.mrb[44].mxu0 %vm579_vm0, %v18850_v9 }
  0x7c   : > { %16082 = vmatmul.mubr.msk.f32.gmra.mrb[12].mxu1 %vm579_vm0, %v19271_v40  ;;  %15960 = vmatprep.mubr.msk.f32.mxu0 %vm579_vm0, %v18860_v11  ;;  %v19299_v40 = vld [vmem:[%s18836_s13 + $0x404] sm:$0xff] }
  0x7d   : > { %16084 = vmatprep.mubr.msk.f32.mxu1 %vm579_vm0, %v19274_v2  ;;  %v19307_v2 = vld [vmem:[%s23910_s4 + $0x28] sm:$0xff] }
  0x7f   : > { %15961 = vmatmul.mubr.msk.f32.gmra.mrb[46].mxu0 %vm579_vm0, %v18872_v13 }
  0x80   : > { %16085 = vmatmul.mubr.msk.f32.gmra.mrb[14].mxu1 %vm579_vm0, %v19285_v61  ;;  %15963 = vmatprep.mubr.msk.f32.mxu0 %vm579_vm0, %v18880_v15  ;;  %v19317_v61 = vld [vmem:[%s18836_s13 + $0x43c] sm:$0xff] }
  0x81   : > { %16089 = vmatprep.mubr.msk.f32.mxu1 %vm579_vm0, %v19288_v5 }
  0x83   : > { %15964 = vmatmul.mubr.msk.f32.gmra.mrb[48].mxu0 %vm579_vm0, %v18895_v17 }
  0x84   : > { %16090 = vmatmul.mubr.msk.f32.vlgmr.msra.gmra.mrb[16].mxu1 %vm579_vm0, %v19299_v40  ;;  %15966 = vmatprep.mubr.msk.f32.mxu0 %vm579_vm0, %v18901_v19 }
  0x85   : > { %16138 = vmatpush3.msra.mxu1 %v19023_v45  ;;  %16092 = vmatprep.mubr.msk.f32.mxu1 %vm579_vm0, %v19302_v3  ;;  %v19434_v45 = vld [vmem:[%s18836_s13 + $0x6a4] sm:$0xff] }
  0x86   : > { %16187 = vmatprep.subr.mxu1 %v19307_v2 }
  0x87   : > { %15967 = vmatmul.mubr.msk.f32.gmra.mrb[50].mxu0 %vm579_vm0, %v18916_v21 }
  0x88   : > { %16093 = vmatmul.mubr.msk.f32.gmra.mrb[18].mxu1 %vm579_vm0, %v19317_v61  ;;  %15969 = vmatprep.mubr.msk.f32.mxu0 %vm579_vm0, %v18922_v23 }
  0x89   : > { %16095 = vmatprep.mubr.msk.f32.mxu1 %vm579_vm0, %v18847_v8  ;;  %v13343_v8 = vld [vmem:[%s18836_s13 + $0x2ac] sm:$0xff] }
  0x8b   : > { %15970 = vmatmul.mubr.msk.f32.gmra.mrb[52].mxu0 %vm579_vm0, %v18936_v25 }
  0x8c   : > { %16096 = vmatmul.mubr.msk.f32.gmra.mrb[20].mxu1 %vm579_vm0, %v18857_v10  ;;  %15972 = vmatprep.mubr.msk.f32.mxu0 %vm579_vm0, %v18942_v27  ;;  %v13344_v10 = vld [vmem:[%s18836_s13 + $0x2b4] sm:$0xff] }
  0x8d   : > { %16098 = vmatprep.mubr.msk.f32.mxu1 %vm579_vm0, %v18863_v12  ;;  %v13345_v12 = vld [vmem:[%s18836_s13 + $0x2e4] sm:$0xff] }
  0x8f   : > { %15973 = vmatmul.mubr.msk.f32.gmra.mrb[54].mxu0 %vm579_vm0, %v18956_v29 }
  0x90   : > { %16099 = vmatmul.mubr.msk.f32.gmra.mrb[22].mxu1 %vm579_vm0, %v18875_v14  ;;  %15975 = vmatprep.mubr.msk.f32.mxu0 %vm579_vm0, %v18962_v31  ;;  %v19386_v14 = vld [vmem:[%s23912_s6] sm:$0xff] }
  0x91   : > { %16101 = vmatprep.mubr.msk.f32.mxu1 %vm579_vm0, %v18883_v16  ;;  %v13346_v16 = vld [vmem:[%s18836_s13 + $0x2ec] sm:$0xff] }
  0x93   : > { %15976 = vmatmul.mubr.msk.f32.gmra.mrb[56].mxu0 %vm579_vm0, %v18976_v33 }
  0x94   : > { %16102 = vmatmul.mubr.msk.f32.gmra.mrb[24].mxu1 %vm579_vm0, %v18898_v18  ;;  %15978 = vmatprep.mubr.msk.f32.mxu0 %vm579_vm0, %v18982_v35  ;;  %v13347_v18 = vld [vmem:[%s18836_s13 + $0x31c] sm:$0xff] }
  0x95   : > { %16104 = vmatprep.mubr.msk.f32.mxu1 %vm579_vm0, %v18904_v20  ;;  %v19394_v20 = vld [vmem:[%s18836_s13 + $0x62c] sm:$0xff] }
  0x97   : > { %15979 = vmatmul.mubr.msk.f32.gmra.mrb[58].mxu0 %vm579_vm0, %v18996_v37 }
  0x98   : > { %16105 = vmatmul.mubr.msk.f32.gmra.mrb[26].mxu1 %vm579_vm0, %v18919_v22  ;;  %15981 = vmatprep.mubr.msk.f32.mxu0 %vm579_vm0, %v19002_v39  ;;  %v13348_v22 = vld [vmem:[%s18836_s13 + $0x324] sm:$0xff] }
  0x99   : > { %16107 = vmatprep.mubr.msk.f32.mxu1 %vm579_vm0, %v18925_v24  ;;  %v19406_v24 = vld [vmem:[%s18836_s13 + $0x634] sm:$0xff] }
  0x9b   : > { %15982 = vmatmul.mubr.msk.f32.gmra.mrb[60].mxu0 %vm579_vm0, %v19013_v41 }
  0x9c   : > { %16108 = vmatmul.mubr.msk.f32.gmra.mrb[28].mxu1 %vm579_vm0, %v18939_v26  ;;  %15984 = vmatprep.mubr.msk.f32.mxu0 %vm579_vm0, %v19017_v43  ;;  %v13349_v26 = vld [vmem:[%s18836_s13 + $0x354] sm:$0xff] }
  0x9d   : > { %16110 = vmatprep.mubr.msk.f32.mxu1 %vm579_vm0, %v18945_v28  ;;  %v19410_v28 = vld [vmem:[%s18836_s13 + $0x664] sm:$0xff] }
  0x9f   : > { %15985 = vmatmul.mubr.msk.f32.gmra.mrb[62].mxu0 %vm579_vm0, %v19032_v46 }
  0xa0   : > { %16111 = vmatmul.mubr.msk.f32.gmra.mrb[30].mxu1 %vm579_vm0, %v18959_v30  ;;  %15989 = vmatprep.mubr.msk.f32.mxu0 %vm579_vm0, %v13343_v8  ;;  %v13350_v30 = vld [vmem:[%s18836_s13 + $0x35c] sm:$0xff]  ;;  %v19438_v8 = vld [vmem:[%s18836_s13 + $0x6d4] sm:$0xff] }
  0xa1   : > { %16113 = vmatprep.mubr.msk.f32.mxu1 %vm579_vm0, %v18965_v32  ;;  %v19420_v32 = vld [vmem:[%s18836_s13 + $0x66c] sm:$0xff] }
  0xa3   : > { %15990 = vmatmul.mubr.msk.f32.vlgmr.msra.gmra.mrb[32].mxu0 %vm579_vm0, %v13344_v10  ;;  %v13354_v10 = vld [vmem:[%s18836_s13 + $0x3cc] sm:$0xff] }
  0xa4   : > { %16114 = vmatmul.mubr.msk.f32.gmra.mrb[0].mxu1 %vm579_vm0, %v18979_v34  ;;  %15992 = vmatprep.mubr.msk.f32.mxu0 %vm579_vm0, %v13345_v12  ;;  %v13351_v34 = vld [vmem:[%s18836_s13 + $0x38c] sm:$0xff]  ;;  %v19448_v12 = vld [vmem:[%s18836_s13 + $0x6dc] sm:$0xff] }
  0xa5   : > { %16116 = vmatprep.mubr.msk.f32.mxu1 %vm579_vm0, %v18985_v36  ;;  %16388 = vmatpush3.msra.mxu0 %v19165_v57  ;;  %v19424_v36 = vld [vmem:[%s18836_s13 + $0x69c] sm:$0xff]  ;;  %v13353_v57 = vld [vmem:[%s18836_s13 + $0x3c4] sm:$0xff] }
  0xa6   : > { %16437 = vmatprep.subr.mxu0 %v19386_v14 }
  0xa7   : > { %15993 = vmatmul.mubr.msk.f32.gmra.mrb[34].mxu0 %vm579_vm0, %v13346_v16  ;;  %v19451_v16 = vld [vmem:[%s18836_s13 + $0x70c] sm:$0xff] }
  0xa8   : > { %16117 = vmatmul.mubr.msk.f32.gmra.mrb[2].mxu1 %vm579_vm0, %v18999_v38  ;;  %15995 = vmatprep.mubr.msk.f32.mxu0 %vm579_vm0, %v13347_v18  ;;  %v13352_v38 = vld [vmem:[%s18836_s13 + $0x394] sm:$0xff] }
  0xa9   : > { %16119 = vmatprep.mubr.msk.f32.mxu1 %vm579_vm0, %v19394_v20  ;;  %v19461_v18 = vld [vmem:[%s18836_s13 + $0x714] sm:$0xff] }
  0xab   : > { %15996 = vmatmul.mubr.msk.f32.gmra.mrb[36].mxu0 %vm579_vm0, %v13348_v22  ;;  %v19464_v22 = vld [vmem:[%s18836_s13 + $0x744] sm:$0xff] }
  0xac   : > { %16120 = vmatmul.mubr.msk.f32.gmra.mrb[4].mxu1 %vm579_vm0, %v19406_v24  ;;  %15998 = vmatprep.mubr.msk.f32.mxu0 %vm579_vm0, %v13349_v26  ;;  %v13928_v26 = vld [vmem:[%s18836_s13 + $0x162] sm:$0xff] }
  0xad   : > { %16122 = vmatprep.mubr.msk.f32.mxu1 %vm579_vm0, %v19410_v28 }
  0xaf   : > { %15999 = vmatmul.mubr.msk.f32.gmra.mrb[38].mxu0 %vm579_vm0, %v13350_v30  ;;  %v19490_v30 = vld [vmem:[%s23910_s4 + $0x30] sm:$0xff] }
  0xb0   : > { %16123 = vmatmul.mubr.msk.f32.gmra.mrb[6].mxu1 %vm579_vm0, %v19420_v32  ;;  %16001 = vmatprep.mubr.msk.f32.mxu0 %vm579_vm0, %v13351_v34  ;;  %v13932_v34 = vld [vmem:[%s18836_s13 + $0x1d2] sm:$0xff] }
  0xb1   : > { %16125 = vmatprep.mubr.msk.f32.mxu1 %vm579_vm0, %v19424_v36 }
  0xb3   : > { %16002 = vmatmul.mubr.msk.f32.gmra.mrb[40].mxu0 %vm579_vm0, %v13352_v38  ;;  %v19506_v38 = vld [vmem:[%s23912_s6 + $0x10] sm:$0xff] }
  0xb4   : > { %16126 = vmatmul.mubr.msk.f32.gmra.mrb[8].mxu1 %vm579_vm0, %v19434_v45  ;;  %16004 = vmatprep.mubr.msk.f32.mxu0 %vm579_vm0, %v13353_v57  ;;  %v13934_v57 = vld [vmem:[%s18836_s13 + $0x20a] sm:$0xff] }
  0xb5   : > { %16128 = vmatprep.mubr.msk.f32.mxu1 %vm579_vm0, %v19438_v8 }
  0xb7   : > { %16005 = vmatmul.mubr.msk.f32.gmra.mrb[42].mxu0 %vm579_vm0, %v13354_v10  ;;  %v13936_v10 = vld [vmem:[%s18836_s13 + $0x242] sm:$0xff] }
  0xb8   : > { %16129 = vmatmul.mubr.msk.f32.gmra.mrb[10].mxu1 %vm579_vm0, %v19448_v12  ;;  %16007 = vmatprep.mubr.msk.f32.mxu0 %vm579_vm0, %v19288_v5  ;;  %v19475_v5 = vld [vmem:[%s18836_s13 + $0x74c] sm:$0xff] }
  0xb9   : > { %16131 = vmatprep.mubr.msk.f32.mxu1 %vm579_vm0, %v19451_v16 }
  0xbb   : > { %16008 = vmatmul.mubr.msk.f32.gmra.mrb[44].mxu0 %vm579_vm0, %v19299_v40  ;;  %v13929_v40 = vld [vmem:[%s18836_s13 + $0x16a] sm:$0xff] }
  0xbc   : > { %16132 = vmatmul.mubr.msk.f32.gmra.mrb[12].mxu1 %vm579_vm0, %v19461_v18  ;;  %16010 = vmatprep.mubr.msk.f32.mxu0 %vm579_vm0, %v19302_v3  ;;  %v13930_v3 = vld [vmem:[%s18836_s13 + $0x19a] sm:$0xff] }
  0xbd   : > { %16134 = vmatprep.mubr.msk.f32.mxu1 %vm579_vm0, %v19464_v22 }
  0xbf   : > { %16011 = vmatmul.mubr.msk.f32.gmra.mrb[46].mxu0 %vm579_vm0, %v19317_v61  ;;  %v13931_v61 = vld [vmem:[%s18836_s13 + $0x1a2] sm:$0xff] }
  0xc0   : > { %16135 = vmatmul.mubr.msk.f32.gmra.mrb[14].mxu1 %vm579_vm0, %v19475_v5  ;;  %16389 = vmatprep.mubr.msk.f32.mxu0 %vm579_vm0, %v13928_v26  ;;  %v13937_v26 = vld [vmem:[%s18836_s13 + $0x24a] sm:$0xff] }
  0xc1   : > { %16139 = vmatprep.mubr.msk.f32.mxu1 %vm579_vm0, %v18844_v7 }
  0xc3   : > { %16390 = vmatmul.mubr.msk.f32.vlgmr.msra.gmra.mrb[64].mxu0 %vm579_vm0, %v13929_v40  ;;  %v13938_v40 = vld [vmem:[%s18836_s13 + $0x27a] sm:$0xff] }
  0xc4   : > { %16140 = vmatmul.mubr.msk.f32.vlgmr.msra.gmra.mrb[16].mxu1 %vm579_vm0, %v18850_v9  ;;  %16392 = vmatprep.mubr.msk.f32.mxu0 %vm579_vm0, %v13930_v3  ;;  %v13939_v3 = vld [vmem:[%s18836_s13 + $0x282] sm:$0xff] }
  0xc5   : > { %16188 = vmatpush3.msra.mxu1 %v19307_v2  ;;  %16142 = vmatprep.mubr.msk.f32.mxu1 %vm579_vm0, %v18860_v11  ;;  %v13933_v2 = vld [vmem:[%s18836_s13 + $0x1da] sm:$0xff] }
  0xc6   : > { %16237 = vmatprep.subr.mxu1 %v19490_v30  ;;  %16438 = vmatpush3.msra.mxu0 %v19386_v14  ;;  %v13935_v14 = vld [vmem:[%s18836_s13 + $0x212] sm:$0xff] }
  0xc7   : > { %16393 = vmatmul.mubr.msk.f32.gmra.mrb[66].mxu0 %vm579_vm0, %v13931_v61  ;;  %16487 = vmatprep.subr.mxu0 %v19506_v38  ;;  %v24235_v61 = vld [vmem:[#allocation29_spill] sm:$0xff] }
  0xc8   : > { %16143 = vmatmul.mubr.msk.f32.gmra.mrb[18].mxu1 %vm579_vm0, %v18872_v13  ;;  %16395 = vmatprep.mubr.msk.f32.mxu0 %vm579_vm0, %v13932_v34  ;;  %v13915_v34 = vld [vmem:[%s18836_s13 + $0x356] sm:$0xff] }
  0xc9   : > { %16145 = vmatprep.mubr.msk.f32.mxu1 %vm579_vm0, %v18880_v15 }
  0xcb   : > { %16396 = vmatmul.mubr.msk.f32.gmra.mrb[68].mxu0 %vm579_vm0, %v13933_v2  ;;  %v13916_v2 = vld [vmem:[%s18836_s13 + $0x386] sm:$0xff] }
  0xcc   : > { %16146 = vmatmul.mubr.msk.f32.gmra.mrb[20].mxu1 %vm579_vm0, %v18895_v17  ;;  %16398 = vmatprep.mubr.msk.f32.mxu0 %vm579_vm0, %v13934_v57  ;;  %v24236_v57 = vld [vmem:[#allocation30_spill] sm:$0xff] }
  0xcd   : > { %16148 = vmatprep.mubr.msk.f32.mxu1 %vm579_vm0, %v18901_v19 }
  0xcf   : > { %16399 = vmatmul.mubr.msk.f32.gmra.mrb[70].mxu0 %vm579_vm0, %v13935_v14  ;;  %v19725_v14 = vld [vmem:[%s18836_s13 + $0x640] sm:$0xff] }
  0xd0   : > { %16149 = vmatmul.mubr.msk.f32.gmra.mrb[22].mxu1 %vm579_vm0, %v18916_v21  ;;  %16401 = vmatprep.mubr.msk.f32.mxu0 %vm579_vm0, %v13936_v10  ;;  %v13917_v10 = vld [vmem:[%s18836_s13 + $0x38e] sm:$0xff] }
  0xd1   : > { %16151 = vmatprep.mubr.msk.f32.mxu1 %vm579_vm0, %v18922_v23  ;;  %v13898_v23 = vld [vmem:[%s18836_s13 + $0x18e] sm:$0xff] }
  0xd3   : > { %16402 = vmatmul.mubr.msk.f32.gmra.mrb[72].mxu0 %vm579_vm0, %v13937_v26  ;;  %v19729_v26 = vld [vmem:[%s18836_s13 + $0x670] sm:$0xff] }
  0xd4   : > { %16152 = vmatmul.mubr.msk.f32.gmra.mrb[24].mxu1 %vm579_vm0, %v18936_v25  ;;  %16404 = vmatprep.mubr.msk.f32.mxu0 %vm579_vm0, %v13938_v40  ;;  %v19632_v25 = vld [vmem:[%s23910_s4 + $0x38] sm:$0xff] }
  0xd5   : > { %16154 = vmatprep.mubr.msk.f32.mxu1 %vm579_vm0, %v18942_v27  ;;  %v13899_v27 = vld [vmem:[%s18836_s13 + $0x196] sm:$0xff]  ;;  %v13918_v40 = vld [vmem:[%s18836_s13 + $0x3be] sm:$0xff] }
  0xd7   : > { %16405 = vmatmul.mubr.msk.f32.gmra.mrb[74].mxu0 %vm579_vm0, %v13939_v3  ;;  %v19739_v3 = vld [vmem:[%s18836_s13 + $0x678] sm:$0xff] }
  0xd8   : > { %16155 = vmatmul.mubr.msk.f32.gmra.mrb[26].mxu1 %vm579_vm0, %v18956_v29  ;;  %16407 = vmatprep.mubr.msk.f32.mxu0 %vm579_vm0, %v19133_v44  ;;  %v13900_v29 = vld [vmem:[%s18836_s13 + $0x1c6] sm:$0xff] }
  0xd9   : > { %16157 = vmatprep.mubr.msk.f32.mxu1 %vm579_vm0, %v18962_v31  ;;  %v19648_v31 = vld [vmem:[%s23912_s6 + $0x18] sm:$0xff]  ;;  %v24230_v44 = vld [vmem:[#allocation24_spill] sm:$0xff] }
  0xdb   : > { %16408 = vmatmul.mubr.msk.f32.gmra.mrb[76].mxu0 %vm579_vm0, %v19147_v49  ;;  %v13911_v49 = vld [vmem:[%s18836_s13 + $0x2e6] sm:$0xff] }
  0xdc   : > { %16158 = vmatmul.mubr.msk.f32.gmra.mrb[28].mxu1 %vm579_vm0, %v18976_v33  ;;  %16410 = vmatprep.mubr.msk.f32.mxu0 %vm579_vm0, %v19153_v53  ;;  %v24220_v33 = vld [vmem:[#allocation14_spill] sm:$0xff] }
  0xdd   : > { %16160 = vmatprep.mubr.msk.f32.mxu1 %vm579_vm0, %v18982_v35  ;;  %v24221_v35 = vld [vmem:[#allocation15_spill] sm:$0xff]  ;;  %v24232_v53 = vld [vmem:[#allocation26_spill] sm:$0xff] }
  0xdf   : > { %16411 = vmatmul.mubr.msk.f32.gmra.mrb[78].mxu0 %vm579_vm0, %v19172_v59  ;;  %v13913_v59 = vld [vmem:[%s18836_s13 + $0x31e] sm:$0xff] }
  0xe0   : > { %16161 = vmatmul.mubr.msk.f32.gmra.mrb[30].mxu1 %vm579_vm0, %v18996_v37  ;;  %16413 = vmatprep.mubr.msk.f32.mxu0 %vm579_vm0, %v19178_v63  ;;  %v13901_v37 = vld [vmem:[%s18836_s13 + $0x1ce] sm:$0xff] }
  0xe1   : > { %16163 = vmatprep.mubr.msk.f32.mxu1 %vm579_vm0, %v19002_v39  ;;  %v13902_v39 = vld [vmem:[%s18836_s13 + $0x1fe] sm:$0xff]  ;;  %v13914_v63 = vld [vmem:[%s18836_s13 + $0x34e] sm:$0xff] }
  0xe3   : > { %16414 = vmatmul.mubr.msk.f32.gmra.mrb[80].mxu0 %vm579_vm0, %v19194_v55  ;;  %v24233_v55 = vld [vmem:[#allocation27_spill] sm:$0xff] }
  0xe4   : > { %16164 = vmatmul.mubr.msk.f32.gmra.mrb[0].mxu1 %vm579_vm0, %v19013_v41  ;;  %16416 = vmatprep.mubr.msk.f32.mxu0 %vm579_vm0, %v19200_v47  ;;  %v24222_v41 = vld [vmem:[#allocation16_spill] sm:$0xff]  ;;  %v24231_v47 = vld [vmem:[#allocation25_spill] sm:$0xff] }
  0xe5   : > { %16166 = vmatprep.mubr.msk.f32.mxu1 %vm579_vm0, %v19017_v43  ;;  %v24223_v43 = vld [vmem:[#allocation17_spill] sm:$0xff] }
  0xe7   : > { %16417 = vmatmul.mubr.msk.f32.gmra.mrb[82].mxu0 %vm579_vm0, %v19214_v51  ;;  %v13912_v51 = vld [vmem:[%s18836_s13 + $0x316] sm:$0xff] }
  0xe8   : > { %16167 = vmatmul.mubr.msk.f32.gmra.mrb[2].mxu1 %vm579_vm0, %v19032_v46  ;;  %16419 = vmatprep.mubr.msk.f32.mxu0 %vm579_vm0, %v19220_v6  ;;  %v13903_v46 = vld [vmem:[%s18836_s13 + $0x206] sm:$0xff]  ;;  %v13909_v6 = vld [vmem:[%s18836_s13 + $0x2ae] sm:$0xff] }
  0xe9   : > { %16169 = vmatprep.mubr.msk.f32.mxu1 %vm579_vm0, %v19037_v48  ;;  %v13904_v48 = vld [vmem:[%s18836_s13 + $0x236] sm:$0xff] }
  0xeb   : > { %16420 = vmatmul.mubr.msk.f32.gmra.mrb[84].mxu0 %vm579_vm0, %v19234_v42  ;;  %v13910_v42 = vld [vmem:[%s18836_s13 + $0x2de] sm:$0xff] }
  0xec   : > { %16170 = vmatmul.mubr.msk.f32.gmra.mrb[4].mxu1 %vm579_vm0, %v19048_v50  ;;  %16422 = vmatprep.mubr.msk.f32.mxu0 %vm579_vm0, %v19240_v1  ;;  %v24224_v50 = vld [vmem:[#allocation18_spill] sm:$0xff] }
  0xed   : > { %16172 = vmatprep.mubr.msk.f32.mxu1 %vm579_vm0, %v19052_v52  ;;  %v24225_v52 = vld [vmem:[#allocation19_spill] sm:$0xff]  ;;  %v24228_v1 = vld [vmem:[#allocation22_spill] sm:$0xff] }
  0xef   : > { %16423 = vmatmul.mubr.msk.f32.gmra.mrb[86].mxu0 %vm579_vm0, %v19254_v4  ;;  %v24229_v4 = vld [vmem:[#allocation23_spill] sm:$0xff] }
  0xf0   : > { %16173 = vmatmul.mubr.msk.f32.gmra.mrb[6].mxu1 %vm579_vm0, %v19062_v54  ;;  %16425 = vmatprep.mubr.msk.f32.mxu0 %vm579_vm0, %v18844_v7  ;;  %v24214_v7 = vld [vmem:[#allocation9_spill] sm:$0xff]  ;;  %v13905_v54 = vld [vmem:[%s18836_s13 + $0x23e] sm:$0xff] }
  0xf1   : > { %16175 = vmatprep.mubr.msk.f32.mxu1 %vm579_vm0, %v19066_v56  ;;  %v13906_v56 = vld [vmem:[%s18836_s13 + $0x26e] sm:$0xff] }
  0xf3   : > { %16426 = vmatmul.mubr.msk.f32.gmra.mrb[88].mxu0 %vm579_vm0, %v18850_v9  ;;  %v24215_v9 = vld [vmem:[#allocation11_spill] sm:$0xff] }
  0xf4   : > { %16176 = vmatmul.mubr.msk.f32.gmra.mrb[8].mxu1 %vm579_vm0, %v19076_v58  ;;  %16428 = vmatprep.mubr.msk.f32.mxu0 %vm579_vm0, %v18860_v11  ;;  %v13896_v11 = vld [vmem:[%s18836_s13 + $0x156] sm:$0xff]  ;;  %v24226_v58 = vld [vmem:[#allocation20_spill] sm:$0xff] }
  0xf5   : > { %16178 = vmatprep.mubr.msk.f32.mxu1 %vm579_vm0, %v19080_v60  ;;  %v24227_v60 = vld [vmem:[#allocation21_spill] sm:$0xff] }
  0xf7   : > { %16429 = vmatmul.mubr.msk.f32.gmra.mrb[90].mxu0 %vm579_vm0, %v18872_v13  ;;  %v24216_v13 = vld [vmem:[#allocation13_spill] sm:$0xff] }
  0xf8   : > { %16179 = vmatmul.mubr.msk.f32.gmra.mrb[10].mxu1 %vm579_vm0, %v19090_v62  ;;  %16431 = vmatprep.mubr.msk.f32.mxu0 %vm579_vm0, %v18880_v15  ;;  %v24217_v15 = vld [vmem:[#allocation8_spill] sm:$0xff]  ;;  %v13907_v62 = vld [vmem:[%s18836_s13 + $0x276] sm:$0xff] }
  0xf9   : > { %16181 = vmatprep.mubr.msk.f32.mxu1 %vm579_vm0, %v19094_v0  ;;  %v13908_v0 = vld [vmem:[%s18836_s13 + $0x2a6] sm:$0xff] }
  0xfb   : > { %16432 = vmatmul.mubr.msk.f32.gmra.mrb[92].mxu0 %vm579_vm0, %v18895_v17  ;;  %v13897_v17 = vld [vmem:[%s18836_s13 + $0x15e] sm:$0xff] }
  0xfc   : > { %16182 = vmatmul.mubr.msk.f32.gmra.mrb[12].mxu1 %vm579_vm0, %v24214_v7  ;;  %16434 = vmatprep.mubr.msk.f32.mxu0 %vm579_vm0, %v18901_v19  ;;  %v24218_v19 = vld [vmem:[#allocation10_spill] sm:$0xff]  ;;  %v13919_v7 = vld [vmem:[%s18836_s13 + $0x3c6] sm:$0xff] }
  0xfd   : > { %16184 = vmatprep.mubr.msk.f32.mxu1 %vm579_vm0, %v24215_v9  ;;  %v19743_v9 = vld [vmem:[%s18836_s13 + $0x6a8] sm:$0xff] }
  0xff   : > { %16435 = vmatmul.mubr.msk.f32.gmra.mrb[94].mxu0 %vm579_vm0, %v18916_v21  ;;  %v24219_v21 = vld [vmem:[#allocation12_spill] sm:$0xff] }
 0x100   : > { %16185 = vmatmul.mubr.msk.f32.gmra.mrb[14].mxu1 %vm579_vm0, %v24216_v13  ;;  %16439 = vmatprep.mubr.msk.f32.mxu0 %vm579_vm0, %v13896_v11  ;;  %v19746_v11 = vld [vmem:[%s18836_s13 + $0x3f6] sm:$0xff] }
 0x101   : > { %16189 = vmatprep.mubr.msk.f32.mxu1 %vm579_vm0, %v24217_v15  ;;  %v19756_v13 = vld [vmem:[%s18836_s13 + $0x6b0] sm:$0xff]  ;;  %v19759_v15 = vld [vmem:[%s18836_s13 + $0x3fe] sm:$0xff] }
 0x103   : > { %16440 = vmatmul.mubr.msk.f32.vlgmr.msra.gmra.mrb[64].mxu0 %vm579_vm0, %v13897_v17  ;;  %v19762_v17 = vld [vmem:[%s18836_s13 + $0x6e0] sm:$0xff] }
 0x104   : > { %16190 = vmatmul.mubr.msk.f32.vlgmr.msra.gmra.mrb[16].mxu1 %vm579_vm0, %v24218_v19  ;;  %16442 = vmatprep.mubr.msk.f32.mxu0 %vm579_vm0, %v13898_v23  ;;  %v19765_v23 = vld [vmem:[%s18836_s13 + $0x42e] sm:$0xff] }
 0x105   : > { %16238 = vmatpush3.msra.mxu1 %v19490_v30  ;;  %16192 = vmatprep.mubr.msk.f32.mxu1 %vm579_vm0, %v24219_v21  ;;  %v24234_v30 = vld [vmem:[#allocation28_spill] sm:$0xff]  ;;  %v19779_v21 = vld [vmem:[%s18836_s13 + $0x436] sm:$0xff] }
 0x106   : > { %16287 = vmatprep.subr.mxu1 %v19632_v25  ;;  %16488 = vmatpush3.msra.mxu0 %v19506_v38  ;;  %v19715_v38 = vld [vmem:[%s18836_s13 + $0x638] sm:$0xff]  ;;  %v19776_v19 = vld [vmem:[%s18836_s13 + $0x6e8] sm:$0xff] }
 0x107   : > { %16443 = vmatmul.mubr.msk.f32.gmra.mrb[66].mxu0 %vm579_vm0, %v13899_v27  ;;  %16537 = vmatprep.subr.mxu0 %v19648_v31  ;;  %v19782_v27 = vld [vmem:[%s18836_s13 + $0x718] sm:$0xff] }
 0x108   : > { %16193 = vmatmul.mubr.msk.f32.gmra.mrb[18].mxu1 %vm579_vm0, %v24220_v33  ;;  %16445 = vmatprep.mubr.msk.f32.mxu0 %vm579_vm0, %v13900_v29  ;;  %v19785_v29 = vld [vmem:[%s18836_s13 + $0x466] sm:$0xff] }
 0x109   : > { %16195 = vmatprep.mubr.msk.f32.mxu1 %vm579_vm0, %v24221_v35  ;;  %v19796_v33 = vld [vmem:[%s18836_s13 + $0x720] sm:$0xff]  ;;  %v19799_v35 = vld [vmem:[%s18836_s13 + $0x46e] sm:$0xff] }
 0x10b   : > { %16446 = vmatmul.mubr.msk.f32.gmra.mrb[68].mxu0 %vm579_vm0, %v13901_v37  ;;  %v19802_v37 = vld [vmem:[%s18836_s13 + $0x750] sm:$0xff] }
 0x10c   : > { %16196 = vmatmul.mubr.msk.f32.gmra.mrb[20].mxu1 %vm579_vm0, %v24222_v41  ;;  %16448 = vmatprep.mubr.msk.f32.mxu0 %vm579_vm0, %v13902_v39  ;;  %v19805_v39 = vld [vmem:[%s18836_s13 + $0x49e] sm:$0xff] }
 0x10d   : > { %16198 = vmatprep.mubr.msk.f32.mxu1 %vm579_vm0, %v24223_v43  ;;  %v19816_v41 = vld [vmem:[%s18836_s13 + $0x758] sm:$0xff]  ;;  %v19819_v43 = vld [vmem:[%s18836_s13 + $0x4a6] sm:$0xff] }
 0x10f   : > { %16449 = vmatmul.mubr.msk.f32.gmra.mrb[70].mxu0 %vm579_vm0, %v13903_v46  ;;  %v13700_v46 = vld [vmem:[%s18836_s13 + $0x54c] sm:$0xff] }
 0x110   : > { %16199 = vmatmul.mubr.msk.f32.gmra.mrb[22].mxu1 %vm579_vm0, %v24224_v50  ;;  %16451 = vmatprep.mubr.msk.f32.mxu0 %vm579_vm0, %v13904_v48  ;;  %v14025_v48 = vld [vmem:[%s18836_s13 + $0x16e] sm:$0xff] }
 0x111   : > { %16201 = vmatprep.mubr.msk.f32.mxu1 %vm579_vm0, %v24225_v52  ;;  %v13701_v50 = vld [vmem:[%s18836_s13 + $0x554] sm:$0xff] }
 0x112   : > { %v14026_v52 = vld [vmem:[%s18836_s13 + $0x176] sm:$0xff] }
 0x113   : > { %16452 = vmatmul.mubr.msk.f32.gmra.mrb[72].mxu0 %vm579_vm0, %v13905_v54  ;;  %v13702_v54 = vld [vmem:[%s18836_s13 + $0x584] sm:$0xff] }
 0x114   : > { %16202 = vmatmul.mubr.msk.f32.gmra.mrb[24].mxu1 %vm579_vm0, %v24226_v58  ;;  %16454 = vmatprep.mubr.msk.f32.mxu0 %vm579_vm0, %v13906_v56  ;;  %v14027_v56 = vld [vmem:[%s18836_s13 + $0x1a6] sm:$0xff] }
 0x115   : > { %16204 = vmatprep.mubr.msk.f32.mxu1 %vm579_vm0, %v24227_v60  ;;  %v19836_v58 = vld [vmem:[%s23910_s4 + $0x40] sm:$0xff]  ;;  %v13703_v60 = vld [vmem:[%s18836_s13 + $0x58c] sm:$0xff] }
 0x117   : > { %16455 = vmatmul.mubr.msk.f32.gmra.mrb[74].mxu0 %vm579_vm0, %v13907_v62  ;;  %v14028_v62 = vld [vmem:[%s18836_s13 + $0x1ae] sm:$0xff] }
 0x118   : > { %16205 = vmatmul.mubr.msk.f32.gmra.mrb[26].mxu1 %vm579_vm0, %v24228_v1  ;;  %16457 = vmatprep.mubr.msk.f32.mxu0 %vm579_vm0, %v13908_v0  ;;  %v13704_v0 = vld [vmem:[%s18836_s13 + $0x5bc] sm:$0xff] }
 0x119   : > { %16207 = vmatprep.mubr.msk.f32.mxu1 %vm579_vm0, %v24229_v4  ;;  %v14029_v1 = vld [vmem:[%s18836_s13 + $0x1de] sm:$0xff] }
 0x11a   : > { %v13705_v4 = vld [vmem:[%s18836_s13 + $0x5c4] sm:$0xff] }
 0x11b   : > { %16458 = vmatmul.mubr.msk.f32.gmra.mrb[76].mxu0 %vm579_vm0, %v13909_v6  ;;  %v14030_v6 = vld [vmem:[%s18836_s13 + $0x1e6] sm:$0xff] }
 0x11c   : > { %16208 = vmatmul.mubr.msk.f32.gmra.mrb[28].mxu1 %vm579_vm0, %v24230_v44  ;;  %16460 = vmatprep.mubr.msk.f32.mxu0 %vm579_vm0, %v13910_v42  ;;  %v14031_v42 = vld [vmem:[%s18836_s13 + $0x216] sm:$0xff] }
 0x11d   : > { %16210 = vmatprep.mubr.msk.f32.mxu1 %vm579_vm0, %v24231_v47  ;;  %v13707_v44 = vld [vmem:[%s18836_s13 + $0x5fc] sm:$0xff] }
 0x11e   : > { %v14032_v47 = vld [vmem:[%s18836_s13 + $0x21e] sm:$0xff] }
 0x11f   : > { %16461 = vmatmul.mubr.msk.f32.gmra.mrb[78].mxu0 %vm579_vm0, %v13911_v49  ;;  %v14033_v49 = vld [vmem:[%s18836_s13 + $0x24e] sm:$0xff] }
 0x120   : > { %16211 = vmatmul.mubr.msk.f32.gmra.mrb[30].mxu1 %vm579_vm0, %v24232_v53  ;;  %16463 = vmatprep.mubr.msk.f32.mxu0 %vm579_vm0, %v13912_v51  ;;  %v14034_v51 = vld [vmem:[%s18836_s13 + $0x256] sm:$0xff]  ;;  %v14035_v53 = vld [vmem:[%s18836_s13 + $0x286] sm:$0xff] }
 0x121   : > { %16213 = vmatprep.mubr.msk.f32.mxu1 %vm579_vm0, %v24233_v55  ;;  %v14036_v55 = vld [vmem:[%s18836_s13 + $0x28e] sm:$0xff] }
 0x123   : > { %16464 = vmatmul.mubr.msk.f32.gmra.mrb[80].mxu0 %vm579_vm0, %v13913_v59  ;;  %v14037_v59 = vld [vmem:[%s18836_s13 + $0x2be] sm:$0xff] }
 0x124   : > { %16214 = vmatmul.mubr.msk.f32.gmra.mrb[0].mxu1 %vm579_vm0, %v24234_v30  ;;  %16466 = vmatprep.mubr.msk.f32.mxu0 %vm579_vm0, %v13914_v63  ;;  %v13722_v63 = vld [vmem:[%s18836_s13 + $0x7b4] sm:$0xff] }
 0x125   : > { %16216 = vmatprep.mubr.msk.f32.mxu1 %vm579_vm0, %v24235_v61  ;;  %v14047_v30 = vld [vmem:[%s18836_s13 + $0x3d6] sm:$0xff]  ;;  %v14048_v61 = vld [vmem:[%s18836_s13 + $0x3de] sm:$0xff] }
 0x127   : > { %16467 = vmatmul.mubr.msk.f32.gmra.mrb[82].mxu0 %vm579_vm0, %v13915_v34  ;;  %v13724_v34 = vld [vmem:[%s18836_s13 + $0x7ec] sm:$0xff] }
 0x128   : > { %16217 = vmatmul.mubr.msk.f32.gmra.mrb[2].mxu1 %vm579_vm0, %v24236_v57  ;;  %16469 = vmatprep.mubr.msk.f32.mxu0 %vm579_vm0, %v13916_v2  ;;  %v19935_v2 = vld [vmem:[%s18836_s13 + $0x40e] sm:$0xff] }
 0x129   : > { %16219 = vmatprep.mubr.msk.f32.mxu1 %vm579_vm0, %v19715_v38  ;;  %v13725_v57 = vld [vmem:[%s18836_s13 + $0x7f4] sm:$0xff] }
 0x12b   : > { %16470 = vmatmul.mubr.msk.f32.gmra.mrb[84].mxu0 %vm579_vm0, %v13917_v10  ;;  %v19944_v10 = vld [vmem:[%s18836_s13 + $0x416] sm:$0xff] }
 0x12c   : > { %16220 = vmatmul.mubr.msk.f32.gmra.mrb[4].mxu1 %vm579_vm0, %v19725_v14  ;;  %16472 = vmatprep.mubr.msk.f32.mxu0 %vm579_vm0, %v13918_v40  ;;  %v13726_v40 = vld [vmem:[%s18836_s13 + $0x824] sm:$0xff] }
 0x12d   : > { %16222 = vmatprep.mubr.msk.f32.mxu1 %vm579_vm0, %v19729_v26 }
 0x12f   : > { %16473 = vmatmul.mubr.msk.f32.gmra.mrb[86].mxu0 %vm579_vm0, %v13919_v7  ;;  %v19948_v7 = vld [vmem:[%s18836_s13 + $0x446] sm:$0xff] }
 0x130   : > { %16223 = vmatmul.mubr.msk.f32.gmra.mrb[6].mxu1 %vm579_vm0, %v19739_v3  ;;  %16475 = vmatprep.mubr.msk.f32.mxu0 %vm579_vm0, %v19746_v11 }
 0x131   : > { %16225 = vmatprep.mubr.msk.f32.mxu1 %vm579_vm0, %v19743_v9 }
 0x133   : > { %16476 = vmatmul.mubr.msk.f32.gmra.mrb[88].mxu0 %vm579_vm0, %v19759_v15 }
 0x134   : > { %16226 = vmatmul.mubr.msk.f32.gmra.mrb[8].mxu1 %vm579_vm0, %v19756_v13  ;;  %16478 = vmatprep.mubr.msk.f32.mxu0 %vm579_vm0, %v19765_v23 }
 0x135   : > { %16228 = vmatprep.mubr.msk.f32.mxu1 %vm579_vm0, %v19762_v17 }
 0x137   : > { %16479 = vmatmul.mubr.msk.f32.gmra.mrb[90].mxu0 %vm579_vm0, %v19779_v21 }
 0x138   : > { %16229 = vmatmul.mubr.msk.f32.gmra.mrb[10].mxu1 %vm579_vm0, %v19776_v19  ;;  %16481 = vmatprep.mubr.msk.f32.mxu0 %vm579_vm0, %v19785_v29 }
 0x139   : > { %16231 = vmatprep.mubr.msk.f32.mxu1 %vm579_vm0, %v19782_v27 }
 0x13b   : > { %16482 = vmatmul.mubr.msk.f32.gmra.mrb[92].mxu0 %vm579_vm0, %v19799_v35 }
 0x13c   : > { %16232 = vmatmul.mubr.msk.f32.gmra.mrb[12].mxu1 %vm579_vm0, %v19796_v33  ;;  %16484 = vmatprep.mubr.msk.f32.mxu0 %vm579_vm0, %v19805_v39 }
 0x13d   : > { %16234 = vmatprep.mubr.msk.f32.mxu1 %vm579_vm0, %v19802_v37 }
 0x13f   : > { %16485 = vmatmul.mubr.msk.f32.gmra.mrb[94].mxu0 %vm579_vm0, %v19819_v43 }
 0x140   : > { %16235 = vmatmul.mubr.msk.f32.gmra.mrb[14].mxu1 %vm579_vm0, %v19816_v41  ;;  %16489 = vmatprep.mubr.msk.f32.mxu0 %vm579_vm0, %v14025_v48  ;;  %v19958_v48 = vld [vmem:[%s18836_s13 + $0x44e] sm:$0xff] }
 0x141   : > { %16239 = vmatprep.mubr.msk.f32.mxu1 %vm579_vm0, %v13700_v46  ;;  %v13727_v46 = vld [vmem:[%s18836_s13 + $0x82c] sm:$0xff] }
 0x143   : > { %16490 = vmatmul.mubr.msk.f32.vlgmr.msra.gmra.mrb[64].mxu0 %vm579_vm0, %v14026_v52  ;;  %v19962_v52 = vld [vmem:[%s18836_s13 + $0x47e] sm:$0xff] }
 0x144   : > { %16240 = vmatmul.mubr.msk.f32.vlgmr.msra.gmra.mrb[16].mxu1 %vm579_vm0, %v13701_v50  ;;  %16492 = vmatprep.mubr.msk.f32.mxu0 %vm579_vm0, %v14027_v56  ;;  %v13728_v50 = vld [vmem:[%s18836_s13 + $0x85c] sm:$0xff]  ;;  %v19972_v56 = vld [vmem:[%s18836_s13 + $0x486] sm:$0xff] }
 0x145   : > { %16288 = vmatpush3.msra.mxu1 %v19632_v25  ;;  %16242 = vmatprep.mubr.msk.f32.mxu1 %vm579_vm0, %v13702_v54  ;;  %v19852_v25 = vld [vmem:[%s23912_s6 + $0x20] sm:$0xff] }
 0x146   : > { %16337 = vmatprep.subr.mxu1 %v19836_v58  ;;  %16538 = vmatpush3.msra.mxu0 %v19648_v31  ;;  %v13706_v31 = vld [vmem:[%s18836_s13 + $0x5f4] sm:$0xff]  ;;  %v13729_v54 = vld [vmem:[%s18836_s13 + $0x864] sm:$0xff] }
 0x147   : > { %16493 = vmatmul.mubr.msk.f32.gmra.mrb[66].mxu0 %vm579_vm0, %v14028_v62  ;;  %16587 = vmatprep.subr.mxu0 %v19852_v25  ;;  %v19976_v62 = vld [vmem:[%s18836_s13 + $0x4b6] sm:$0xff] }
 0x148   : > { %16243 = vmatmul.mubr.msk.f32.gmra.mrb[18].mxu1 %vm579_vm0, %v13703_v60  ;;  %16495 = vmatprep.mubr.msk.f32.mxu0 %vm579_vm0, %v14029_v1  ;;  %v13730_v60 = vld [vmem:[%s18836_s13 + $0x894] sm:$0xff]  ;;  %v19986_v1 = vld [vmem:[%s18836_s13 + $0x4be] sm:$0xff] }
 0x149   : > { %16245 = vmatprep.mubr.msk.f32.mxu1 %vm579_vm0, %v13704_v0  ;;  %v13731_v0 = vld [vmem:[%s18836_s13 + $0x89c] sm:$0xff] }
 0x14b   : > { %16496 = vmatmul.mubr.msk.f32.gmra.mrb[68].mxu0 %vm579_vm0, %v14030_v6  ;;  %v13766_v6 = vld [vmem:[%s18836_s13 + $0x55a] sm:$0xff] }
 0x14c   : > { %16246 = vmatmul.mubr.msk.f32.gmra.mrb[20].mxu1 %vm579_vm0, %v13705_v4  ;;  %16498 = vmatprep.mubr.msk.f32.mxu0 %vm579_vm0, %v14031_v42  ;;  %v13765_v4 = vld [vmem:[%s18836_s13 + $0x552] sm:$0xff]  ;;  %v20003_v42 = vld [vmem:[%s23914_s8 + $0x8] sm:$0xff] }
 0x14d   : > { %16248 = vmatprep.mubr.msk.f32.mxu1 %vm579_vm0, %v13706_v31  ;;  %v13767_v31 = vld [vmem:[%s18836_s13 + $0x58a] sm:$0xff] }
 0x14f   : > { %16499 = vmatmul.mubr.msk.f32.gmra.mrb[70].mxu0 %vm579_vm0, %v14032_v47  ;;  %v14099_v47 = vld [vmem:[%s18836_s13 + $0x4de] sm:$0xff] }
 0x150   : > { %16249 = vmatmul.mubr.msk.f32.gmra.mrb[22].mxu1 %vm579_vm0, %v13707_v44  ;;  %16501 = vmatprep.mubr.msk.f32.mxu0 %vm579_vm0, %v14033_v49  ;;  %v20008_v44 = vld [vmem:[%s23912_s6 + $0x28] sm:$0xff] }
 0x151   : > { %16251 = vmatprep.mubr.msk.f32.mxu1 %vm579_vm0, %v19394_v20  ;;  %v14038_v20 = vld [vmem:[%s18836_s13 + $0x2c6] sm:$0xff]  ;;  %v14100_v49 = vld [vmem:[%s18836_s13 + $0x50e] sm:$0xff] }
 0x153   : > { %16502 = vmatmul.mubr.msk.f32.gmra.mrb[72].mxu0 %vm579_vm0, %v14034_v51  ;;  %v14101_v51 = vld [vmem:[%s18836_s13 + $0x516] sm:$0xff] }
 0x154   : > { %16252 = vmatmul.mubr.msk.f32.gmra.mrb[24].mxu1 %vm579_vm0, %v19406_v24  ;;  %16504 = vmatprep.mubr.msk.f32.mxu0 %vm579_vm0, %v14035_v53  ;;  %v14039_v24 = vld [vmem:[%s18836_s13 + $0x2f6] sm:$0xff]  ;;  %v13777_v53 = vld [vmem:[%s18836_s13 + $0x6a2] sm:$0xff] }
 0x155   : > { %16254 = vmatprep.mubr.msk.f32.mxu1 %vm579_vm0, %v19410_v28  ;;  %v14040_v28 = vld [vmem:[%s18836_s13 + $0x2fe] sm:$0xff] }
 0x157   : > { %16505 = vmatmul.mubr.msk.f32.gmra.mrb[74].mxu0 %vm579_vm0, %v14036_v55  ;;  %v14102_v55 = vld [vmem:[%s18836_s13 + $0x546] sm:$0xff] }
 0x158   : > { %16255 = vmatmul.mubr.msk.f32.gmra.mrb[26].mxu1 %vm579_vm0, %v19420_v32  ;;  %16507 = vmatprep.mubr.msk.f32.mxu0 %vm579_vm0, %v14037_v59  ;;  %v14041_v32 = vld [vmem:[%s18836_s13 + $0x32e] sm:$0xff] }
 0x159   : > { %16257 = vmatprep.mubr.msk.f32.mxu1 %vm579_vm0, %v19424_v36  ;;  %v14042_v36 = vld [vmem:[%s18836_s13 + $0x336] sm:$0xff]  ;;  %v13778_v59 = vld [vmem:[%s18836_s13 + $0x6aa] sm:$0xff] }
 0x15b   : > { %16508 = vmatmul.mubr.msk.f32.gmra.mrb[76].mxu0 %vm579_vm0, %v14038_v20  ;;  %v14103_v20 = vld [vmem:[%s18836_s13 + $0x54e] sm:$0xff] }
 0x15c   : > { %16258 = vmatmul.mubr.msk.f32.gmra.mrb[28].mxu1 %vm579_vm0, %v19434_v45  ;;  %16510 = vmatprep.mubr.msk.f32.mxu0 %vm579_vm0, %v14039_v24  ;;  %v14043_v45 = vld [vmem:[%s18836_s13 + $0x366] sm:$0xff]  ;;  %v13779_v24 = vld [vmem:[%s18836_s13 + $0x6da] sm:$0xff] }
 0x15d   : > { %16260 = vmatprep.mubr.msk.f32.mxu1 %vm579_vm0, %v19438_v8  ;;  %v14044_v8 = vld [vmem:[%s18836_s13 + $0x36e] sm:$0xff] }
 0x15f   : > { %16511 = vmatmul.mubr.msk.f32.gmra.mrb[78].mxu0 %vm579_vm0, %v14040_v28  ;;  %v14104_v28 = vld [vmem:[%s18836_s13 + $0x57e] sm:$0xff] }
 0x160   : > { %16261 = vmatmul.mubr.msk.f32.gmra.mrb[30].mxu1 %vm579_vm0, %v19448_v12  ;;  %16513 = vmatprep.mubr.msk.f32.mxu0 %vm579_vm0, %v14041_v32  ;;  %v13720_v12 = vld [vmem:[%s18836_s13 + $0x77c] sm:$0xff] }
 0x161   : > { %16263 = vmatprep.mubr.msk.f32.mxu1 %vm579_vm0, %v19451_v16  ;;  %v14045_v16 = vld [vmem:[%s18836_s13 + $0x39e] sm:$0xff] }
 0x162   : > { %v13780_v32 = vld [vmem:[%s18836_s13 + $0x6e2] sm:$0xff] }
 0x163   : > { %16514 = vmatmul.mubr.msk.f32.gmra.mrb[80].mxu0 %vm579_vm0, %v14042_v36  ;;  %v14105_v36 = vld [vmem:[%s18836_s13 + $0x586] sm:$0xff] }
 0x164   : > { %16264 = vmatmul.mubr.msk.f32.gmra.mrb[0].mxu1 %vm579_vm0, %v19461_v18  ;;  %16516 = vmatprep.mubr.msk.f32.mxu0 %vm579_vm0, %v14043_v45  ;;  %v13721_v18 = vld [vmem:[%s18836_s13 + $0x784] sm:$0xff]  ;;  %v13781_v45 = vld [vmem:[%s18836_s13 + $0x712] sm:$0xff] }
 0x165   : > { %16266 = vmatprep.mubr.msk.f32.mxu1 %vm579_vm0, %v19464_v22  ;;  %v14046_v22 = vld [vmem:[%s18836_s13 + $0x3a6] sm:$0xff] }
 0x167   : > { %16517 = vmatmul.mubr.msk.f32.gmra.mrb[82].mxu0 %vm579_vm0, %v14044_v8  ;;  %v14106_v8 = vld [vmem:[%s18836_s13 + $0x5b6] sm:$0xff] }
 0x168   : > { %16267 = vmatmul.mubr.msk.f32.gmra.mrb[2].mxu1 %vm579_vm0, %v19475_v5  ;;  %16519 = vmatprep.mubr.msk.f32.mxu0 %vm579_vm0, %v14045_v16  ;;  %v13723_v5 = vld [vmem:[%s18836_s13 + $0x7bc] sm:$0xff] }
 0x169   : > { %16269 = vmatprep.mubr.msk.f32.mxu1 %vm579_vm0, %v13720_v12  ;;  %v13782_v12 = vld [vmem:[%s18836_s13 + $0x71a] sm:$0xff] }
 0x16a   : > { %v14107_v16 = vld [vmem:[%s18836_s13 + $0x5be] sm:$0xff] }
 0x16b   : > { %16520 = vmatmul.mubr.msk.f32.gmra.mrb[84].mxu0 %vm579_vm0, %v14046_v22  ;;  %v14108_v22 = vld [vmem:[%s18836_s13 + $0x5ee] sm:$0xff] }
 0x16c   : > { %16270 = vmatmul.mubr.msk.f32.gmra.mrb[4].mxu1 %vm579_vm0, %v13721_v18  ;;  %16522 = vmatprep.mubr.msk.f32.mxu0 %vm579_vm0, %v14047_v30  ;;  %v13783_v18 = vld [vmem:[%s18836_s13 + $0x74a] sm:$0xff]  ;;  %v14109_v30 = vld [vmem:[%s18836_s13 + $0x5f6] sm:$0xff] }
 0x16d   : > { %16272 = vmatprep.mubr.msk.f32.mxu1 %vm579_vm0, %v13722_v63  ;;  %v13784_v63 = vld [vmem:[%s18836_s13 + $0x752] sm:$0xff] }
 0x16f   : > { %16523 = vmatmul.mubr.msk.f32.gmra.mrb[86].mxu0 %vm579_vm0, %v14048_v61  ;;  %v14110_v61 = vld [vmem:[%s18836_s13 + $0x626] sm:$0xff] }
 0x170   : > { %16273 = vmatmul.mubr.msk.f32.gmra.mrb[6].mxu1 %vm579_vm0, %v13723_v5  ;;  %16525 = vmatprep.mubr.msk.f32.mxu0 %vm579_vm0, %v19935_v2  ;;  %v13785_v5 = vld [vmem:[%s18836_s13 + $0x782] sm:$0xff] }
 0x171   : > { %16275 = vmatprep.mubr.msk.f32.mxu1 %vm579_vm0, %v13724_v34  ;;  %v13786_v34 = vld [vmem:[%s18836_s13 + $0x78a] sm:$0xff] }
 0x173   : > { %16526 = vmatmul.mubr.msk.f32.gmra.mrb[88].mxu0 %vm579_vm0, %v19944_v10 }
 0x174   : > { %16276 = vmatmul.mubr.msk.f32.gmra.mrb[8].mxu1 %vm579_vm0, %v13725_v57  ;;  %16528 = vmatprep.mubr.msk.f32.mxu0 %vm579_vm0, %v19948_v7  ;;  %v14111_v57 = vld [vmem:[%s18836_s13 + $0x62e] sm:$0xff] }
 0x175   : > { %16278 = vmatprep.mubr.msk.f32.mxu1 %vm579_vm0, %v13726_v40  ;;  %v13787_v40 = vld [vmem:[%s18836_s13 + $0x7ba] sm:$0xff] }
 0x177   : > { %16529 = vmatmul.mubr.msk.f32.gmra.mrb[90].mxu0 %vm579_vm0, %v19958_v48 }
 0x178   : > { %16279 = vmatmul.mubr.msk.f32.gmra.mrb[10].mxu1 %vm579_vm0, %v13727_v46  ;;  %16531 = vmatprep.mubr.msk.f32.mxu0 %vm579_vm0, %v19962_v52  ;;  %v14112_v46 = vld [vmem:[%s18836_s13 + $0x65e] sm:$0xff] }
 0x179   : > { %16281 = vmatprep.mubr.msk.f32.mxu1 %vm579_vm0, %v13728_v50  ;;  %v20095_v50 = vpop.f32.mrb[0].mxu0 }
 0x17b   : > { %16532 = vmatmul.mubr.msk.f32.gmra.mrb[92].mxu0 %vm579_vm0, %v19972_v56 }
 0x17c   : > { %16282 = vmatmul.mubr.msk.f32.gmra.mrb[12].mxu1 %vm579_vm0, %v13729_v54  ;;  %16534 = vmatprep.mubr.msk.f32.mxu0 %vm579_vm0, %v19976_v62  ;;  %v13788_v54 = vld [vmem:[%s18836_s13 + $0x7c2] sm:$0xff] }
 0x17d   : > { %16284 = vmatprep.mubr.msk.f32.mxu1 %vm579_vm0, %v13730_v60  ;;  %v14113_v60 = vld [vmem:[%s18836_s13 + $0x666] sm:$0xff] }
 0x17f   : > { %16535 = vmatmul.mubr.msk.f32.gmra.mrb[94].mxu0 %vm579_vm0, %v19986_v1 }
 0x180   : > { %16285 = vmatmul.mubr.msk.f32.gmra.mrb[14].mxu1 %vm579_vm0, %v13731_v0  ;;  %16539 = vmatprep.mubr.msk.f32.mxu0 %vm579_vm0, %v19746_v11  ;;  %v13768_v11 = vld [vmem:[%s18836_s13 + $0x592] sm:$0xff]  ;;  %v20101_v0 = vpop.f32.mrb[1].mxu0 }
 0x181   : > { %16289 = vmatprep.mubr.msk.f32.mxu1 %vm579_vm0, %v13765_v4  ;;  %v13789_v4 = vld [vmem:[%s18836_s13 + $0x7f2] sm:$0xff] }
 0x183   : > { %16540 = vmatmul.mubr.msk.f32.vlgmr.msra.gmra.mrb[64].mxu0 %vm579_vm0, %v19759_v15  ;;  %v13769_v15 = vld [vmem:[%s18836_s13 + $0x5c2] sm:$0xff] }
 0x184   : > { %16290 = vmatmul.mubr.msk.f32.vlgmr.msra.gmra.mrb[16].mxu1 %vm579_vm0, %v13766_v6  ;;  %16542 = vmatprep.mubr.msk.f32.mxu0 %vm579_vm0, %v19765_v23  ;;  %v13770_v23 = vld [vmem:[%s18836_s13 + $0x5ca] sm:$0xff]  ;;  %v20105_v6 = vld [vmem:[%s18836_s13 + $0x696] sm:$0xff] }
 0x185   : > { %16338 = vmatpush3.msra.mxu1 %v19836_v58  ;;  %16292 = vmatprep.mubr.msk.f32.mxu1 %vm579_vm0, %v13767_v31  ;;  %v13771_v58 = vld [vmem:[%s18836_s13 + $0x5fa] sm:$0xff]  ;;  %v20107_v31 = vpop.f32.mrb[2].mxu0 }
 0x186   : > { %16588 = vmatpush3.msra.mxu0 %v19852_v25  ;;  %16837 = vmatprep.subr.mxu1 %v20003_v42  ;;  %v13773_v25 = vld [vmem:[%s18836_s13 + $0x632] sm:$0xff] }
 0x187   : > { %16637 = vmatprep.subr.mxu0 %v20008_v44  ;;  %16543 = vmatmul.mubr.msk.f32.gmra.mrb[66].mxu0 %vm579_vm0, %v19779_v21  ;;  %v13772_v21 = vld [vmem:[%s18836_s13 + $0x602] sm:$0xff] }
 0x188   : > { %16293 = vmatmul.mubr.msk.f32.gmra.mrb[18].mxu1 %vm579_vm0, %v13768_v11  ;;  %16545 = vmatprep.mubr.msk.f32.mxu0 %vm579_vm0, %v19785_v29  ;;  %v14098_v29 = vld [vmem:[%s18836_s13 + $0x4d6] sm:$0xff]  ;;  %v20111_v11 = vpop.f32.mrb[3].mxu0 }
 0x189   : > { %16295 = vmatprep.mubr.msk.f32.mxu1 %vm579_vm0, %v13769_v15  ;;  %v13790_v15 = vld [vmem:[%s18836_s13 + $0x7fa] sm:$0xff] }
 0x18b   : > { %16546 = vmatmul.mubr.msk.f32.gmra.mrb[68].mxu0 %vm579_vm0, %v19799_v35  ;;  %v13774_v35 = vld [vmem:[%s18836_s13 + $0x63a] sm:$0xff] }
 0x18c   : > { %16296 = vmatmul.mubr.msk.f32.gmra.mrb[20].mxu1 %vm579_vm0, %v13770_v23  ;;  %16548 = vmatprep.mubr.msk.f32.mxu0 %vm579_vm0, %v19805_v39  ;;  %v13775_v39 = vld [vmem:[%s18836_s13 + $0x66a] sm:$0xff]  ;;  %v20118_v23 = vld [vmem:[%s18836_s13 + $0x69e] sm:$0xff] }
 0x18d   : > { %16298 = vmatprep.mubr.msk.f32.mxu1 %vm579_vm0, %v13771_v58  ;;  %v20120_v58 = vpop.f32.mrb[4].mxu0 }
 0x18f   : > { %16549 = vmatmul.mubr.msk.f32.gmra.mrb[70].mxu0 %vm579_vm0, %v19819_v43  ;;  %v13776_v43 = vld [vmem:[%s18836_s13 + $0x672] sm:$0xff] }
 0x190   : > { %16299 = vmatmul.mubr.msk.f32.gmra.mrb[22].mxu1 %vm579_vm0, %v13772_v21  ;;  %16551 = vmatprep.mubr.msk.f32.mxu0 %vm579_vm0, %v14098_v29  ;;  %v13791_v21 = vld [vmem:[%s18836_s13 + $0x82a] sm:$0xff]  ;;  %v20129_v29 = vpop.f32.mrb[5].mxu0 }
 0x191   : > { %16301 = vmatprep.mubr.msk.f32.mxu1 %vm579_vm0, %v13773_v25  ;;  %v20124_v25 = vld [vmem:[%s18836_s13 + $0x6ce] sm:$0xff] }
 0x193   : > { %16552 = vmatmul.mubr.msk.f32.gmra.mrb[72].mxu0 %vm579_vm0, %v14099_v47  ;;  %v20136_v47 = vld [vmem:[%s18836_s13 + $0x6d6] sm:$0xff] }
 0x194   : > { %16302 = vmatmul.mubr.msk.f32.gmra.mrb[24].mxu1 %vm579_vm0, %v13774_v35  ;;  %16554 = vmatprep.mubr.msk.f32.mxu0 %vm579_vm0, %v14100_v49  ;;  %v13792_v35 = vld [vmem:[%s18836_s13 + $0x832] sm:$0xff]  ;;  %v13793_v49 = vld [vmem:[%s18836_s13 + $0x862] sm:$0xff] }
 0x195   : > { %16304 = vmatprep.mubr.msk.f32.mxu1 %vm579_vm0, %v13775_v39  ;;  %v20138_v39 = vpop.f32.mrb[6].mxu0 }
 0x197   : > { %16555 = vmatmul.mubr.msk.f32.gmra.mrb[74].mxu0 %vm579_vm0, %v14101_v51  ;;  %v20147_v51 = vpop.f32.mrb[7].mxu0 }
 0x198   : > { %16305 = vmatmul.mubr.msk.f32.gmra.mrb[26].mxu1 %vm579_vm0, %v13776_v43  ;;  %16557 = vmatprep.mubr.msk.f32.mxu0 %vm579_vm0, %v14102_v55  ;;  %v20142_v43 = vld [vmem:[%s18836_s13 + $0x706] sm:$0xff]  ;;  %v20154_v55 = vld [vmem:[%s18836_s13 + $0x70e] sm:$0xff] }
 0x199   : > { %16307 = vmatprep.mubr.msk.f32.mxu1 %vm579_vm0, %v13777_v53  ;;  %v13794_v53 = vld [vmem:[%s18836_s13 + $0x86a] sm:$0xff] }
 0x19b   : > { %16558 = vmatmul.mubr.msk.f32.gmra.mrb[76].mxu0 %vm579_vm0, %v14103_v20  ;;  %v13795_v20 = vld [vmem:[%s18836_s13 + $0x89a] sm:$0xff] }
 0x19c   : > { %16308 = vmatmul.mubr.msk.f32.gmra.mrb[28].mxu1 %vm579_vm0, %v13778_v59  ;;  %16560 = vmatprep.mubr.msk.f32.mxu0 %vm579_vm0, %v14104_v28  ;;  %v20156_v59 = vpop.f32.mrb[8].mxu0 }
 0x19d   : > { %16310 = vmatprep.mubr.msk.f32.mxu1 %vm579_vm0, %v13779_v24  ;;  %v20160_v24 = vld [vmem:[%s18836_s13 + $0x73e] sm:$0xff]  ;;  %v20165_v28 = vpop.f32.mrb[9].mxu0 }
 0x19f   : > { %16561 = vmatmul.mubr.msk.f32.gmra.mrb[78].mxu0 %vm579_vm0, %v14105_v36  ;;  %v20172_v36 = vld [vmem:[%s18836_s13 + $0x746] sm:$0xff] }
 0x1a0   : > { %16311 = vmatmul.mubr.msk.f32.gmra.mrb[30].mxu1 %vm579_vm0, %v13780_v32  ;;  %16563 = vmatprep.mubr.msk.f32.mxu0 %vm579_vm0, %v14106_v8  ;;  %v13796_v32 = vld [vmem:[%s18836_s13 + $0x8a2] sm:$0xff]  ;;  %v13830_v8 = vld [vmem:[%s18836_s13 + $0x558] sm:$0xff] }
 0x1a1   : > { %16313 = vmatprep.mubr.msk.f32.mxu1 %vm579_vm0, %v13781_v45  ;;  %v20174_v45 = vpop.f32.mrb[10].mxu0 }
 0x1a2   : > { %24237 = vst [vmem:[#allocation9_spill] sm:$0xff] %v20174_v45  ;;  %v7700_v45 = vld [vmem:[%s18836_s13 + $0xf2] sm:$0xff] }
 0x1a3   : > { %16564 = vmatmul.mubr.msk.f32.gmra.mrb[80].mxu0 %vm579_vm0, %v14107_v16  ;;  %v18535_v16 = vld [vmem:[%s18836_s13 + $0x402] sm:$0xff] }
 0x1a4   : > { %16314 = vmatmul.mubr.msk.f32.gmra.mrb[0].mxu1 %vm579_vm0, %v13782_v12  ;;  %16566 = vmatprep.mubr.msk.f32.mxu0 %vm579_vm0, %v14108_v22  ;;  %v20180_v12 = vpop.f32.mrb[11].mxu0 }
 0x1a5   : > { %16316 = vmatprep.mubr.msk.f32.mxu1 %vm579_vm0, %v13783_v18  ;;  %24238 = vst [vmem:[#allocation11_spill] sm:$0xff] %v20180_v12  ;;  %v13831_v18 = vld [vmem:[%s18836_s13 + $0x560] sm:$0xff]  ;;  %v20186_v22 = vpop.f32.mrb[12].mxu0  ;;  %v7702_v12 = vld [vmem:[%s18836_s13 + $0x12a] sm:$0xff] }
 0x1a6   : > { %24239 = vst [vmem:[#allocation13_spill] sm:$0xff] %v20186_v22  ;;  %v7692_v22 = vld [vmem:[%s18836_s13 + $0x12] sm:$0xff] }
 0x1a7   : > { %16567 = vmatmul.mubr.msk.f32.gmra.mrb[82].mxu0 %vm579_vm0, %v14109_v30  ;;  %v18536_v30 = vld [vmem:[%s18836_s13 + $0x40a] sm:$0xff] }
 0x1a8   : > { %16317 = vmatmul.mubr.msk.f32.gmra.mrb[2].mxu1 %vm579_vm0, %v13784_v63  ;;  %16569 = vmatprep.mubr.msk.f32.mxu0 %vm579_vm0, %v14110_v61  ;;  %v13832_v63 = vld [vmem:[%s18836_s13 + $0x590] sm:$0xff] }
 0x1a9   : > { %16319 = vmatprep.mubr.msk.f32.mxu1 %vm579_vm0, %v13785_v5  ;;  %v20195_v5 = vld [vmem:[%s23914_s8] sm:$0xff]  ;;  %v20200_v61 = vld [vmem:[%s23912_s6 + $0x30] sm:$0xff] }
 0x1ab   : > { %16570 = vmatmul.mubr.msk.f32.gmra.mrb[84].mxu0 %vm579_vm0, %v14111_v57  ;;  %v20205_v57 = vpop.f32.mrb[13].mxu0 }
 0x1ac   : > { %16320 = vmatmul.mubr.msk.f32.gmra.mrb[4].mxu1 %vm579_vm0, %v13786_v34  ;;  %16572 = vmatprep.mubr.msk.f32.mxu0 %vm579_vm0, %v14112_v46  ;;  %v13833_v34 = vld [vmem:[%s18836_s13 + $0x598] sm:$0xff]  ;;  %24240 = vst [vmem:[#allocation8_spill] sm:$0xff] %v20205_v57  ;;  %v13834_v46 = vld [vmem:[%s18836_s13 + $0x5c8] sm:$0xff] }
 0x1ad   : > { %16322 = vmatprep.mubr.msk.f32.mxu1 %vm579_vm0, %v13787_v40  ;;  %v18537_v40 = vld [vmem:[%s18836_s13 + $0x43a] sm:$0xff]  ;;  %v7694_v57 = vld [vmem:[%s18836_s13 + $0x4a] sm:$0xff] }
 0x1af   : > { %16573 = vmatmul.mubr.msk.f32.gmra.mrb[86].mxu0 %vm579_vm0, %v14113_v60 }
 0x1b0   : > { %16323 = vmatmul.mubr.msk.f32.gmra.mrb[6].mxu1 %vm579_vm0, %v13788_v54  ;;  %16575 = vmatprep.mubr.msk.f32.mxu0 %vm579_vm0, %v20105_v6  ;;  %v20211_v54 = vpop.f32.mrb[14].mxu0 }
 0x1b1   : > { %16325 = vmatprep.mubr.msk.f32.mxu1 %vm579_vm0, %v13789_v4  ;;  %24241 = vst [vmem:[#allocation10_spill] sm:$0xff] %v20211_v54  ;;  %v20218_v60 = vpop.f32.mrb[15].mxu0  ;;  %v18539_v4 = vld [vmem:[%s18836_s13 + $0x472] sm:$0xff]  ;;  %v13860_v54 = vld [vmem:[%s18836_s13 + $0x8a0] sm:$0xff] }
 0x1b2   : > { %24242 = vst [vmem:[#allocation12_spill] sm:$0xff] %v20218_v60  ;;  %v13861_v60 = vld [vmem:[%s18836_s13 + $0x8a8] sm:$0xff] }
 0x1b3   : > { %16576 = vmatmul.mubr.msk.f32.gmra.mrb[88].mxu0 %vm579_vm0, %v20118_v23 }
 0x1b4   : > { %16326 = vmatmul.mubr.msk.f32.gmra.mrb[8].mxu1 %vm579_vm0, %v13790_v15  ;;  %16578 = vmatprep.mubr.msk.f32.mxu0 %vm579_vm0, %v20124_v25  ;;  %v20224_v15 = vpop.f32.mrb[16].mxu0 }
 0x1b5   : > { %16328 = vmatprep.mubr.msk.f32.mxu1 %vm579_vm0, %v13791_v21  ;;  %24243 = vst [vmem:[#allocation14_spill] sm:$0xff] %v20224_v15  ;;  %v13836_v21 = vld [vmem:[%s18836_s13 + $0x600] sm:$0xff]  ;;  %v13858_v15 = vld [vmem:[%s18836_s13 + $0x868] sm:$0xff] }
 0x1b7   : > { %16579 = vmatmul.mubr.msk.f32.gmra.mrb[90].mxu0 %vm579_vm0, %v20136_v47 }
 0x1b8   : > { %16329 = vmatmul.mubr.msk.f32.gmra.mrb[10].mxu1 %vm579_vm0, %v13792_v35  ;;  %16581 = vmatprep.mubr.msk.f32.mxu0 %vm579_vm0, %v20142_v43  ;;  %v18540_v35 = vld [vmem:[%s18836_s13 + $0x47a] sm:$0xff] }
 0x1b9   : > { %16331 = vmatprep.mubr.msk.f32.mxu1 %vm579_vm0, %v13793_v49  ;;  %v20230_v49 = vpop.f32.mrb[17].mxu0 }
 0x1ba   : > { %24244 = vst [vmem:[#allocation15_spill] sm:$0xff] %v20230_v49 }
 0x1bb   : > { %16582 = vmatmul.mubr.msk.f32.gmra.mrb[92].mxu0 %vm579_vm0, %v20154_v55 }
 0x1bc   : > { %16332 = vmatmul.mubr.msk.f32.gmra.mrb[12].mxu1 %vm579_vm0, %v13794_v53  ;;  %16584 = vmatprep.mubr.msk.f32.mxu0 %vm579_vm0, %v20160_v24  ;;  %v18541_v53 = vld [vmem:[%s18836_s13 + $0x4aa] sm:$0xff] }
 0x1bd   : > { %16334 = vmatprep.mubr.msk.f32.mxu1 %vm579_vm0, %v13795_v20  ;;  %v13837_v20 = vld [vmem:[%s18836_s13 + $0x608] sm:$0xff] }
 0x1bf   : > { %16585 = vmatmul.mubr.msk.f32.gmra.mrb[94].mxu0 %vm579_vm0, %v20172_v36 }
 0x1c0   : > { %16335 = vmatmul.mubr.msk.f32.gmra.mrb[14].mxu1 %vm579_vm0, %v13796_v32  ;;  %16589 = vmatprep.mubr.msk.f32.mxu0 %vm579_vm0, %v18535_v16  ;;  %v20236_v32 = vpop.f32.mrb[18].mxu0 }
 0x1c1   : > { %16339 = vmatprep.mubr.msk.f32.mxu1 %vm579_vm0, %v13830_v8  ;;  %24245 = vst [vmem:[#allocation16_spill] sm:$0xff] %v20236_v32  ;;  %v18542_v8 = vld [vmem:[%s18836_s13 + $0x4b2] sm:$0xff]  ;;  %v20241_v16 = vpop.f32.mrb[19].mxu0 }
 0x1c2   : > { %24246 = vst [vmem:[#allocation17_spill] sm:$0xff] %v20241_v16  ;;  %v13857_v32 = vld [vmem:[%s18836_s13 + $0x838] sm:$0xff] }
 0x1c3   : > { %16590 = vmatmul.mubr.msk.f32.vlgmr.msra.gmra.mrb[64].mxu0 %vm579_vm0, %v18536_v30  ;;  %v18544_v30 = vld [vmem:[%s18836_s13 + $0x4ea] sm:$0xff] }
 0x1c4   : > { %16340 = vmatmul.mubr.msk.f32.vlgmr.msra.gmra.mrb[16].mxu1 %vm579_vm0, %v13831_v18  ;;  %16592 = vmatprep.mubr.msk.f32.mxu0 %vm579_vm0, %v18537_v40  ;;  %v18543_v18 = vld [vmem:[%s18836_s13 + $0x4e2] sm:$0xff]  ;;  %v18545_v40 = vld [vmem:[%s18836_s13 + $0x51a] sm:$0xff] }
 0x1c5   : > { %16838 = vmatpush3.msra.mxu1 %v20003_v42  ;;  %16342 = vmatprep.mubr.msk.f32.mxu1 %vm579_vm0, %v13832_v63  ;;  %v18538_v42 = vld [vmem:[%s18836_s13 + $0x442] sm:$0xff]  ;;  %v20247_v63 = vpop.f32.mrb[20].mxu0 }
 0x1c6   : > { %16638 = vmatpush3.msra.mxu0 %v20008_v44  ;;  %16887 = vmatprep.subr.mxu1 %v20195_v5  ;;  %v13835_v44 = vld [vmem:[%s18836_s13 + $0x5d0] sm:$0xff]  ;;  %24247 = vst [vmem:[#allocation18_spill] sm:$0xff] %v20247_v63 }
 0x1c7   : > { %16687 = vmatprep.subr.mxu0 %v20200_v61  ;;  %16593 = vmatmul.mubr.msk.f32.gmra.mrb[66].mxu0 %vm579_vm0, %v18538_v42  ;;  %v18547_v42 = vld [vmem:[%s18836_s13 + $0x552] sm:$0xff] }
 0x1c8   : > { %16343 = vmatmul.mubr.msk.f32.gmra.mrb[18].mxu1 %vm579_vm0, %v13833_v34  ;;  %16595 = vmatprep.mubr.msk.f32.mxu0 %vm579_vm0, %v18539_v4  ;;  %v20253_v34 = vpop.f32.mrb[21].mxu0  ;;  %v18548_v4 = vld [vmem:[%s18836_s13 + $0x55a] sm:$0xff]  ;;  %v13856_v63 = vld [vmem:[%s18836_s13 + $0x830] sm:$0xff] }
 0x1c9   : > { %16345 = vmatprep.mubr.msk.f32.mxu1 %vm579_vm0, %v13834_v46  ;;  %24248 = vst [vmem:[#allocation19_spill] sm:$0xff] %v20253_v34  ;;  %v18546_v46 = vld [vmem:[%s18836_s13 + $0x522] sm:$0xff] }
 0x1cb   : > { %16596 = vmatmul.mubr.msk.f32.gmra.mrb[68].mxu0 %vm579_vm0, %v18540_v35 }
 0x1cc   : > { %16346 = vmatmul.mubr.msk.f32.gmra.mrb[20].mxu1 %vm579_vm0, %v13835_v44  ;;  %16598 = vmatprep.mubr.msk.f32.mxu0 %vm579_vm0, %v18541_v53  ;;  %v18549_v44 = vld [vmem:[%s18836_s13 + $0x58a] sm:$0xff] }
 0x1cd   : > { %16348 = vmatprep.mubr.msk.f32.mxu1 %vm579_vm0, %v13836_v21 }
 0x1cf   : > { %16599 = vmatmul.mubr.msk.f32.gmra.mrb[70].mxu0 %vm579_vm0, %v18542_v8 }
 0x1d0   : > { %16349 = vmatmul.mubr.msk.f32.gmra.mrb[22].mxu1 %vm579_vm0, %v13837_v20  ;;  %16601 = vmatprep.mubr.msk.f32.mxu0 %vm579_vm0, %v18543_v18 }
 0x1d1   : > { %16351 = vmatprep.mubr.msk.f32.mxu1 %vm579_vm0, %v19715_v38  ;;  %v20259_v38 = vpop.f32.mrb[22].mxu0 }
 0x1d2   : > { %24249 = vst [vmem:[#allocation20_spill] sm:$0xff] %v20259_v38  ;;  %v13855_v38 = vld [vmem:[%s18836_s13 + $0x800] sm:$0xff] }
 0x1d3   : > { %16602 = vmatmul.mubr.msk.f32.gmra.mrb[72].mxu0 %vm579_vm0, %v18544_v30 }
 0x1d4   : > { %16352 = vmatmul.mubr.msk.f32.gmra.mrb[24].mxu1 %vm579_vm0, %v19725_v14  ;;  %16604 = vmatprep.mubr.msk.f32.mxu0 %vm579_vm0, %v18545_v40  ;;  %v20265_v14 = vpop.f32.mrb[23].mxu0 }
 0x1d5   : > { %16354 = vmatprep.mubr.msk.f32.mxu1 %vm579_vm0, %v19729_v26  ;;  %24250 = vst [vmem:[#allocation21_spill] sm:$0xff] %v20265_v14  ;;  %v20271_v26 = vpop.f32.mrb[24].mxu0 }
 0x1d6   : > { %24251 = vst [vmem:[#allocation22_spill] sm:$0xff] %v20271_v26  ;;  %v13854_v26 = vld [vmem:[%s18836_s13 + $0x7f8] sm:$0xff] }
 0x1d7   : > { %16605 = vmatmul.mubr.msk.f32.gmra.mrb[74].mxu0 %vm579_vm0, %v18546_v46  ;;  %v13850_v46 = vld [vmem:[%s18836_s13 + $0x788] sm:$0xff] }
 0x1d8   : > { %16355 = vmatmul.mubr.msk.f32.gmra.mrb[26].mxu1 %vm579_vm0, %v19739_v3  ;;  %16607 = vmatprep.mubr.msk.f32.mxu0 %vm579_vm0, %v18547_v42  ;;  %v20277_v3 = vpop.f32.mrb[25].mxu0 }
 0x1d9   : > { %16357 = vmatprep.mubr.msk.f32.mxu1 %vm579_vm0, %v19743_v9  ;;  %24252 = vst [vmem:[#allocation23_spill] sm:$0xff] %v20277_v3  ;;  %v20283_v9 = vpop.f32.mrb[26].mxu0 }
 0x1da   : > { %v20285_v21 = vpop.f32.mrb[27].mxu0 }
 0x1db   : > { %16608 = vmatmul.mubr.msk.f32.gmra.mrb[76].mxu0 %vm579_vm0, %v18548_v4  ;;  %24253 = vst [vmem:[#allocation24_spill] sm:$0xff] %v20285_v21  ;;  %v20287_v35 = vpop.f32.mrb[28].mxu0  ;;  %v18554_v4 = vld [vmem:[%s18836_s13 + $0x602] sm:$0xff] }
 0x1dc   : > { %16358 = vmatmul.mubr.msk.f32.gmra.mrb[28].mxu1 %vm579_vm0, %v19756_v13  ;;  %16610 = vmatprep.mubr.msk.f32.mxu0 %vm579_vm0, %v18549_v44  ;;  %24254 = vst [vmem:[#allocation25_spill] sm:$0xff] %v20287_v35  ;;  %v18550_v13 = vld [vmem:[%s18836_s13 + $0x592] sm:$0xff]  ;;  %v20293_v53 = vpop.f32.mrb[29].mxu0  ;;  %v13853_v35 = vld [vmem:[%s18836_s13 + $0x7c8] sm:$0xff] }
 0x1dd   : > { %16360 = vmatprep.mubr.msk.f32.mxu1 %vm579_vm0, %v19762_v17  ;;  %v18551_v17 = vld [vmem:[%s18836_s13 + $0x5c2] sm:$0xff]  ;;  %v20299_v20 = vpop.f32.mrb[30].mxu0  ;;  %v18555_v44 = vld [vmem:[%s18836_s13 + $0x632] sm:$0xff] }
 0x1de   : > { %v20301_v8 = vpop.f32.mrb[31].mxu0 }
 0x1df   : > { %16611 = vmatmul.mubr.msk.f32.gmra.mrb[78].mxu0 %vm579_vm0, %v18550_v13  ;;  %v20303_v18 = vpop.f32.mrb[48].mxu0  ;;  %v13851_v13 = vld [vmem:[%s18836_s13 + $0x790] sm:$0xff] }
 0x1e0   : > { %16361 = vmatmul.mubr.msk.f32.gmra.mrb[30].mxu1 %vm579_vm0, %v19776_v19  ;;  %16613 = vmatprep.mubr.msk.f32.mxu0 %vm579_vm0, %v18551_v17  ;;  %v18552_v19 = vld [vmem:[%s18836_s13 + $0x5ca] sm:$0xff]  ;;  %v20309_v30 = vpop.f32.mrb[49].mxu0 }
 0x1e1   : > { %16363 = vmatprep.mubr.msk.f32.mxu1 %vm579_vm0, %v19782_v27  ;;  %v18553_v27 = vld [vmem:[%s18836_s13 + $0x5fa] sm:$0xff]  ;;  %v20315_v40 = vpop.f32.mrb[50].mxu0 }
 0x1e2   : > { %v20318_v42 = vpop.f32.mrb[51].mxu0 }
 0x1e3   : > { %16614 = vmatmul.mubr.msk.f32.gmra.mrb[80].mxu0 %vm579_vm0, %v18552_v19  ;;  %v13852_v19 = vld [vmem:[%s18836_s13 + $0x7c0] sm:$0xff] }
 0x1e4   : > { %16364 = vmatmul.mubr.msk.f32.gmra.mrb[0].mxu1 %vm579_vm0, %v19796_v33  ;;  %16616 = vmatprep.mubr.msk.f32.mxu0 %vm579_vm0, %v18553_v27  ;;  %v20320_v33 = vpop.f32.mrb[52].mxu0 }
 0x1e5   : > { %16366 = vmatprep.mubr.msk.f32.mxu1 %vm579_vm0, %v19802_v37  ;;  %v20326_v37 = vpop.f32.mrb[53].mxu0 }
 0x1e6   : > { %v20332_v17 = vpop.f32.mrb[54].mxu0 }
 0x1e7   : > { %16617 = vmatmul.mubr.msk.f32.gmra.mrb[82].mxu0 %vm579_vm0, %v18554_v4  ;;  %v20335_v27 = vpop.f32.mrb[55].mxu0  ;;  %v18556_v4 = vld [vmem:[%s18836_s13 + $0x63a] sm:$0xff] }
 0x1e8   : > { %16367 = vmatmul.mubr.msk.f32.gmra.mrb[2].mxu1 %vm579_vm0, %v19816_v41  ;;  %16619 = vmatprep.mubr.msk.f32.mxu0 %vm579_vm0, %v18555_v44  ;;  %v20337_v41 = vpop.f32.mrb[56].mxu0  ;;  %v18557_v44 = vld [vmem:[%s18836_s13 + $0x66a] sm:$0xff] }
 0x1e9   : > { %16369 = vmatprep.mubr.msk.f32.mxu1 %vm579_vm0, %v13850_v46  ;;  %v20342_v46 = vpop.f32.mrb[57].mxu0 }
 0x1ea   : > { %v20348_v21 = vpop.f32.mrb[58].mxu0 }
 0x1eb   : > { %16620 = vmatmul.mubr.msk.f32.gmra.mrb[84].mxu0 %vm579_vm0, %v18556_v4  ;;  %v20351_v3 = vpop.f32.mrb[59].mxu0  ;;  %v18558_v4 = vld [vmem:[%s18836_s13 + $0x672] sm:$0xff] }
 0x1ec   : > { %16370 = vmatmul.mubr.msk.f32.gmra.mrb[4].mxu1 %vm579_vm0, %v13851_v13  ;;  %16622 = vmatprep.mubr.msk.f32.mxu0 %vm579_vm0, %v18557_v44  ;;  %v20353_v13 = vpop.f32.mrb[60].mxu0  ;;  %v18559_v44 = vld [vmem:[%s18836_s13 + $0x6a2] sm:$0xff] }
 0x1ed   : > { %16372 = vmatprep.mubr.msk.f32.mxu1 %vm579_vm0, %v13852_v19  ;;  %v20358_v19 = vpop.f32.mrb[61].mxu0 }
 0x1ee   : > { %v20364_v14 = vpop.f32.mrb[62].mxu0 }
 0x1ef   : > { %16623 = vmatmul.mubr.msk.f32.gmra.mrb[86].mxu0 %vm579_vm0, %v18558_v4  ;;  %v20367_v34 = vpop.f32.mrb[63].mxu0  ;;  %v18560_v4 = vld [vmem:[%s18836_s13 + $0x6aa] sm:$0xff] }
 0x1f0   : > { %16373 = vmatmul.mubr.msk.f32.gmra.mrb[6].mxu1 %vm579_vm0, %v13853_v35  ;;  %16625 = vmatprep.mubr.msk.f32.mxu0 %vm579_vm0, %v18559_v44  ;;  %v20369_v35 = vpop.f32.mrb[32].mxu0  ;;  %v18561_v44 = vld [vmem:[%s18836_s13 + $0x6da] sm:$0xff] }
 0x1f1   : > { %16375 = vmatprep.mubr.msk.f32.mxu1 %vm579_vm0, %v13854_v26  ;;  %v20374_v26 = vpop.f32.mrb[33].mxu0 }
 0x1f2   : > { %v20380_v16 = vpop.f32.mrb[34].mxu0 }
 0x1f3   : > { %16626 = vmatmul.mubr.msk.f32.gmra.mrb[88].mxu0 %vm579_vm0, %v18560_v4  ;;  %v20386_v4 = vpop.f32.mrb[35].mxu0 }
 0x1f4   : > { %16376 = vmatmul.mubr.msk.f32.gmra.mrb[8].mxu1 %vm579_vm0, %v13855_v38  ;;  %16628 = vmatprep.mubr.msk.f32.mxu0 %vm579_vm0, %v18561_v44  ;;  %v18562_v38 = vld [vmem:[%s18836_s13 + $0x6e2] sm:$0xff]  ;;  %v13859_v44 = vld [vmem:[%s18836_s13 + $0x870] sm:$0xff]  ;;  %v20392_v49 = vpop.f32.mrb[36].mxu0 }
 0x1f5   : > { %16378 = vmatprep.mubr.msk.f32.mxu1 %vm579_vm0, %v13856_v63  ;;  %v18563_v63 = vld [vmem:[%s18836_s13 + $0x712] sm:$0xff] }
 0x1f7   : > { %16629 = vmatmul.mubr.msk.f32.gmra.mrb[90].mxu0 %vm579_vm0, %v18562_v38  ;;  %v20398_v38 = vpop.f32.mrb[37].mxu0 }
 0x1f8   : > { %16379 = vmatmul.mubr.msk.f32.gmra.mrb[10].mxu1 %vm579_vm0, %v13857_v32  ;;  %16631 = vmatprep.mubr.msk.f32.mxu0 %vm579_vm0, %v18563_v63  ;;  %v18564_v32 = vld [vmem:[%s18836_s13 + $0x71a] sm:$0xff]  ;;  %v20404_v63 = vpop.f32.mrb[38].mxu0 }
 0x1f9   : > { %16381 = vmatprep.mubr.msk.f32.mxu1 %vm579_vm0, %v13858_v15  ;;  %v18565_v15 = vld [vmem:[%s18836_s13 + $0x74a] sm:$0xff] }
 0x1fb   : > { %16632 = vmatmul.mubr.msk.f32.gmra.mrb[92].mxu0 %vm579_vm0, %v18564_v32  ;;  %v20410_v32 = vpop.f32.mrb[39].mxu0 }
 0x1fc   : > { %16382 = vmatmul.mubr.msk.f32.gmra.mrb[12].mxu1 %vm579_vm0, %v13859_v44  ;;  %16634 = vmatprep.mubr.msk.f32.mxu0 %vm579_vm0, %v18565_v15  ;;  %v18566_v44 = vld [vmem:[%s18836_s13 + $0x752] sm:$0xff]  ;;  %v20416_v15 = vpop.f32.mrb[40].mxu0 }
 0x1fd   : > { %16384 = vmatprep.mubr.msk.f32.mxu1 %vm579_vm0, %v13860_v54  ;;  %v7693_v54 = vld [vmem:[%s18836_s13 + $0x1a] sm:$0xff] }
 0x1ff   : > { %16635 = vmatmul.mubr.msk.f32.gmra.mrb[94].mxu0 %vm579_vm0, %v18566_v44  ;;  %v7696_v44 = vld [vmem:[%s18836_s13 + $0x82] sm:$0xff] }
 0x200   : > { %16385 = vmatmul.mubr.msk.f32.gmra.mrb[14].mxu1 %vm579_vm0, %v13861_v60  ;;  %16639 = vmatprep.mubr.msk.f32.mxu0 %vm579_vm0, %v19935_v2  ;;  %v20425_v60 = vld [vmem:[%s23914_s8 + $0x10] sm:$0xff]  ;;  %v20430_v2 = vld [vmem:[%s23912_s6 + $0x38] sm:$0xff] }
 0x201   : > { %16839 = vmatprep.mubr.msk.f32.mxu1 %vm579_vm0, %v7692_v22  ;;  %v20436_v22 = vpop.f32.mrb[41].mxu0 }
 0x203   : > { %16640 = vmatmul.mubr.msk.f32.vlgmr.msra.gmra.mrb[64].mxu0 %vm579_vm0, %v19944_v10  ;;  %v7695_v10 = vld [vmem:[%s18836_s13 + $0x52] sm:$0xff] }
 0x204   : > { %16840 = vmatmul.mubr.msk.f32.vlgmr.msra.gmra.mrb[32].mxu1 %vm579_vm0, %v7693_v54  ;;  %16642 = vmatprep.mubr.msk.f32.mxu0 %vm579_vm0, %v19948_v7  ;;  %v20441_v54 = vpop.f32.mrb[42].mxu0 }
 0x205   : > { %16888 = vmatpush3.msra.mxu1 %v20195_v5  ;;  %16842 = vmatprep.mubr.msk.f32.mxu1 %vm579_vm0, %v7694_v57  ;;  %v20448_v7 = vpop.f32.mrb[43].mxu0  ;;  %v7697_v5 = vld [vmem:[%s18836_s13 + $0x8a] sm:$0xff]  ;;  %v7698_v57 = vld [vmem:[%s18836_s13 + $0xba] sm:$0xff] }
 0x206   : > { %16688 = vmatpush3.msra.mxu0 %v20200_v61  ;;  %16937 = vmatprep.subr.mxu1 %v20425_v60  ;;  %v20454_v61 = vpop.f32.mrb[44].mxu0 }
 0x207   : > { %16737 = vmatprep.subr.mxu0 %v20430_v2  ;;  %16643 = vmatmul.mubr.msk.f32.gmra.mrb[66].mxu0 %vm579_vm0, %v19958_v48  ;;  %v20460_v48 = vpop.f32.mrb[45].mxu0 }
 0x208   : > { %16843 = vmatmul.mubr.msk.f32.gmra.mrb[34].mxu1 %vm579_vm0, %v7695_v10  ;;  %16645 = vmatprep.mubr.msk.f32.mxu0 %vm579_vm0, %v19962_v52  ;;  %v7699_v52 = vld [vmem:[%s18836_s13 + $0xc2] sm:$0xff]  ;;  %v20466_v10 = vpop.f32.mrb[46].mxu0 }
 0x209   : > { %16845 = vmatprep.mubr.msk.f32.mxu1 %vm579_vm0, %v7696_v44  ;;  %v14196_v44 = vld [vmem:[%s18836_s13 + $0x4ee] sm:$0xff] }
 0x20b   : > { %16646 = vmatmul.mubr.msk.f32.gmra.mrb[68].mxu0 %vm579_vm0, %v19972_v56  ;;  %v20473_v56 = vpop.f32.mrb[47].mxu0 }
 0x20c   : > { %16846 = vmatmul.mubr.msk.f32.gmra.mrb[36].mxu1 %vm579_vm0, %v7697_v5  ;;  %16648 = vmatprep.mubr.msk.f32.mxu0 %vm579_vm0, %v19976_v62  ;;  %v14197_v62 = vld [vmem:[%s18836_s13 + $0x4f6] sm:$0xff] }
 0x20d   : > { %16848 = vmatprep.mubr.msk.f32.mxu1 %vm579_vm0, %v7698_v57  ;;  %v7701_v5 = vld [vmem:[%s18836_s13 + $0xfa] sm:$0xff]  ;;  %v14198_v57 = vld [vmem:[%s18836_s13 + $0x526] sm:$0xff] }
 0x20f   : > { %16649 = vmatmul.mubr.msk.f32.gmra.mrb[70].mxu0 %vm579_vm0, %v19986_v1  ;;  %v14199_v1 = vld [vmem:[%s18836_s13 + $0x52e] sm:$0xff] }
 0x210   : > { %16849 = vmatmul.mubr.msk.f32.gmra.mrb[38].mxu1 %vm579_vm0, %v7699_v52  ;;  %16651 = vmatprep.mubr.msk.f32.mxu0 %vm579_vm0, %v14196_v44  ;;  %v7703_v52 = vld [vmem:[%s18836_s13 + $0x132] sm:$0xff]  ;;  %v7704_v44 = vld [vmem:[%s18836_s13 + $0x162] sm:$0xff] }
 0x211   : > { %16851 = vmatprep.mubr.msk.f32.mxu1 %vm579_vm0, %v7700_v45  ;;  %v14200_v45 = vld [vmem:[%s18836_s13 + $0x55e] sm:$0xff] }
 0x213   : > { %16652 = vmatmul.mubr.msk.f32.gmra.mrb[72].mxu0 %vm579_vm0, %v14197_v62  ;;  %v14201_v62 = vld [vmem:[%s18836_s13 + $0x566] sm:$0xff] }
 0x214   : > { %16852 = vmatmul.mubr.msk.f32.gmra.mrb[40].mxu1 %vm579_vm0, %v7701_v5  ;;  %16654 = vmatprep.mubr.msk.f32.mxu0 %vm579_vm0, %v14198_v57  ;;  %v7705_v5 = vld [vmem:[%s18836_s13 + $0x16a] sm:$0xff]  ;;  %v7706_v57 = vld [vmem:[%s18836_s13 + $0x19a] sm:$0xff] }
 0x215   : > { %16854 = vmatprep.mubr.msk.f32.mxu1 %vm579_vm0, %v7702_v12  ;;  %v14202_v12 = vld [vmem:[%s18836_s13 + $0x596] sm:$0xff] }
 0x217   : > { %16655 = vmatmul.mubr.msk.f32.gmra.mrb[74].mxu0 %vm579_vm0, %v14199_v1  ;;  %v14203_v1 = vld [vmem:[%s18836_s13 + $0x59e] sm:$0xff] }
 0x218   : > { %16855 = vmatmul.mubr.msk.f32.gmra.mrb[42].mxu1 %vm579_vm0, %v7703_v52  ;;  %16657 = vmatprep.mubr.msk.f32.mxu0 %vm579_vm0, %v14200_v45  ;;  %v7707_v52 = vld [vmem:[%s18836_s13 + $0x1a2] sm:$0xff]  ;;  %v14204_v45 = vld [vmem:[%s18836_s13 + $0x5ce] sm:$0xff] }
 0x219   : > { %16857 = vmatprep.mubr.msk.f32.mxu1 %vm579_vm0, %v7704_v44  ;;  %v7708_v44 = vld [vmem:[%s18836_s13 + $0x1d2] sm:$0xff] }
 0x21b   : > { %16658 = vmatmul.mubr.msk.f32.gmra.mrb[76].mxu0 %vm579_vm0, %v14201_v62  ;;  %v14205_v62 = vld [vmem:[%s18836_s13 + $0x5d6] sm:$0xff] }
 0x21c   : > { %16858 = vmatmul.mubr.msk.f32.gmra.mrb[44].mxu1 %vm579_vm0, %v7705_v5  ;;  %16660 = vmatprep.mubr.msk.f32.mxu0 %vm579_vm0, %v14202_v12  ;;  %v7709_v5 = vld [vmem:[%s18836_s13 + $0x1da] sm:$0xff]  ;;  %v14206_v12 = vld [vmem:[%s18836_s13 + $0x606] sm:$0xff] }
 0x21d   : > { %16860 = vmatprep.mubr.msk.f32.mxu1 %vm579_vm0, %v7706_v57  ;;  %v7710_v57 = vld [vmem:[%s18836_s13 + $0x20a] sm:$0xff] }
 0x21f   : > { %16661 = vmatmul.mubr.msk.f32.gmra.mrb[78].mxu0 %vm579_vm0, %v14203_v1  ;;  %v14207_v1 = vld [vmem:[%s18836_s13 + $0x60e] sm:$0xff] }
 0x220   : > { %16861 = vmatmul.mubr.msk.f32.gmra.mrb[46].mxu1 %vm579_vm0, %v7707_v52  ;;  %16663 = vmatprep.mubr.msk.f32.mxu0 %vm579_vm0, %v14204_v45  ;;  %v7711_v52 = vld [vmem:[%s18836_s13 + $0x212] sm:$0xff]  ;;  %v14208_v45 = vld [vmem:[%s18836_s13 + $0x63e] sm:$0xff] }
 0x221   : > { %16863 = vmatprep.mubr.msk.f32.mxu1 %vm579_vm0, %v7708_v44  ;;  %v7712_v44 = vld [vmem:[%s18836_s13 + $0x242] sm:$0xff] }
 0x223   : > { %16664 = vmatmul.mubr.msk.f32.gmra.mrb[80].mxu0 %vm579_vm0, %v14205_v62  ;;  %v14209_v62 = vld [vmem:[%s18836_s13 + $0x646] sm:$0xff] }
 0x224   : > { %16864 = vmatmul.mubr.msk.f32.gmra.mrb[48].mxu1 %vm579_vm0, %v7709_v5  ;;  %16666 = vmatprep.mubr.msk.f32.mxu0 %vm579_vm0, %v14206_v12  ;;  %v7713_v5 = vld [vmem:[%s18836_s13 + $0x24a] sm:$0xff]  ;;  %v14210_v12 = vld [vmem:[%s18836_s13 + $0x676] sm:$0xff] }
 0x225   : > { %16866 = vmatprep.mubr.msk.f32.mxu1 %vm579_vm0, %v7710_v57  ;;  %v7714_v57 = vld [vmem:[%s18836_s13 + $0x27a] sm:$0xff] }
 0x227   : > { %16667 = vmatmul.mubr.msk.f32.gmra.mrb[82].mxu0 %vm579_vm0, %v14207_v1  ;;  %v14211_v1 = vld [vmem:[%s18836_s13 + $0x67e] sm:$0xff] }
 0x228   : > { %16867 = vmatmul.mubr.msk.f32.gmra.mrb[50].mxu1 %vm579_vm0, %v7711_v52  ;;  %16669 = vmatprep.mubr.msk.f32.mxu0 %vm579_vm0, %v14208_v45  ;;  %v7715_v52 = vld [vmem:[%s18836_s13 + $0x282] sm:$0xff]  ;;  %v14212_v45 = vld [vmem:[%s18836_s13 + $0x6ae] sm:$0xff] }
 0x229   : > { %16869 = vmatprep.mubr.msk.f32.mxu1 %vm579_vm0, %v7712_v44  ;;  %v7716_v44 = vld [vmem:[%s18836_s13 + $0x2b2] sm:$0xff] }
 0x22b   : > { %16670 = vmatmul.mubr.msk.f32.gmra.mrb[84].mxu0 %vm579_vm0, %v14209_v62  ;;  %v14213_v62 = vld [vmem:[%s18836_s13 + $0x6b6] sm:$0xff] }
 0x22c   : > { %16870 = vmatmul.mubr.msk.f32.gmra.mrb[52].mxu1 %vm579_vm0, %v7713_v5  ;;  %16672 = vmatprep.mubr.msk.f32.mxu0 %vm579_vm0, %v14210_v12  ;;  %v7717_v5 = vld [vmem:[%s18836_s13 + $0x2ba] sm:$0xff]  ;;  %v14214_v12 = vld [vmem:[%s18836_s13 + $0x6e6] sm:$0xff] }
 0x22d   : > { %16872 = vmatprep.mubr.msk.f32.mxu1 %vm579_vm0, %v7714_v57  ;;  %v7718_v57 = vld [vmem:[%s18836_s13 + $0x2ea] sm:$0xff] }
 0x22f   : > { %16673 = vmatmul.mubr.msk.f32.gmra.mrb[86].mxu0 %vm579_vm0, %v14211_v1  ;;  %v14215_v1 = vld [vmem:[%s18836_s13 + $0x6ee] sm:$0xff] }
 0x230   : > { %16873 = vmatmul.mubr.msk.f32.gmra.mrb[54].mxu1 %vm579_vm0, %v7715_v52  ;;  %16675 = vmatprep.mubr.msk.f32.mxu0 %vm579_vm0, %v14212_v45  ;;  %v7719_v52 = vld [vmem:[%s18836_s13 + $0x2f2] sm:$0xff]  ;;  %v14216_v45 = vld [vmem:[%s18836_s13 + $0x71e] sm:$0xff] }
 0x231   : > { %16875 = vmatprep.mubr.msk.f32.mxu1 %vm579_vm0, %v7716_v44  ;;  %v7720_v44 = vld [vmem:[%s18836_s13 + $0x322] sm:$0xff] }
 0x233   : > { %16676 = vmatmul.mubr.msk.f32.gmra.mrb[88].mxu0 %vm579_vm0, %v14213_v62  ;;  %v14217_v62 = vld [vmem:[%s18836_s13 + $0x726] sm:$0xff] }
 0x234   : > { %16876 = vmatmul.mubr.msk.f32.gmra.mrb[56].mxu1 %vm579_vm0, %v7717_v5  ;;  %16678 = vmatprep.mubr.msk.f32.mxu0 %vm579_vm0, %v14214_v12  ;;  %v7721_v5 = vld [vmem:[%s18836_s13 + $0x32a] sm:$0xff]  ;;  %v14218_v12 = vld [vmem:[%s18836_s13 + $0x756] sm:$0xff] }
 0x235   : > { %16878 = vmatprep.mubr.msk.f32.mxu1 %vm579_vm0, %v7718_v57  ;;  %v7722_v57 = vld [vmem:[%s18836_s13 + $0x35a] sm:$0xff] }
 0x237   : > { %16679 = vmatmul.mubr.msk.f32.gmra.mrb[90].mxu0 %vm579_vm0, %v14215_v1  ;;  %v14219_v1 = vld [vmem:[%s18836_s13 + $0x75e] sm:$0xff] }
 0x238   : > { %16879 = vmatmul.mubr.msk.f32.gmra.mrb[58].mxu1 %vm579_vm0, %v7719_v52  ;;  %16681 = vmatprep.mubr.msk.f32.mxu0 %vm579_vm0, %v14216_v45  ;;  %v7723_v52 = vld [vmem:[%s18836_s13 + $0x362] sm:$0xff] }
 0x239   : > { %16881 = vmatprep.mubr.msk.f32.mxu1 %vm579_vm0, %v7720_v44  ;;  %v7659_v45 = vld [vmem:[%s18836_s13] sm:$0xff]  ;;  %v7660_v44 = vld [vmem:[%s18836_s13 + $0x8] sm:$0xff] }
 0x23b   : > { %16682 = vmatmul.mubr.msk.f32.gmra.mrb[92].mxu0 %vm579_vm0, %v14217_v62  ;;  %v7661_v62 = vld [vmem:[%s18836_s13 + $0x38] sm:$0xff] }
 0x23c   : > { %16882 = vmatmul.mubr.msk.f32.gmra.mrb[60].mxu1 %vm579_vm0, %v7721_v5  ;;  %16684 = vmatprep.mubr.msk.f32.mxu0 %vm579_vm0, %v14218_v12  ;;  %v20581_v5 = vld [vmem:[%s23914_s8 + $0x18] sm:$0xff]  ;;  %v7663_v12 = vld [vmem:[%s18836_s13 + $0x70] sm:$0xff] }
 0x23d   : > { %16884 = vmatprep.mubr.msk.f32.mxu1 %vm579_vm0, %v7722_v57  ;;  %v14263_v57 = vld [vmem:[%s18836_s13 + $0x7ae] sm:$0xff] }
 0x23f   : > { %16685 = vmatmul.mubr.msk.f32.gmra.mrb[94].mxu0 %vm579_vm0, %v14219_v1  ;;  %v7669_v1 = vld [vmem:[%s18836_s13 + $0x118] sm:$0xff] }
 0x240   : > { %16885 = vmatmul.mubr.msk.f32.gmra.mrb[62].mxu1 %vm579_vm0, %v7723_v52  ;;  %16689 = vmatprep.mubr.msk.f32.mxu0 %vm579_vm0, %v20105_v6  ;;  %v20586_v6 = vld [vmem:[%s23912_s6 + $0x40] sm:$0xff] }
 0x241   : > { %16889 = vmatprep.mubr.msk.f32.mxu1 %vm579_vm0, %v7659_v45  ;;  %v7670_v52 = vld [vmem:[%s18836_s13 + $0x120] sm:$0xff] }
 0x242   : > { %v14265_v45 = vld [vmem:[%s18836_s13 + $0x7e6] sm:$0xff] }
 0x243   : > { %16690 = vmatmul.mubr.msk.f32.vlgmr.msra.gmra.mrb[64].mxu0 %vm579_vm0, %v20118_v23  ;;  %v7662_v23 = vld [vmem:[%s18836_s13 + $0x40] sm:$0xff] }
 0x244   : > { %16890 = vmatmul.mubr.msk.f32.vlgmr.msra.gmra.mrb[32].mxu1 %vm579_vm0, %v7660_v44  ;;  %16692 = vmatprep.mubr.msk.f32.mxu0 %vm579_vm0, %v20124_v25  ;;  %v7664_v25 = vld [vmem:[%s18836_s13 + $0x78] sm:$0xff]  ;;  %v7671_v44 = vld [vmem:[%s18836_s13 + $0x150] sm:$0xff] }
 0x245   : > { %16938 = vmatpush3.msra.mxu1 %v20425_v60  ;;  %16892 = vmatprep.mubr.msk.f32.mxu1 %vm579_vm0, %v7661_v62  ;;  %v7665_v60 = vld [vmem:[%s18836_s13 + $0xa8] sm:$0xff] }
 0x246   : > { %16738 = vmatpush3.msra.mxu0 %v20430_v2  ;;  %16987 = vmatprep.subr.mxu1 %v20581_v5  ;;  %v7667_v2 = vld [vmem:[%s18836_s13 + $0xe0] sm:$0xff]  ;;  %v14266_v62 = vld [vmem:[%s18836_s13 + $0x7ee] sm:$0xff] }
 0x247   : > { %16787 = vmatprep.subr.mxu0 %v20586_v6  ;;  %16693 = vmatmul.mubr.msk.f32.gmra.mrb[66].mxu0 %vm579_vm0, %v20136_v47  ;;  %v7666_v47 = vld [vmem:[%s18836_s13 + $0xb0] sm:$0xff] }
 0x248   : > { %16893 = vmatmul.mubr.msk.f32.gmra.mrb[34].mxu1 %vm579_vm0, %v7662_v23  ;;  %16695 = vmatprep.mubr.msk.f32.mxu0 %vm579_vm0, %v20142_v43  ;;  %v14261_v43 = vld [vmem:[%s18836_s13 + $0x776] sm:$0xff] }
 0x249   : > { %16895 = vmatprep.mubr.msk.f32.mxu1 %vm579_vm0, %v7663_v12  ;;  %v7672_v23 = vld [vmem:[%s18836_s13 + $0x158] sm:$0xff] }
 0x24a   : > { %v14267_v12 = vld [vmem:[%s18836_s13 + $0x81e] sm:$0xff] }
 0x24b   : > { %16696 = vmatmul.mubr.msk.f32.gmra.mrb[68].mxu0 %vm579_vm0, %v20154_v55  ;;  %v14262_v55 = vld [vmem:[%s18836_s13 + $0x77e] sm:$0xff] }
 0x24c   : > { %16896 = vmatmul.mubr.msk.f32.gmra.mrb[36].mxu1 %vm579_vm0, %v7664_v25  ;;  %16698 = vmatprep.mubr.msk.f32.mxu0 %vm579_vm0, %v20160_v24  ;;  %v7668_v24 = vld [vmem:[%s18836_s13 + $0xe8] sm:$0xff] }
 0x24d   : > { %16898 = vmatprep.mubr.msk.f32.mxu1 %vm579_vm0, %v7665_v60  ;;  %v7673_v25 = vld [vmem:[%s18836_s13 + $0x188] sm:$0xff] }
 0x24e   : > { %v14268_v60 = vld [vmem:[%s18836_s13 + $0x826] sm:$0xff] }
 0x24f   : > { %16699 = vmatmul.mubr.msk.f32.gmra.mrb[70].mxu0 %vm579_vm0, %v20172_v36  ;;  %v14264_v36 = vld [vmem:[%s18836_s13 + $0x7b6] sm:$0xff] }
 0x250   : > { %16899 = vmatmul.mubr.msk.f32.gmra.mrb[38].mxu1 %vm579_vm0, %v7666_v47  ;;  %16701 = vmatprep.mubr.msk.f32.mxu0 %vm579_vm0, %v14261_v43  ;;  %v7674_v47 = vld [vmem:[%s18836_s13 + $0x190] sm:$0xff] }
 0x251   : > { %16901 = vmatprep.mubr.msk.f32.mxu1 %vm579_vm0, %v7667_v2  ;;  %v14269_v43 = vld [vmem:[%s18836_s13 + $0x856] sm:$0xff]  ;;  %v7675_v2 = vld [vmem:[%s18836_s13 + $0x1c0] sm:$0xff] }
 0x253   : > { %16702 = vmatmul.mubr.msk.f32.gmra.mrb[72].mxu0 %vm579_vm0, %v14262_v55  ;;  %v14270_v55 = vld [vmem:[%s18836_s13 + $0x85e] sm:$0xff] }
 0x254   : > { %16902 = vmatmul.mubr.msk.f32.gmra.mrb[40].mxu1 %vm579_vm0, %v7668_v24  ;;  %16704 = vmatprep.mubr.msk.f32.mxu0 %vm579_vm0, %v14263_v57  ;;  %v7676_v24 = vld [vmem:[%s18836_s13 + $0x1c8] sm:$0xff] }
 0x255   : > { %16904 = vmatprep.mubr.msk.f32.mxu1 %vm579_vm0, %v7669_v1  ;;  %v14271_v57 = vld [vmem:[%s18836_s13 + $0x88e] sm:$0xff]  ;;  %v7677_v1 = vld [vmem:[%s18836_s13 + $0x1f8] sm:$0xff] }
 0x257   : > { %16705 = vmatmul.mubr.msk.f32.gmra.mrb[74].mxu0 %vm579_vm0, %v14264_v36  ;;  %v14272_v36 = vld [vmem:[%s18836_s13 + $0x896] sm:$0xff] }
 0x258   : > { %16905 = vmatmul.mubr.msk.f32.gmra.mrb[42].mxu1 %vm579_vm0, %v7670_v52  ;;  %16707 = vmatprep.mubr.msk.f32.mxu0 %vm579_vm0, %v14265_v45  ;;  %v7678_v52 = vld [vmem:[%s18836_s13 + $0x200] sm:$0xff] }
 0x259   : > { %16907 = vmatprep.mubr.msk.f32.mxu1 %vm579_vm0, %v7671_v44  ;;  %v14273_v45 = vld [vmem:[%s18836_s13 + $0x8c6] sm:$0xff]  ;;  %v7679_v44 = vld [vmem:[%s18836_s13 + $0x230] sm:$0xff] }
 0x25b   : > { %16708 = vmatmul.mubr.msk.f32.gmra.mrb[76].mxu0 %vm579_vm0, %v14266_v62  ;;  %v14274_v62 = vld [vmem:[%s18836_s13 + $0x8ce] sm:$0xff] }
 0x25c   : > { %16908 = vmatmul.mubr.msk.f32.gmra.mrb[44].mxu1 %vm579_vm0, %v7672_v23  ;;  %16710 = vmatprep.mubr.msk.f32.mxu0 %vm579_vm0, %v14267_v12  ;;  %v7680_v23 = vld [vmem:[%s18836_s13 + $0x238] sm:$0xff] }
 0x25d   : > { %16910 = vmatprep.mubr.msk.f32.mxu1 %vm579_vm0, %v7673_v25  ;;  %v14275_v12 = vld [vmem:[%s18836_s13 + $0x8fe] sm:$0xff]  ;;  %v7681_v25 = vld [vmem:[%s18836_s13 + $0x268] sm:$0xff] }
 0x25f   : > { %16711 = vmatmul.mubr.msk.f32.gmra.mrb[78].mxu0 %vm579_vm0, %v14268_v60  ;;  %v14276_v60 = vld [vmem:[%s18836_s13 + $0x906] sm:$0xff] }
 0x260   : > { %16911 = vmatmul.mubr.msk.f32.gmra.mrb[46].mxu1 %vm579_vm0, %v7674_v47  ;;  %16713 = vmatprep.mubr.msk.f32.mxu0 %vm579_vm0, %v14269_v43  ;;  %v7682_v47 = vld [vmem:[%s18836_s13 + $0x270] sm:$0xff] }
 0x261   : > { %16913 = vmatprep.mubr.msk.f32.mxu1 %vm579_vm0, %v7675_v2  ;;  %v14277_v43 = vld [vmem:[%s18836_s13 + $0x936] sm:$0xff]  ;;  %v7683_v2 = vld [vmem:[%s18836_s13 + $0x2a0] sm:$0xff] }
 0x263   : > { %16714 = vmatmul.mubr.msk.f32.gmra.mrb[80].mxu0 %vm579_vm0, %v14270_v55  ;;  %v14278_v55 = vld [vmem:[%s18836_s13 + $0x93e] sm:$0xff] }
 0x264   : > { %16914 = vmatmul.mubr.msk.f32.gmra.mrb[48].mxu1 %vm579_vm0, %v7676_v24  ;;  %16716 = vmatprep.mubr.msk.f32.mxu0 %vm579_vm0, %v14271_v57  ;;  %v7684_v24 = vld [vmem:[%s18836_s13 + $0x2a8] sm:$0xff] }
 0x265   : > { %16916 = vmatprep.mubr.msk.f32.mxu1 %vm579_vm0, %v7677_v1  ;;  %v14279_v57 = vld [vmem:[%s18836_s13 + $0x96e] sm:$0xff]  ;;  %v7685_v1 = vld [vmem:[%s18836_s13 + $0x2d8] sm:$0xff] }
 0x267   : > { %16717 = vmatmul.mubr.msk.f32.gmra.mrb[82].mxu0 %vm579_vm0, %v14272_v36  ;;  %v14280_v36 = vld [vmem:[%s18836_s13 + $0x976] sm:$0xff] }
 0x268   : > { %16917 = vmatmul.mubr.msk.f32.gmra.mrb[50].mxu1 %vm579_vm0, %v7678_v52  ;;  %16719 = vmatprep.mubr.msk.f32.mxu0 %vm579_vm0, %v14273_v45  ;;  %v7686_v52 = vld [vmem:[%s18836_s13 + $0x2e0] sm:$0xff] }
 0x269   : > { %16919 = vmatprep.mubr.msk.f32.mxu1 %vm579_vm0, %v7679_v44  ;;  %v14281_v45 = vld [vmem:[%s18836_s13 + $0x9a6] sm:$0xff]  ;;  %v7687_v44 = vld [vmem:[%s18836_s13 + $0x310] sm:$0xff] }
 0x26b   : > { %16720 = vmatmul.mubr.msk.f32.gmra.mrb[84].mxu0 %vm579_vm0, %v14274_v62  ;;  %v14282_v62 = vld [vmem:[%s18836_s13 + $0x9ae] sm:$0xff] }
 0x26c   : > { %16920 = vmatmul.mubr.msk.f32.gmra.mrb[52].mxu1 %vm579_vm0, %v7680_v23  ;;  %16722 = vmatprep.mubr.msk.f32.mxu0 %vm579_vm0, %v14275_v12  ;;  %v7688_v23 = vld [vmem:[%s18836_s13 + $0x318] sm:$0xff] }
 0x26d   : > { %16922 = vmatprep.mubr.msk.f32.mxu1 %vm579_vm0, %v7681_v25  ;;  %v14283_v12 = vld [vmem:[%s18836_s13 + $0x9de] sm:$0xff]  ;;  %v7689_v25 = vld [vmem:[%s18836_s13 + $0x348] sm:$0xff] }
 0x26f   : > { %16723 = vmatmul.mubr.msk.f32.gmra.mrb[86].mxu0 %vm579_vm0, %v14276_v60  ;;  %v14284_v60 = vld [vmem:[%s18836_s13 + $0x9e6] sm:$0xff] }
 0x270   : > { %16923 = vmatmul.mubr.msk.f32.gmra.mrb[54].mxu1 %vm579_vm0, %v7682_v47  ;;  %16725 = vmatprep.mubr.msk.f32.mxu0 %vm579_vm0, %v14277_v43  ;;  %v7690_v47 = vld [vmem:[%s18836_s13 + $0x350] sm:$0xff]  ;;  %v14318_v43 = vld [vmem:[%s18836_s13 + $0x6a2] sm:$0xff] }
 0x271   : > { %16925 = vmatprep.mubr.msk.f32.mxu1 %vm579_vm0, %v7683_v2  ;;  %v8368_v2 = vld [vmem:[%s18836_s13 + $0x24] sm:$0xff] }
 0x273   : > { %16726 = vmatmul.mubr.msk.f32.gmra.mrb[88].mxu0 %vm579_vm0, %v14278_v55  ;;  %v14319_v55 = vld [vmem:[%s18836_s13 + $0x6aa] sm:$0xff] }
 0x274   : > { %16926 = vmatmul.mubr.msk.f32.gmra.mrb[56].mxu1 %vm579_vm0, %v7684_v24  ;;  %16728 = vmatprep.mubr.msk.f32.mxu0 %vm579_vm0, %v14279_v57  ;;  %v8369_v24 = vld [vmem:[%s18836_s13 + $0x2c] sm:$0xff]  ;;  %v14320_v57 = vld [vmem:[%s18836_s13 + $0x6da] sm:$0xff] }
 0x275   : > { %16928 = vmatprep.mubr.msk.f32.mxu1 %vm579_vm0, %v7685_v1  ;;  %v8370_v1 = vld [vmem:[%s18836_s13 + $0x5c] sm:$0xff] }
 0x277   : > { %16729 = vmatmul.mubr.msk.f32.gmra.mrb[90].mxu0 %vm579_vm0, %v14280_v36  ;;  %v20724_v36 = vld [vmem:[%s23914_s8 + $0x20] sm:$0xff] }
 0x278   : > { %16929 = vmatmul.mubr.msk.f32.gmra.mrb[58].mxu1 %vm579_vm0, %v7686_v52  ;;  %16731 = vmatprep.mubr.msk.f32.mxu0 %vm579_vm0, %v14281_v45  ;;  %v14321_v52 = vld [vmem:[%s18836_s13 + $0x6e2] sm:$0xff] }
 0x279   : > { %16931 = vmatprep.mubr.msk.f32.mxu1 %vm579_vm0, %v7687_v44  ;;  %v8371_v45 = vld [vmem:[%s18836_s13 + $0x64] sm:$0xff]  ;;  %v14322_v44 = vld [vmem:[%s18836_s13 + $0x712] sm:$0xff] }
 0x27b   : > { %16732 = vmatmul.mubr.msk.f32.gmra.mrb[92].mxu0 %vm579_vm0, %v14282_v62  ;;  %v8372_v62 = vld [vmem:[%s18836_s13 + $0x94] sm:$0xff] }
 0x27c   : > { %16932 = vmatmul.mubr.msk.f32.gmra.mrb[60].mxu1 %vm579_vm0, %v7688_v23  ;;  %16734 = vmatprep.mubr.msk.f32.mxu0 %vm579_vm0, %v14283_v12  ;;  %v8373_v23 = vld [vmem:[%s18836_s13 + $0x9c] sm:$0xff]  ;;  %v14324_v12 = vld [vmem:[%s18836_s13 + $0x74a] sm:$0xff] }
 0x27d   : > { %16934 = vmatprep.mubr.msk.f32.mxu1 %vm579_vm0, %v7689_v25  ;;  %v8374_v25 = vld [vmem:[%s18836_s13 + $0xcc] sm:$0xff] }
 0x27f   : > { %16735 = vmatmul.mubr.msk.f32.gmra.mrb[94].mxu0 %vm579_vm0, %v14284_v60  ;;  %v8375_v60 = vld [vmem:[%s18836_s13 + $0xd4] sm:$0xff] }
 0x280   : > { %16935 = vmatmul.mubr.msk.f32.gmra.mrb[62].mxu1 %vm579_vm0, %v7690_v47  ;;  %16739 = vmatprep.mubr.msk.f32.mxu0 %vm579_vm0, %v14318_v43  ;;  %v14326_v47 = vld [vmem:[%s18836_s13 + $0x782] sm:$0xff] }
 0x281   : > { %16939 = vmatprep.mubr.msk.f32.mxu1 %vm579_vm0, %v8368_v2  ;;  %v8376_v43 = vld [vmem:[%s18836_s13 + $0x104] sm:$0xff] }
 0x282   : > { %v14327_v2 = vld [vmem:[%s18836_s13 + $0x78a] sm:$0xff] }
 0x283   : > { %16740 = vmatmul.mubr.msk.f32.vlgmr.msra.gmra.mrb[64].mxu0 %vm579_vm0, %v14319_v55  ;;  %v8377_v55 = vld [vmem:[%s18836_s13 + $0x10c] sm:$0xff] }
 0x284   : > { %16940 = vmatmul.mubr.msk.f32.vlgmr.msra.gmra.mrb[32].mxu1 %vm579_vm0, %v8369_v24  ;;  %16742 = vmatprep.mubr.msk.f32.mxu0 %vm579_vm0, %v14320_v57  ;;  %v14328_v24 = vld [vmem:[%s18836_s13 + $0x7ba] sm:$0xff] }
 0x285   : > { %16988 = vmatpush3.msra.mxu1 %v20581_v5  ;;  %16942 = vmatprep.mubr.msk.f32.mxu1 %vm579_vm0, %v8370_v1  ;;  %v14323_v5 = vld [vmem:[%s18836_s13 + $0x71a] sm:$0xff]  ;;  %v14329_v1 = vld [vmem:[%s18836_s13 + $0x7c2] sm:$0xff] }
 0x286   : > { %16788 = vmatpush3.msra.mxu0 %v20586_v6  ;;  %17037 = vmatprep.subr.mxu1 %v20724_v36  ;;  %v14325_v6 = vld [vmem:[%s18836_s13 + $0x752] sm:$0xff]  ;;  %v8378_v57 = vld [vmem:[%s18836_s13 + $0x13c] sm:$0xff] }
 0x287   : > { %16743 = vmatmul.mubr.msk.f32.gmra.mrb[66].mxu0 %vm579_vm0, %v14321_v52  ;;  %v8379_v52 = vld [vmem:[%s18836_s13 + $0x144] sm:$0xff] }
 0x288   : > { %16943 = vmatmul.mubr.msk.f32.gmra.mrb[34].mxu1 %vm579_vm0, %v8371_v45  ;;  %16745 = vmatprep.mubr.msk.f32.mxu0 %vm579_vm0, %v14322_v44  ;;  %v14330_v45 = vld [vmem:[%s18836_s13 + $0x7f2] sm:$0xff] }
 0x289   : > { %16945 = vmatprep.mubr.msk.f32.mxu1 %vm579_vm0, %v8372_v62  ;;  %v8380_v44 = vld [vmem:[%s18836_s13 + $0x174] sm:$0xff] }
 0x28b   : > { %16746 = vmatmul.mubr.msk.f32.gmra.mrb[68].mxu0 %vm579_vm0, %v14323_v5 }
 0x28c   : > { %16946 = vmatmul.mubr.msk.f32.gmra.mrb[36].mxu1 %vm579_vm0, %v8373_v23  ;;  %16748 = vmatprep.mubr.msk.f32.mxu0 %vm579_vm0, %v14324_v12 }
 0x28d   : > { %16948 = vmatprep.mubr.msk.f32.mxu1 %vm579_vm0, %v8374_v25  ;;  %v14331_v25 = vld [vmem:[%s18836_s13 + $0x7fa] sm:$0xff] }
 0x28f   : > { %16749 = vmatmul.mubr.msk.f32.gmra.mrb[70].mxu0 %vm579_vm0, %v14325_v6  ;;  %v8381_v6 = vld [vmem:[%s18836_s13 + $0x17c] sm:$0xff] }
 0x290   : > { %16949 = vmatmul.mubr.msk.f32.gmra.mrb[38].mxu1 %vm579_vm0, %v8375_v60  ;;  %16751 = vmatprep.mubr.msk.f32.mxu0 %vm579_vm0, %v14326_v47  ;;  %v8382_v60 = vld [vmem:[%s18836_s13 + $0x1ac] sm:$0xff] }
 0x291   : > { %16951 = vmatprep.mubr.msk.f32.mxu1 %vm579_vm0, %v8376_v43 }
 0x293   : > { %16752 = vmatmul.mubr.msk.f32.gmra.mrb[72].mxu0 %vm579_vm0, %v14327_v2 }
 0x294   : > { %16952 = vmatmul.mubr.msk.f32.gmra.mrb[40].mxu1 %vm579_vm0, %v8377_v55  ;;  %16754 = vmatprep.mubr.msk.f32.mxu0 %vm579_vm0, %v14328_v24  ;;  %v14333_v55 = vld [vmem:[%s18836_s13 + $0x832] sm:$0xff] }
 0x295   : > { %16954 = vmatprep.mubr.msk.f32.mxu1 %vm579_vm0, %v8378_v57  ;;  %v8383_v24 = vld [vmem:[%s18836_s13 + $0x1b4] sm:$0xff]  ;;  %v8384_v57 = vld [vmem:[%s18836_s13 + $0x1e4] sm:$0xff] }
 0x297   : > { %v16341_v62 = vpop.f32.mrb[16].mxu1  ;;  %16755 = vmatmul.mubr.msk.f32.gmra.mrb[74].mxu0 %vm579_vm0, %v14329_v1 }
 0x298   : > { %v20768_v5 = vadd.f32 %v16341_v62, %v20369_v35  ;;  %v4034_v23 = vpop.f32.mrb[17].mxu1  ;;  %16955 = vmatmul.mubr.msk.f32.gmra.mrb[42].mxu1 %vm579_vm0, %v8379_v52  ;;  %16757 = vmatprep.mubr.msk.f32.mxu0 %vm579_vm0, %v14330_v45  ;;  %v14332_v35 = vld [vmem:[%s18836_s13 + $0x82a] sm:$0xff] }
 0x299   : > { %v20773_v12 = vadd.f32 %v4034_v23, %v20374_v26  ;;  %16957 = vmatprep.mubr.msk.f32.mxu1 %vm579_vm0, %v8380_v44  ;;  %v14335_v44 = vld [vmem:[%s18836_s13 + $0x86a] sm:$0xff]  ;;  %v8386_v23 = vld [vmem:[%s18836_s13 + $0x21c] sm:$0xff] }
 0x29a   : > { %v8385_v62 = vld [vmem:[%s18836_s13 + $0x1ec] sm:$0xff] }
 0x29b   : > { %v16344_v47 = vpop.f32.mrb[18].mxu1  ;;  %16758 = vmatmul.mubr.msk.f32.gmra.mrb[76].mxu0 %vm579_vm0, %v14331_v25 }
 0x29c   : > { %v20782_v43 = vadd.f32 %v16344_v47, %v20380_v16  ;;  %v4044_v2 = vpop.f32.mrb[19].mxu1  ;;  %16958 = vmatmul.mubr.msk.f32.gmra.mrb[44].mxu1 %vm579_vm0, %v8381_v6  ;;  %16760 = vmatprep.mubr.msk.f32.mxu0 %vm579_vm0, %v14332_v35  ;;  %v14334_v16 = vld [vmem:[%s18836_s13 + $0x862] sm:$0xff] }
 0x29d   : > { %v20787_v26 = vadd.f32 %v4044_v2, %v20386_v4  ;;  %16960 = vmatprep.mubr.msk.f32.mxu1 %vm579_vm0, %v8382_v60  ;;  %v14337_v60 = vld [vmem:[%s18836_s13 + $0x8a2] sm:$0xff]  ;;  %v8388_v2 = vld [vmem:[%s18836_s13 + $0x254] sm:$0xff] }
 0x29e   : > { %v8387_v47 = vld [vmem:[%s18836_s13 + $0x224] sm:$0xff] }
 0x29f   : > { %v16347_v1 = vpop.f32.mrb[20].mxu1  ;;  %16761 = vmatmul.mubr.msk.f32.gmra.mrb[78].mxu0 %vm579_vm0, %v14333_v55 }
 0x2a0   : > { %v20796_v52 = vadd.f32 %v16347_v1, %v20392_v49  ;;  %v4054_v45 = vpop.f32.mrb[21].mxu1  ;;  %16961 = vmatmul.mubr.msk.f32.gmra.mrb[46].mxu1 %vm579_vm0, %v8383_v24  ;;  %16763 = vmatprep.mubr.msk.f32.mxu0 %vm579_vm0, %v14334_v16  ;;  %v14336_v49 = vld [vmem:[%s18836_s13 + $0x89a] sm:$0xff] }
 0x2a1   : > { %v20801_v4 = vadd.f32 %v4054_v45, %v20398_v38  ;;  %16963 = vmatprep.mubr.msk.f32.mxu1 %vm579_vm0, %v8384_v57  ;;  %v14339_v57 = vld [vmem:[%s18836_s13 + $0x8da] sm:$0xff]  ;;  %v8390_v45 = vld [vmem:[%s18836_s13 + $0x28c] sm:$0xff] }
 0x2a2   : > { %v8389_v1 = vld [vmem:[%s18836_s13 + $0x25c] sm:$0xff] }
 0x2a3   : > { %v16350_v25 = vpop.f32.mrb[22].mxu1  ;;  %16764 = vmatmul.mubr.msk.f32.gmra.mrb[80].mxu0 %vm579_vm0, %v14335_v44 }
 0x2a4   : > { %v20810_v6 = vadd.f32 %v16350_v25, %v20404_v63  ;;  %v4064_v35 = vpop.f32.mrb[23].mxu1  ;;  %16964 = vmatmul.mubr.msk.f32.gmra.mrb[48].mxu1 %vm579_vm0, %v8385_v62  ;;  %16766 = vmatprep.mubr.msk.f32.mxu0 %vm579_vm0, %v14336_v49  ;;  %v14338_v63 = vld [vmem:[%s18836_s13 + $0x8d2] sm:$0xff] }
 0x2a5   : > { %v20815_v38 = vadd.f32 %v4064_v35, %v20410_v32  ;;  %16966 = vmatprep.mubr.msk.f32.mxu1 %vm579_vm0, %v8386_v23  ;;  %v14341_v23 = vld [vmem:[%s18836_s13 + $0x912] sm:$0xff]  ;;  %v8392_v35 = vld [vmem:[%s18836_s13 + $0x2c4] sm:$0xff] }
 0x2a6   : > { %v8391_v25 = vld [vmem:[%s18836_s13 + $0x294] sm:$0xff] }
 0x2a7   : > { %v16353_v55 = vpop.f32.mrb[24].mxu1  ;;  %16767 = vmatmul.mubr.msk.f32.gmra.mrb[82].mxu0 %vm579_vm0, %v14337_v60 }
 0x2a8   : > { %v20824_v24 = vadd.f32 %v16353_v55, %v20416_v15  ;;  %v4074_v16 = vpop.f32.mrb[25].mxu1  ;;  %16967 = vmatmul.mubr.msk.f32.gmra.mrb[50].mxu1 %vm579_vm0, %v8387_v47  ;;  %16769 = vmatprep.mubr.msk.f32.mxu0 %vm579_vm0, %v14338_v63  ;;  %v14340_v15 = vld [vmem:[%s18836_s13 + $0x90a] sm:$0xff] }
 0x2a9   : > { %v20829_v32 = vadd.f32 %v4074_v16, %v20436_v22  ;;  %16969 = vmatprep.mubr.msk.f32.mxu1 %vm579_vm0, %v8388_v2  ;;  %v14343_v2 = vld [vmem:[%s18836_s13 + $0x94a] sm:$0xff]  ;;  %v8394_v16 = vld [vmem:[%s18836_s13 + $0x2fc] sm:$0xff] }
 0x2aa   : > { %v8393_v55 = vld [vmem:[%s18836_s13 + $0x2cc] sm:$0xff] }
 0x2ab   : > { %v16356_v44 = vpop.f32.mrb[26].mxu1  ;;  %16770 = vmatmul.mubr.msk.f32.gmra.mrb[84].mxu0 %vm579_vm0, %v14339_v57 }
 0x2ac   : > { %v20838_v62 = vadd.f32 %v16356_v44, %v20441_v54  ;;  %v4084_v49 = vpop.f32.mrb[27].mxu1  ;;  %16970 = vmatmul.mubr.msk.f32.gmra.mrb[52].mxu1 %vm579_vm0, %v8389_v1  ;;  %16772 = vmatprep.mubr.msk.f32.mxu0 %vm579_vm0, %v14340_v15  ;;  %v14342_v54 = vld [vmem:[%s18836_s13 + $0x942] sm:$0xff] }
 0x2ad   : > { %v20843_v22 = vadd.f32 %v4084_v49, %v20448_v7  ;;  %16972 = vmatprep.mubr.msk.f32.mxu1 %vm579_vm0, %v8390_v45  ;;  %v14345_v45 = vld [vmem:[%s18836_s13 + $0x982] sm:$0xff]  ;;  %v8396_v49 = vld [vmem:[%s18836_s13 + $0x334] sm:$0xff] }
 0x2ae   : > { %v8395_v44 = vld [vmem:[%s18836_s13 + $0x304] sm:$0xff] }
 0x2af   : > { %v16359_v60 = vpop.f32.mrb[28].mxu1  ;;  %16773 = vmatmul.mubr.msk.f32.gmra.mrb[86].mxu0 %vm579_vm0, %v14341_v23 }
 0x2b0   : > { %v20852_v47 = vadd.f32 %v16359_v60, %v20454_v61  ;;  %v4094_v63 = vpop.f32.mrb[29].mxu1  ;;  %16973 = vmatmul.mubr.msk.f32.gmra.mrb[54].mxu1 %vm579_vm0, %v8391_v25  ;;  %16775 = vmatprep.mubr.msk.f32.mxu0 %vm579_vm0, %v14342_v54  ;;  %v14344_v61 = vld [vmem:[%s18836_s13 + $0x97a] sm:$0xff] }
 0x2b1   : > { %v20857_v7 = vadd.f32 %v4094_v63, %v20460_v48  ;;  %16975 = vmatprep.mubr.msk.f32.mxu1 %vm579_vm0, %v8392_v35  ;;  %v14347_v35 = vld [vmem:[%s18836_s13 + $0x9ba] sm:$0xff]  ;;  %v8398_v63 = vld [vmem:[%s18836_s13 + $0x36c] sm:$0xff] }
 0x2b2   : > { %v8397_v60 = vld [vmem:[%s18836_s13 + $0x33c] sm:$0xff] }
 0x2b3   : > { %v16362_v57 = vpop.f32.mrb[30].mxu1  ;;  %16776 = vmatmul.mubr.msk.f32.gmra.mrb[88].mxu0 %vm579_vm0, %v14343_v2 }
 0x2b4   : > { %v20866_v1 = vadd.f32 %v16362_v57, %v20466_v10  ;;  %v4104_v15 = vpop.f32.mrb[31].mxu1  ;;  %16976 = vmatmul.mubr.msk.f32.gmra.mrb[56].mxu1 %vm579_vm0, %v8393_v55  ;;  %16778 = vmatprep.mubr.msk.f32.mxu0 %vm579_vm0, %v14344_v61  ;;  %v14346_v10 = vld [vmem:[%s18836_s13 + $0x9b2] sm:$0xff] }
 0x2b5   : > { %v20871_v48 = vadd.f32 %v4104_v15, %v20473_v56  ;;  %16978 = vmatprep.mubr.msk.f32.mxu1 %vm579_vm0, %v8394_v16  ;;  %v14349_v16 = vld [vmem:[%s18836_s13 + $0x9f2] sm:$0xff] }
 0x2b6   : > { %v8399_v57 = vld [vmem:[%s18836_s13 + $0x374] sm:$0xff] }
 0x2b7   : > { %v16365_v23 = vpop.f32.mrb[0].mxu1  ;;  %16779 = vmatmul.mubr.msk.f32.gmra.mrb[90].mxu0 %vm579_vm0, %v14345_v45  ;;  %v14547_v15 = vld [vmem:[%s18836_s13 + $0x3f0] sm:$0xff] }
 0x2b8   : > { %v20880_v25 = vadd.f32 %v16365_v23, %v20303_v18  ;;  %v4114_v54 = vpop.f32.mrb[1].mxu1  ;;  %16979 = vmatmul.mubr.msk.f32.gmra.mrb[58].mxu1 %vm579_vm0, %v8395_v44  ;;  %16781 = vmatprep.mubr.msk.f32.mxu0 %vm579_vm0, %v14346_v10  ;;  %v14348_v18 = vld [vmem:[%s18836_s13 + $0x9ea] sm:$0xff]  ;;  %v14548_v23 = vld [vmem:[%s18836_s13 + $0x3f8] sm:$0xff] }
 0x2b9   : > { %v20885_v56 = vadd.f32 %v4114_v54, %v20309_v30  ;;  %16981 = vmatprep.mubr.msk.f32.mxu1 %vm579_vm0, %v8396_v49  ;;  %v14384_v49 = vld [vmem:[%s18836_s13 + $0x6b6] sm:$0xff]  ;;  %v14385_v54 = vld [vmem:[%s18836_s13 + $0x6e6] sm:$0xff] }
 0x2bb   : > { %v16368_v2 = vpop.f32.mrb[2].mxu1  ;;  %16782 = vmatmul.mubr.msk.f32.gmra.mrb[92].mxu0 %vm579_vm0, %v14347_v35 }
 0x2bc   : > { %v20894_v55 = vadd.f32 %v16368_v2, %v20315_v40  ;;  %v4124_v61 = vpop.f32.mrb[3].mxu1  ;;  %16982 = vmatmul.mubr.msk.f32.gmra.mrb[60].mxu1 %vm579_vm0, %v8397_v60  ;;  %16784 = vmatprep.mubr.msk.f32.mxu0 %vm579_vm0, %v14348_v18  ;;  %v14383_v40 = vld [vmem:[%s18836_s13 + $0x6ae] sm:$0xff] }
 0x2bd   : > { %v20899_v30 = vadd.f32 %v4124_v61, %v20318_v42  ;;  %16984 = vmatprep.mubr.msk.f32.mxu1 %vm579_vm0, %v8398_v63  ;;  %v14549_v60 = vld [vmem:[%s18836_s13 + $0x428] sm:$0xff] }
 0x2be   : > { %v20924_v18 = vld [vmem:[%s23914_s8 + $0x28] sm:$0xff] }
 0x2bf   : > { %v16371_v45 = vpop.f32.mrb[4].mxu1  ;;  %16785 = vmatmul.mubr.msk.f32.gmra.mrb[94].mxu0 %vm579_vm0, %v14349_v16  ;;  %v14386_v61 = vld [vmem:[%s18836_s13 + $0x6ee] sm:$0xff] }
 0x2c0   : > { %v20908_v44 = vadd.f32 %v16371_v45, %v20320_v33  ;;  %v4134_v10 = vpop.f32.mrb[5].mxu1  ;;  %16985 = vmatmul.mubr.msk.f32.gmra.mrb[62].mxu1 %vm579_vm0, %v8399_v57  ;;  %16789 = vmatprep.mubr.msk.f32.mxu0 %vm579_vm0, %v14383_v40  ;;  %v11030_v33 = vlaneseq  ;;  %v14550_v16 = vld [vmem:[%s18836_s13 + $0x430] sm:$0xff]  ;;  %v14551_v57 = vld [vmem:[%s18836_s13 + $0x460] sm:$0xff] }
 0x2c1   : > { %v20913_v42 = vadd.f32 %v4134_v10, %v20326_v37  ;;  %16989 = vmatprep.mubr.msk.f32.mxu1 %vm579_vm0, %v14547_v15  ;;  %v14388_v10 = vld [vmem:[%s18836_s13 + $0x726] sm:$0xff] }
 0x2c2   : > { %v20942_v40 = vshrl.u32 %v11030_v33, 7 }
 0x2c3   : > { %v16374_v35 = vpop.f32.mrb[6].mxu1  ;;  %16790 = vmatmul.mubr.msk.f32.vlgmr.msra.gmra.mrb[64].mxu0 %vm579_vm0, %v14384_v49  ;;  %v14552_v49 = vld [vmem:[%s18836_s13 + $0x468] sm:$0xff] }
 0x2c4   : > { %v20927_v37 = vadd.f32 %v16374_v35, %v20332_v17  ;;  %v4144_v63 = vpop.f32.mrb[7].mxu1  ;;  %16990 = vmatmul.mubr.msk.f32.vlgmr.msra.gmra.mrb[32].mxu1 %vm579_vm0, %v14548_v23  ;;  %16792 = vmatprep.mubr.msk.f32.mxu0 %vm579_vm0, %v14385_v54  ;;  %v14387_v17 = vld [vmem:[%s18836_s13 + $0x71e] sm:$0xff]  ;;  %24255 = vst [vmem:[#allocation26_spill] sm:$0xff] %v20942_v40  ;;  %v14389_v23 = vld [vmem:[%s18836_s13 + $0x756] sm:$0xff]  ;;  %v20964_v33 = vsub.s32 0, %v20942_v40 }
 0x2c5   : > { %v20932_v2 = vadd.f32 %v4144_v63, %v20335_v27  ;;  %17038 = vmatpush3.msra.mxu1 %v20724_v36  ;;  %16992 = vmatprep.mubr.msk.f32.mxu1 %vm579_vm0, %v14549_v60  ;;  %v14553_v54 = vld [vmem:[%s18836_s13 + $0x498] sm:$0xff]  ;;  %v20969_v35 = vld [vmem:[%s23916_s10] sm:$0x1f] }
 0x2c6   : > { %17087 = vmatprep.subr.mxu1 %v20924_v18  ;;  %24257 = vst [vmem:[#allocation28_spill] sm:$0xff] %v20964_v33 }
 0x2c7   : > { %v16377_v27 = vpop.f32.mrb[8].mxu1  ;;  %16793 = vmatmul.mubr.msk.f32.gmra.mrb[66].mxu0 %vm579_vm0, %v14386_v61 }
 0x2c8   : > { %v20945_v15 = vadd.f32 %v16377_v27, %v20337_v41  ;;  %v4154_v36 = vpop.f32.mrb[9].mxu1  ;;  %16993 = vmatmul.mubr.msk.f32.gmra.mrb[34].mxu1 %vm579_vm0, %v14550_v16  ;;  %16795 = vmatprep.mubr.msk.f32.mxu0 %vm579_vm0, %v14387_v17  ;;  %v20961_v41 = vld [vmem:[%s23909_s3] ss:$0 sm:$0xff]  ;;  %v23948_v16 = vsub.s32 1, %v20942_v40 }
 0x2c9   : > { %v20950_v45 = vadd.f32 %v4154_v36, %v20342_v46  ;;  %16995 = vmatprep.mubr.msk.f32.mxu1 %vm579_vm0, %v14551_v57  ;;  %v878_v60 = vadd.f32 %v20283_v9, %v20961_v41  ;;  %v20980_v17 = vld [vmem:[%s23911_s5] ss:$0 sm:$0xff]  ;;  %v14391_v36 = vld [vmem:[%s18836_s13 + $0x78e] sm:$0xff] }
 0x2ca   : > { %24256 = vst [vmem:[#allocation27_spill] sm:$0xff] %v20945_v15  ;;  %v14390_v9 = vld [vmem:[%s18836_s13 + $0x75e] sm:$0xff] }
 0x2cb   : > { %v16380_v46 = vpop.f32.mrb[10].mxu1  ;;  %16796 = vmatmul.mubr.msk.f32.gmra.mrb[68].mxu0 %vm579_vm0, %v14388_v10  ;;  %v14555_v10 = vld [vmem:[%s18836_s13 + $0x4d0] sm:$0xff] }
 0x2cc   : > { %v17523_v63 = vadd.f32 %v16380_v46, %v20348_v21  ;;  %v4164_v61 = vpop.f32.mrb[11].mxu1  ;;  %16996 = vmatmul.mubr.msk.f32.gmra.mrb[36].mxu1 %vm579_vm0, %v14552_v49  ;;  %16798 = vmatprep.mubr.msk.f32.mxu0 %vm579_vm0, %v14389_v23  ;;  %v14554_v21 = vld [vmem:[%s18836_s13 + $0x4a0] sm:$0xff]  ;;  %v20994_v49 = vrot.slane %v20969_v35, %v20964_v33  ;;  %v883_v33 = vadd.f32 %v20961_v41, %v20293_v53 }
 0x2cd   : > { %v20983_v57 = vadd.f32 %v4164_v61, %v20351_v3  ;;  %16998 = vmatprep.mubr.msk.f32.mxu1 %vm579_vm0, %v14553_v54  ;;  %v20996_v3 = vmax.f32 %v878_v60, 0.0 }
 0x2ce   : > { %v4259_v27 = vadd.f32 %v17523_v63, %v20980_v17  ;;  %24259 = vst [vmem:[#allocation30_spill] sm:$0xff] %v20994_v49  ;;  %v21008_v63 = vrot.slane %v20969_v35, %v23948_v16 }
 0x2cf   : > { %24258 = vst [vmem:[#allocation29_spill] sm:$0xff] %v20983_v57  ;;  %v16383_v46 = vpop.f32.mrb[12].mxu1  ;;  %24260 = vst [vmem:[#allocation31_spill] sm:$0xff] %v20996_v3  ;;  %16799 = vmatmul.mubr.msk.f32.gmra.mrb[70].mxu0 %vm579_vm0, %v14390_v9  ;;  %v11164_v9 = vmul.f32 %v20994_v49, %v20996_v3  ;;  %v21031_v57 = vmax.f32 %v883_v33, 0.0  ;;  %v14559_v33 = vld [vmem:[%s18836_s13 + $0x540] sm:$0xff] }
 0x2d0   : > { %v20998_v23 = vmax.f32 %v4259_v27, 0.0  ;;  %v21001_v54 = vadd.f32 %v16383_v46, %v20353_v13  ;;  %v4174_v61 = vpop.f32.mrb[13].mxu1  ;;  %16999 = vmatmul.mubr.msk.f32.gmra.mrb[38].mxu1 %vm579_vm0, %v14554_v21  ;;  %24263 = vst [vmem:[#allocation34_spill] sm:$0xff] %v21008_v63  ;;  %16801 = vmatprep.mubr.msk.f32.mxu0 %vm579_vm0, %v14391_v36  ;;  %v14392_v13 = vld [vmem:[%s18836_s13 + $0x796] sm:$0xff]  ;;  %v14393_v21 = vld [vmem:[%s18836_s13 + $0x7c6] sm:$0xff] }
 0x2d1   : > { %v17526_v60 = vadd.f32 %v4174_v61, %v20358_v19  ;;  %17001 = vmatprep.mubr.msk.f32.mxu1 %vm579_vm0, %v14555_v10  ;;  %v14556_v27 = vld [vmem:[%s18836_s13 + $0x4d8] sm:$0xff]  ;;  %v14557_v46 = vld [vmem:[%s18836_s13 + $0x508] sm:$0xff]  ;;  %v898_v19 = vadd.f32 %v20299_v20, %v20961_v41  ;;  %24264 = vst [vmem:[#allocation35_spill] sm:$0xff] %v21031_v57  ;;  %v14558_v20 = vld [vmem:[%s18836_s13 + $0x510] sm:$0xff] }
 0x2d2   : > { %24261 = vst [vmem:[#allocation32_spill] sm:$0xff] %v20998_v23  ;;  %24262 = vst [vmem:[#allocation33_spill] sm:$0xff] %v21001_v54  ;;  %v11165_v16 = vmul.f32 %v21008_v63, %v20998_v23 }
 0x2d3   : > { %v4260_v53 = vadd.f32 %v17526_v60, %v20980_v17  ;;  %v16386_v54 = vpop.f32.mrb[14].mxu1  ;;  %16802 = vmatmul.mubr.msk.f32.gmra.mrb[72].mxu0 %vm579_vm0, %v14392_v13  ;;  %v893_v60 = vadd.f32 %v20961_v41, %v20301_v8  ;;  %v11168_v8 = vmul.f32 %v20994_v49, %v21031_v57 }
 0x2d4   : > { %v17527_v36 = vadd.f32 %v16386_v54, %v20364_v14  ;;  %v4184_v10 = vpop.f32.mrb[15].mxu1  ;;  %17002 = vmatmul.mubr.msk.f32.gmra.mrb[40].mxu1 %vm579_vm0, %v14556_v27  ;;  %v21029_v61 = vadd.f32 %v11165_v16, %v11164_v9  ;;  %16804 = vmatprep.mubr.msk.f32.mxu0 %vm579_vm0, %v14393_v21  ;;  %v14394_v14 = vld [vmem:[%s18836_s13 + $0x7ce] sm:$0xff]  ;;  %v14395_v54 = vld [vmem:[%s18836_s13 + $0x7fe] sm:$0xff]  ;;  %v21050_v27 = vmax.f32 %v898_v19, 0.0 }
 0x2d5   : > { %v21035_v23 = vmax.f32 %v4260_v53, 0.0  ;;  %v17528_v15 = vadd.f32 %v4184_v10, %v20367_v34  ;;  %17004 = vmatprep.mubr.msk.f32.mxu1 %vm579_vm0, %v14557_v46  ;;  %v21056_v21 = vmax.f32 %v893_v60, 0.0  ;;  %v14560_v53 = vld [vmem:[%s18836_s13 + $0x548] sm:$0xff]  ;;  %v14397_v10 = vld [vmem:[%s18836_s13 + $0x836] sm:$0xff] }
 0x2d6   : > { %v4263_v16 = vadd.f32 %v17527_v36, %v20980_v17  ;;  %24266 = vst [vmem:[#allocation37_spill] sm:$0xff] %v21050_v27  ;;  %v11180_v36 = vmul.f32 %v20994_v49, %v21050_v27  ;;  %v14561_v60 = vld [vmem:[%s18836_s13 + $0x578] sm:$0xff] }
 0x2d7   : > { %24265 = vst [vmem:[#allocation36_spill] sm:$0xff] %v21035_v23  ;;  %v4262_v13 = vadd.f32 %v17528_v15, %v20980_v17  ;;  %v11169_v34 = vmul.f32 %v21008_v63, %v21035_v23  ;;  %16805 = vmatmul.mubr.msk.f32.gmra.mrb[74].mxu0 %vm579_vm0, %v14394_v14  ;;  %24268 = vst [vmem:[#allocation39_spill] sm:$0xff] %v21056_v21  ;;  %v14396_v15 = vld [vmem:[%s18836_s13 + $0x806] sm:$0xff] }
 0x2d8   : > { %v21052_v9 = vmax.f32 %v4263_v16, 0.0  ;;  %17005 = vmatmul.mubr.msk.f32.gmra.mrb[42].mxu1 %vm579_vm0, %v14558_v20  ;;  %16807 = vmatprep.mubr.msk.f32.mxu0 %vm579_vm0, %v14395_v54  ;;  %v11176_v20 = vmul.f32 %v20994_v49, %v21056_v21  ;;  %v14732_v49 = vld [vmem:[%s18836_s13 + $0xa48] sm:$0xff]  ;;  %v14734_v21 = vld [vmem:[%s18836_s13 + $0xa80] sm:$0xff] }
 0x2d9   : > { %v21058_v46 = vmax.f32 %v4262_v13, 0.0  ;;  %17007 = vmatprep.mubr.msk.f32.mxu1 %vm579_vm0, %v14559_v33  ;;  %v21064_v19 = vadd.f32 %v11169_v34, %v11168_v8  ;;  %v14398_v33 = vld [vmem:[%s18836_s13 + $0x83e] sm:$0xff]  ;;  %v14399_v34 = vld [vmem:[%s18836_s13 + $0x86e] sm:$0xff] }
 0x2da   : > { %24267 = vst [vmem:[#allocation38_spill] sm:$0xff] %v21052_v9  ;;  %v11181_v14 = vmul.f32 %v21008_v63, %v21052_v9  ;;  %v14562_v8 = vld [vmem:[%s18836_s13 + $0x580] sm:$0xff]  ;;  %v14563_v9 = vld [vmem:[%s18836_s13 + $0x5b0] sm:$0xff] }
 0x2db   : > { %24269 = vst [vmem:[#allocation40_spill] sm:$0xff] %v21058_v46  ;;  %v11177_v16 = vmul.f32 %v21008_v63, %v21058_v46  ;;  %16808 = vmatmul.mubr.msk.f32.gmra.mrb[76].mxu0 %vm579_vm0, %v14396_v15  ;;  %v14400_v15 = vld [vmem:[%s18836_s13 + $0x876] sm:$0xff] }
 0x2dc   : > { %17008 = vmatmul.mubr.msk.f32.gmra.mrb[44].mxu1 %vm579_vm0, %v14560_v53  ;;  %v21078_v54 = vadd.f32 %v11181_v14, %v11180_v36  ;;  %16810 = vmatprep.mubr.msk.f32.mxu0 %vm579_vm0, %v14397_v10  ;;  %v14564_v53 = vld [vmem:[%s18836_s13 + $0x5b8] sm:$0xff]  ;;  %v14401_v36 = vld [vmem:[%s18836_s13 + $0x8a6] sm:$0xff]  ;;  %v14566_v14 = vld [vmem:[%s18836_s13 + $0x5f0] sm:$0xff] }
 0x2dd   : > { %17010 = vmatprep.mubr.msk.f32.mxu1 %vm579_vm0, %v14561_v60  ;;  %v21084_v13 = vadd.f32 %v11177_v16, %v11176_v20  ;;  %v14565_v10 = vld [vmem:[%s18836_s13 + $0x5e8] sm:$0xff]  ;;  %v14567_v20 = vld [vmem:[%s18836_s13 + $0x620] sm:$0xff]  ;;  %v14730_v63 = vld [vmem:[%s18836_s13 + $0xa10] sm:$0xff] }
 0x2de   : > { %v14402_v60 = vld [vmem:[%s18836_s13 + $0x8ae] sm:$0xff]  ;;  %v14404_v16 = vld [vmem:[%s18836_s13 + $0x8e6] sm:$0xff] }
 0x2df   : > { %16811 = vmatmul.mubr.msk.f32.gmra.mrb[78].mxu0 %vm579_vm0, %v14398_v33  ;;  %v14568_v33 = vld [vmem:[%s18836_s13 + $0x628] sm:$0xff] }
 0x2e0   : > { %17011 = vmatmul.mubr.msk.f32.gmra.mrb[46].mxu1 %vm579_vm0, %v14562_v8  ;;  %16813 = vmatprep.mubr.msk.f32.mxu0 %vm579_vm0, %v14399_v34  ;;  %v14405_v8 = vld [vmem:[%s18836_s13 + $0x916] sm:$0xff] }
 0x2e1   : > { %17013 = vmatprep.mubr.msk.f32.mxu1 %vm579_vm0, %v14563_v9  ;;  %v14403_v9 = vld [vmem:[%s18836_s13 + $0x8de] sm:$0xff] }
 0x2e2   : > { %v14569_v34 = vld [vmem:[%s18836_s13 + $0x658] sm:$0xff] }
 0x2e3   : > { %16814 = vmatmul.mubr.msk.f32.gmra.mrb[80].mxu0 %vm579_vm0, %v14400_v15  ;;  %v14406_v15 = vld [vmem:[%s18836_s13 + $0x91e] sm:$0xff] }
 0x2e4   : > { %17014 = vmatmul.mubr.msk.f32.gmra.mrb[48].mxu1 %vm579_vm0, %v14564_v53  ;;  %16816 = vmatprep.mubr.msk.f32.mxu0 %vm579_vm0, %v14401_v36  ;;  %v14570_v53 = vld [vmem:[%s18836_s13 + $0x660] sm:$0xff]  ;;  %v14407_v36 = vld [vmem:[%s18836_s13 + $0x94e] sm:$0xff] }
 0x2e5   : > { %17016 = vmatprep.mubr.msk.f32.mxu1 %vm579_vm0, %v14565_v10  ;;  %v14571_v10 = vld [vmem:[%s18836_s13 + $0x690] sm:$0xff] }
 0x2e7   : > { %16817 = vmatmul.mubr.msk.f32.gmra.mrb[82].mxu0 %vm579_vm0, %v14402_v60  ;;  %v14408_v60 = vld [vmem:[%s18836_s13 + $0x956] sm:$0xff] }
 0x2e8   : > { %17017 = vmatmul.mubr.msk.f32.gmra.mrb[50].mxu1 %vm579_vm0, %v14566_v14  ;;  %16819 = vmatprep.mubr.msk.f32.mxu0 %vm579_vm0, %v14403_v9  ;;  %v14572_v14 = vld [vmem:[%s18836_s13 + $0x698] sm:$0xff]  ;;  %v14409_v9 = vld [vmem:[%s18836_s13 + $0x986] sm:$0xff] }
 0x2e9   : > { %17019 = vmatprep.mubr.msk.f32.mxu1 %vm579_vm0, %v14567_v20  ;;  %v14573_v20 = vld [vmem:[%s18836_s13 + $0x6c8] sm:$0xff] }
 0x2eb   : > { %16820 = vmatmul.mubr.msk.f32.gmra.mrb[84].mxu0 %vm579_vm0, %v14404_v16  ;;  %v14410_v16 = vld [vmem:[%s18836_s13 + $0x98e] sm:$0xff] }
 0x2ec   : > { %17020 = vmatmul.mubr.msk.f32.gmra.mrb[52].mxu1 %vm579_vm0, %v14568_v33  ;;  %16822 = vmatprep.mubr.msk.f32.mxu0 %vm579_vm0, %v14405_v8  ;;  %v14574_v33 = vld [vmem:[%s18836_s13 + $0x6d0] sm:$0xff]  ;;  %v14411_v8 = vld [vmem:[%s18836_s13 + $0x9be] sm:$0xff] }
 0x2ed   : > { %17022 = vmatprep.mubr.msk.f32.mxu1 %vm579_vm0, %v14569_v34  ;;  %v14575_v34 = vld [vmem:[%s18836_s13 + $0x700] sm:$0xff] }
 0x2ef   : > { %16823 = vmatmul.mubr.msk.f32.gmra.mrb[86].mxu0 %vm579_vm0, %v14406_v15  ;;  %v14412_v15 = vld [vmem:[%s18836_s13 + $0x9c6] sm:$0xff] }
 0x2f0   : > { %17023 = vmatmul.mubr.msk.f32.gmra.mrb[54].mxu1 %vm579_vm0, %v14570_v53  ;;  %16825 = vmatprep.mubr.msk.f32.mxu0 %vm579_vm0, %v14407_v36  ;;  %v14576_v53 = vld [vmem:[%s18836_s13 + $0x708] sm:$0xff]  ;;  %v14413_v36 = vld [vmem:[%s18836_s13 + $0x9f6] sm:$0xff] }
 0x2f1   : > { %17025 = vmatprep.mubr.msk.f32.mxu1 %vm579_vm0, %v14571_v10  ;;  %v14577_v10 = vld [vmem:[%s18836_s13 + $0x738] sm:$0xff] }
 0x2f3   : > { %16826 = vmatmul.mubr.msk.f32.gmra.mrb[88].mxu0 %vm579_vm0, %v14408_v60  ;;  %v14414_v60 = vld [vmem:[%s18836_s13 + $0x9fe] sm:$0xff] }
 0x2f4   : > { %17026 = vmatmul.mubr.msk.f32.gmra.mrb[56].mxu1 %vm579_vm0, %v14572_v14  ;;  %16828 = vmatprep.mubr.msk.f32.mxu0 %vm579_vm0, %v14409_v9  ;;  %v14578_v14 = vld [vmem:[%s18836_s13 + $0x740] sm:$0xff] }
 0x2f5   : > { %17028 = vmatprep.mubr.msk.f32.mxu1 %vm579_vm0, %v14573_v20  ;;  %v18567_v9 = vld [vmem:[%s18836_s13 + $0x402] sm:$0xff]  ;;  %v21157_v20 = vld [vmem:[%s23914_s8 + $0x30] sm:$0xff] }
 0x2f7   : > { %16829 = vmatmul.mubr.msk.f32.gmra.mrb[90].mxu0 %vm579_vm0, %v14410_v16  ;;  %v18568_v16 = vld [vmem:[%s18836_s13 + $0x40a] sm:$0xff] }
 0x2f8   : > { %17029 = vmatmul.mubr.msk.f32.gmra.mrb[58].mxu1 %vm579_vm0, %v14574_v33  ;;  %16831 = vmatprep.mubr.msk.f32.mxu0 %vm579_vm0, %v14411_v8  ;;  %v18569_v33 = vld [vmem:[%s18836_s13 + $0x43a] sm:$0xff]  ;;  %v18570_v8 = vld [vmem:[%s18836_s13 + $0x442] sm:$0xff] }
 0x2f9   : > { %17031 = vmatprep.mubr.msk.f32.mxu1 %vm579_vm0, %v14575_v34  ;;  %v18571_v34 = vld [vmem:[%s18836_s13 + $0x472] sm:$0xff] }
 0x2fb   : > { %16832 = vmatmul.mubr.msk.f32.gmra.mrb[92].mxu0 %vm579_vm0, %v14412_v15  ;;  %v18572_v15 = vld [vmem:[%s18836_s13 + $0x47a] sm:$0xff] }
 0x2fc   : > { %17032 = vmatmul.mubr.msk.f32.gmra.mrb[60].mxu1 %vm579_vm0, %v14576_v53  ;;  %16834 = vmatprep.mubr.msk.f32.mxu0 %vm579_vm0, %v14413_v36  ;;  %v18574_v53 = vld [vmem:[%s18836_s13 + $0x4b2] sm:$0xff]  ;;  %v18575_v36 = vld [vmem:[%s18836_s13 + $0x4e2] sm:$0xff] }
 0x2fd   : > { %17034 = vmatprep.mubr.msk.f32.mxu1 %vm579_vm0, %v14577_v10  ;;  %v18576_v10 = vld [vmem:[%s18836_s13 + $0x4ea] sm:$0xff] }
 0x2ff   : > { %16835 = vmatmul.mubr.msk.f32.gmra.mrb[94].mxu0 %vm579_vm0, %v14414_v60  ;;  %v18577_v60 = vld [vmem:[%s18836_s13 + $0x51a] sm:$0xff] }
 0x300   : > { %17035 = vmatmul.mubr.msk.f32.gmra.mrb[62].mxu1 %vm579_vm0, %v14578_v14  ;;  %v18578_v14 = vld [vmem:[%s18836_s13 + $0x522] sm:$0xff] }
 0x301   : > { %17039 = vmatprep.mubr.msk.f32.mxu1 %vm579_vm0, %v18567_v9  ;;  %v18579_v9 = vld [vmem:[%s18836_s13 + $0x552] sm:$0xff] }
 0x304   : > { %17040 = vmatmul.mubr.msk.f32.vlgmr.msra.gmra.mrb[32].mxu1 %vm579_vm0, %v18568_v16  ;;  %v18580_v16 = vld [vmem:[%s18836_s13 + $0x55a] sm:$0xff] }
 0x305   : > { %17088 = vmatpush3.msra.mxu1 %v20924_v18  ;;  %17042 = vmatprep.mubr.msk.f32.mxu1 %vm579_vm0, %v18569_v33  ;;  %v18573_v18 = vld [vmem:[%s18836_s13 + $0x4aa] sm:$0xff] }
 0x306   : > { %17137 = vmatprep.subr.mxu1 %v21157_v20  ;;  %v18581_v33 = vld [vmem:[%s18836_s13 + $0x58a] sm:$0xff] }
 0x308   : > { %17043 = vmatmul.mubr.msk.f32.gmra.mrb[34].mxu1 %vm579_vm0, %v18570_v8  ;;  %v18582_v8 = vld [vmem:[%s18836_s13 + $0x592] sm:$0xff] }
 0x309   : > { %17045 = vmatprep.mubr.msk.f32.mxu1 %vm579_vm0, %v18571_v34  ;;  %v18583_v34 = vld [vmem:[%s18836_s13 + $0x5c2] sm:$0xff] }
 0x30c   : > { %17046 = vmatmul.mubr.msk.f32.gmra.mrb[36].mxu1 %vm579_vm0, %v18572_v15  ;;  %v18584_v15 = vld [vmem:[%s18836_s13 + $0x5ca] sm:$0xff] }
 0x30d   : > { %17048 = vmatprep.mubr.msk.f32.mxu1 %vm579_vm0, %v18573_v18  ;;  %v18585_v18 = vld [vmem:[%s18836_s13 + $0x5fa] sm:$0xff] }
 0x310   : > { %17049 = vmatmul.mubr.msk.f32.gmra.mrb[38].mxu1 %vm579_vm0, %v18574_v53  ;;  %v18586_v53 = vld [vmem:[%s18836_s13 + $0x602] sm:$0xff] }
 0x311   : > { %17051 = vmatprep.mubr.msk.f32.mxu1 %vm579_vm0, %v18575_v36  ;;  %v18587_v36 = vld [vmem:[%s18836_s13 + $0x632] sm:$0xff] }
 0x314   : > { %17052 = vmatmul.mubr.msk.f32.gmra.mrb[40].mxu1 %vm579_vm0, %v18576_v10  ;;  %v18588_v10 = vld [vmem:[%s18836_s13 + $0x63a] sm:$0xff] }
 0x315   : > { %17054 = vmatprep.mubr.msk.f32.mxu1 %vm579_vm0, %v18577_v60  ;;  %v18589_v60 = vld [vmem:[%s18836_s13 + $0x66a] sm:$0xff] }
 0x318   : > { %17055 = vmatmul.mubr.msk.f32.gmra.mrb[42].mxu1 %vm579_vm0, %v18578_v14  ;;  %v18590_v14 = vld [vmem:[%s18836_s13 + $0x672] sm:$0xff] }
 0x319   : > { %17057 = vmatprep.mubr.msk.f32.mxu1 %vm579_vm0, %v18579_v9  ;;  %v18591_v9 = vld [vmem:[%s18836_s13 + $0x6a2] sm:$0xff] }
 0x31c   : > { %17058 = vmatmul.mubr.msk.f32.gmra.mrb[44].mxu1 %vm579_vm0, %v18580_v16  ;;  %v18592_v16 = vld [vmem:[%s18836_s13 + $0x6aa] sm:$0xff] }
 0x31d   : > { %17060 = vmatprep.mubr.msk.f32.mxu1 %vm579_vm0, %v18581_v33  ;;  %v18593_v33 = vld [vmem:[%s18836_s13 + $0x6da] sm:$0xff] }
 0x320   : > { %17061 = vmatmul.mubr.msk.f32.gmra.mrb[46].mxu1 %vm579_vm0, %v18582_v8  ;;  %v18594_v8 = vld [vmem:[%s18836_s13 + $0x6e2] sm:$0xff] }
 0x321   : > { %17063 = vmatprep.mubr.msk.f32.mxu1 %vm579_vm0, %v18583_v34  ;;  %v18595_v34 = vld [vmem:[%s18836_s13 + $0x712] sm:$0xff] }
 0x324   : > { %17064 = vmatmul.mubr.msk.f32.gmra.mrb[48].mxu1 %vm579_vm0, %v18584_v15  ;;  %v18596_v15 = vld [vmem:[%s18836_s13 + $0x71a] sm:$0xff] }
 0x325   : > { %17066 = vmatprep.mubr.msk.f32.mxu1 %vm579_vm0, %v18585_v18  ;;  %v18597_v18 = vld [vmem:[%s18836_s13 + $0x74a] sm:$0xff] }
 0x328   : > { %17067 = vmatmul.mubr.msk.f32.gmra.mrb[50].mxu1 %vm579_vm0, %v18586_v53  ;;  %v14645_v53 = vld [vmem:[%s18836_s13 + $0x414] sm:$0xff] }
 0x329   : > { %17069 = vmatprep.mubr.msk.f32.mxu1 %vm579_vm0, %v18587_v36  ;;  %v18598_v36 = vld [vmem:[%s18836_s13 + $0x752] sm:$0xff] }
 0x32c   : > { %17070 = vmatmul.mubr.msk.f32.gmra.mrb[52].mxu1 %vm579_vm0, %v18588_v10  ;;  %v14646_v10 = vld [vmem:[%s18836_s13 + $0x41c] sm:$0xff] }
 0x32d   : > { %17072 = vmatprep.mubr.msk.f32.mxu1 %vm579_vm0, %v18589_v60  ;;  %v14647_v60 = vld [vmem:[%s18836_s13 + $0x44c] sm:$0xff] }
 0x330   : > { %17073 = vmatmul.mubr.msk.f32.gmra.mrb[54].mxu1 %vm579_vm0, %v18590_v14  ;;  %v21230_v14 = vld [vmem:[%s23914_s8 + $0x38] sm:$0xff] }
 0x331   : > { %17075 = vmatprep.mubr.msk.f32.mxu1 %vm579_vm0, %v18591_v9  ;;  %v14648_v9 = vld [vmem:[%s18836_s13 + $0x454] sm:$0xff] }
 0x334   : > { %17076 = vmatmul.mubr.msk.f32.gmra.mrb[56].mxu1 %vm579_vm0, %v18592_v16  ;;  %v14649_v16 = vld [vmem:[%s18836_s13 + $0x484] sm:$0xff] }
 0x335   : > { %17078 = vmatprep.mubr.msk.f32.mxu1 %vm579_vm0, %v18593_v33  ;;  %v14650_v33 = vld [vmem:[%s18836_s13 + $0x48c] sm:$0xff] }
 0x338   : > { %17079 = vmatmul.mubr.msk.f32.gmra.mrb[58].mxu1 %vm579_vm0, %v18594_v8  ;;  %v14651_v8 = vld [vmem:[%s18836_s13 + $0x4bc] sm:$0xff] }
 0x339   : > { %17081 = vmatprep.mubr.msk.f32.mxu1 %vm579_vm0, %v18595_v34  ;;  %v14653_v34 = vld [vmem:[%s18836_s13 + $0x4f4] sm:$0xff] }
 0x33c   : > { %17082 = vmatmul.mubr.msk.f32.gmra.mrb[60].mxu1 %vm579_vm0, %v18596_v15  ;;  %v14654_v15 = vld [vmem:[%s18836_s13 + $0x4fc] sm:$0xff] }
 0x33d   : > { %17084 = vmatprep.mubr.msk.f32.mxu1 %vm579_vm0, %v18597_v18  ;;  %v14655_v18 = vld [vmem:[%s18836_s13 + $0x52c] sm:$0xff] }
 0x340   : > { %17085 = vmatmul.mubr.msk.f32.gmra.mrb[62].mxu1 %vm579_vm0, %v18598_v36  ;;  %v14657_v36 = vld [vmem:[%s18836_s13 + $0x564] sm:$0xff] }
 0x341   : > { %17089 = vmatprep.mubr.msk.f32.mxu1 %vm579_vm0, %v14645_v53  ;;  %v14656_v53 = vld [vmem:[%s18836_s13 + $0x534] sm:$0xff] }
 0x344   : > { %17090 = vmatmul.mubr.msk.f32.vlgmr.msra.gmra.mrb[32].mxu1 %vm579_vm0, %v14646_v10  ;;  %v14658_v10 = vld [vmem:[%s18836_s13 + $0x56c] sm:$0xff] }
 0x345   : > { %17138 = vmatpush3.msra.mxu1 %v21157_v20  ;;  %17092 = vmatprep.mubr.msk.f32.mxu1 %vm579_vm0, %v14647_v60  ;;  %v14652_v20 = vld [vmem:[%s18836_s13 + $0x4c4] sm:$0xff]  ;;  %v14659_v60 = vld [vmem:[%s18836_s13 + $0x59c] sm:$0xff] }
 0x346   : > { %17187 = vmatprep.subr.mxu1 %v21230_v14 }
 0x348   : > { %17093 = vmatmul.mubr.msk.f32.gmra.mrb[34].mxu1 %vm579_vm0, %v14648_v9  ;;  %v14660_v9 = vld [vmem:[%s18836_s13 + $0x5a4] sm:$0xff] }
 0x349   : > { %17095 = vmatprep.mubr.msk.f32.mxu1 %vm579_vm0, %v14649_v16  ;;  %v14661_v16 = vld [vmem:[%s18836_s13 + $0x5d4] sm:$0xff] }
 0x34c   : > { %17096 = vmatmul.mubr.msk.f32.gmra.mrb[36].mxu1 %vm579_vm0, %v14650_v33  ;;  %v14662_v33 = vld [vmem:[%s18836_s13 + $0x5dc] sm:$0xff] }
 0x34d   : > { %17098 = vmatprep.mubr.msk.f32.mxu1 %vm579_vm0, %v14651_v8  ;;  %v14663_v8 = vld [vmem:[%s18836_s13 + $0x60c] sm:$0xff] }
 0x350   : > { %17099 = vmatmul.mubr.msk.f32.gmra.mrb[38].mxu1 %vm579_vm0, %v14652_v20  ;;  %v14664_v20 = vld [vmem:[%s18836_s13 + $0x614] sm:$0xff] }
 0x351   : > { %17101 = vmatprep.mubr.msk.f32.mxu1 %vm579_vm0, %v14653_v34  ;;  %v14665_v34 = vld [vmem:[%s18836_s13 + $0x644] sm:$0xff] }
 0x354   : > { %17102 = vmatmul.mubr.msk.f32.gmra.mrb[40].mxu1 %vm579_vm0, %v14654_v15  ;;  %v14666_v15 = vld [vmem:[%s18836_s13 + $0x64c] sm:$0xff] }
 0x355   : > { %17104 = vmatprep.mubr.msk.f32.mxu1 %vm579_vm0, %v14655_v18  ;;  %v14667_v18 = vld [vmem:[%s18836_s13 + $0x67c] sm:$0xff] }
 0x358   : > { %17105 = vmatmul.mubr.msk.f32.gmra.mrb[42].mxu1 %vm579_vm0, %v14656_v53  ;;  %v14668_v53 = vld [vmem:[%s18836_s13 + $0x684] sm:$0xff] }
 0x359   : > { %17107 = vmatprep.mubr.msk.f32.mxu1 %vm579_vm0, %v14657_v36  ;;  %v14669_v36 = vld [vmem:[%s18836_s13 + $0x6b4] sm:$0xff] }
 0x35c   : > { %17108 = vmatmul.mubr.msk.f32.gmra.mrb[44].mxu1 %vm579_vm0, %v14658_v10  ;;  %v14670_v10 = vld [vmem:[%s18836_s13 + $0x6bc] sm:$0xff] }
 0x35d   : > { %17110 = vmatprep.mubr.msk.f32.mxu1 %vm579_vm0, %v14659_v60  ;;  %v14671_v60 = vld [vmem:[%s18836_s13 + $0x6ec] sm:$0xff] }
 0x360   : > { %17111 = vmatmul.mubr.msk.f32.gmra.mrb[46].mxu1 %vm579_vm0, %v14660_v9  ;;  %v14672_v9 = vld [vmem:[%s18836_s13 + $0x6f4] sm:$0xff] }
 0x361   : > { %17113 = vmatprep.mubr.msk.f32.mxu1 %vm579_vm0, %v14661_v16  ;;  %v14673_v16 = vld [vmem:[%s18836_s13 + $0x724] sm:$0xff] }
 0x364   : > { %17114 = vmatmul.mubr.msk.f32.gmra.mrb[48].mxu1 %vm579_vm0, %v14662_v33  ;;  %v14674_v33 = vld [vmem:[%s18836_s13 + $0x72c] sm:$0xff] }
 0x365   : > { %17116 = vmatprep.mubr.msk.f32.mxu1 %vm579_vm0, %v14663_v8  ;;  %v14675_v8 = vld [vmem:[%s18836_s13 + $0x75c] sm:$0xff] }
 0x368   : > { %17117 = vmatmul.mubr.msk.f32.gmra.mrb[50].mxu1 %vm579_vm0, %v14664_v20  ;;  %v14676_v20 = vld [vmem:[%s18836_s13 + $0x764] sm:$0xff] }
 0x369   : > { %17119 = vmatprep.mubr.msk.f32.mxu1 %vm579_vm0, %v14665_v34  ;;  %v14710_v34 = vld [vmem:[%s18836_s13 + $0x7e0] sm:$0xff] }
 0x36c   : > { %17120 = vmatmul.mubr.msk.f32.gmra.mrb[52].mxu1 %vm579_vm0, %v14666_v15  ;;  %v14711_v15 = vld [vmem:[%s18836_s13 + $0x7e8] sm:$0xff] }
 0x36d   : > { %17122 = vmatprep.mubr.msk.f32.mxu1 %vm579_vm0, %v14667_v18  ;;  %v14712_v18 = vld [vmem:[%s18836_s13 + $0x818] sm:$0xff] }
 0x370   : > { %17123 = vmatmul.mubr.msk.f32.gmra.mrb[54].mxu1 %vm579_vm0, %v14668_v53  ;;  %v21301_v53 = vld [vmem:[%s23914_s8 + $0x40] sm:$0xff] }
 0x371   : > { %17125 = vmatprep.mubr.msk.f32.mxu1 %vm579_vm0, %v14669_v36  ;;  %v14713_v36 = vld [vmem:[%s18836_s13 + $0x820] sm:$0xff] }
 0x374   : > { %17126 = vmatmul.mubr.msk.f32.gmra.mrb[56].mxu1 %vm579_vm0, %v14670_v10  ;;  %v14714_v10 = vld [vmem:[%s18836_s13 + $0x850] sm:$0xff] }
 0x375   : > { %17128 = vmatprep.mubr.msk.f32.mxu1 %vm579_vm0, %v14671_v60  ;;  %v14715_v60 = vld [vmem:[%s18836_s13 + $0x858] sm:$0xff] }
 0x378   : > { %17129 = vmatmul.mubr.msk.f32.gmra.mrb[58].mxu1 %vm579_vm0, %v14672_v9  ;;  %v14716_v9 = vld [vmem:[%s18836_s13 + $0x888] sm:$0xff] }
 0x379   : > { %17131 = vmatprep.mubr.msk.f32.mxu1 %vm579_vm0, %v14673_v16  ;;  %v14718_v16 = vld [vmem:[%s18836_s13 + $0x8c0] sm:$0xff] }
 0x37c   : > { %17132 = vmatmul.mubr.msk.f32.gmra.mrb[60].mxu1 %vm579_vm0, %v14674_v33  ;;  %v14719_v33 = vld [vmem:[%s18836_s13 + $0x8c8] sm:$0xff] }
 0x37d   : > { %17134 = vmatprep.mubr.msk.f32.mxu1 %vm579_vm0, %v14675_v8  ;;  %v14720_v8 = vld [vmem:[%s18836_s13 + $0x8f8] sm:$0xff] }
 0x380   : > { %17135 = vmatmul.mubr.msk.f32.gmra.mrb[62].mxu1 %vm579_vm0, %v14676_v20  ;;  %v14721_v20 = vld [vmem:[%s18836_s13 + $0x900] sm:$0xff] }
 0x381   : > { %17139 = vmatprep.mubr.msk.f32.mxu1 %vm579_vm0, %v14710_v34  ;;  %v14722_v34 = vld [vmem:[%s18836_s13 + $0x930] sm:$0xff] }
 0x384   : > { %17140 = vmatmul.mubr.msk.f32.vlgmr.msra.gmra.mrb[32].mxu1 %vm579_vm0, %v14711_v15 }
 0x385   : > { %17188 = vmatpush3.msra.mxu1 %v21230_v14  ;;  %17142 = vmatprep.mubr.msk.f32.mxu1 %vm579_vm0, %v14712_v18  ;;  %v14717_v14 = vld [vmem:[%s18836_s13 + $0x890] sm:$0xff] }
 0x386   : > { %17237 = vmatprep.subr.mxu1 %v21301_v53 }
 0x388   : > { %17143 = vmatmul.mubr.msk.f32.gmra.mrb[34].mxu1 %vm579_vm0, %v14713_v36  ;;  %v14723_v36 = vld [vmem:[%s18836_s13 + $0x938] sm:$0xff] }
 0x389   : > { %17145 = vmatprep.mubr.msk.f32.mxu1 %vm579_vm0, %v14714_v10  ;;  %v14724_v10 = vld [vmem:[%s18836_s13 + $0x968] sm:$0xff] }
 0x38c   : > { %17146 = vmatmul.mubr.msk.f32.gmra.mrb[36].mxu1 %vm579_vm0, %v14715_v60 }
 0x38d   : > { %17148 = vmatprep.mubr.msk.f32.mxu1 %vm579_vm0, %v14716_v9 }
 0x390   : > { %17149 = vmatmul.mubr.msk.f32.gmra.mrb[38].mxu1 %vm579_vm0, %v14717_v14  ;;  %v14725_v14 = vld [vmem:[%s18836_s13 + $0x970] sm:$0xff] }
 0x391   : > { %17151 = vmatprep.mubr.msk.f32.mxu1 %vm579_vm0, %v14718_v16  ;;  %v14726_v16 = vld [vmem:[%s18836_s13 + $0x9a0] sm:$0xff] }
 0x394   : > { %17152 = vmatmul.mubr.msk.f32.gmra.mrb[40].mxu1 %vm579_vm0, %v14719_v33 }
 0x395   : > { %17154 = vmatprep.mubr.msk.f32.mxu1 %vm579_vm0, %v14720_v8 }
 0x396   : > { %v21325_v15 = vpop.f32.mrb[64].mxu0 }
 0x397   : > { %v21327_v18 = vpop.f32.mrb[65].mxu0 }
 0x398   : > { %17155 = vmatmul.mubr.msk.f32.gmra.mrb[42].mxu1 %vm579_vm0, %v14721_v20  ;;  %v14727_v20 = vld [vmem:[%s18836_s13 + $0x9a8] sm:$0xff] }
 0x399   : > { %17157 = vmatprep.mubr.msk.f32.mxu1 %vm579_vm0, %v14722_v34  ;;  %v14728_v34 = vld [vmem:[%s18836_s13 + $0x9d8] sm:$0xff] }
 0x39a   : > { %v21333_v60 = vpop.f32.mrb[66].mxu0 }
 0x39b   : > { %v21335_v9 = vpop.f32.mrb[67].mxu0 }
 0x39c   : > { %17158 = vmatmul.mubr.msk.f32.gmra.mrb[44].mxu1 %vm579_vm0, %v14723_v36 }
 0x39d   : > { %17160 = vmatprep.mubr.msk.f32.mxu1 %vm579_vm0, %v14724_v10  ;;  %v14729_v10 = vld [vmem:[%s18836_s13 + $0x9e0] sm:$0xff] }
 0x39e   : > { %v21341_v33 = vpop.f32.mrb[68].mxu0 }
 0x39f   : > { %v21343_v8 = vpop.f32.mrb[69].mxu0 }
 0x3a0   : > { %17161 = vmatmul.mubr.msk.f32.gmra.mrb[46].mxu1 %vm579_vm0, %v14725_v14 }
 0x3a1   : > { %17163 = vmatprep.mubr.msk.f32.mxu1 %vm579_vm0, %v14726_v16  ;;  %v14731_v16 = vld [vmem:[%s18836_s13 + $0xa18] sm:$0xff] }
 0x3a2   : > { %v21349_v46 = vpop.f32.mrb[70].mxu0 }
 0x3a3   : > { %24270 = vst [vmem:[#allocation41_spill] sm:$0xff] %v21349_v46  ;;  %v21351_v36 = vpop.f32.mrb[71].mxu0 }
 0x3a4   : > { %17164 = vmatmul.mubr.msk.f32.gmra.mrb[48].mxu1 %vm579_vm0, %v14727_v20 }
 0x3a5   : > { %17166 = vmatprep.mubr.msk.f32.mxu1 %vm579_vm0, %v14728_v34  ;;  %v14733_v34 = vld [vmem:[%s18836_s13 + $0xa50] sm:$0xff] }
 0x3a6   : > { %v21357_v23 = vpop.f32.mrb[72].mxu0 }
 0x3a7   : > { %24271 = vst [vmem:[#allocation42_spill] sm:$0xff] %v21357_v23  ;;  %v21359_v14 = vpop.f32.mrb[73].mxu0 }
 0x3a8   : > { %24272 = vst [vmem:[#allocation43_spill] sm:$0xff] %v21359_v14  ;;  %17167 = vmatmul.mubr.msk.f32.gmra.mrb[50].mxu1 %vm579_vm0, %v14729_v10 }
 0x3a9   : > { %17169 = vmatprep.mubr.msk.f32.mxu1 %vm579_vm0, %v14730_v63  ;;  %v14735_v63 = vld [vmem:[%s18836_s13 + $0xa88] sm:$0xff] }
 0x3aa   : > { %v21365_v27 = vpop.f32.mrb[74].mxu0 }
 0x3ab   : > { %24273 = vst [vmem:[#allocation44_spill] sm:$0xff] %v21365_v27  ;;  %v21367_v20 = vpop.f32.mrb[75].mxu0  ;;  %v14736_v27 = vld [vmem:[%s18836_s13 + $0xab8] sm:$0xff] }
 0x3ac   : > { %24274 = vst [vmem:[#allocation45_spill] sm:$0xff] %v21367_v20  ;;  %17170 = vmatmul.mubr.msk.f32.gmra.mrb[52].mxu1 %vm579_vm0, %v14731_v16 }
 0x3ad   : > { %17172 = vmatprep.mubr.msk.f32.mxu1 %vm579_vm0, %v14732_v49  ;;  %v14737_v49 = vld [vmem:[%s18836_s13 + $0xac0] sm:$0xff] }
 0x3ae   : > { %v21373_v23 = vpop.f32.mrb[76].mxu0 }
 0x3af   : > { %24275 = vst [vmem:[#allocation46_spill] sm:$0xff] %v21373_v23  ;;  %v21375_v10 = vpop.f32.mrb[77].mxu0  ;;  %v14738_v23 = vld [vmem:[%s18836_s13 + $0xaf0] sm:$0xff] }
 0x3b0   : > { %24276 = vst [vmem:[#allocation47_spill] sm:$0xff] %v21375_v10  ;;  %17173 = vmatmul.mubr.msk.f32.gmra.mrb[54].mxu1 %vm579_vm0, %v14733_v34 }
 0x3b1   : > { %17175 = vmatprep.mubr.msk.f32.mxu1 %vm579_vm0, %v14734_v21  ;;  %v14739_v21 = vld [vmem:[%s18836_s13 + $0xaf8] sm:$0xff] }
 0x3b2   : > { %v21381_v20 = vpop.f32.mrb[78].mxu0 }
 0x3b3   : > { %24277 = vst [vmem:[#allocation48_spill] sm:$0xff] %v21381_v20  ;;  %v21383_v16 = vpop.f32.mrb[79].mxu0  ;;  %v14740_v20 = vld [vmem:[%s18836_s13 + $0xb28] sm:$0xff] }
 0x3b4   : > { %24278 = vst [vmem:[#allocation49_spill] sm:$0xff] %v21383_v16  ;;  %17176 = vmatmul.mubr.msk.f32.gmra.mrb[56].mxu1 %vm579_vm0, %v14735_v63  ;;  %v14775_v63 = vld [vmem:[%s18836_s13 + $0x7f2] sm:$0xff] }
 0x3b5   : > { %17178 = vmatprep.mubr.msk.f32.mxu1 %vm579_vm0, %v14736_v27  ;;  %v14741_v27 = vld [vmem:[%s18836_s13 + $0xb30] sm:$0xff] }
 0x3b6   : > { %v21389_v10 = vpop.f32.mrb[80].mxu0 }
 0x3b7   : > { %24279 = vst [vmem:[#allocation50_spill] sm:$0xff] %v21389_v10  ;;  %v21391_v34 = vpop.f32.mrb[81].mxu0 }
 0x3b8   : > { %24280 = vst [vmem:[#allocation51_spill] sm:$0xff] %v21391_v34  ;;  %17179 = vmatmul.mubr.msk.f32.gmra.mrb[58].mxu1 %vm579_vm0, %v14737_v49  ;;  %v14777_v49 = vld [vmem:[%s18836_s13 + $0x82a] sm:$0xff] }
 0x3b9   : > { %17181 = vmatprep.mubr.msk.f32.mxu1 %vm579_vm0, %v14738_v23  ;;  %v14776_v23 = vld [vmem:[%s18836_s13 + $0x7fa] sm:$0xff] }
 0x3ba   : > { %v21397_v16 = vpop.f32.mrb[82].mxu0 }
 0x3bb   : > { %24281 = vst [vmem:[#allocation52_spill] sm:$0xff] %v21397_v16  ;;  %v21399_v57 = vpop.f32.mrb[83].mxu0 }
 0x3bc   : > { %24282 = vst [vmem:[#allocation53_spill] sm:$0xff] %v21399_v57  ;;  %17182 = vmatmul.mubr.msk.f32.gmra.mrb[60].mxu1 %vm579_vm0, %v14739_v21 }
 0x3bd   : > { %17184 = vmatprep.mubr.msk.f32.mxu1 %vm579_vm0, %v14740_v20  ;;  %v14778_v20 = vld [vmem:[%s18836_s13 + $0x832] sm:$0xff] }
 0x3be   : > { %v21405_v10 = vpop.f32.mrb[84].mxu0 }
 0x3bf   : > { %24283 = vst [vmem:[#allocation54_spill] sm:$0xff] %v21405_v10  ;;  %v21407_v34 = vpop.f32.mrb[85].mxu0  ;;  %v14779_v10 = vld [vmem:[%s18836_s13 + $0x862] sm:$0xff] }
 0x3c0   : > { %24284 = vst [vmem:[#allocation55_spill] sm:$0xff] %v21407_v34  ;;  %17185 = vmatmul.mubr.msk.f32.gmra.mrb[62].mxu1 %vm579_vm0, %v14741_v27 }
 0x3c1   : > { %17189 = vmatprep.mubr.msk.f32.mxu1 %vm579_vm0, %v14775_v63  ;;  %v14780_v63 = vld [vmem:[%s18836_s13 + $0x86a] sm:$0xff] }
 0x3c2   : > { %v21413_v16 = vpop.f32.mrb[86].mxu0 }
 0x3c3   : > { %24285 = vst [vmem:[#allocation56_spill] sm:$0xff] %v21413_v16  ;;  %v21415_v21 = vpop.f32.mrb[87].mxu0  ;;  %v14781_v16 = vld [vmem:[%s18836_s13 + $0x89a] sm:$0xff] }
 0x3c4   : > { %24286 = vst [vmem:[#allocation57_spill] sm:$0xff] %v21415_v21  ;;  %17190 = vmatmul.mubr.msk.f32.vlgmr.msra.gmra.mrb[32].mxu1 %vm579_vm0, %v14776_v23  ;;  %v14783_v23 = vld [vmem:[%s18836_s13 + $0x8d2] sm:$0xff] }
 0x3c5   : > { %17238 = vmatpush3.msra.mxu1 %v21301_v53  ;;  %17192 = vmatprep.mubr.msk.f32.mxu1 %vm579_vm0, %v14777_v49  ;;  %v21434_v53 = vld [vmem:[%s23913_s7] ss:$0 sm:$0xff] }
 0x3c6   : > { %v21422_v27 = vpop.f32.mrb[88].mxu0 }
 0x3c7   : > { %24287 = vst [vmem:[#allocation58_spill] sm:$0xff] %v21422_v27  ;;  %v21424_v34 = vpop.f32.mrb[89].mxu0 }
 0x3c8   : > { %24288 = vst [vmem:[#allocation59_spill] sm:$0xff] %v21424_v34  ;;  %17193 = vmatmul.mubr.msk.f32.gmra.mrb[34].mxu1 %vm579_vm0, %v14778_v20  ;;  %v24291_v34 = vsub.s32 2, %v20942_v40 }
 0x3c9   : > { %17195 = vmatprep.mubr.msk.f32.mxu1 %vm579_vm0, %v14779_v10  ;;  %v14782_v10 = vld [vmem:[%s18836_s13 + $0x8a2] sm:$0xff] }
 0x3ca   : > { %v16830_v49 = vpop.f32.mrb[90].mxu0  ;;  %v21448_v57 = vrot.slane %v20969_v35, %v24291_v34 }
 0x3cb   : > { %v7622_v27 = vadd.f32 %v16830_v49, %v21434_v53  ;;  %v21437_v21 = vpop.f32.mrb[91].mxu0  ;;  %v14785_v49 = vld [vmem:[%s18836_s13 + $0x90a] sm:$0xff] }
 0x3cc   : > { %24289 = vst [vmem:[#allocation60_spill] sm:$0xff] %v21437_v21  ;;  %17196 = vmatmul.mubr.msk.f32.gmra.mrb[36].mxu1 %vm579_vm0, %v14780_v63  ;;  %24292 = vst [vmem:[#allocation62_spill] sm:$0xff] %v21448_v57 }
 0x3cd   : > { %17198 = vmatprep.mubr.msk.f32.mxu1 %vm579_vm0, %v14781_v16  ;;  %v21442_v20 = vmax.f32 %v7622_v27, 0.0  ;;  %v14784_v27 = vld [vmem:[%s18836_s13 + $0x8da] sm:$0xff] }
 0x3ce   : > { %v21450_v14 = vpop.f32.mrb[92].mxu0 }
 0x3cf   : > { %24290 = vst [vmem:[#allocation61_spill] sm:$0xff] %v21442_v20  ;;  %24293 = vst [vmem:[#allocation63_spill] sm:$0xff] %v21450_v14  ;;  %v7537_v46 = vpop.f32.mrb[93].mxu0  ;;  %v11166_v63 = vmul.f32 %v21448_v57, %v21442_v20 }
 0x3d0   : > { %17199 = vmatmul.mubr.msk.f32.gmra.mrb[38].mxu1 %vm579_vm0, %v14782_v10  ;;  %v7623_v16 = vadd.f32 %v21434_v53, %v7537_v46  ;;  %v14786_v46 = vld [vmem:[%s18836_s13 + $0x912] sm:$0xff] }
 0x3d1   : > { %17201 = vmatprep.mubr.msk.f32.mxu1 %vm579_vm0, %v14783_v23  ;;  %v21460_v21 = vadd.f32 %v21029_v61, %v11166_v63  ;;  %v14787_v63 = vld [vmem:[%s18836_s13 + $0x942] sm:$0xff] }
 0x3d2   : > { %v21462_v35 = vmax.f32 %v7623_v16, 0.0  ;;  %v16836_v34 = vpop.f32.mrb[94].mxu0 }
 0x3d3   : > { %24294 = vst [vmem:[#allocation64_spill] sm:$0xff] %v21460_v21  ;;  %v7626_v14 = vadd.f32 %v16836_v34, %v21434_v53  ;;  %v7547_v10 = vpop.f32.mrb[95].mxu0 }
 0x3d4   : > { %24295 = vst [vmem:[#allocation65_spill] sm:$0xff] %v21462_v35  ;;  %17202 = vmatmul.mubr.msk.f32.gmra.mrb[40].mxu1 %vm579_vm0, %v14784_v27  ;;  %v7625_v20 = vadd.f32 %v21434_v53, %v7547_v10  ;;  %v11170_v61 = vmul.f32 %v21448_v57, %v21462_v35  ;;  %v24327_v35 = vld [vmem:[#allocation12_spill] sm:$0xff] }
 0x3d5   : > { %17204 = vmatprep.mubr.msk.f32.mxu1 %vm579_vm0, %v14785_v49  ;;  %v21471_v23 = vmax.f32 %v7626_v14, 0.0  ;;  %v14788_v49 = vld [vmem:[%s18836_s13 + $0x94a] sm:$0xff] }
 0x3d6   : > { %v21474_v16 = vmax.f32 %v7625_v20, 0.0  ;;  %v21477_v34 = vadd.f32 %v21064_v19, %v11170_v61  ;;  %v14789_v20 = vld [vmem:[%s18836_s13 + $0x97a] sm:$0xff]  ;;  %v14791_v61 = vld [vmem:[%s18836_s13 + $0x9b2] sm:$0xff] }
 0x3d7   : > { %24296 = vst [vmem:[#allocation66_spill] sm:$0xff] %v21471_v23  ;;  %v11182_v27 = vmul.f32 %v21448_v57, %v21471_v23  ;;  %v24321_v23 = vld [vmem:[#allocation8_spill] sm:$0xff] }
 0x3d8   : > { %24297 = vst [vmem:[#allocation67_spill] sm:$0xff] %v21474_v16  ;;  %24298 = vst [vmem:[#allocation68_spill] sm:$0xff] %v21477_v34  ;;  %17205 = vmatmul.mubr.msk.f32.gmra.mrb[42].mxu1 %vm579_vm0, %v14786_v46  ;;  %v11178_v14 = vmul.f32 %v21448_v57, %v21474_v16  ;;  %v14790_v46 = vld [vmem:[%s18836_s13 + $0x982] sm:$0xff]  ;;  %v24315_v34 = vld [vmem:[#allocation11_spill] sm:$0xff] }
 0x3d9   : > { %17207 = vmatprep.mubr.msk.f32.mxu1 %vm579_vm0, %v14787_v63  ;;  %v21488_v10 = vadd.f32 %v21078_v54, %v11182_v27  ;;  %v14792_v63 = vld [vmem:[%s18836_s13 + $0x9ba] sm:$0xff]  ;;  %v14793_v54 = vld [vmem:[%s18836_s13 + $0x9ea] sm:$0xff]  ;;  %v14795_v27 = vld [vmem:[%s18836_s13 + $0xa22] sm:$0xff] }
 0x3da   : > { %v21491_v19 = vadd.f32 %v21084_v13, %v11178_v14  ;;  %v14794_v13 = vld [vmem:[%s18836_s13 + $0x9f2] sm:$0xff]  ;;  %v14797_v14 = vld [vmem:[%s18836_s13 + $0xa5a] sm:$0xff] }
 0x3db   : > { %24299 = vst [vmem:[#allocation69_spill] sm:$0xff] %v21488_v10  ;;  %v24333_v57 = vld [vmem:[#allocation15_spill] sm:$0xff] }
 0x3dc   : > { %24300 = vst [vmem:[#allocation70_spill] sm:$0xff] %v21491_v19  ;;  %17208 = vmatmul.mubr.msk.f32.gmra.mrb[44].mxu1 %vm579_vm0, %v14788_v49  ;;  %v14796_v49 = vld [vmem:[%s18836_s13 + $0xa2a] sm:$0xff]  ;;  %v763_v19 = vadd.f32 %v20961_v41, %v20129_v29 }
 0x3dd   : > { %17210 = vmatprep.mubr.msk.f32.mxu1 %vm579_vm0, %v14789_v20  ;;  %v14798_v20 = vld [vmem:[%s18836_s13 + $0xa62] sm:$0xff] }
 0x3de   : > { %v21612_v10 = vmax.f32 %v763_v19, 0.0  ;;  %v4232_v19 = vadd.f32 %v20773_v12, %v20980_v17 }
 0x3e0   : > { %17211 = vmatmul.mubr.msk.f32.gmra.mrb[46].mxu1 %vm579_vm0, %v14790_v46  ;;  %v14799_v46 = vld [vmem:[%s18836_s13 + $0xa92] sm:$0xff]  ;;  %24305 = vst [vmem:[#allocation75_spill] sm:$0xff] %v21612_v10 }
 0x3e1   : > { %17213 = vmatprep.mubr.msk.f32.mxu1 %vm579_vm0, %v14791_v61  ;;  %v14800_v61 = vld [vmem:[%s18836_s13 + $0xa9a] sm:$0xff] }
 0x3e4   : > { %17214 = vmatmul.mubr.msk.f32.gmra.mrb[48].mxu1 %vm579_vm0, %v14792_v63  ;;  %v14801_v63 = vld [vmem:[%s18836_s13 + $0xaca] sm:$0xff] }
 0x3e5   : > { %17216 = vmatprep.mubr.msk.f32.mxu1 %vm579_vm0, %v14793_v54  ;;  %v14802_v54 = vld [vmem:[%s18836_s13 + $0xad2] sm:$0xff] }
 0x3e8   : > { %17217 = vmatmul.mubr.msk.f32.gmra.mrb[50].mxu1 %vm579_vm0, %v14794_v13  ;;  %v14803_v13 = vld [vmem:[%s18836_s13 + $0xb02] sm:$0xff] }
 0x3e9   : > { %17219 = vmatprep.mubr.msk.f32.mxu1 %vm579_vm0, %v14795_v27  ;;  %v14804_v27 = vld [vmem:[%s18836_s13 + $0xb0a] sm:$0xff] }
 0x3ec   : > { %17220 = vmatmul.mubr.msk.f32.gmra.mrb[52].mxu1 %vm579_vm0, %v14796_v49  ;;  %v14805_v49 = vld [vmem:[%s18836_s13 + $0xb3a] sm:$0xff] }
 0x3ed   : > { %17222 = vmatprep.mubr.msk.f32.mxu1 %vm579_vm0, %v14797_v14  ;;  %v14806_v14 = vld [vmem:[%s18836_s13 + $0xb42] sm:$0xff] }
 0x3f0   : > { %17223 = vmatmul.mubr.msk.f32.gmra.mrb[54].mxu1 %vm579_vm0, %v14798_v20  ;;  %v14840_v20 = vld [vmem:[%s18836_s13 + $0x804] sm:$0xff] }
 0x3f1   : > { %17225 = vmatprep.mubr.msk.f32.mxu1 %vm579_vm0, %v14799_v46  ;;  %v14841_v46 = vld [vmem:[%s18836_s13 + $0x80c] sm:$0xff] }
 0x3f4   : > { %17226 = vmatmul.mubr.msk.f32.gmra.mrb[56].mxu1 %vm579_vm0, %v14800_v61  ;;  %v14842_v61 = vld [vmem:[%s18836_s13 + $0x83c] sm:$0xff] }
 0x3f5   : > { %17228 = vmatprep.mubr.msk.f32.mxu1 %vm579_vm0, %v14801_v63  ;;  %v14843_v63 = vld [vmem:[%s18836_s13 + $0x844] sm:$0xff] }
 0x3f8   : > { %17229 = vmatmul.mubr.msk.f32.gmra.mrb[58].mxu1 %vm579_vm0, %v14802_v54  ;;  %v14844_v54 = vld [vmem:[%s18836_s13 + $0x874] sm:$0xff] }
 0x3f9   : > { %17231 = vmatprep.mubr.msk.f32.mxu1 %vm579_vm0, %v14803_v13  ;;  %v14845_v13 = vld [vmem:[%s18836_s13 + $0x87c] sm:$0xff] }
 0x3fc   : > { %17232 = vmatmul.mubr.msk.f32.gmra.mrb[60].mxu1 %vm579_vm0, %v14804_v27  ;;  %v14846_v27 = vld [vmem:[%s18836_s13 + $0x8ac] sm:$0xff] }
 0x3fd   : > { %17234 = vmatprep.mubr.msk.f32.mxu1 %vm579_vm0, %v14805_v49  ;;  %v14847_v49 = vld [vmem:[%s18836_s13 + $0x8b4] sm:$0xff] }
 0x400   : > { %17235 = vmatmul.mubr.msk.f32.gmra.mrb[62].mxu1 %vm579_vm0, %v14806_v14  ;;  %v14848_v14 = vld [vmem:[%s18836_s13 + $0x8e4] sm:$0xff] }
 0x401   : > { %17239 = vmatprep.mubr.msk.f32.mxu1 %vm579_vm0, %v14840_v20  ;;  %v14849_v20 = vld [vmem:[%s18836_s13 + $0x8ec] sm:$0xff] }
 0x404   : > { %17240 = vmatmul.mubr.msk.f32.vlgmr.msra.gmra.mrb[32].mxu1 %vm579_vm0, %v14841_v46  ;;  %v14850_v46 = vld [vmem:[%s18836_s13 + $0x91c] sm:$0xff] }
 0x405   : > { %17242 = vmatprep.mubr.msk.f32.mxu1 %vm579_vm0, %v14842_v61  ;;  %v14851_v61 = vld [vmem:[%s18836_s13 + $0x924] sm:$0xff] }
 0x408   : > { %17243 = vmatmul.mubr.msk.f32.gmra.mrb[34].mxu1 %vm579_vm0, %v14843_v63  ;;  %v14852_v63 = vld [vmem:[%s18836_s13 + $0x954] sm:$0xff] }
 0x409   : > { %17245 = vmatprep.mubr.msk.f32.mxu1 %vm579_vm0, %v14844_v54  ;;  %v14853_v54 = vld [vmem:[%s18836_s13 + $0x95c] sm:$0xff] }
 0x40c   : > { %17246 = vmatmul.mubr.msk.f32.gmra.mrb[36].mxu1 %vm579_vm0, %v14845_v13  ;;  %v14854_v13 = vld [vmem:[%s18836_s13 + $0x98c] sm:$0xff] }
 0x40d   : > { %17248 = vmatprep.mubr.msk.f32.mxu1 %vm579_vm0, %v14846_v27  ;;  %v14855_v27 = vld [vmem:[%s18836_s13 + $0x994] sm:$0xff] }
 0x410   : > { %17249 = vmatmul.mubr.msk.f32.gmra.mrb[38].mxu1 %vm579_vm0, %v14847_v49  ;;  %v14856_v49 = vld [vmem:[%s18836_s13 + $0x9c4] sm:$0xff] }
 0x411   : > { %17251 = vmatprep.mubr.msk.f32.mxu1 %vm579_vm0, %v14848_v14  ;;  %v14857_v14 = vld [vmem:[%s18836_s13 + $0x9cc] sm:$0xff] }
 0x414   : > { %17252 = vmatmul.mubr.msk.f32.gmra.mrb[40].mxu1 %vm579_vm0, %v14849_v20  ;;  %v14858_v20 = vld [vmem:[%s18836_s13 + $0x9fc] sm:$0xff] }
 0x415   : > { %17254 = vmatprep.mubr.msk.f32.mxu1 %vm579_vm0, %v14850_v46  ;;  %v14859_v46 = vld [vmem:[%s18836_s13 + $0xa04] sm:$0xff] }
 0x418   : > { %17255 = vmatmul.mubr.msk.f32.gmra.mrb[42].mxu1 %vm579_vm0, %v14851_v61  ;;  %v14860_v61 = vld [vmem:[%s18836_s13 + $0xa34] sm:$0xff] }
 0x419   : > { %17257 = vmatprep.mubr.msk.f32.mxu1 %vm579_vm0, %v14852_v63  ;;  %v14861_v63 = vld [vmem:[%s18836_s13 + $0xa3c] sm:$0xff] }
 0x41c   : > { %17258 = vmatmul.mubr.msk.f32.gmra.mrb[44].mxu1 %vm579_vm0, %v14853_v54  ;;  %v14862_v54 = vld [vmem:[%s18836_s13 + $0xa6c] sm:$0xff] }
 0x41d   : > { %17260 = vmatprep.mubr.msk.f32.mxu1 %vm579_vm0, %v14854_v13  ;;  %v748_v13 = vadd.f32 %v20095_v50, %v20961_v41  ;;  %v14865_v50 = vld [vmem:[%s18836_s13 + $0xaac] sm:$0xff] }
 0x420   : > { %17261 = vmatmul.mubr.msk.f32.gmra.mrb[46].mxu1 %vm579_vm0, %v14855_v27  ;;  %v743_v27 = vadd.f32 %v20961_v41, %v20101_v0  ;;  %v14866_v0 = vld [vmem:[%s18836_s13 + $0xadc] sm:$0xff] }
 0x421   : > { %17263 = vmatprep.mubr.msk.f32.mxu1 %vm579_vm0, %v14856_v49  ;;  %v14863_v49 = vld [vmem:[%s18836_s13 + $0xa74] sm:$0xff] }
 0x424   : > { %17264 = vmatmul.mubr.msk.f32.gmra.mrb[48].mxu1 %vm579_vm0, %v14857_v14  ;;  %v14864_v14 = vld [vmem:[%s18836_s13 + $0xaa4] sm:$0xff] }
 0x425   : > { %17266 = vmatprep.mubr.msk.f32.mxu1 %vm579_vm0, %v14858_v20  ;;  %v21581_v20 = vmax.f32 %v748_v13, 0.0 }
 0x427   : > { %24301 = vst [vmem:[#allocation71_spill] sm:$0xff] %v21581_v20 }
 0x428   : > { %17267 = vmatmul.mubr.msk.f32.gmra.mrb[50].mxu1 %vm579_vm0, %v14859_v46  ;;  %v21583_v46 = vmax.f32 %v743_v27, 0.0  ;;  %v14868_v27 = vld [vmem:[%s18836_s13 + $0xb14] sm:$0xff] }
 0x429   : > { %17269 = vmatprep.mubr.msk.f32.mxu1 %vm579_vm0, %v14860_v61  ;;  %v753_v61 = vadd.f32 %v20961_v41, %v20111_v11  ;;  %v14867_v11 = vld [vmem:[%s18836_s13 + $0xae4] sm:$0xff] }
 0x42a   : > { %24302 = vst [vmem:[#allocation72_spill] sm:$0xff] %v21583_v46 }
 0x42b   : > { %v21595_v13 = vmax.f32 %v753_v61, 0.0  ;;  %v14870_v61 = vld [vmem:[%s18836_s13 + $0xb4c] sm:$0xff] }
 0x42c   : > { %17270 = vmatmul.mubr.msk.f32.gmra.mrb[52].mxu1 %vm579_vm0, %v14861_v63  ;;  %v11607_v63 = vadd.f32 %v21581_v20, %v21583_v46 }
 0x42d   : > { %17272 = vmatprep.mubr.msk.f32.mxu1 %vm579_vm0, %v14862_v54  ;;  %v758_v54 = vadd.f32 %v20107_v31, %v20961_v41  ;;  %24303 = vst [vmem:[#allocation73_spill] sm:$0xff] %v21595_v13  ;;  %v14869_v31 = vld [vmem:[%s18836_s13 + $0xb1c] sm:$0xff] }
 0x430   : > { %17273 = vmatmul.mubr.msk.f32.gmra.mrb[54].mxu1 %vm579_vm0, %v14863_v49  ;;  %v21601_v49 = vmax.f32 %v758_v54, 0.0 }
 0x431   : > { %17275 = vmatprep.mubr.msk.f32.mxu1 %vm579_vm0, %v14864_v14  ;;  %v11608_v14 = vadd.f32 %v11607_v63, %v21595_v13  ;;  %v14871_v63 = vld [vmem:[%s18836_s13 + $0xb54] sm:$0xff]  ;;  %s23857_s13 = scalar_lea.hbm %s23921_s16, %s14914_s21 }
 0x432   : > { %24304 = vst [vmem:[#allocation74_spill] sm:$0xff] %v21601_v49 }
 0x434   : > { %17276 = vmatmul.mubr.msk.f32.gmra.mrb[56].mxu1 %vm579_vm0, %v14865_v50  ;;  %v768_v50 = vadd.f32 %v20120_v58, %v20961_v41  ;;  %v4233_v41 = vadd.f32 %v20768_v5, %v20980_v17  ;;  %v21647_v5 = vmax.f32 %v4232_v19, 0.0 }
 0x435   : > { %17278 = vmatprep.mubr.msk.f32.mxu1 %vm579_vm0, %v14866_v0  ;;  %v11609_v0 = vadd.f32 %v11608_v14, %v21601_v49 }
 0x436   : > { %v21618_v54 = vmax.f32 %v768_v50, 0.0  ;;  %v21645_v50 = vmax.f32 %v4233_v41, 0.0  ;;  %24309 = vst [vmem:[#allocation79_spill] sm:$0xff] %v21647_v5 }
 0x437   : > { %v11610_v29 = vadd.f32 %v11609_v0, %v21612_v10 }
 0x438   : > { %17279 = vmatmul.mubr.msk.f32.gmra.mrb[58].mxu1 %vm579_vm0, %v14867_v11  ;;  %24306 = vst [vmem:[#allocation76_spill] sm:$0xff] %v21618_v54  ;;  %v21624_v11 = vld [vmem:[%s23909_s3] ss:$0 sm:$0xff]  ;;  %24308 = vst [vmem:[#allocation78_spill] sm:$0xff] %v21645_v50 }
 0x439   : > { %17281 = vmatprep.mubr.msk.f32.mxu1 %vm579_vm0, %v14868_v27  ;;  %v773_v58 = vadd.f32 %v21624_v11, %v20147_v51  ;;  %v778_v27 = vadd.f32 %v21624_v11, %v20138_v39  ;;  %v783_v17 = vadd.f32 %v21624_v11, %v20165_v28 }
 0x43b   : > { %v21635_v14 = vmax.f32 %v773_v58, 0.0  ;;  %v21649_v12 = vmax.f32 %v778_v27, 0.0  ;;  %v21662_v58 = vmax.f32 %v783_v17, 0.0  ;;  %v24317_v17 = vld [vmem:[#allocation9_spill] sm:$0xff] }
 0x43c   : > { %17282 = vmatmul.mubr.msk.f32.gmra.mrb[60].mxu1 %vm579_vm0, %v14869_v31  ;;  %v11611_v31 = vadd.f32 %v11610_v29, %v21618_v54 }
 0x43d   : > { %17284 = vmatprep.mubr.msk.f32.mxu1 %vm579_vm0, %v14870_v61  ;;  %24307 = vst [vmem:[#allocation77_spill] sm:$0xff] %v21635_v14  ;;  %v21641_v61 = vld [vmem:[%s23911_s5] ss:$0 sm:$0xff]  ;;  %24310 = vst [vmem:[#allocation80_spill] sm:$0xff] %v21649_v12 }
 0x43e   : > { %v4234_v51 = vadd.f32 %v21641_v61, %v20787_v26  ;;  %v11612_v39 = vadd.f32 %v11611_v31, %v21635_v14  ;;  %v4235_v29 = vadd.f32 %v21641_v61, %v20782_v43  ;;  %v788_v26 = vadd.f32 %v21624_v11, %v20156_v59  ;;  %24312 = vst [vmem:[#allocation82_spill] sm:$0xff] %v21662_v58 }
 0x43f   : > { %v4236_v28 = vadd.f32 %v21641_v61, %v20801_v4  ;;  %v793_v43 = vadd.f32 %v21624_v11, %v24315_v34 }
 0x440   : > { %17285 = vmatmul.mubr.msk.f32.gmra.mrb[62].mxu1 %vm579_vm0, %v14871_v63  ;;  %v21654_v0 = vmax.f32 %v4234_v51, 0.0  ;;  %v11644_v63 = vadd.f32 %v21645_v50, %v21647_v5  ;;  %v11613_v41 = vadd.f32 %v11612_v39, %v21649_v12  ;;  %v21668_v27 = vmax.f32 %v4235_v29, 0.0 }
 0x441   : > { %v21670_v31 = vmax.f32 %v788_v26, 0.0  ;;  %v21675_v21 = vmax.f32 %v4236_v28, 0.0  ;;  %v4237_v39 = vadd.f32 %v21641_v61, %v20796_v52  ;;  %v21682_v4 = vmax.f32 %v793_v43, 0.0 }
 0x442   : > { %24311 = vst [vmem:[#allocation81_spill] sm:$0xff] %v21654_v0  ;;  %v11645_v19 = vadd.f32 %v11644_v63, %v21654_v0  ;;  %24313 = vst [vmem:[#allocation83_spill] sm:$0xff] %v21668_v27  ;;  %v11614_v51 = vadd.f32 %v11613_v41, %v21662_v58  ;;  %v798_v63 = vadd.f32 %v21624_v11, %v24317_v17 }
 0x443   : > { %24314 = vst [vmem:[#allocation84_spill] sm:$0xff] %v21670_v31  ;;  %24316 = vst [vmem:[#allocation11_spill] sm:$0xff] %v21675_v21  ;;  %v4238_v41 = vadd.f32 %v21641_v61, %v20815_v38  ;;  %v21688_v34 = vmax.f32 %v4237_v39, 0.0  ;;  %v803_v52 = vadd.f32 %v21624_v11, %v24321_v23 }
 0x444   : > { %v11646_v59 = vadd.f32 %v11645_v19, %v21668_v27  ;;  %24318 = vst [vmem:[#allocation9_spill] sm:$0xff] %v21682_v4  ;;  %v11615_v29 = vadd.f32 %v11614_v51, %v21670_v31  ;;  %v21690_v28 = vmax.f32 %v798_v63, 0.0  ;;  %v4239_v51 = vadd.f32 %v21641_v61, %v20810_v6 }
 0x445   : > { %24319 = vst [vmem:[#allocation85_spill] sm:$0xff] %v21688_v34  ;;  %v21695_v16 = vmax.f32 %v4238_v41, 0.0  ;;  %v21702_v38 = vmax.f32 %v803_v52, 0.0  ;;  %v813_v6 = vadd.f32 %v21624_v11, %v24327_v35 }
 0x446   : > { %v11647_v26 = vadd.f32 %v11646_v59, %v21675_v21  ;;  %24320 = vst [vmem:[#allocation86_spill] sm:$0xff] %v21690_v28  ;;  %v11616_v19 = vadd.f32 %v11615_v29, %v21682_v4  ;;  %v24323_v59 = vld [vmem:[#allocation13_spill] sm:$0xff]  ;;  %v4240_v29 = vadd.f32 %v21641_v61, %v20829_v32  ;;  %v21708_v23 = vmax.f32 %v4239_v51, 0.0 }
 0x447   : > { %24322 = vst [vmem:[#allocation8_spill] sm:$0xff] %v21695_v16  ;;  %v808_v17 = vadd.f32 %v21624_v11, %v24323_v59  ;;  %24324 = vst [vmem:[#allocation13_spill] sm:$0xff] %v21702_v38  ;;  %v21722_v32 = vmax.f32 %v813_v6, 0.0 }
 0x448   : > { %v11648_v43 = vadd.f32 %v11647_v26, %v21688_v34  ;;  %v11617_v39 = vadd.f32 %v11616_v19, %v21690_v28  ;;  %24325 = vst [vmem:[#allocation87_spill] sm:$0xff] %v21708_v23  ;;  %v21715_v40 = vmax.f32 %v4240_v29, 0.0  ;;  %v4241_v19 = vadd.f32 %v21641_v61, %v20824_v24 }
 0x449   : > { %v21710_v41 = vmax.f32 %v808_v17, 0.0  ;;  %v823_v24 = vadd.f32 %v21624_v11, %v24333_v57 }
 0x44a   : > { %v11649_v63 = vadd.f32 %v11648_v43, %v21695_v16  ;;  %v11618_v26 = vadd.f32 %v11617_v39, %v21702_v38  ;;  %24328 = vst [vmem:[#allocation12_spill] sm:$0xff] %v21715_v40  ;;  %v24329_v43 = vld [vmem:[#allocation10_spill] sm:$0xff]  ;;  %v4242_v39 = vadd.f32 %v21641_v61, %v20843_v22  ;;  %v21728_v35 = vmax.f32 %v4241_v19, 0.0 }
 0x44b   : > { %24326 = vst [vmem:[#allocation88_spill] sm:$0xff] %v21710_v41  ;;  %v818_v59 = vadd.f32 %v21624_v11, %v24329_v43  ;;  %24330 = vst [vmem:[#allocation10_spill] sm:$0xff] %v21722_v32  ;;  %v21742_v22 = vmax.f32 %v823_v24, 0.0 }
 0x44c   : > { %v11650_v52 = vadd.f32 %v11649_v63, %v21708_v23  ;;  %v11619_v51 = vadd.f32 %v11618_v26, %v21710_v41  ;;  %24331 = vst [vmem:[#allocation89_spill] sm:$0xff] %v21728_v35  ;;  %v21735_v16 = vmax.f32 %v4242_v39, 0.0  ;;  %v4243_v26 = vadd.f32 %v21641_v61, %v20838_v62 }
 0x44d   : > { %v21730_v29 = vmax.f32 %v818_v59, 0.0 }
 0x44e   : > { %v11651_v17 = vadd.f32 %v11650_v52, %v21715_v40  ;;  %v11620_v63 = vadd.f32 %v11619_v51, %v21722_v32  ;;  %24334 = vst [vmem:[#allocation15_spill] sm:$0xff] %v21735_v16  ;;  %v24335_v52 = vld [vmem:[#allocation14_spill] sm:$0xff]  ;;  %v4244_v51 = vadd.f32 %v21641_v61, %v20857_v7  ;;  %v21748_v57 = vmax.f32 %v4243_v26, 0.0 }
 0x44f   : > { %24332 = vst [vmem:[#allocation90_spill] sm:$0xff] %v21730_v29  ;;  %v828_v43 = vadd.f32 %v21624_v11, %v24335_v52  ;;  %24336 = vst [vmem:[#allocation14_spill] sm:$0xff] %v21742_v22 }
 0x450   : > { %v11652_v6 = vadd.f32 %v11651_v17, %v21728_v35  ;;  %v11621_v19 = vadd.f32 %v11620_v63, %v21730_v29  ;;  %24337 = vst [vmem:[#allocation91_spill] sm:$0xff] %v21748_v57  ;;  %v24339_v35 = vld [vmem:[#allocation17_spill] sm:$0xff]  ;;  %v21755_v40 = vmax.f32 %v4244_v51, 0.0  ;;  %v4245_v63 = vadd.f32 %v21641_v61, %v20852_v47 }
 0x451   : > { %v21750_v39 = vmax.f32 %v828_v43, 0.0  ;;  %v833_v62 = vadd.f32 %v21624_v11, %v24339_v35 }
 0x452   : > { %v11653_v59 = vadd.f32 %v11652_v6, %v21735_v16  ;;  %v11622_v17 = vadd.f32 %v11621_v19, %v21742_v22  ;;  %24340 = vst [vmem:[#allocation17_spill] sm:$0xff] %v21755_v40  ;;  %v24341_v6 = vld [vmem:[#allocation16_spill] sm:$0xff]  ;;  %v4246_v19 = vadd.f32 %v21641_v61, %v20871_v48  ;;  %v21768_v35 = vmax.f32 %v4245_v63, 0.0 }
 0x453   : > { %24338 = vst [vmem:[#allocation92_spill] sm:$0xff] %v21750_v39  ;;  %v838_v52 = vadd.f32 %v21624_v11, %v24341_v6  ;;  %v21762_v7 = vmax.f32 %v833_v62, 0.0 }
 0x454   : > { %v11654_v24 = vadd.f32 %v11653_v59, %v21748_v57  ;;  %v11623_v26 = vadd.f32 %v11622_v17, %v21750_v39  ;;  %24343 = vst [vmem:[#allocation93_spill] sm:$0xff] %v21768_v35  ;;  %v24345_v57 = vld [vmem:[#allocation19_spill] sm:$0xff]  ;;  %v21775_v16 = vmax.f32 %v4246_v19, 0.0  ;;  %v4247_v17 = vadd.f32 %v21641_v61, %v20866_v1 }
 0x455   : > { %24342 = vst [vmem:[#allocation16_spill] sm:$0xff] %v21762_v7  ;;  %v21770_v51 = vmax.f32 %v838_v52, 0.0  ;;  %v843_v47 = vadd.f32 %v21624_v11, %v24345_v57 }
 0x456   : > { %v11655_v43 = vadd.f32 %v11654_v24, %v21755_v40  ;;  %v11624_v59 = vadd.f32 %v11623_v26, %v21762_v7  ;;  %24346 = vst [vmem:[#allocation19_spill] sm:$0xff] %v21775_v16  ;;  %v24347_v24 = vld [vmem:[#allocation18_spill] sm:$0xff]  ;;  %v4248_v26 = vadd.f32 %v21641_v61, %v20885_v56  ;;  %v21788_v57 = vmax.f32 %v4247_v17, 0.0  ;;  %v24351_v40 = vld [vmem:[#allocation21_spill] sm:$0xff] }
 0x457   : > { %24344 = vst [vmem:[#allocation94_spill] sm:$0xff] %v21770_v51  ;;  %v848_v6 = vadd.f32 %v21624_v11, %v24347_v24  ;;  %v21782_v48 = vmax.f32 %v843_v47, 0.0  ;;  %v853_v1 = vadd.f32 %v21624_v11, %v24351_v40  ;;  %v4250_v40 = vadd.f32 %v21641_v61, %v20899_v30 }
 0x458   : > { %v11656_v62 = vadd.f32 %v11655_v43, %v21768_v35  ;;  %v11625_v63 = vadd.f32 %v11624_v59, %v21770_v51  ;;  %24349 = vst [vmem:[#allocation95_spill] sm:$0xff] %v21788_v57  ;;  %v21795_v35 = vmax.f32 %v4248_v26, 0.0  ;;  %v4249_v59 = vadd.f32 %v21641_v61, %v20880_v25 }
 0x459   : > { %24348 = vst [vmem:[#allocation18_spill] sm:$0xff] %v21782_v48  ;;  %v21790_v19 = vmax.f32 %v848_v6, 0.0  ;;  %v21802_v56 = vmax.f32 %v853_v1, 0.0  ;;  %v7597_v1 = vadd.f32 %v21434_v53, %v21335_v9 }
 0x45a   : > { %v11657_v52 = vadd.f32 %v11656_v62, %v21775_v16  ;;  %v11626_v43 = vadd.f32 %v11625_v63, %v21782_v48  ;;  %24352 = vst [vmem:[#allocation21_spill] sm:$0xff] %v21795_v35  ;;  %v24353_v62 = vld [vmem:[#allocation20_spill] sm:$0xff]  ;;  %v7596_v63 = vadd.f32 %v21325_v15, %v21434_v53  ;;  %v21812_v25 = vmax.f32 %v4249_v59, 0.0  ;;  %v24361_v59 = vld [vmem:[#allocation22_spill] sm:$0xff] }
 0x45b   : > { %24350 = vst [vmem:[#allocation96_spill] sm:$0xff] %v21790_v19  ;;  %v858_v24 = vadd.f32 %v21624_v11, %v24353_v62  ;;  %24354 = vst [vmem:[#allocation20_spill] sm:$0xff] %v21802_v56  ;;  %v21832_v9 = vmax.f32 %v7597_v1, 0.0 }
 0x45c   : > { %v11658_v47 = vadd.f32 %v11657_v52, %v21788_v57  ;;  %v11627_v17 = vadd.f32 %v11626_v43, %v21790_v19  ;;  %v7595_v52 = vadd.f32 %v21434_v53, %v21327_v18  ;;  %24355 = vst [vmem:[#allocation97_spill] sm:$0xff] %v21812_v25  ;;  %v21824_v15 = vmax.f32 %v7596_v63, 0.0 }
 0x45d   : > { %v21814_v26 = vmax.f32 %v858_v24, 0.0  ;;  %v4251_v18 = vadd.f32 %v21641_v61, %v20894_v55  ;;  %v868_v24 = vadd.f32 %v21624_v11, %v24361_v59  ;;  %24362 = vst [vmem:[#allocation22_spill] sm:$0xff] %v21832_v9  ;;  %v4252_v55 = vadd.f32 %v21641_v61, %v20913_v42 }
 0x45e   : > { %v11659_v6 = vadd.f32 %v11658_v47, %v21795_v35  ;;  %v11628_v43 = vadd.f32 %v11627_v17, %v21802_v56  ;;  %v24357_v47 = vld [vmem:[#allocation23_spill] sm:$0xff]  ;;  %v21821_v35 = vmax.f32 %v4250_v40, 0.0  ;;  %24359 = vst [vmem:[#allocation99_spill] sm:$0xff] %v21824_v15  ;;  %v21826_v57 = vmax.f32 %v7595_v52, 0.0 }
 0x45f   : > { %24356 = vst [vmem:[#allocation98_spill] sm:$0xff] %v21814_v26  ;;  %v863_v62 = vadd.f32 %v21624_v11, %v24357_v47  ;;  %v7598_v52 = vadd.f32 %v21333_v60, %v21434_v53  ;;  %v21850_v1 = vmax.f32 %v4251_v18, 0.0  ;;  %v21853_v47 = vld [vmem:[%s21838_s0] ss:$0 sm:$0xff]  ;;  %v21855_v59 = vmax.f32 %v868_v24, 0.0 }
 0x460   : > { %24358 = vst [vmem:[#allocation23_spill] sm:$0xff] %v21821_v35  ;;  %v11660_v30 = vadd.f32 %v11659_v6, %v21812_v25  ;;  %24360 = vst [vmem:[#allocation100_spill] sm:$0xff] %v21826_v57  ;;  %v11629_v6 = vadd.f32 %v11628_v43, %v21814_v26  ;;  %v11681_v63 = vadd.f32 %v21824_v15, %v21826_v57  ;;  %v24366_v57 = vld [vmem:[#allocation24_spill] sm:$0xff]  ;;  %v21865_v60 = vmax.f32 %v4252_v55, 0.0 }
 0x461   : > { %v21840_v17 = vmax.f32 %v863_v62, 0.0  ;;  %24364 = vst [vmem:[#allocation102_spill] sm:$0xff] %v21850_v1  ;;  %24365 = vst [vmem:[#allocation103_spill] sm:$0xff] %v21855_v59  ;;  %v7599_v43 = vadd.f32 %v21434_v53, %v21343_v8  ;;  %v11755_v42 = vadd.f32 %v21853_v47, %v21853_v47  ;;  %v873_v15 = vadd.f32 %v21624_v11, %v24366_v57 }
 0x462   : > { %v11661_v40 = vadd.f32 %v11660_v30, %v21821_v35  ;;  %v11682_v62 = vadd.f32 %v11681_v63, %v21832_v9  ;;  %24367 = vst [vmem:[#allocation24_spill] sm:$0xff] %v21865_v60  ;;  %v21868_v35 = vmax.f32 %v7598_v52, 0.0  ;;  %v4253_v24 = vadd.f32 %v21641_v61, %v20908_v44 }
 0x463   : > { %24363 = vst [vmem:[#allocation101_spill] sm:$0xff] %v21840_v17  ;;  %v11630_v30 = vadd.f32 %v11629_v6, %v21840_v17  ;;  %v21872_v63 = vmax.f32 %v7599_v43, 0.0  ;;  %v11756_v9 = vadd.f32 %v21853_v47, %v11755_v42  ;;  %v21876_v25 = vmax.f32 %v873_v15, 0.0 }
 0x464   : > { %v11662_v18 = vadd.f32 %v11661_v40, %v21850_v1  ;;  %24368 = vst [vmem:[#allocation104_spill] sm:$0xff] %v21868_v35  ;;  %v11683_v8 = vadd.f32 %v11682_v62, %v21868_v35  ;;  %v4254_v40 = vadd.f32 %v21641_v61, %v20932_v2  ;;  %v7600_v55 = vadd.f32 %v21341_v33, %v21434_v53 }
 0x465   : > { %24369 = vst [vmem:[#allocation105_spill] sm:$0xff] %v21872_v63  ;;  %24370 = vst [vmem:[#allocation106_spill] sm:$0xff] %v21876_v25  ;;  %v11631_v6 = vadd.f32 %v11630_v30, %v21855_v59  ;;  %v21884_v52 = vmax.f32 %v4253_v24, 0.0  ;;  %v7601_v62 = vadd.f32 %v21434_v53, %v21351_v36  ;;  %v11757_v15 = vadd.f32 %v21853_v47, %v11756_v9  ;;  %v24375_v36 = vld [vmem:[#allocation25_spill] sm:$0xff] }
 0x466   : > { %v11663_v57 = vadd.f32 %v11662_v18, %v21865_v60  ;;  %v11684_v44 = vadd.f32 %v11683_v8, %v21872_v63  ;;  %v21891_v42 = vmax.f32 %v4254_v40, 0.0  ;;  %v21894_v18 = vmax.f32 %v7600_v55, 0.0  ;;  %v24376_v55 = vld [vmem:[#allocation41_spill] sm:$0xff] }
 0x467   : > { %24371 = vst [vmem:[#allocation107_spill] sm:$0xff] %v21884_v52  ;;  %v11632_v43 = vadd.f32 %v11631_v6, %v21876_v25  ;;  %v4255_v2 = vadd.f32 %v21641_v61, %v20927_v37  ;;  %v21898_v33 = vmax.f32 %v7601_v62, 0.0  ;;  %v11758_v8 = vadd.f32 %v21853_v47, %v11757_v15 }
 0x468   : > { %24372 = vst [vmem:[#allocation108_spill] sm:$0xff] %v21891_v42  ;;  %v11664_v30 = vadd.f32 %v11663_v57, %v21884_v52  ;;  %24373 = vst [vmem:[#allocation109_spill] sm:$0xff] %v21894_v18  ;;  %v11685_v24 = vadd.f32 %v11684_v44, %v21894_v18  ;;  %v888_v9 = vadd.f32 %v21624_v11, %v24375_v36  ;;  %v24378_v44 = vld [vmem:[#allocation43_spill] sm:$0xff] }
 0x469   : > { %24374 = vst [vmem:[#allocation110_spill] sm:$0xff] %v21898_v33  ;;  %v11633_v6 = vadd.f32 %v11632_v43, %v20996_v3  ;;  %v4256_v57 = vadd.f32 %v21641_v61, %v20950_v45  ;;  %v7602_v63 = vadd.f32 %v24376_v55, %v21434_v53  ;;  %v21910_v37 = vmax.f32 %v4255_v2, 0.0  ;;  %v24380_v43 = vld [vmem:[#allocation35_spill] sm:$0xff] }
 0x46a   : > { %v11665_v40 = vadd.f32 %v11664_v30, %v21891_v42  ;;  %v11686_v62 = vadd.f32 %v11685_v24, %v21898_v33  ;;  %v7603_v15 = vadd.f32 %v21434_v53, %v24378_v44  ;;  %v11759_v18 = vadd.f32 %v21853_v47, %v11758_v8  ;;  %v24383_v55 = vld [vmem:[#allocation27_spill] sm:$0xff] }
 0x46b   : > { %24377 = vst [vmem:[#allocation25_spill] sm:$0xff] %v21910_v37  ;;  %v21916_v11 = vmax.f32 %v888_v9, 0.0  ;;  %v11634_v36 = vadd.f32 %v11633_v6, %v24380_v43  ;;  %v21919_v30 = vmax.f32 %v4256_v57, 0.0  ;;  %v21922_v3 = vmax.f32 %v7602_v63, 0.0  ;;  %v24385_v6 = vld [vmem:[#allocation29_spill] sm:$0xff] }
 0x46c   : > { %v11666_v45 = vadd.f32 %v11665_v40, %v21910_v37  ;;  %v4257_v2 = vadd.f32 %v21641_v61, %v24383_v55  ;;  %v21926_v35 = vmax.f32 %v7603_v15, 0.0  ;;  %v11760_v44 = vadd.f32 %v21853_v47, %v11759_v18  ;;  %v24386_v40 = vld [vmem:[#allocation42_spill] sm:$0xff]  ;;  %v24388_v15 = vld [vmem:[#allocation45_spill] sm:$0xff]  ;;  %v24389_v18 = vld [vmem:[#allocation39_spill] sm:$0xff] }
 0x46d   : > { %24379 = vst [vmem:[#allocation41_spill] sm:$0xff] %v21916_v11  ;;  %24381 = vst [vmem:[#allocation43_spill] sm:$0xff] %v21919_v30  ;;  %v11687_v24 = vadd.f32 %v11686_v62, %v21922_v3  ;;  %v11635_v8 = vadd.f32 %v11634_v36, %v21916_v11  ;;  %v4258_v57 = vadd.f32 %v21641_v61, %v24385_v6 }
 0x46e   : > { %24382 = vst [vmem:[#allocation111_spill] sm:$0xff] %v21922_v3  ;;  %24384 = vst [vmem:[#allocation27_spill] sm:$0xff] %v21926_v35  ;;  %v11667_v9 = vadd.f32 %v11666_v45, %v21919_v30  ;;  %v7604_v63 = vadd.f32 %v24386_v40, %v21434_v53  ;;  %v21936_v43 = vmax.f32 %v4257_v2, 0.0  ;;  %v7605_v33 = vadd.f32 %v21434_v53, %v24388_v15 }
 0x46f   : > { %v11688_v55 = vadd.f32 %v11687_v24, %v21926_v35  ;;  %v11761_v62 = vadd.f32 %v21853_v47, %v11760_v44  ;;  %v11636_v3 = vadd.f32 %v11635_v8, %v24389_v18  ;;  %v21943_v36 = vmax.f32 %v4258_v57, 0.0  ;;  %v24393_v24 = vld [vmem:[#allocation37_spill] sm:$0xff]  ;;  %v24394_v44 = vld [vmem:[#allocation30_spill] sm:$0xff]  ;;  %v24395_v8 = vld [vmem:[#allocation44_spill] sm:$0xff] }
 0x470   : > { %24387 = vst [vmem:[#allocation29_spill] sm:$0xff] %v21936_v43  ;;  %v11668_v45 = vadd.f32 %v11667_v9, %v21936_v43  ;;  %v21946_v30 = vmax.f32 %v7604_v63, 0.0  ;;  %v21948_v6 = vmax.f32 %v7605_v33, 0.0  ;;  %v11055_v37 = vmul.f32 %v24394_v44, %v21583_v46 }
 0x471   : > { %24390 = vst [vmem:[#allocation42_spill] sm:$0xff] %v21943_v36  ;;  %v11762_v40 = vadd.f32 %v21853_v47, %v11761_v62  ;;  %v11637_v35 = vadd.f32 %v11636_v3, %v24393_v24  ;;  %v7606_v57 = vadd.f32 %v24395_v8, %v21434_v53  ;;  %v21960_v9 = vmul.f32 %v24394_v44, %v21595_v13  ;;  %v24396_v62 = vld [vmem:[#allocation47_spill] sm:$0xff] }
 0x472   : > { %24391 = vst [vmem:[#allocation45_spill] sm:$0xff] %v21946_v30  ;;  %24392 = vst [vmem:[#allocation112_spill] sm:$0xff] %v21948_v6  ;;  %v11689_v2 = vadd.f32 %v11688_v55, %v21946_v30  ;;  %v11669_v15 = vadd.f32 %v11668_v45, %v21943_v36  ;;  %v21964_v33 = vmul.f32 %v24394_v44, %v21618_v54 }
 0x473   : > { %v21968_v63 = vmul.f32 %v24394_v44, %v21612_v10  ;;  %v21972_v3 = vmul.f32 %v24394_v44, %v21649_v12  ;;  %v7607_v45 = vadd.f32 %v21434_v53, %v24396_v62  ;;  %v11060_v8 = vmul.f32 %v24394_v44, %v21581_v20  ;;  %v24397_v10 = vld [vmem:[#allocation32_spill] sm:$0xff] }
 0x474   : > { %v11690_v55 = vadd.f32 %v11689_v2, %v21948_v6  ;;  %v11763_v24 = vadd.f32 %v21853_v47, %v11762_v40  ;;  %v21982_v18 = vmul.f32 %v24394_v44, %v21635_v14  ;;  %v21986_v54 = vmul.f32 %v24394_v44, %v21670_v31  ;;  %v24405_v6 = vld [vmem:[#allocation34_spill] sm:$0xff] }
 0x475   : > { %v11638_v12 = vrot.slane %v11637_v35, 4  ;;  %v11670_v13 = vadd.f32 %v11669_v15, %v24397_v10  ;;  %v21991_v2 = vmul.f32 %v24394_v44, %v21662_v58  ;;  %v21995_v62 = vmul.f32 %v24394_v44, %v21690_v28  ;;  %v24399_v58 = vld [vmem:[#allocation33_spill] sm:$0xff] }
 0x476   : > { %v21997_v40 = vmax.f32 %v7606_v57, 0.0  ;;  %v11068_v14 = vmul.f32 %v24394_v44, %v21601_v49  ;;  %v22003_v31 = vmul.f32 %v24394_v44, %v21682_v4  ;;  %v22007_v15 = vmul.f32 %v24394_v44, %v21710_v41 }
 0x477   : > { %v22011_v10 = vmul.f32 %v24394_v44, %v21702_v38  ;;  %v4261_v28 = vadd.f32 %v21641_v61, %v24399_v58  ;;  %v22017_v57 = vmul.f32 %v24394_v44, %v21730_v29  ;;  %v22019_v49 = vmax.f32 %v7607_v45, 0.0  ;;  %v24401_v61 = vld [vmem:[#allocation36_spill] sm:$0xff]  ;;  %v24402_v45 = vld [vmem:[#allocation46_spill] sm:$0xff] }
 0x478   : > { %24398 = vst [vmem:[#allocation30_spill] sm:$0xff] %v21997_v40  ;;  %v11691_v4 = vadd.f32 %v11690_v55, %v21997_v40  ;;  %v11764_v20 = vadd.f32 %v21853_v47, %v11763_v24  ;;  %v22025_v41 = vmul.f32 %v24394_v44, %v21722_v32  ;;  %v22029_v38 = vmul.f32 %v24394_v44, %v21750_v39 }
 0x479   : > { %24400 = vst [vmem:[#allocation44_spill] sm:$0xff] %v22019_v49  ;;  %v11639_v46 = vadd.f32 %v11638_v12, %v11637_v35  ;;  %v11671_v58 = vadd.f32 %v11670_v13, %v24401_v61  ;;  %v22034_v29 = vmul.f32 %v24394_v44, %v21742_v22  ;;  %v22038_v55 = vmul.f32 %v24394_v44, %v21770_v51 }
 0x47a   : > { %v22042_v24 = vmul.f32 %v24394_v44, %v21762_v7  ;;  %v7608_v32 = vadd.f32 %v24402_v45, %v21434_v53  ;;  %v22048_v12 = vmul.f32 %v24394_v44, %v21790_v19  ;;  %v22052_v13 = vmul.f32 %v24394_v44, %v21782_v48  ;;  %v24404_v7 = vld [vmem:[#allocation49_spill] sm:$0xff] }
 0x47b   : > { %v22056_v35 = vmul.f32 %v24394_v44, %v21814_v26  ;;  %v22058_v61 = vmax.f32 %v4261_v28, 0.0  ;;  %v22062_v51 = vmul.f32 %v24394_v44, %v21802_v56  ;;  %v11692_v45 = vadd.f32 %v11691_v4, %v22019_v49  ;;  %v24408_v49 = vld [vmem:[#allocation40_spill] sm:$0xff] }
 0x47c   : > { %v7609_v19 = vadd.f32 %v21434_v53, %v24404_v7  ;;  %v11765_v39 = vadd.f32 %v21853_v47, %v11764_v20  ;;  %v11640_v22 = vrot.slane %v11639_v46, 2  ;;  %v11061_v26 = vmul.f32 %v24405_v6, %v21645_v50 }
 0x47d   : > { %24403 = vst [vmem:[#allocation47_spill] sm:$0xff] %v22058_v61  ;;  %v11672_v48 = vadd.f32 %v11671_v58, %v22058_v61  ;;  %v11056_v28 = vmul.f32 %v24405_v6, %v21647_v5  ;;  %v22075_v56 = vmul.f32 %v24394_v44, %v21855_v59  ;;  %v22079_v4 = vmul.f32 %v24394_v44, %v21840_v17 }
 0x47e   : > { %v22081_v7 = vmax.f32 %v7608_v32, 0.0  ;;  %v11069_v20 = vmul.f32 %v24405_v6, %v21668_v27  ;;  %v22087_v58 = vmul.f32 %v24394_v44, %v21876_v25  ;;  %v22091_v50 = vmul.f32 %v24394_v44, %v21916_v11 }
 0x47f   : > { %v11065_v59 = vmul.f32 %v24405_v6, %v21654_v0  ;;  %v11077_v17 = vmul.f32 %v24405_v6, %v21688_v34  ;;  %v22097_v5 = vmax.f32 %v7609_v19, 0.0  ;;  %v11073_v27 = vmul.f32 %v24405_v6, %v21675_v21  ;;  %v24409_v0 = vld [vmem:[#allocation48_spill] sm:$0xff] }
 0x480   : > { %24406 = vst [vmem:[#allocation33_spill] sm:$0xff] %v22081_v7  ;;  %v11693_v32 = vadd.f32 %v11692_v45, %v22081_v7  ;;  %v11766_v25 = vadd.f32 %v21853_v47, %v11765_v39  ;;  %v11673_v40 = vadd.f32 %v11672_v48, %v24408_v49  ;;  %v22104_v30 = vadd.f32 %v11061_v26, %v11060_v8  ;;  %v24410_v7 = vld [vmem:[#allocation8_spill] sm:$0xff]  ;;  %v24416_v49 = vld [vmem:[#allocation91_spill] sm:$0xff] }
 0x481   : > { %24407 = vst [vmem:[#allocation46_spill] sm:$0xff] %v22097_v5  ;;  %v22106_v44 = vadd.f32 %v11056_v28, %v11055_v37  ;;  %v22108_v11 = vadd.f32 %v11640_v22, %v11639_v46  ;;  %v7610_v34 = vadd.f32 %v24409_v0, %v21434_v53  ;;  %v22112_v19 = vadd.f32 %v11069_v20, %v11068_v14  ;;  %v24411_v26 = vld [vmem:[#allocation12_spill] sm:$0xff]  ;;  %v24412_v22 = vld [vmem:[#allocation89_spill] sm:$0xff]  ;;  %v24413_v37 = vld [vmem:[#allocation51_spill] sm:$0xff] }
 0x482   : > { %v11085_v45 = vmul.f32 %v24405_v6, %v21708_v23  ;;  %v11081_v21 = vmul.f32 %v24405_v6, %v24410_v7  ;;  %v22119_v39 = vadd.f32 %v11065_v59, %v21960_v9  ;;  %v22122_v48 = vadd.f32 %v11077_v17, %v21964_v33  ;;  %v24414_v9 = vld [vmem:[#allocation38_spill] sm:$0xff]  ;;  %v24415_v17 = vld [vmem:[#allocation15_spill] sm:$0xff]  ;;  %v24417_v23 = vld [vmem:[#allocation93_spill] sm:$0xff] }
 0x483   : > { %v11089_v46 = vmul.f32 %v24405_v6, %v24411_v26  ;;  %v11093_v0 = vmul.f32 %v24405_v6, %v24412_v22  ;;  %v11694_v14 = vadd.f32 %v11693_v32, %v22097_v5  ;;  %v7611_v8 = vadd.f32 %v21434_v53, %v24413_v37 }
 0x484   : > { %v22132_v28 = vadd.f32 %v11073_v27, %v21968_v63  ;;  %v11767_v59 = vadd.f32 %v21853_v47, %v11766_v25  ;;  %v11674_v20 = vadd.f32 %v11673_v40, %v24414_v9  ;;  %v11097_v33 = vmul.f32 %v24405_v6, %v24415_v17  ;;  %v24419_v25 = vld [vmem:[#allocation17_spill] sm:$0xff] }
 0x485   : > { %v11101_v26 = vmul.f32 %v24405_v6, %v24416_v49  ;;  %v11109_v22 = vmul.f32 %v24405_v6, %v24417_v23  ;;  %v22142_v32 = vmax.f32 %v7610_v34, 0.0  ;;  %v22145_v37 = vadd.f32 %v11085_v45, %v21972_v3  ;;  %v24420_v34 = vld [vmem:[#allocation95_spill] sm:$0xff] }
 0x486   : > { %v22148_v27 = vadd.f32 %v11081_v21, %v21982_v18  ;;  %v11105_v63 = vmul.f32 %v24405_v6, %v24419_v25  ;;  %v22153_v40 = vadd.f32 %v11089_v46, %v21991_v2  ;;  %v22156_v9 = vadd.f32 %v11093_v0, %v21986_v54  ;;  %v24422_v18 = vld [vmem:[#allocation97_spill] sm:$0xff] }
 0x487   : > { %24418 = vst [vmem:[#allocation49_spill] sm:$0xff] %v22142_v32  ;;  %v11113_v23 = vmul.f32 %v24405_v6, %v21775_v16  ;;  %v11117_v49 = vmul.f32 %v24405_v6, %v24420_v34  ;;  %v22162_v3 = vmax.f32 %v7611_v8, 0.0  ;;  %v11695_v21 = vadd.f32 %v11694_v14, %v22142_v32  ;;  %v24423_v8 = vld [vmem:[#allocation50_spill] sm:$0xff]  ;;  %v24424_v16 = vld [vmem:[#allocation21_spill] sm:$0xff] }
 0x488   : > { %v11125_v45 = vmul.f32 %v24405_v6, %v24422_v18  ;;  %v11768_v25 = vadd.f32 %v21853_v47, %v11767_v59  ;;  %v11675_v2 = vrot.slane %v11674_v20, 4  ;;  %v22169_v46 = vadd.f32 %v11097_v33, %v22003_v31  ;;  %v24426_v33 = vld [vmem:[#allocation53_spill] sm:$0xff] }
 0x489   : > { %24421 = vst [vmem:[#allocation34_spill] sm:$0xff] %v22162_v3  ;;  %v22172_v54 = vadd.f32 %v11101_v26, %v21995_v62  ;;  %v22175_v0 = vadd.f32 %v11109_v22, %v22007_v15  ;;  %v7612_v34 = vadd.f32 %v24423_v8, %v21434_v53  ;;  %v22180_v14 = vadd.f32 %v11105_v63, %v22011_v10  ;;  %v24425_v15 = vld [vmem:[#allocation23_spill] sm:$0xff] }
 0x48a   : > { %v11121_v18 = vmul.f32 %v24405_v6, %v24424_v16  ;;  %v11133_v59 = vmul.f32 %v24405_v6, %v21850_v1  ;;  %v22187_v31 = vadd.f32 %v11113_v23, %v22025_v41  ;;  %v22190_v62 = vadd.f32 %v11117_v49, %v22017_v57  ;;  %v24427_v1 = vld [vmem:[#allocation25_spill] sm:$0xff] }
 0x48b   : > { %v11129_v26 = vmul.f32 %v24405_v6, %v24425_v15  ;;  %v11141_v22 = vmul.f32 %v24405_v6, %v21884_v52  ;;  %v11696_v10 = vadd.f32 %v11695_v21, %v22162_v3  ;;  %v7613_v63 = vadd.f32 %v21434_v53, %v24426_v33 }
 0x48c   : > { %v22200_v8 = vadd.f32 %v11125_v45, %v22029_v38  ;;  %v11769_v23 = vadd.f32 %v21853_v47, %v11768_v25  ;;  %v11676_v41 = vadd.f32 %v11675_v2, %v11674_v20  ;;  %v11137_v49 = vmul.f32 %v24405_v6, %v21865_v60  ;;  %v24429_v2 = vld [vmem:[#allocation43_spill] sm:$0xff] }
 0x48d   : > { %v11145_v57 = vmul.f32 %v24405_v6, %v21891_v42  ;;  %v11149_v52 = vmul.f32 %v24405_v6, %v24427_v1  ;;  %v22209_v15 = vmax.f32 %v7612_v34, 0.0  ;;  %v22212_v21 = vadd.f32 %v11121_v18, %v22034_v29  ;;  %v24434_v1 = vld [vmem:[#allocation100_spill] sm:$0xff] }
 0x48e   : > { %v22215_v38 = vadd.f32 %v11133_v59, %v22038_v55  ;;  %v11157_v20 = vmul.f32 %v24405_v6, %v21936_v43  ;;  %v22220_v25 = vadd.f32 %v11129_v26, %v22042_v24  ;;  %v22223_v45 = vadd.f32 %v11141_v22, %v22048_v12  ;;  %v24432_v43 = vld [vmem:[#allocation99_spill] sm:$0xff] }
 0x48f   : > { %24428 = vst [vmem:[#allocation48_spill] sm:$0xff] %v22209_v15  ;;  %v11153_v33 = vmul.f32 %v24405_v6, %v24429_v2  ;;  %v11161_v34 = vmul.f32 %v24405_v6, %v21943_v36  ;;  %v22229_v29 = vmax.f32 %v7613_v63, 0.0  ;;  %v11697_v55 = vadd.f32 %v11696_v10, %v22209_v15  ;;  %v24431_v63 = vld [vmem:[#allocation52_spill] sm:$0xff]  ;;  %v24433_v10 = vld [vmem:[#allocation62_spill] sm:$0xff] }
 0x490   : > { %v11173_v18 = vmul.f32 %v24405_v6, %v22058_v61  ;;  %v11770_v59 = vadd.f32 %v21853_v47, %v11769_v23  ;;  %v22236_v24 = vadd.f32 %v11137_v49, %v22052_v13  ;;  %v22239_v12 = vadd.f32 %v11145_v57, %v22062_v51  ;;  %v24435_v13 = vld [vmem:[#allocation104_spill] sm:$0xff]  ;;  %v24436_v49 = vld [vmem:[#allocation22_spill] sm:$0xff] }
 0x491   : > { %24430 = vst [vmem:[#allocation8_spill] sm:$0xff] %v22229_v29  ;;  %v22242_v26 = vadd.f32 %v11149_v52, %v22056_v35  ;;  %v11677_v22 = vrot.slane %v11676_v41, 2  ;;  %v7614_v36 = vadd.f32 %v24431_v63, %v21434_v53  ;;  %v11062_v2 = vmul.f32 %v24433_v10, %v24432_v43  ;;  %v24437_v43 = vld [vmem:[#allocation55_spill] sm:$0xff] }
 0x492   : > { %v11057_v6 = vmul.f32 %v24433_v10, %v24434_v1  ;;  %v22251_v23 = vadd.f32 %v11157_v20, %v22075_v56  ;;  %v11070_v51 = vmul.f32 %v24433_v10, %v24435_v13  ;;  %v11066_v52 = vmul.f32 %v24433_v10, %v24436_v49  ;;  %v24438_v13 = vld [vmem:[#allocation105_spill] sm:$0xff] }
 0x493   : > { %v22258_v35 = vadd.f32 %v11153_v33, %v22079_v4  ;;  %v22261_v57 = vadd.f32 %v11161_v34, %v22087_v58  ;;  %v11698_v63 = vadd.f32 %v11697_v55, %v22229_v29  ;;  %v7615_v1 = vadd.f32 %v21434_v53, %v24437_v43  ;;  %v24439_v49 = vld [vmem:[#allocation109_spill] sm:$0xff]  ;;  %v24440_v33 = vld [vmem:[#allocation111_spill] sm:$0xff] }
 0x494   : > { %v22267_v56 = vadd.f32 %v11173_v18, %v22091_v50  ;;  %v11771_v20 = vadd.f32 %v21853_v47, %v11770_v59  ;;  %v11074_v61 = vmul.f32 %v24433_v10, %v24438_v13  ;;  %v11078_v4 = vmul.f32 %v24433_v10, %v24439_v49  ;;  %v24442_v18 = vld [vmem:[#allocation110_spill] sm:$0xff] }
 0x495   : > { %v11086_v58 = vmul.f32 %v24433_v10, %v24440_v33  ;;  %v22276_v34 = vadd.f32 %v11677_v22, %v11676_v41  ;;  %v22278_v55 = vmax.f32 %v7614_v36, 0.0  ;;  %v22281_v43 = vadd.f32 %v22104_v30, %v11062_v2  ;;  %v24443_v33 = vld [vmem:[#allocation27_spill] sm:$0xff]  ;;  %v24444_v36 = vld [vmem:[#allocation45_spill] sm:$0xff]  ;;  %v24445_v2 = vld [vmem:[#allocation30_spill] sm:$0xff] }
 0x496   : > { %v22284_v50 = vadd.f32 %v22106_v44, %v11057_v6  ;;  %v11082_v59 = vmul.f32 %v24433_v10, %v24442_v18  ;;  %v22289_v13 = vadd.f32 %v22112_v19, %v11070_v51  ;;  %v22292_v49 = vadd.f32 %v22119_v39, %v11066_v52  ;;  %v24446_v52 = vld [vmem:[#allocation112_spill] sm:$0xff] }
 0x497   : > { %24441 = vst [vmem:[#allocation51_spill] sm:$0xff] %v22278_v55  ;;  %v11090_v41 = vmul.f32 %v24433_v10, %v24443_v33  ;;  %v11094_v22 = vmul.f32 %v24433_v10, %v24444_v36  ;;  %v22298_v30 = vmax.f32 %v7615_v1, 0.0  ;;  %v11699_v44 = vadd.f32 %v11698_v63, %v22278_v55  ;;  %v24447_v36 = vld [vmem:[#allocation54_spill] sm:$0xff] }
 0x498   : > { %v11102_v6 = vmul.f32 %v24433_v10, %v24445_v2  ;;  %v11772_v18 = vadd.f32 %v21853_v47, %v11771_v20  ;;  %v22305_v19 = vadd.f32 %v22132_v28, %v11074_v61  ;;  %v22308_v39 = vadd.f32 %v22122_v48, %v11078_v4  ;;  %v24448_v33 = vld [vmem:[#allocation26_spill] sm:$0xff]  ;;  %v22325_v61 = vld [vmem:[%s23915_s9] ss:$0 sm:$0xff]  ;;  %v24450_v4 = vld [vmem:[#allocation33_spill] sm:$0xff] }
 0x499   : > { %v22311_v51 = vadd.f32 %v22145_v37, %v11086_v58  ;;  %v11098_v1 = vmul.f32 %v24433_v10, %v24446_v52  ;;  %v7616_v63 = vadd.f32 %v24447_v36, %v21434_v53  ;;  %v22320_v20 = vadd.f32 %v22148_v27, %v11082_v59  ;;  %v24449_v37 = vld [vmem:[#allocation44_spill] sm:$0xff]  ;;  %v22341_v59 = vld [vmem:[%s23913_s7] ss:$0 sm:$0xff]  ;;  %v24451_v36 = vld [vmem:[#allocation57_spill] sm:$0xff] }
 0x49a   : > { %v22328_v48 = vadd.f32 %v22153_v40, %v11090_v41  ;;  %v22331_v28 = vadd.f32 %v22156_v9, %v11094_v22  ;;  %v11106_v53 = vmul.f32 %v24433_v10, %v24449_v37  ;;  %v11110_v58 = vmul.f32 %v24433_v10, %v24450_v4 }
 0x49b   : > { %v11700_v27 = vadd.f32 %v11699_v44, %v22298_v30  ;;  %v7617_v40 = vadd.f32 %v22341_v59, %v24451_v36  ;;  %v22346_v41 = vadd.f32 %v22172_v54, %v11102_v6  ;;  %v11773_v9 = vadd.f32 %v21853_v47, %v11772_v18  ;;  %v18602_v18 = vld [vmem:[%s23916_s10] sm:$0x1f] }
 0x49c   : > { %v22350_v2 = vadd.f32 %v22169_v46, %v11098_v1  ;;  %v11114_v44 = vmul.f32 %v24433_v10, %v22097_v5  ;;  %v11118_v42 = vmul.f32 %v24433_v10, %v22142_v32  ;;  %v11126_v4 = vmul.f32 %v24433_v10, %v22209_v15 }
 0x49d   : > { %v22358_v37 = vmax.f32 %v7616_v63, 0.0  ;;  %v24453_v46 = vsub.s32 3, %v24448_v33  ;;  %v24454_v36 = vsub.s32 4, %v24448_v33  ;;  %v22372_v15 = vadd.f32 %v22180_v14, %v11106_v53 }
 0x49e   : > { %v22375_v63 = vadd.f32 %v22175_v0, %v11110_v58  ;;  %v22379_v52 = vmax.f32 %v7617_v40, 0.0  ;;  %v11774_v16 = vadd.f32 %v21853_v47, %v11773_v9  ;;  %v22388_v14 = vadd.f32 %v22187_v31, %v11114_v44  ;;  %v24457_v58 = vld [vmem:[#allocation56_spill] sm:$0xff]  ;;  %v24458_v31 = vld [vmem:[#allocation59_spill] sm:$0xff] }
 0x49f   : > { %24452 = vst [vmem:[#allocation50_spill] sm:$0xff] %v22358_v37  ;;  %v22366_v1 = vrot.slane %v18602_v18, %v24453_v46  ;;  %v11049_v5 = vrot.slane %v18602_v18, %v24454_v36  ;;  %v11701_v60 = vadd.f32 %v11700_v27, %v22358_v37  ;;  %v22391_v0 = vadd.f32 %v22190_v62, %v11118_v42 }
 0x4a0   : > { %v22394_v53 = vadd.f32 %v22200_v8, %v11126_v4  ;;  %v7618_v40 = vadd.f32 %v22341_v59, %v24457_v58  ;;  %v7619_v44 = vadd.f32 %v22341_v59, %v24458_v31 }
 0x4a1   : > { %v22400_v9 = vmul.f32 %v21853_v47, %v11049_v5  ;;  %v11702_v4 = vadd.f32 %v11701_v60, %v22379_v52 }
 0x4d7   : > { %v17241_v22 = vpop.f32.mrb[32].mxu1 }
 0x4d8   : > { %v10958_v54 = vadd.f32 %v17241_v22, %v22325_v61  ;;  %v10759_v6 = vpop.f32.mrb[33].mxu1  ;;  %v11122_v22 = vmul.f32 %v24433_v10, %v22162_v3 }
 0x4d9   : > { %v10957_v32 = vadd.f32 %v22325_v61, %v10759_v6 }
 0x4da   : > { %v22382_v46 = vmax.f32 %v10958_v54, 0.0  ;;  %v22410_v8 = vadd.f32 %v22212_v21, %v11122_v22  ;;  %v22424_v21 = vmul.f32 %v24433_v10, %v22278_v55  ;;  %v22426_v22 = vmax.f32 %v7618_v40, 0.0 }
 0x4db   : > { %v22385_v18 = vmax.f32 %v10957_v32, 0.0  ;;  %v17244_v6 = vpop.f32.mrb[34].mxu1 }
 0x4dc   : > { %24455 = vst [vmem:[#allocation53_spill] sm:$0xff] %v22382_v46  ;;  %v10960_v27 = vadd.f32 %v17244_v6, %v22325_v61  ;;  %v10769_v54 = vpop.f32.mrb[35].mxu1  ;;  %v11063_v32 = vmul.f32 %v22366_v1, %v22382_v46  ;;  %v11775_v6 = vadd.f32 %v21853_v47, %v11774_v16  ;;  %v11703_v40 = vadd.f32 %v11702_v4, %v22426_v22 }
 0x4dd   : > { %24456 = vst [vmem:[#allocation52_spill] sm:$0xff] %v22385_v18  ;;  %v10959_v42 = vadd.f32 %v22325_v61, %v10769_v54  ;;  %v11058_v62 = vmul.f32 %v22366_v1, %v22385_v18  ;;  %v11718_v58 = vadd.f32 %v22382_v46, %v22385_v18  ;;  %v24462_v46 = vld [vmem:[#allocation58_spill] sm:$0xff] }
 0x4de   : > { %v22413_v36 = vmax.f32 %v10960_v27, 0.0  ;;  %v11192_v5 = vadd.f32 %v22281_v43, %v11063_v32  ;;  %v22432_v32 = vmax.f32 %v7619_v44, 0.0  ;;  %v7620_v44 = vadd.f32 %v22341_v59, %v24462_v46 }
 0x4df   : > { %v22419_v31 = vmax.f32 %v10959_v42, 0.0  ;;  %v17247_v54 = vpop.f32.mrb[36].mxu1  ;;  %v11186_v3 = vadd.f32 %v22284_v50, %v11058_v62 }
 0x4e0   : > { %24459 = vst [vmem:[#allocation62_spill] sm:$0xff] %v22413_v36  ;;  %v10962_v60 = vadd.f32 %v17247_v54, %v22325_v61  ;;  %v10779_v27 = vpop.f32.mrb[37].mxu1  ;;  %v11193_v43 = vadd.f32 %v11192_v5, %v22400_v9  ;;  %v11071_v16 = vmul.f32 %v22366_v1, %v22413_v36  ;;  %24461 = vst [vmem:[#allocation54_spill] sm:$0xff] %v22432_v32 }
 0x4e1   : > { %24460 = vst [vmem:[#allocation55_spill] sm:$0xff] %v22419_v31  ;;  %v11719_v42 = vadd.f32 %v11718_v58, %v22419_v31  ;;  %v10961_v50 = vadd.f32 %v22325_v61, %v10779_v27  ;;  %v11067_v62 = vmul.f32 %v22366_v1, %v22419_v31  ;;  %v11776_v5 = vadd.f32 %v21853_v47, %v11775_v6 }
 0x4e2   : > { %v22439_v55 = vmax.f32 %v10962_v60, 0.0  ;;  %11194 = vadd.xlane.f32.xlu0 %v11193_v43  ;;  %v11204_v54 = vadd.f32 %v22289_v13, %v11071_v16  ;;  %v11187_v17 = vadd.f32 %v11186_v3, %v22400_v9  ;;  %v11130_v3 = vmul.f32 %v24433_v10, %v22229_v29 }
 0x4e3   : > { %v22445_v18 = vmax.f32 %v10961_v50, 0.0  ;;  %v11720_v58 = vadd.f32 %v11719_v42, %v22413_v36  ;;  %v17250_v27 = vpop.f32.mrb[38].mxu1  ;;  %v11198_v43 = vadd.f32 %v22292_v49, %v11067_v62  ;;  %v11704_v42 = vadd.f32 %v11703_v40, %v22432_v32  ;;  %v24464_v50 = vld [vmem:[#allocation60_spill] sm:$0xff] }
 0x4e4   : > { %v10964_v31 = vadd.f32 %v17250_v27, %v22325_v61  ;;  %v10789_v4 = vpop.f32.mrb[39].mxu1  ;;  %v11205_v60 = vadd.f32 %v11204_v54, %v22400_v9  ;;  %v11079_v13 = vmul.f32 %v22366_v1, %v22439_v55  ;;  %v7621_v54 = vadd.f32 %v22341_v59, %v24464_v50 }
 0x4e5   : > { %24463 = vst [vmem:[#allocation26_spill] sm:$0xff] %v22445_v18  ;;  %v11721_v6 = vadd.f32 %v11720_v58, %v22445_v18  ;;  %v10963_v46 = vadd.f32 %v22325_v61, %v10789_v4  ;;  %v11075_v16 = vmul.f32 %v22366_v1, %v22445_v18  ;;  %v11777_v49 = vadd.f32 %v21853_v47, %v11776_v5 }
 0x4e6   : > { %v22463_v27 = vmax.f32 %v10964_v31, 0.0  ;;  %11206 = vadd.xlane.f32.xlu1 %v11205_v60  ;;  %11188 = vadd.xlane.f32.xlu0 %v11187_v17  ;;  %v11216_v29 = vadd.f32 %v22308_v39, %v11079_v13  ;;  %v22471_v36 = vmax.f32 %v7620_v44, 0.0  ;;  %v11199_v31 = vadd.f32 %v11198_v43, %v22400_v9 }
 0x4e7   : > { %v22466_v62 = vmax.f32 %v10963_v46, 0.0  ;;  %v11722_v58 = vadd.f32 %v11721_v6, %v22439_v55  ;;  %v17253_v4 = vpop.f32.mrb[40].mxu1  ;;  %v11210_v18 = vadd.f32 %v22305_v19, %v11075_v16  ;;  %v22482_v39 = vmax.f32 %v7621_v54, 0.0 }
 0x4e8   : > { %24465 = vst [vmem:[#allocation57_spill] sm:$0xff] %v22471_v36  ;;  %v10966_v40 = vadd.f32 %v17253_v4, %v22325_v61  ;;  %v10799_v50 = vpop.f32.mrb[41].mxu1  ;;  %v11087_v17 = vmul.f32 %v22366_v1, %v22463_v27  ;;  %v11705_v44 = vadd.f32 %v11704_v42, %v22471_v36  ;;  %v11778_v4 = vadd.f32 %v21853_v47, %v11777_v49 }
 0x4e9   : > { %v11723_v5 = vadd.f32 %v11722_v58, %v22466_v62  ;;  %v10965_v60 = vadd.f32 %v22325_v61, %v10799_v50  ;;  %v11211_v6 = vadd.f32 %v11210_v18, %v22400_v9  ;;  %v11083_v19 = vmul.f32 %v22366_v1, %v22466_v62  ;;  %24466 = vst [vmem:[#allocation56_spill] sm:$0xff] %v22482_v39 }
 0x4ea   : > { %v22485_v13 = vmax.f32 %v10966_v40, 0.0  ;;  %11200 = vadd.xlane.f32.xlu1 %v11199_v31  ;;  %v11228_v43 = vadd.f32 %v22311_v51, %v11087_v17  ;;  %v11217_v18 = vadd.f32 %v11216_v29, %v22400_v9  ;;  %v22504_v29 = vadd.f32 %v22215_v38, %v22424_v21 }
 0x4eb   : > { %v22488_v46 = vmax.f32 %v10965_v60, 0.0  ;;  %v11724_v16 = vadd.f32 %v11723_v5, %v22463_v27  ;;  %v17256_v58 = vpop.f32.mrb[42].mxu1  ;;  %11212 = vadd.xlane.f32.xlu0 %v11211_v6  ;;  %v11222_v40 = vadd.f32 %v22320_v20, %v11083_v19  ;;  %v11706_v49 = vadd.f32 %v11705_v44, %v22482_v39 }
 0x4ec   : > { %v10968_v54 = vadd.f32 %v17256_v58, %v22325_v61  ;;  %v10809_v50 = vpop.f32.mrb[43].mxu1  ;;  %v11229_v42 = vadd.f32 %v11228_v43, %v22400_v9  ;;  %v11095_v51 = vmul.f32 %v22366_v1, %v22485_v13  ;;  %v22510_v20 = vadd.f32 %v22220_v25, %v11130_v3 }
 0x4ed   : > { %v11725_v31 = vadd.f32 %v11724_v16, %v22488_v46  ;;  %v10967_v17 = vadd.f32 %v22325_v61, %v10809_v50  ;;  %v11091_v5 = vmul.f32 %v22366_v1, %v22488_v46  ;;  %v11142_v6 = vmul.f32 %v24433_v10, %v22358_v37 }
 0x4ee   : > { %v22507_v60 = vmax.f32 %v10968_v54, 0.0  ;;  %11218 = vadd.xlane.f32.xlu1 %v11217_v18  ;;  %v11779_v21 = vadd.f32 %v21853_v47, %v11778_v4  ;;  %v11223_v18 = vadd.f32 %v11222_v40, %v22400_v9  ;;  %v11240_v25 = vadd.f32 %v22331_v28, %v11095_v51  ;;  %v24467_v4 = vld [vmem:[#allocation63_spill] sm:$0xff] }
 0x4ef   : > { %v22514_v19 = vmax.f32 %v10967_v17, 0.0  ;;  %v11726_v43 = vadd.f32 %v11725_v31, %v22485_v13  ;;  %v17259_v16 = vpop.f32.mrb[44].mxu1  ;;  %11230 = vadd.xlane.f32.xlu0 %v11229_v42  ;;  %v11234_v38 = vadd.f32 %v22328_v48, %v11091_v5  ;;  %v7624_v31 = vadd.f32 %v22341_v59, %v24467_v4  ;;  %v24468_v17 = vld [vmem:[#allocation61_spill] sm:$0xff] }
 0x4f0   : > { %v10970_v44 = vadd.f32 %v17259_v16, %v22325_v61  ;;  %v10819_v58 = vpop.f32.mrb[45].mxu1  ;;  %v11103_v3 = vmul.f32 %v22366_v1, %v22507_v60  ;;  %v11707_v5 = vadd.f32 %v11706_v49, %v24468_v17  ;;  %v11138_v28 = vmul.f32 %v24433_v10, %v22298_v30 }
 0x4f1   : > { %v11727_v54 = vadd.f32 %v11726_v43, %v22514_v19  ;;  %v10969_v50 = vadd.f32 %v22325_v61, %v10819_v58  ;;  %v11235_v42 = vadd.f32 %v11234_v38, %v22400_v9  ;;  %v11099_v48 = vmul.f32 %v22366_v1, %v22514_v19 }
 0x4f2   : > { %v22532_v40 = vmax.f32 %v10970_v44, 0.0  ;;  %v11780_v58 = vadd.f32 %v21853_v47, %v11779_v21  ;;  %v11241_v49 = vadd.f32 %v11240_v25, %v22400_v9  ;;  %v11252_v44 = vadd.f32 %v22346_v41, %v11103_v3 }
 0x4f3   : > { %v22536_v51 = vmax.f32 %v10969_v50, 0.0  ;;  %v11728_v43 = vadd.f32 %v11727_v54, %v22507_v60  ;;  %v17262_v16 = vpop.f32.mrb[46].mxu1  ;;  %11236 = vadd.xlane.f32.xlu1 %v11235_v42  ;;  %11224 = vadd.xlane.f32.xlu0 %v11223_v18  ;;  %v11246_v38 = vadd.f32 %v22350_v2, %v11099_v48  ;;  %v22551_v21 = vmax.f32 %v7624_v31, 0.0  ;;  %v24470_v42 = vld [vmem:[#allocation65_spill] sm:$0xff] }
 0x4f4   : > { %v10972_v59 = vadd.f32 %v17262_v16, %v22325_v61  ;;  %v10829_v4 = vpop.f32.mrb[47].mxu1  ;;  %v11111_v50 = vmul.f32 %v22366_v1, %v22532_v40  ;;  %v11708_v48 = vadd.f32 %v11707_v5, %v24470_v42  ;;  %v22557_v41 = vadd.f32 %v22223_v45, %v11142_v6 }
 0x4f5   : > { %v11729_v17 = vadd.f32 %v11728_v43, %v22536_v51  ;;  %v10971_v54 = vadd.f32 %v22325_v61, %v10829_v4  ;;  %v11247_v18 = vadd.f32 %v11246_v38, %v22400_v9  ;;  %v11107_v2 = vmul.f32 %v22366_v1, %v22536_v51  ;;  %24469 = vst [vmem:[#allocation59_spill] sm:$0xff] %v22551_v21 }
 0x4f6   : > { %v22554_v16 = vmax.f32 %v10972_v59, 0.0  ;;  %v11781_v4 = vadd.f32 %v21853_v47, %v11780_v58  ;;  %v11253_v5 = vadd.f32 %v11252_v44, %v22400_v9  ;;  %v11264_v59 = vadd.f32 %v22375_v63, %v11111_v50 }
 0x4f7   : > { %v22559_v25 = vmax.f32 %v10971_v54, 0.0  ;;  %v11730_v3 = vadd.f32 %v11729_v17, %v22532_v40  ;;  %v17265_v43 = vpop.f32.mrb[48].mxu1  ;;  %11248 = vadd.xlane.f32.xlu1 %v11247_v18  ;;  %11242 = vadd.xlane.f32.xlu0 %v11241_v49  ;;  %v11258_v38 = vadd.f32 %v22372_v15, %v11107_v2  ;;  %v11709_v58 = vadd.f32 %v11708_v48, %v22551_v21 }
 0x4f8   : > { %v10974_v31 = vadd.f32 %v17265_v43, %v22325_v61  ;;  %v10839_v37 = vpop.f32.mrb[49].mxu1  ;;  %v11119_v45 = vmul.f32 %v22366_v1, %v22554_v16  ;;  %v22578_v44 = vadd.f32 %v22236_v24, %v11138_v28  ;;  %v11150_v63 = vmul.f32 %v24433_v10, %v22426_v22 }
 0x4f9   : > { %v11731_v6 = vadd.f32 %v11730_v3, %v22559_v25  ;;  %v10973_v17 = vadd.f32 %v22325_v61, %v10839_v37  ;;  %v11259_v49 = vadd.f32 %v11258_v38, %v22400_v9  ;;  %v11115_v15 = vmul.f32 %v22366_v1, %v22559_v25 }
 0x4fa   : > { %v22575_v54 = vmax.f32 %v10974_v31, 0.0  ;;  %v11782_v3 = vadd.f32 %v21853_v47, %v11781_v4  ;;  %v11265_v24 = vadd.f32 %v11264_v59, %v22400_v9  ;;  %v11276_v28 = vadd.f32 %v22391_v0, %v11119_v45  ;;  %v24471_v4 = vld [vmem:[#allocation67_spill] sm:$0xff] }
 0x4fb   : > { %v22582_v50 = vmax.f32 %v10973_v17, 0.0  ;;  %v11732_v18 = vadd.f32 %v11731_v6, %v22554_v16  ;;  %v17268_v37 = vpop.f32.mrb[50].mxu1  ;;  %11260 = vadd.xlane.f32.xlu1 %v11259_v49  ;;  %11254 = vadd.xlane.f32.xlu0 %v11253_v5  ;;  %v11270_v2 = vadd.f32 %v22388_v14, %v11115_v15  ;;  %v11710_v17 = vadd.f32 %v11709_v58, %v24471_v4 }
 0x4fc   : > { %v10976_v48 = vadd.f32 %v17268_v37, %v22325_v61  ;;  %v10849_v43 = vpop.f32.mrb[51].mxu1  ;;  %v11127_v38 = vmul.f32 %v22366_v1, %v22575_v54  ;;  %v11146_v59 = vmul.f32 %v24433_v10, %v22379_v52  ;;  %v22603_v0 = vadd.f32 %v22242_v26, %v11150_v63 }
 0x4fd   : > { %v11733_v31 = vadd.f32 %v11732_v18, %v22582_v50  ;;  %v10975_v6 = vadd.f32 %v22325_v61, %v10849_v43  ;;  %v11271_v5 = vadd.f32 %v11270_v2, %v22400_v9  ;;  %v11123_v14 = vmul.f32 %v22366_v1, %v22582_v50 }
 0x4fe   : > { %v22598_v49 = vmax.f32 %v10976_v48, 0.0  ;;  %v11783_v2 = vadd.f32 %v21853_v47, %v11782_v3  ;;  %v11277_v43 = vadd.f32 %v11276_v28, %v22400_v9  ;;  %v11288_v4 = vadd.f32 %v22394_v53, %v11127_v38  ;;  %v24472_v3 = vld [vmem:[#allocation66_spill] sm:$0xff] }
 0x4ff   : > { %v22605_v45 = vmax.f32 %v10975_v6, 0.0  ;;  %v11734_v15 = vadd.f32 %v11733_v31, %v22575_v54  ;;  %v17271_v18 = vpop.f32.mrb[52].mxu1  ;;  %11272 = vadd.xlane.f32.xlu1 %v11271_v5  ;;  %11266 = vadd.xlane.f32.xlu0 %v11265_v24  ;;  %v11282_v37 = vadd.f32 %v22410_v8, %v11123_v14  ;;  %v11711_v6 = vadd.f32 %v11710_v17, %v24472_v3 }
 0x500   : > { %v10978_v58 = vadd.f32 %v17271_v18, %v22325_v61  ;;  %v10859_v48 = vpop.f32.mrb[53].mxu1  ;;  %v11135_v26 = vmul.f32 %v22366_v1, %v22598_v49  ;;  %v11317_v28 = vadd.f32 %v22239_v12, %v11146_v59  ;;  %v11158_v53 = vmul.f32 %v24433_v10, %v22471_v36 }
 0x501   : > { %v11735_v63 = vadd.f32 %v11734_v15, %v22605_v45  ;;  %v10977_v31 = vadd.f32 %v22325_v61, %v10859_v48  ;;  %v11283_v24 = vadd.f32 %v11282_v37, %v22400_v9  ;;  %v11131_v8 = vmul.f32 %v22366_v1, %v22605_v45 }
 0x502   : > { %v22621_v5 = vmax.f32 %v10978_v58, 0.0  ;;  %v11784_v37 = vadd.f32 %v21853_v47, %v11783_v2  ;;  %v11289_v48 = vadd.f32 %v11288_v4, %v22400_v9  ;;  %v11300_v12 = vadd.f32 %v22504_v29, %v11135_v26 }
 0x503   : > { %v22626_v38 = vmax.f32 %v10977_v31, 0.0  ;;  %v11736_v14 = vadd.f32 %v11735_v63, %v22598_v49  ;;  %v17274_v15 = vpop.f32.mrb[54].mxu1  ;;  %11284 = vadd.xlane.f32.xlu1 %v11283_v24  ;;  %11278 = vadd.xlane.f32.xlu0 %v11277_v43  ;;  %v11294_v18 = vadd.f32 %v22510_v20, %v11131_v8  ;;  %v11712_v2 = vrot.slane %v11711_v6, 4 }
 0x504   : > { %v10980_v17 = vadd.f32 %v17274_v15, %v22325_v61  ;;  %v10869_v58 = vpop.f32.mrb[55].mxu1  ;;  %v11143_v59 = vmul.f32 %v22366_v1, %v22621_v5  ;;  %v11154_v4 = vmul.f32 %v24433_v10, %v22432_v32  ;;  %v11335_v29 = vadd.f32 %v22251_v23, %v11158_v53 }
 0x505   : > { %v11737_v31 = vadd.f32 %v11736_v14, %v22626_v38  ;;  %v10979_v63 = vadd.f32 %v22325_v61, %v10869_v58  ;;  %v11295_v43 = vadd.f32 %v11294_v18, %v22400_v9  ;;  %v11139_v20 = vmul.f32 %v22366_v1, %v22626_v38 }
 0x506   : > { %v22641_v24 = vmax.f32 %v10980_v17, 0.0  ;;  %v11785_v18 = vadd.f32 %v21853_v47, %v11784_v37  ;;  %v11301_v3 = vadd.f32 %v11300_v12, %v22400_v9  ;;  %v11312_v42 = vadd.f32 %v22557_v41, %v11143_v59 }
 0x507   : > { %v22646_v26 = vmax.f32 %v10979_v63, 0.0  ;;  %v11738_v8 = vadd.f32 %v11737_v31, %v22621_v5  ;;  %v17277_v14 = vpop.f32.mrb[56].mxu1  ;;  %11296 = vadd.xlane.f32.xlu1 %v11295_v43  ;;  %11290 = vadd.xlane.f32.xlu0 %v11289_v48  ;;  %v11306_v15 = vadd.f32 %v22578_v44, %v11139_v20  ;;  %v11713_v47 = vadd.f32 %v11712_v2, %v11711_v6 }
 0x508   : > { %v10982_v58 = vadd.f32 %v17277_v14, %v22325_v61  ;;  %v10879_v17 = vpop.f32.mrb[57].mxu1  ;;  %v11151_v23 = vmul.f32 %v22366_v1, %v22641_v24  ;;  %v11329_v63 = vadd.f32 %v22258_v35, %v11154_v4  ;;  %v11162_v41 = vmul.f32 %v24433_v10, %v22482_v39 }
 0x509   : > { %v11739_v53 = vadd.f32 %v11738_v8, %v22646_v26  ;;  %v10981_v31 = vadd.f32 %v22325_v61, %v10879_v17  ;;  %v11307_v48 = vadd.f32 %v11306_v15, %v22400_v9  ;;  %v11147_v44 = vmul.f32 %v22366_v1, %v22646_v26 }
 0x50a   : > { %v22661_v37 = vmax.f32 %v10982_v58, 0.0  ;;  %v11786_v8 = vrot.slane %v11785_v18, 4  ;;  %v11313_v6 = vadd.f32 %v11312_v42, %v22400_v9  ;;  %v11324_v2 = vadd.f32 %v22603_v0, %v11151_v23 }
 0x50b   : > { %v22666_v12 = vmax.f32 %v10981_v31, 0.0  ;;  %v11740_v59 = vadd.f32 %v11739_v53, %v22641_v24  ;;  %v17280_v43 = vpop.f32.mrb[58].mxu1  ;;  %11308 = vadd.xlane.f32.xlu1 %v11307_v48  ;;  %11302 = vadd.xlane.f32.xlu0 %v11301_v3  ;;  %v11318_v20 = vadd.f32 %v11317_v28, %v11147_v44  ;;  %v11341_v53 = vadd.f32 %v22261_v57, %v11162_v41 }
 0x50c   : > { %24473 = vst [vmem:[#allocation58_spill] sm:$0xff] %v22661_v37  ;;  %v10984_v14 = vadd.f32 %v17280_v43, %v22325_v61  ;;  %v10889_v15 = vpop.f32.mrb[59].mxu1  ;;  %v11159_v35 = vmul.f32 %v22366_v1, %v22661_v37  ;;  %v11174_v42 = vmul.f32 %v24433_v10, %v22551_v21  ;;  %v11714_v0 = vrot.slane %v11713_v47, 2 }
 0x50d   : > { %24474 = vst [vmem:[#allocation60_spill] sm:$0xff] %v22666_v12  ;;  %v11741_v4 = vadd.f32 %v11740_v59, %v22666_v12  ;;  %v10983_v58 = vadd.f32 %v22325_v61, %v10889_v15  ;;  %v11319_v17 = vadd.f32 %v11318_v20, %v22400_v9  ;;  %v11155_v3 = vmul.f32 %v22366_v1, %v22666_v12 }
 0x50e   : > { %v22679_v28 = vmax.f32 %v10984_v14, 0.0  ;;  %v11787_v59 = vadd.f32 %v11786_v8, %v11785_v18  ;;  %v11325_v14 = vadd.f32 %v11324_v2, %v22400_v9  ;;  %v11336_v15 = vadd.f32 %v11335_v29, %v11159_v35 }
 0x50f   : > { %v22684_v23 = vmax.f32 %v10983_v58, 0.0  ;;  %v11742_v31 = vadd.f32 %v11741_v4, %v22661_v37  ;;  %v17283_v48 = vpop.f32.mrb[60].mxu1  ;;  %11320 = vadd.xlane.f32.xlu1 %v11319_v17  ;;  %11314 = vadd.xlane.f32.xlu0 %v11313_v6  ;;  %v11330_v44 = vadd.f32 %v11329_v63, %v11155_v3  ;;  %v11359_v18 = vadd.f32 %v22267_v56, %v11174_v42  ;;  %v24478_v58 = vld [vmem:[#allocation64_spill] sm:$0xff] }
 0x510   : > { %24475 = vst [vmem:[#allocation63_spill] sm:$0xff] %v22679_v28  ;;  %v10986_v43 = vadd.f32 %v17283_v48, %v22325_v61  ;;  %v10899_v20 = vpop.f32.mrb[61].mxu1  ;;  %v11167_v57 = vmul.f32 %v22366_v1, %v22679_v28  ;;  %v11715_v8 = vadd.f32 %v11714_v0, %v11713_v47 }
 0x511   : > { %24476 = vst [vmem:[#allocation113_spill] sm:$0xff] %v22684_v23  ;;  %v11743_v10 = vadd.f32 %v11742_v31, %v22684_v23  ;;  %v10985_v41 = vadd.f32 %v22325_v61, %v10899_v20  ;;  %v11331_v4 = vadd.f32 %v11330_v44, %v22400_v9  ;;  %v11163_v6 = vmul.f32 %v22366_v1, %v22684_v23 }
 0x512   : > { %v22696_v63 = vmax.f32 %v10986_v43, 0.0  ;;  %v11348_v2 = vadd.f32 %v24478_v58, %v11167_v57  ;;  %v11788_v31 = vrot.slane %v11787_v59, 2  ;;  %v11337_v43 = vadd.f32 %v11336_v15, %v22400_v9 }
 0x513   : > { %v22700_v29 = vmax.f32 %v10985_v41, 0.0  ;;  %v11744_v35 = vadd.f32 %v11743_v10, %v22679_v28  ;;  %v17286_v17 = vpop.f32.mrb[62].mxu1  ;;  %11332 = vadd.xlane.f32.xlu1 %v11331_v4  ;;  %11326 = vadd.xlane.f32.xlu0 %v11325_v14  ;;  %v11342_v3 = vadd.f32 %v11341_v53, %v11163_v6  ;;  %v11679_v41 = vrot.slane %v22276_v34, 1  ;;  %v24482_v4 = vld [vmem:[#allocation68_spill] sm:$0xff] }
 0x514   : > { %24477 = vst [vmem:[#allocation114_spill] sm:$0xff] %v22696_v63  ;;  %v10988_v48 = vadd.f32 %v17286_v17, %v22325_v61  ;;  %v10909_v44 = vpop.f32.mrb[63].mxu1  ;;  %v11175_v56 = vmul.f32 %v22366_v1, %v22696_v63  ;;  %v22708_v47 = vadd.f32 %v11348_v2, %v22400_v9  ;;  %v11642_v58 = vrot.slane %v22108_v11, 1 }
 0x515   : > { %24479 = vst [vmem:[#allocation64_spill] sm:$0xff] %v22700_v29  ;;  %v11745_v42 = vadd.f32 %v11744_v35, %v22700_v29  ;;  %v10987_v0 = vadd.f32 %v22325_v61, %v10909_v44  ;;  %v11343_v20 = vadd.f32 %v11342_v3, %v22400_v9  ;;  %v11171_v53 = vmul.f32 %v22366_v1, %v22700_v29  ;;  %v24483_v44 = vld [vmem:[#allocation69_spill] sm:$0xff] }
 0x516   : > { %v22715_v14 = vmax.f32 %v10988_v48, 0.0  ;;  %v11360_v57 = vadd.f32 %v11359_v18, %v11175_v56  ;;  %v11716_v2 = vrot.slane %v11715_v8, 1  ;;  %v11789_v17 = vadd.f32 %v11788_v31, %v11787_v59 }
 0x517   : > { %v22717_v10 = vmax.f32 %v10987_v0, 0.0  ;;  %v11746_v15 = vadd.f32 %v11745_v42, %v22696_v63  ;;  %11344 = vadd.xlane.f32.xlu1 %v11343_v20  ;;  %11338 = vadd.xlane.f32.xlu0 %v11337_v43  ;;  %v11354_v6 = vadd.f32 %v24482_v4, %v11171_v53  ;;  %v11680_v42 = vadd.f32 %v11679_v41, %v22276_v34  ;;  %v24484_v0 = vld [vmem:[#allocation70_spill] sm:$0xff] }
 0x518   : > { %24480 = vst [vmem:[#allocation115_spill] sm:$0xff] %v22715_v14  ;;  %v11361_v61 = vadd.f32 %v11360_v57, %v22400_v9  ;;  %v11183_v35 = vmul.f32 %v22366_v1, %v22715_v14  ;;  %v11643_v53 = vadd.f32 %v11642_v58, %v22108_v11  ;;  %v11717_v31 = vadd.f32 %v11716_v2, %v11715_v8  ;;  %v24486_v11 = vld [vmem:[#allocation28_spill] sm:$0xff] }
 0x519   : > { %24481 = vst [vmem:[#allocation116_spill] sm:$0xff] %v22717_v10  ;;  %v11747_v18 = vadd.f32 %v11746_v15, %v22717_v10  ;;  %v11355_v3 = vadd.f32 %v11354_v6, %v22400_v9  ;;  %v11179_v48 = vmul.f32 %v22366_v1, %v22717_v10  ;;  %v11790_v15 = vrot.slane %v11789_v17, 1  ;;  %v11798_v1 = vld [vmem:[%s23918_s12] sm:$0x1f] }
 0x51a   : > { %v11372_v43 = vadd.f32 %v24483_v44, %v11183_v35  ;;  %v24485_v34 = vsub.s32 1, %v24448_v33  ;;  %v11793_v35 = vmul.f32 0.00390625, %v11643_v53  ;;  %v11803_v58 = vrot.slane %v11798_v1, %v24486_v11 }
 0x51b   : > { %v11748_v56 = vadd.f32 %v11747_v18, %v22715_v14  ;;  %11362 = vadd.xlane.f32.xlu0 %v11361_v61  ;;  %v11366_v20 = vadd.f32 %v24484_v0, %v11179_v48  ;;  %v11794_v61 = vmul.f32 0.00390625, %v11680_v42  ;;  %v11791_v48 = vadd.f32 %v11790_v15, %v11789_v17 }
 0x51c   : > { %v22736_v57 = vadd.f32 %v11372_v43, %v22400_v9  ;;  %v11807_v41 = vrot.slane %v11798_v1, %v24485_v34  ;;  %v11795_v44 = vmul.f32 0.00390625, %v11717_v31  ;;  %v24487_v8 = vsub.s32 2, %v24448_v33 }
 0x51d   : > { %v11749_v59 = vrot.slane %v11748_v56, 4  ;;  %v22742_v4 = vadd.f32 %v11366_v20, %v22400_v9  ;;  %v11825_v14 = vmul.f32 %v11803_v58, %v11793_v35  ;;  %v11797_v9 = vmul.f32 0.00390625, %v11791_v48 }
 0x51e   : > { %v11811_v2 = vrot.slane %v11798_v1, %v24487_v8  ;;  %v11826_v0 = vmul.f32 %v11807_v41, %v11794_v61  ;;  %v24489_v53 = vsub.s32 3, %v24448_v33 }
 0x51f   : > { %v11750_v6 = vadd.f32 %v11749_v59, %v11748_v56  ;;  %v24488_v56 = vsub.s32 4, %v24448_v33  ;;  %v11831_v15 = vsel %vm11830_vm1, %v11825_v14, 0.0 }
 0x520   : > { %v11827_v20 = vmul.f32 %v11811_v2, %v11795_v44  ;;  %v11815_v34 = vrot.slane %v11798_v1, %v24489_v53  ;;  %v11832_v21 = vsel %vm11830_vm1, %v11826_v0, 0.0  ;;  %v12361_v44 = vld [vmem:[%s23919_s14] sm:$0xff]  ;;  %v12364_v0 = vld [vmem:[%s23919_s14 + $0x18] sm:$0xff] }
 0x521   : > { %v11751_v18 = vrot.slane %v11750_v6, 2  ;;  %v11819_v42 = vrot.slane %v11798_v1, %v24488_v56  ;;  %v11833_v8 = vadd.f32 %v11832_v21, %v11831_v15 }
 0x522   : > { %v11834_v63 = vsel %vm11830_vm1, %v11827_v20, 0.0  ;;  %v12366_v20 = vld [vmem:[%s23919_s14 + $0x28] sm:$0xff] }
 0x523   : > { %v11752_v43 = vadd.f32 %v11751_v18, %v11750_v6  ;;  %v11829_v31 = vmul.f32 %v11819_v42, %v11797_v9  ;;  %v11835_v61 = vadd.f32 %v11834_v63, %v11833_v8  ;;  %v18669_v63 = vmov 0.0|0.0   ;;  %v12365_v42 = vld [vmem:[%s23919_s14 + $0x20] sm:$0xff] }
 0x524   : > { %17367 = vmatprep.subr.bf16.mxu0 %v18669_v63  ;;  %v17374_v53 = vpack.c.bf16 %v12366_v20, %v12365_v42 }
 0x525   : > { %v11753_v10 = vrot.slane %v11752_v43, 1  ;;  %v11838_v35 = vsel %vm11830_vm1, %v11829_v31, 0.0  ;;  %v22791_v31 = vld [vmem:[#allocation2] ss:$0 sm:$0xff] }
 0x527   : > { %v11754_v59 = vadd.f32 %v11753_v10, %v11752_v43  ;;  %v18668_v10 = vmov 0   ;;  %v12363_v43 = vld [vmem:[%s23919_s14 + $0x10] sm:$0xff] }
 0x528   : > { %18406 = vset.pattern.permute.xlu1 %v18668_v10  ;;  %18405 = vset.pattern.permute.xlu0 %v18668_v10  ;;  %v17371_v9 = vpack.c.bf16 %v12364_v0, %v12363_v43 }
 0x529   : > { %v11796_v17 = vmul.f32 0.00390625, %v11754_v59 }
 0x52b   : > { %v11828_v6 = vmul.f32 %v11815_v34, %v11796_v17  ;;  %v12367_v34 = vld [vmem:[%s23919_s14 + $0x30] sm:$0xff]  ;;  %v12368_v17 = vld [vmem:[%s23919_s14 + $0x38] sm:$0xff] }
 0x52c   : > { %v17377_v15 = vpack.c.bf16 %v12368_v17, %v12367_v34  ;;  %v12374_v34 = vld [vmem:[%s23919_s14 + $0x68] sm:$0xff] }
 0x52d   : > { %v11836_v41 = vsel %vm11830_vm1, %v11828_v6, 0.0 }
 0x52e   : > { %v11837_v58 = vadd.f32 %v11836_v41, %v11835_v61  ;;  %v12369_v41 = vld [vmem:[%s23919_s14 + $0x40] sm:$0xff] }
 0x530   : > { %v11839_v18 = vadd.f32 %v11838_v35, %v11837_v58  ;;  %v12370_v35 = vld [vmem:[%s23919_s14 + $0x48] sm:$0xff] }
 0x532   : > { %11840 = vadd.xlane.f32.xlu1 %v11839_v18  ;;  %v17380_v18 = vpack.c.bf16 %v12370_v35, %v12369_v41  ;;  %v12375_v35 = vld [vmem:[%s23919_s14 + $0x70] sm:$0xff] }
 0x536   : > { %11350 = vadd.xlane.f32.xlu1 %v22708_v47  ;;  %v12362_v47 = vld [vmem:[%s23919_s14 + $0x8] sm:$0xff] }
 0x53a   : > { %11356 = vadd.xlane.f32.xlu1 %v11355_v3  ;;  %v17368_v3 = vpack.c.bf16 %v12362_v47, %v12361_v44  ;;  %v12371_v47 = vld [vmem:[%s23919_s14 + $0x50] sm:$0xff] }
 0x53c   : > { %17369 = vmatpush1.bf16.msra.mxu0 %v17368_v3  ;;  %v12372_v3 = vld [vmem:[%s23919_s14 + $0x58] sm:$0xff] }
 0x53d   : > { %17370 = vmatprep.subr.bf16.mxu0 %v18669_v63 }
 0x540   : > { %17372 = vmatpush1.bf16.msra.mxu0 %v17371_v9  ;;  %v17383_v9 = vpack.c.bf16 %v12372_v3, %v12371_v47  ;;  %v12377_v47 = vld [vmem:[%s23919_s14 + $0x80] sm:$0xff]  ;;  %v12378_v3 = vld [vmem:[%s23919_s14 + $0x88] sm:$0xff] }
 0x541   : > { %17373 = vmatprep.subr.bf16.mxu0 %v18669_v63 }
 0x544   : > { %17375 = vmatpush1.bf16.msra.mxu0 %v17374_v53  ;;  %v12373_v53 = vld [vmem:[%s23919_s14 + $0x60] sm:$0xff] }
 0x545   : > { %17376 = vmatprep.subr.bf16.mxu0 %v18669_v63 }
 0x548   : > { %17378 = vmatpush1.bf16.msra.mxu0 %v17377_v15 }
 0x549   : > { %17379 = vmatprep.subr.bf16.mxu0 %v18669_v63 }
 0x54c   : > { %17381 = vmatpush1.bf16.msra.mxu0 %v17380_v18 }
 0x54d   : > { %17382 = vmatprep.subr.bf16.mxu0 %v18669_v63 }
 0x550   : > { %17384 = vmatpush1.bf16.msra.mxu0 %v17383_v9 }
 0x551   : > { %17385 = vmatprep.subr.bf16.mxu0 %v18669_v63 }
 0x56f   : > { %v11195_v56 = vpop.xlane.xlu0 %11194 }
 0x570   : > { %v11384_v6 = vadd.f32 %v22791_v31, %v11195_v56 }
 0x572   : > { %v11416_v10 = vsub.f32 0.0, %v11384_v6 }
 0x573   : > { %v11207_v33 = vpop.xlane.xlu1 %11206  ;;  %v11189_v8 = vpop.xlane.xlu0 %11188 }
 0x574   : > { %v11383_v58 = vadd.f32 %v22791_v31, %v11189_v8  ;;  %v11386_v44 = vadd.f32 %v22791_v31, %v11207_v33  ;;  %v11449_v20 = vmul.f32 1.442695, %v11416_v10  ;;  %v17386_v8 = vpack.c.bf16 %v12374_v34, %v12373_v53 }
 0x576   : > { %v11415_v43 = vsub.f32 0.0, %v11383_v58  ;;  %v11418_v33 = vsub.f32 0.0, %v11386_v44  ;;  %18407 = vpow2.f32 %v11449_v20  ;;  %17387 = vmatpush1.bf16.msra.mxu0 %v17386_v8  ;;  %v12376_v58 = vld [vmem:[%s23919_s14 + $0x78] sm:$0xff] }
 0x577   : > { %v11201_v1 = vpop.xlane.xlu1 %11200  ;;  %17388 = vmatprep.subr.bf16.mxu0 %v18669_v63  ;;  %v17389_v44 = vpack.c.bf16 %v12376_v58, %v12375_v35  ;;  %v12380_v20 = vld [vmem:[%s23919_s14 + $0x98] sm:$0xff] }
 0x578   : > { %v11385_v0 = vadd.f32 %v22791_v31, %v11201_v1  ;;  %v11213_v56 = vpop.xlane.xlu0 %11212  ;;  %v11447_v17 = vmul.f32 1.442695, %v11415_v43  ;;  %v11453_v6 = vmul.f32 1.442695, %v11418_v33 }
 0x579   : > { %v11387_v1 = vadd.f32 %v22791_v31, %v11213_v56  ;;  %v12379_v56 = vld [vmem:[%s23919_s14 + $0x90] sm:$0xff] }
 0x57a   : > { %v11417_v15 = vsub.f32 0.0, %v11385_v0  ;;  %18409 = vpow2.f32 %v11447_v17  ;;  %17390 = vmatpush1.bf16.msra.mxu0 %v17389_v44  ;;  %v17392_v0 = vpack.c.bf16 %v12378_v3, %v12377_v47  ;;  %v17395_v33 = vpack.c.bf16 %v12380_v20, %v12379_v56  ;;  %v12384_v44 = vld [vmem:[%s23919_s14 + $0xb8] sm:$0xff]  ;;  %v11842_v20 = vld [vmem:[#allocation3] sm:$0x1] }
 0x57b   : > { %v22754_v48 = vpop.xlane.xlu1 %11218  ;;  %v11419_v10 = vsub.f32 0.0, %v11387_v1  ;;  %18411 = vpow2.f32 %v11453_v6  ;;  %17391 = vmatprep.subr.bf16.mxu0 %v18669_v63  ;;  %v12382_v1 = vld [vmem:[%s23919_s14 + $0xa8] sm:$0xff] }
 0x57c   : > { %v11451_v18 = vmul.f32 1.442695, %v11417_v15  ;;  %v12381_v15 = vld [vmem:[%s23919_s14 + $0xa0] sm:$0xff] }
 0x57d   : > { %v11455_v43 = vmul.f32 1.442695, %v11419_v10  ;;  %v17398_v6 = vpack.c.bf16 %v12382_v1, %v12381_v15  ;;  %v12383_v10 = vld [vmem:[%s23919_s14 + $0xb0] sm:$0xff]  ;;  %v12388_v1 = vld [vmem:[%s23919_s14 + $0xd8] sm:$0xff] }
 0x57e   : > { %18413 = vpow2.f32 %v11451_v18  ;;  %17393 = vmatpush1.bf16.msra.mxu0 %v17392_v0  ;;  %v17401_v3 = vpack.c.bf16 %v12384_v44, %v12383_v10  ;;  %v12387_v15 = vld [vmem:[%s23919_s14 + $0xd0] sm:$0xff]  ;;  %v12389_v10 = vld [vmem:[%s23919_s14 + $0xe0] sm:$0xff]  ;;  %v12390_v44 = vld [vmem:[%s23919_s14 + $0xe8] sm:$0xff] }
 0x57f   : > { %18415 = vpow2.f32 %v11455_v43  ;;  %17394 = vmatprep.subr.bf16.mxu0 %v18669_v63 }
 0x580   : > { %v22756_v14 = vpop.xlane.xlu1 %11236  ;;  %v18408_v53 = vpop.eup %18407 }
 0x581   : > { %v11512_v8 = vadd.f32 1.0, %v18408_v53  ;;  %v12386_v53 = vld [vmem:[%s23919_s14 + $0xc8] sm:$0xff] }
 0x582   : > { %17396 = vmatpush1.bf16.msra.mxu0 %v17395_v33  ;;  %v12385_v33 = vld [vmem:[%s23919_s14 + $0xc0] sm:$0xff] }
 0x583   : > { %17397 = vmatprep.subr.bf16.mxu0 %v18669_v63  ;;  %18417 = vrcp.f32 %v11512_v8 }
 0x584   : > { %v22758_v21 = vpop.xlane.xlu1 %11248  ;;  %v18410_v34 = vpop.eup %18409 }
 0x585   : > { %v18412_v35 = vpop.eup %18411  ;;  %v11511_v58 = vadd.f32 1.0, %v18410_v34  ;;  %v17404_v34 = vpack.c.bf16 %v12386_v53, %v12385_v33 }
 0x586   : > { %17399 = vmatpush1.bf16.msra.mxu0 %v17398_v6  ;;  %v11514_v47 = vadd.f32 1.0, %v18412_v35 }
 0x587   : > { %17400 = vmatprep.subr.bf16.mxu0 %v18669_v63  ;;  %18419 = vrcp.f32 %v11511_v58  ;;  %v17407_v58 = vpack.c.bf16 %v12388_v1, %v12387_v15 }
 0x588   : > { %v22767_v2 = vpop.xlane.xlu1 %11260  ;;  %v18414_v18 = vpop.eup %18413  ;;  %18421 = vrcp.f32 %v11514_v47 }
 0x589   : > { %v11513_v43 = vadd.f32 1.0, %v18414_v18  ;;  %v18416_v56 = vpop.eup %18415 }
 0x58a   : > { %17402 = vmatpush1.bf16.msra.mxu0 %v17401_v3  ;;  %v11515_v8 = vadd.f32 1.0, %v18416_v56  ;;  %v17410_v56 = vpack.c.bf16 %v12390_v44, %v12389_v10  ;;  %v11388_v44 = vadd.f32 %v22791_v31, %v22754_v48 }
 0x58b   : > { %17403 = vmatprep.subr.bf16.mxu0 %v18669_v63  ;;  %18423 = vrcp.f32 %v11513_v43 }
 0x58c   : > { %v22783_v59 = vpop.xlane.xlu1 %11272  ;;  %18425 = vrcp.f32 %v11515_v8  ;;  %v12392_v8 = vld [vmem:[%s23919_s14 + $0xf8] sm:$0xff] }
 0x58d   : > { %v18418_v47 = vpop.eup %18417 }
 0x58e   : > { %17405 = vmatpush1.bf16.msra.mxu0 %v17404_v34 }
 0x58f   : > { %17406 = vmatprep.subr.bf16.mxu0 %v18669_v63 }
 0x590   : > { %v22795_v61 = vpop.xlane.xlu1 %11284 }
 0x591   : > { %v18420_v43 = vpop.eup %18419 }
 0x592   : > { %17408 = vmatpush1.bf16.msra.mxu0 %v17407_v58  ;;  %v18422_v53 = vpop.eup %18421 }
 0x593   : > { %17409 = vmatprep.subr.bf16.mxu0 %v18669_v63 }
 0x594   : > { %v22814_v42 = vpop.xlane.xlu1 %11296 }
 0x595   : > { %v18424_v34 = vpop.eup %18423 }
 0x596   : > { %17411 = vmatpush1.bf16.msra.mxu0 %v17410_v56  ;;  %v11420_v56 = vsub.f32 0.0, %v11388_v44 }
 0x597   : > { %17412 = vmatprep.subr.bf16.mxu0 %v18669_v63 }
 0x598   : > { %v22824_v41 = vpop.xlane.xlu1 %11308 }
 0x59c   : > { %v22840_v9 = vpop.xlane.xlu1 %11320 }
 0x5a0   : > { %v22849_v17 = vpop.xlane.xlu1 %11332 }
 0x5a4   : > { %v22865_v0 = vpop.xlane.xlu1 %11344 }
 0x5bf   : > { %v11841_v6 = vpop.xlane.xlu1 %11840 }
 0x5c0   : > { %v11843_v35 = vadd.f32 %v11842_v20, %v11841_v6  ;;  %v11231_v6 = vpop.xlane.xlu0 %11230 }
 0x5c2   : > { %v11844_v18 = vmax.f32 %v11843_v35, 0.0  ;;  %v18426_v35 = vpop.eup %18425 }
 0x5c4   : > { %v22888_v3 = vrot.slane %v11844_v18, %v24486_v11  ;;  %v12391_v11 = vld [vmem:[%s23919_s14 + $0xf0] sm:$0xff]  ;;  %v11225_v10 = vpop.xlane.xlu0 %11224 }
 0x5c5   : > { %v17413_v18 = vpack.c.bf16 %v12392_v8, %v12391_v11  ;;  %v11397_v11 = vadd.f32 %v22791_v31, %v22783_v59 }
 0x5c6   : > { %v11850_v20 = vmax.f32 %v18418_v47, %v22888_v3  ;;  %v11849_v33 = vmax.f32 %v18420_v43, %v22888_v3  ;;  %v11852_v15 = vmax.f32 %v18422_v53, %v22888_v3  ;;  %v11851_v1 = vmax.f32 %v18424_v34, %v22888_v3 }
 0x5c7   : > { %v11853_v58 = vmax.f32 %v18426_v35, %v22888_v3  ;;  %17414 = vmatpush1.bf16.msra.mxu0 %v17413_v18  ;;  %v11391_v43 = vadd.f32 %v22791_v31, %v22756_v14  ;;  %v11429_v18 = vsub.f32 0.0, %v11397_v11  ;;  %v11399_v14 = vadd.f32 %v22791_v31, %v22795_v61 }
 0x5c8   : > { %11888 = vperm.xlu1 %18406, %v11850_v20   ;;  %11883 = vperm.xlu0 %18405, %v11849_v33   ;;  %v11243_v47 = vpop.xlane.xlu0 %11242  ;;  %v11389_v20 = vadd.f32 %v22791_v31, %v11225_v10  ;;  %v11390_v33 = vadd.f32 %v22791_v31, %v11231_v6  ;;  %v11393_v6 = vadd.f32 %v22791_v31, %v22758_v21 }
 0x5c9   : > { %17415 = vmatprep.subr.bf16.mxu0 %v18669_v63  ;;  %v11423_v53 = vsub.f32 0.0, %v11391_v43  ;;  %v11392_v48 = vadd.f32 %v22791_v31, %v11243_v47  ;;  %v11431_v59 = vsub.f32 0.0, %v11399_v14  ;;  %v11403_v11 = vadd.f32 %v22791_v31, %v22824_v41 }
 0x5ca   : > { %v11422_v8 = vsub.f32 0.0, %v11390_v33  ;;  %v11425_v47 = vsub.f32 0.0, %v11393_v6  ;;  %v22927_v6 = vpop.xlane.xlu1 %11350 }
 0x5cb   : > { %v11463_v35 = vmul.f32 1.442695, %v11423_v53  ;;  %v11424_v43 = vsub.f32 0.0, %v11392_v48  ;;  %v11479_v61 = vmul.f32 1.442695, %v11431_v59 }
 0x5cc   : > { %11898 = vperm.xlu1 %18406, %v11852_v15   ;;  %11893 = vperm.xlu0 %18405, %v11851_v1   ;;  %v11255_v34 = vpop.xlane.xlu0 %11254  ;;  %v11457_v15 = vmul.f32 1.442695, %v11420_v56  ;;  %v11421_v1 = vsub.f32 0.0, %v11389_v20  ;;  %v11461_v44 = vmul.f32 1.442695, %v11422_v8  ;;  %v11401_v20 = vadd.f32 %v22791_v31, %v22814_v42 }
 0x5cd   : > { %v11475_v56 = vmul.f32 1.442695, %v11429_v18  ;;  %v11465_v33 = vmul.f32 1.442695, %v11424_v43  ;;  %v11394_v53 = vadd.f32 %v22791_v31, %v11255_v34  ;;  %v11467_v8 = vmul.f32 1.442695, %v11425_v47 }
 0x5ce   : > { %18427 = vpow2.f32 %v11457_v15  ;;  %v11435_v18 = vsub.f32 0.0, %v11403_v11  ;;  %v11405_v34 = vadd.f32 %v22791_v31, %v22840_v9 }
 0x5cf   : > { %18429 = vpow2.f32 %v11463_v35  ;;  %v11395_v35 = vadd.f32 %v22791_v31, %v22767_v2  ;;  %v11426_v48 = vsub.f32 0.0, %v11394_v53 }
 0x5d0   : > { %11903 = vperm.xlu0 %18405, %v11853_v58   ;;  %v11459_v58 = vmul.f32 1.442695, %v11421_v1  ;;  %v11267_v10 = vpop.xlane.xlu0 %11266  ;;  %v11433_v1 = vsub.f32 0.0, %v11401_v20  ;;  %v11487_v47 = vmul.f32 1.442695, %v11435_v18 }
 0x5d1   : > { %v11427_v43 = vsub.f32 0.0, %v11395_v35  ;;  %v11469_v2 = vmul.f32 1.442695, %v11426_v48 }
 0x5d2   : > { %18431 = vpow2.f32 %v11459_v58  ;;  %v11483_v58 = vmul.f32 1.442695, %v11433_v1 }
 0x5d3   : > { %18433 = vpow2.f32 %v11461_v44 }
 0x5d4   : > { %v11279_v15 = vpop.xlane.xlu0 %11278  ;;  %18435 = vpow2.f32 %v11475_v56  ;;  %v11396_v56 = vadd.f32 %v22791_v31, %v11267_v10  ;;  %v11357_v10 = vpop.xlane.xlu1 %11356 }
 0x5d5   : > { %18437 = vpow2.f32 %v11465_v33  ;;  %v11437_v33 = vsub.f32 0.0, %v11405_v34  ;;  %v11398_v1 = vadd.f32 %v22791_v31, %v11279_v15 }
 0x5d6   : > { %18439 = vpow2.f32 %v11479_v61  ;;  %v11471_v61 = vmul.f32 1.442695, %v11427_v43 }
 0x5d7   : > { %18441 = vpow2.f32 %v11467_v8  ;;  %v11491_v35 = vmul.f32 1.442695, %v11437_v33  ;;  %v11430_v34 = vsub.f32 0.0, %v11398_v1 }
 0x5d8   : > { %v18428_v21 = vpop.eup %18427  ;;  %v11291_v44 = vpop.xlane.xlu0 %11290  ;;  %18443 = vpow2.f32 %v11483_v58 }
 0x5d9   : > { %v18430_v42 = vpop.eup %18429  ;;  %v11516_v14 = vadd.f32 1.0, %v18428_v21 }
 0x5da   : > { %v11519_v59 = vadd.f32 1.0, %v18430_v42  ;;  %v11409_v42 = vadd.f32 %v22791_v31, %v22865_v0 }
 0x5db   : > { %18445 = vrcp.f32 %v11516_v14  ;;  %v11411_v14 = vadd.f32 %v22791_v31, %v11357_v10 }
 0x5dc   : > { %v18432_v41 = vpop.eup %18431  ;;  %18447 = vpow2.f32 %v11469_v2  ;;  %v11303_v21 = vpop.xlane.xlu0 %11302 }
 0x5dd   : > { %v18434_v20 = vpop.eup %18433  ;;  %v11517_v9 = vadd.f32 1.0, %v18432_v41  ;;  %18449 = vrcp.f32 %v11519_v59  ;;  %v11400_v41 = vadd.f32 %v22791_v31, %v11291_v44  ;;  %v11443_v33 = vsub.f32 0.0, %v11411_v14 }
 0x5de   : > { %v18436_v53 = vpop.eup %18435  ;;  %v11518_v11 = vadd.f32 1.0, %v18434_v20  ;;  %18451 = vpow2.f32 %v11487_v47  ;;  %v11477_v47 = vmul.f32 1.442695, %v11430_v34 }
 0x5df   : > { %v18438_v8 = vpop.eup %18437  ;;  %18453 = vrcp.f32 %v11517_v9 }
 0x5e0   : > { %v18440_v58 = vpop.eup %18439  ;;  %18455 = vpow2.f32 %v11471_v61  ;;  %v11520_v15 = vadd.f32 1.0, %v18438_v8  ;;  %v11315_v20 = vpop.xlane.xlu0 %11314  ;;  %v11402_v61 = vadd.f32 %v22791_v31, %v11303_v21 }
 0x5e1   : > { %18457 = vrcp.f32 %v11518_v11  ;;  %v18442_v43 = vpop.eup %18441  ;;  %v11527_v59 = vadd.f32 1.0, %v18440_v58  ;;  %v11404_v58 = vadd.f32 %v22791_v31, %v11315_v20 }
 0x5e2   : > { %18459 = vpow2.f32 %v11491_v35  ;;  %v18444_v0 = vpop.eup %18443  ;;  %v11521_v9 = vadd.f32 1.0, %v18442_v43  ;;  %v11503_v35 = vmul.f32 1.442695, %v11443_v33 }
 0x5e3   : > { %v11529_v10 = vadd.f32 1.0, %v18444_v0  ;;  %v11436_v0 = vsub.f32 0.0, %v11404_v58 }
 0x5ef   : > { %11374 = vadd.xlane.f32.xlu0 %v22736_v57  ;;  %v11407_v57 = vadd.f32 %v22791_v31, %v22849_v17  ;;  %v11525_v17 = vadd.f32 1.0, %v18436_v53  ;;  %v11432_v53 = vsub.f32 0.0, %v11400_v41 }
 0x5f0   : > { %11368 = vadd.xlane.f32.xlu1 %v22742_v4  ;;  %v11428_v4 = vsub.f32 0.0, %v11396_v56  ;;  %v11441_v56 = vsub.f32 0.0, %v11409_v42 }
 0x5f1   : > { %v11439_v48 = vsub.f32 0.0, %v11407_v57  ;;  %18461 = vrcp.f32 %v11525_v17  ;;  %v18446_v57 = vpop.eup %18445  ;;  %v11481_v42 = vmul.f32 1.442695, %v11432_v53  ;;  %v11434_v17 = vsub.f32 0.0, %v11402_v61 }
 0x5f2   : > { %v11473_v18 = vmul.f32 1.442695, %v11428_v4  ;;  %v18448_v4 = vpop.eup %18447  ;;  %v11499_v44 = vmul.f32 1.442695, %v11441_v56  ;;  %v11854_v1 = vmax.f32 %v18446_v57, %v22888_v3 }
 0x5f3   : > { %v11495_v2 = vmul.f32 1.442695, %v11439_v48  ;;  %v18450_v11 = vpop.eup %18449  ;;  %v11522_v34 = vadd.f32 1.0, %v18448_v4  ;;  %v11485_v33 = vmul.f32 1.442695, %v11434_v17 }
 0x5f4   : > { %18463 = vpow2.f32 %v11473_v18  ;;  %v18452_v8 = vpop.eup %18451  ;;  %v11327_v18 = vpop.xlane.xlu0 %11326  ;;  %v11857_v14 = vmax.f32 %v18450_v11, %v22888_v3 }
 0x5f5   : > { %18465 = vrcp.f32 %v11520_v15  ;;  %v18454_v48 = vpop.eup %18453  ;;  %v11531_v43 = vadd.f32 1.0, %v18452_v8  ;;  %v11406_v20 = vadd.f32 %v22791_v31, %v11327_v18 }
 0x5f6   : > { %18467 = vpow2.f32 %v11495_v2  ;;  %v18456_v21 = vpop.eup %18455  ;;  %v11855_v15 = vmax.f32 %v18454_v48, %v22888_v3 }
 0x5f7   : > { %18469 = vrcp.f32 %v11527_v59  ;;  %v18458_v41 = vpop.eup %18457  ;;  %v11523_v59 = vadd.f32 1.0, %v18456_v21  ;;  %v11438_v8 = vsub.f32 0.0, %v11406_v20 }
 0x5f8   : > { %18471 = vpow2.f32 %v11477_v47  ;;  %v18460_v2 = vpop.eup %18459  ;;  %v11339_v4 = vpop.xlane.xlu0 %11338 }
 0x5f9   : > { %18473 = vrcp.f32 %v11521_v9  ;;  %v11856_v9 = vmax.f32 %v18458_v41, %v22888_v3  ;;  %v11533_v61 = vadd.f32 1.0, %v18460_v2  ;;  %v11408_v48 = vadd.f32 %v22791_v31, %v11339_v4 }
 0x5fa   : > { %18475 = vpow2.f32 %v11499_v44  ;;  %v11493_v41 = vmul.f32 1.442695, %v11438_v8 }
 0x5fb   : > { %18477 = vrcp.f32 %v11529_v10  ;;  %v18462_v56 = vpop.eup %18461  ;;  %v11489_v10 = vmul.f32 1.442695, %v11436_v0 }
 0x5fc   : > { %18479 = vpow2.f32 %v11503_v35  ;;  %v11863_v57 = vmax.f32 %v18462_v56, %v22888_v3  ;;  %v11440_v56 = vsub.f32 0.0, %v11408_v48 }
 0x5fd   : > { %18481 = vpow2.f32 %v11481_v42 }
 0x5fe   : > { %v18464_v47 = vpop.eup %18463  ;;  %18483 = vrcp.f32 %v11522_v34  ;;  %v11410_v34 = vadd.f32 %v22791_v31, %v22927_v6 }
 0x5ff   : > { %v18466_v53 = vpop.eup %18465  ;;  %18485 = vrcp.f32 %v11531_v43  ;;  %v11524_v11 = vadd.f32 1.0, %v18464_v47  ;;  %v11363_v43 = vpop.xlane.xlu0 %11362 }
 0x600   : > { %v18468_v44 = vpop.eup %18467  ;;  %18487 = vrcp.f32 %v11523_v59  ;;  %v11858_v17 = vmax.f32 %v18466_v53, %v22888_v3  ;;  %v11412_v6 = vadd.f32 %v22791_v31, %v11363_v43 }
 0x601   : > { %11908 = vperm.xlu1 %18406, %v11854_v1   ;;  %v18470_v1 = vpop.eup %18469  ;;  %18489 = vpow2.f32 %v11485_v33  ;;  %v11535_v18 = vadd.f32 1.0, %v18468_v44 }
 0x602   : > { %v18472_v35 = vpop.eup %18471  ;;  %v11865_v42 = vmax.f32 %v18470_v1, %v22888_v3  ;;  %18491 = vrcp.f32 %v11533_v61  ;;  %v11497_v61 = vmul.f32 1.442695, %v11440_v56  ;;  %v11444_v8 = vsub.f32 0.0, %v11412_v6 }
 0x603   : > { %v18474_v58 = vpop.eup %18473  ;;  %18493 = vrcp.f32 %v11524_v11 }
 0x604   : > { %v18476_v21 = vpop.eup %18475  ;;  %18495 = vpow2.f32 %v11489_v10  ;;  %v11859_v0 = vmax.f32 %v18474_v58, %v22888_v3 }
 0x605   : > { %11923 = vperm.xlu0 %18405, %v11857_v14   ;;  %11913 = vperm.xlu1 %18406, %v11855_v15   ;;  %v18478_v14 = vpop.eup %18477  ;;  %v11526_v15 = vadd.f32 1.0, %v18472_v35  ;;  %18497 = vrcp.f32 %v11535_v18  ;;  %v11537_v47 = vadd.f32 1.0, %v18476_v21 }
 0x606   : > { %v18480_v2 = vpop.eup %18479  ;;  %v11867_v59 = vmax.f32 %v18478_v14, %v22888_v3 }
 0x607   : > { %v18482_v20 = vpop.eup %18481  ;;  %18499 = vrcp.f32 %v11526_v15  ;;  %v11539_v53 = vadd.f32 1.0, %v18480_v2 }
 0x608   : > { %v18484_v33 = vpop.eup %18483  ;;  %18501 = vpow2.f32 %v11493_v41  ;;  %v11528_v11 = vadd.f32 1.0, %v18482_v20 }
 0x609   : > { %11953 = vperm.xlu0 %18405, %v11863_v57   ;;  %11918 = vperm.xlu1 %18406, %v11856_v9   ;;  %v11442_v57 = vsub.f32 0.0, %v11410_v34  ;;  %v18486_v9 = vpop.eup %18485  ;;  %v11860_v44 = vmax.f32 %v18484_v33, %v22888_v3  ;;  %18503 = vrcp.f32 %v11537_v47  ;;  %v11505_v34 = vmul.f32 1.442695, %v11444_v8 }
 0x60a   : > { %v11869_v4 = vmax.f32 %v18486_v9, %v22888_v3  ;;  %v18488_v1 = vpop.eup %18487  ;;  %18505 = vrcp.f32 %v11539_v53 }
 0x60b   : > { %v18490_v10 = vpop.eup %18489  ;;  %v11501_v35 = vmul.f32 1.442695, %v11442_v57  ;;  %18507 = vpow2.f32 %v11497_v61 }
 0x60c   : > { %v18492_v48 = vpop.eup %18491  ;;  %18509 = vrcp.f32 %v11528_v11  ;;  %v11530_v18 = vadd.f32 1.0, %v18490_v10 }
 0x60d   : > { %11963 = vperm.xlu0 %18405, %v11865_v42   ;;  %11928 = vperm.xlu1 %18406, %v11858_v17   ;;  %v11871_v42 = vmax.f32 %v18492_v48, %v22888_v3  ;;  %v11861_v17 = vmax.f32 %v18488_v1, %v22888_v3  ;;  %v18494_v58 = vpop.eup %18493  ;;  %18511 = vpow2.f32 %v11501_v35 }
 0x60e   : > { %v18496_v21 = vpop.eup %18495  ;;  %v11862_v41 = vmax.f32 %v18494_v58, %v22888_v3  ;;  %18513 = vrcp.f32 %v11530_v18 }
 0x60f   : > { %v18498_v14 = vpop.eup %18497  ;;  %v11532_v2 = vadd.f32 1.0, %v18496_v21  ;;  %18515 = vpow2.f32 %v11505_v34 }
 0x610   : > { %v11873_v15 = vmax.f32 %v18498_v14, %v22888_v3 }
 0x611   : > { %11973 = vperm.xlu0 %18405, %v11867_v59   ;;  %11933 = vperm.xlu1 %18406, %v11859_v0   ;;  %v18500_v43 = vpop.eup %18499  ;;  %18517 = vrcp.f32 %v11532_v2  ;;  %v24491_v2 = vld [vmem:[#allocation72_spill] sm:$0xff] }
 0x612   : > { %v18502_v56 = vpop.eup %18501  ;;  %v11864_v20 = vmax.f32 %v18500_v43, %v22888_v3 }
 0x613   : > { %v18504_v59 = vpop.eup %18503  ;;  %v11534_v33 = vadd.f32 1.0, %v18502_v56 }
 0x614   : > { %v11875_v0 = vmax.f32 %v18504_v59, %v22888_v3  ;;  %v18506_v47 = vpop.eup %18505  ;;  %v24492_v59 = vld [vmem:[#allocation79_spill] sm:$0xff] }
 0x615   : > { %11983 = vperm.xlu0 %18405, %v11869_v4   ;;  %11938 = vperm.xlu1 %18406, %v11860_v44   ;;  %v18508_v6 = vpop.eup %18507  ;;  %v11877_v53 = vmax.f32 %v18506_v47, %v22888_v3  ;;  %18519 = vrcp.f32 %v11534_v33  ;;  %v12394_v47 = vld [vmem:[%s23919_s14 + $0x108] sm:$0xff]  ;;  %v24493_v33 = vld [vmem:[#allocation78_spill] sm:$0xff] }
 0x616   : > { %v18510_v57 = vpop.eup %18509  ;;  %v11536_v4 = vadd.f32 1.0, %v18508_v6 }
 0x617   : > { %v18512_v9 = vpop.eup %18511  ;;  %v11866_v61 = vmax.f32 %v18510_v57, %v22888_v3 }
 0x618   : > { %v18514_v44 = vpop.eup %18513  ;;  %v11538_v1 = vadd.f32 1.0, %v18512_v9  ;;  %18521 = vrcp.f32 %v11536_v4 }
 0x619   : > { %11993 = vperm.xlu0 %18405, %v11871_v42   ;;  %11943 = vperm.xlu1 %18406, %v11861_v17   ;;  %v18516_v11 = vpop.eup %18515  ;;  %v11868_v10 = vmax.f32 %v18514_v44, %v22888_v3 }
 0x61a   : > { %v11540_v35 = vadd.f32 1.0, %v18516_v11  ;;  %18523 = vrcp.f32 %v11538_v1  ;;  %v24495_v11 = vld [vmem:[#allocation81_spill] sm:$0xff] }
 0x61b   : > { %v18518_v8 = vpop.eup %18517 }
 0x61c   : > { %v11870_v48 = vmax.f32 %v18518_v8, %v22888_v3  ;;  %18525 = vrcp.f32 %v11540_v35  ;;  %v12395_v8 = vld [vmem:[%s23919_s14 + $0x110] sm:$0xff]  ;;  %v12396_v35 = vld [vmem:[%s23919_s14 + $0x118] sm:$0xff] }
 0x61d   : > { %12003 = vperm.xlu0 %18405, %v11873_v15   ;;  %11948 = vperm.xlu1 %18406, %v11862_v41  }
 0x61f   : > { %v18520_v42 = vpop.eup %18519 }
 0x620   : > { %v11872_v17 = vmax.f32 %v18520_v42, %v22888_v3 }
 0x621   : > { %12013 = vperm.xlu0 %18405, %v11875_v0   ;;  %11958 = vperm.xlu1 %18406, %v11864_v20   ;;  %v12393_v20 = vld [vmem:[%s23919_s14 + $0x100] sm:$0xff] }
 0x622   : > { %v18522_v58 = vpop.eup %18521  ;;  %v17416_v44 = vpack.c.bf16 %v12394_v47, %v12393_v20 }
 0x623   : > { %v11874_v18 = vmax.f32 %v18522_v58, %v22888_v3 }
 0x624   : > { %v18524_v21 = vpop.eup %18523 }
 0x625   : > { %12023 = vperm.xlu0 %18405, %v11877_v53   ;;  %11968 = vperm.xlu1 %18406, %v11866_v61   ;;  %v11876_v34 = vmax.f32 %v18524_v21, %v22888_v3  ;;  %v24494_v61 = vld [vmem:[#allocation71_spill] sm:$0xff] }
 0x626   : > { %v18526_v14 = vpop.eup %18525 }
 0x627   : > { %v11878_v15 = vmax.f32 %v18526_v14, %v22888_v3 }
 0x629   : > { %11978 = vperm.xlu1 %18406, %v11868_v10  }
 0x62d   : > { %11988 = vperm.xlu1 %18406, %v11870_v48  }
 0x631   : > { %11998 = vperm.xlu1 %18406, %v11872_v17   ;;  %v24496_v17 = vld [vmem:[#allocation73_spill] sm:$0xff] }
 0x635   : > { %12008 = vperm.xlu1 %18406, %v11874_v18   ;;  %v17419_v18 = vpack.c.bf16 %v12396_v35, %v12395_v8  ;;  %v12401_v8 = vld [vmem:[%s23919_s14 + $0x140] sm:$0xff]  ;;  %v12402_v35 = vld [vmem:[%s23919_s14 + $0x148] sm:$0xff] }
 0x639   : > { %12018 = vperm.xlu1 %18406, %v11876_v34   ;;  %v24497_v34 = vld [vmem:[#allocation83_spill] sm:$0xff] }
 0x63d   : > { %12028 = vperm.xlu1 %18406, %v11878_v15   ;;  %v12397_v15 = vld [vmem:[%s23919_s14 + $0x120] sm:$0xff] }
 0x647   : > { %v22970_v41 = vpop.permute.xlu1 %11888  ;;  %v22972_v43 = vpop.permute.xlu0 %11883 }
 0x648   : > { %24490 = vst [vmem:[#allocation68_spill] sm:$0xff] %v22970_v41  ;;  %v12041_v56 = vmul.f32 %v22972_v43, %v24491_v2  ;;  %v12042_v0 = vmul.f32 %v22972_v43, %v24492_v59  ;;  %v12047_v6 = vmul.f32 %v22970_v41, %v24493_v33  ;;  %v12046_v4 = vmul.f32 %v22970_v41, %v24494_v61 }
 0x64a   : > { %v12201_v57 = vmul.f32 %v12041_v56, %v24491_v2  ;;  %v12202_v9 = vmul.f32 %v12042_v0, %v24492_v59  ;;  %v12207_v1 = vmul.f32 %v12047_v6, %v24493_v33  ;;  %v12206_v42 = vmul.f32 %v12046_v4, %v24494_v61  ;;  %v12398_v2 = vld [vmem:[%s23919_s14 + $0x128] sm:$0xff]  ;;  %v24498_v0 = vld [vmem:[#allocation74_spill] sm:$0xff]  ;;  %v24499_v6 = vld [vmem:[#allocation11_spill] sm:$0xff] }
 0x64b   : > { %v22988_v53 = vpop.permute.xlu0 %11893  ;;  %v23001_v48 = vpop.permute.xlu1 %11898  ;;  %v17422_v47 = vpack.c.bf16 %v12398_v2, %v12397_v15  ;;  %v12400_v61 = vld [vmem:[%s23919_s14 + $0x138] sm:$0xff]  ;;  %v12407_v2 = vld [vmem:[%s23919_s14 + $0x170] sm:$0xff] }
 0x64c   : > { %12512 = vmatprep.mubr.f32.mxu0 %v12202_v9  ;;  %v12052_v10 = vmul.f32 %v22988_v53, %v24495_v11  ;;  %v12051_v58 = vmul.f32 %v22988_v53, %v24496_v17  ;;  %v12057_v14 = vmul.f32 %v23001_v48, %v24497_v34  ;;  %v12056_v20 = vmul.f32 %v23001_v48, %v24498_v0  ;;  %v12399_v9 = vld [vmem:[%s23919_s14 + $0x130] sm:$0xff] }
 0x64d   : > { %12513 = vmatmul.mubr.f32.vlgmr.msra.gmra.mrb[96].mxu0 %v12201_v57 }
 0x64e   : > { %12517 = vmatprep.mubr.f32.mxu0 %v12207_v1  ;;  %17417 = vmatpush1.bf16.msra.mxu0 %v17416_v44  ;;  %v12212_v21 = vmul.f32 %v12052_v10, %v24495_v11  ;;  %v12211_v59 = vmul.f32 %v12051_v58, %v24496_v17  ;;  %v12217_v33 = vmul.f32 %v12057_v14, %v24497_v34  ;;  %v24500_v44 = vld [vmem:[#allocation75_spill] sm:$0xff]  ;;  %v12403_v58 = vld [vmem:[%s23919_s14 + $0x150] sm:$0xff]  ;;  %v12406_v14 = vld [vmem:[%s23919_s14 + $0x168] sm:$0xff] }
 0x64f   : > { %17418 = vmatprep.subr.bf16.mxu0 %v18669_v63  ;;  %v23016_v56 = vpop.permute.xlu0 %11903  ;;  %v12216_v4 = vmul.f32 %v12056_v20, %v24498_v0  ;;  %v17425_v11 = vpack.c.bf16 %v12400_v61, %v12399_v9  ;;  %v17428_v17 = vpack.c.bf16 %v12402_v35, %v12401_v8  ;;  %v12405_v34 = vld [vmem:[%s23919_s14 + $0x160] sm:$0xff]  ;;  %v12418_v35 = vld [vmem:[%s23919_s14 + $0x1c8] sm:$0xff] }
 0x650   : > { %v12062_v57 = vmul.f32 %v23016_v56, %v24499_v6  ;;  %v12061_v1 = vmul.f32 %v23016_v56, %v24500_v44  ;;  %v17434_v15 = vpack.c.bf16 %v12406_v14, %v12405_v34  ;;  %v12409_v20 = vld [vmem:[%s23919_s14 + $0x180] sm:$0xff] }
 0x651   : > { %12518 = vmatmul.mubr.f32.gmra.mrb[98].mxu0 %v12206_v42  ;;  %v12413_v61 = vld [vmem:[%s23919_s14 + $0x1a0] sm:$0xff] }
 0x652   : > { %12522 = vmatprep.mubr.f32.mxu0 %v12212_v21  ;;  %17420 = vmatpush1.bf16.msra.mxu0 %v17419_v18  ;;  %v12222_v10 = vmul.f32 %v12062_v57, %v24499_v6  ;;  %v12221_v42 = vmul.f32 %v12061_v1, %v24500_v44  ;;  %v12404_v18 = vld [vmem:[%s23919_s14 + $0x158] sm:$0xff]  ;;  %v12411_v6 = vld [vmem:[%s23919_s14 + $0x190] sm:$0xff]  ;;  %v12417_v8 = vld [vmem:[%s23919_s14 + $0x1c0] sm:$0xff] }
 0x653   : > { %17421 = vmatprep.subr.bf16.mxu0 %v18669_v63  ;;  %v17431_v21 = vpack.c.bf16 %v12404_v18, %v12403_v58  ;;  %v12412_v57 = vld [vmem:[%s23919_s14 + $0x198] sm:$0xff]  ;;  %v12415_v1 = vld [vmem:[%s23919_s14 + $0x1b0] sm:$0xff] }
 0x654   : > { %v17443_v9 = vpack.c.bf16 %v12412_v57, %v12411_v6  ;;  %v12419_v58 = vld [vmem:[%s23919_s14 + $0x1d0] sm:$0xff]  ;;  %v12420_v18 = vld [vmem:[%s23919_s14 + $0x1d8] sm:$0xff] }
 0x655   : > { %12523 = vmatmul.mubr.f32.gmra.mrb[100].mxu0 %v12211_v59  ;;  %v12408_v59 = vld [vmem:[%s23919_s14 + $0x178] sm:$0xff]  ;;  %v24501_v57 = vld [vmem:[#allocation85_spill] sm:$0xff] }
 0x656   : > { %12527 = vmatprep.mubr.f32.mxu0 %v12217_v33  ;;  %17423 = vmatpush1.bf16.msra.mxu0 %v17422_v47  ;;  %v17437_v0 = vpack.c.bf16 %v12408_v59, %v12407_v2  ;;  %v12410_v47 = vld [vmem:[%s23919_s14 + $0x188] sm:$0xff]  ;;  %v17455_v2 = vpack.c.bf16 %v12420_v18, %v12419_v58 }
 0x657   : > { %17424 = vmatprep.subr.bf16.mxu0 %v18669_v63  ;;  %v17440_v33 = vpack.c.bf16 %v12410_v47, %v12409_v20  ;;  %v12421_v47 = vld [vmem:[%s23919_s14 + $0x1e0] sm:$0xff] }
 0x659   : > { %12528 = vmatmul.mubr.f32.gmra.mrb[102].mxu0 %v12216_v4  ;;  %v12414_v4 = vld [vmem:[%s23919_s14 + $0x1a8] sm:$0xff] }
 0x65a   : > { %12532 = vmatprep.mubr.f32.mxu0 %v12222_v10  ;;  %17426 = vmatpush1.bf16.msra.mxu0 %v17425_v11  ;;  %v17446_v44 = vpack.c.bf16 %v12414_v4, %v12413_v61  ;;  %v12416_v11 = vld [vmem:[%s23919_s14 + $0x1b8] sm:$0xff] }
 0x65b   : > { %17427 = vmatprep.subr.bf16.mxu0 %v18669_v63  ;;  %v17449_v10 = vpack.c.bf16 %v12416_v11, %v12415_v1 }
 0x65d   : > { %12533 = vmatmul.mubr.f32.gmra.mrb[104].mxu0 %v12221_v42  ;;  %v17452_v42 = vpack.c.bf16 %v12418_v35, %v12417_v8  ;;  %v24503_v8 = vld [vmem:[#allocation77_spill] sm:$0xff] }
 0x65e   : > { %17429 = vmatpush1.bf16.msra.mxu0 %v17428_v17 }
 0x65f   : > { %17430 = vmatprep.subr.bf16.mxu0 %v18669_v63 }
 0x662   : > { %17432 = vmatpush1.bf16.msra.mxu0 %v17431_v21 }
 0x663   : > { %17433 = vmatprep.subr.bf16.mxu0 %v18669_v63 }
 0x666   : > { %17435 = vmatpush1.bf16.msra.mxu0 %v17434_v15 }
 0x667   : > { %17436 = vmatprep.subr.bf16.mxu0 %v18669_v63 }
 0x66a   : > { %17438 = vmatpush1.bf16.msra.mxu0 %v17437_v0 }
 0x66b   : > { %17439 = vmatprep.subr.bf16.mxu0 %v18669_v63 }
 0x66e   : > { %17441 = vmatpush1.bf16.msra.mxu0 %v17440_v33  ;;  %v12422_v33 = vld [vmem:[%s23919_s14 + $0x1e8] sm:$0xff] }
 0x66f   : > { %17442 = vmatprep.subr.bf16.mxu0 %v18669_v63  ;;  %v17458_v1 = vpack.c.bf16 %v12422_v33, %v12421_v47 }
 0x672   : > { %17444 = vmatpush1.bf16.msra.mxu0 %v17443_v9  ;;  %v24502_v9 = vld [vmem:[#allocation76_spill] sm:$0xff] }
 0x673   : > { %17445 = vmatprep.subr.bf16.mxu0 %v18669_v63 }
 0x676   : > { %17447 = vmatpush1.bf16.msra.mxu0 %v17446_v44 }
 0x677   : > { %17448 = vmatprep.subr.bf16.mxu0 %v18669_v63 }
 0x67a   : > { %17450 = vmatpush1.bf16.msra.mxu0 %v17449_v10 }
 0x67b   : > { %17451 = vmatprep.subr.bf16.mxu0 %v18669_v63 }
 0x67c   : > { %v11375_v17 = vpop.xlane.xlu0 %11374 }
 0x67d   : > { %v11414_v21 = vadd.f32 %v22791_v31, %v11375_v17  ;;  %v11369_v34 = vpop.xlane.xlu1 %11368 }
 0x67e   : > { %v11413_v14 = vadd.f32 %v22791_v31, %v11369_v34  ;;  %17453 = vmatpush1.bf16.msra.mxu0 %v17452_v42 }
 0x67f   : > { %v11446_v15 = vsub.f32 0.0, %v11414_v21  ;;  %17454 = vmatprep.subr.bf16.mxu0 %v18669_v63  ;;  %v24504_v21 = vld [vmem:[#allocation87_spill] sm:$0xff] }
 0x680   : > { %v11445_v59 = vsub.f32 0.0, %v11413_v14  ;;  %v24505_v14 = vld [vmem:[#allocation80_spill] sm:$0xff] }
 0x681   : > { %v11509_v0 = vmul.f32 1.442695, %v11446_v15  ;;  %v23109_v20 = vpop.permute.xlu1 %11908 }
 0x682   : > { %v11507_v6 = vmul.f32 1.442695, %v11445_v59  ;;  %v12067_v31 = vmul.f32 %v23109_v20, %v24501_v57  ;;  %v12066_v61 = vmul.f32 %v23109_v20, %v24502_v9  ;;  %17456 = vmatpush1.bf16.msra.mxu0 %v17455_v2  ;;  %v24506_v2 = vld [vmem:[#allocation12_spill] sm:$0xff] }
 0x683   : > { %18527 = vpow2.f32 %v11509_v0  ;;  %17457 = vmatprep.subr.bf16.mxu0 %v18669_v63 }
 0x684   : > { %18529 = vpow2.f32 %v11507_v6  ;;  %v12227_v4 = vmul.f32 %v12067_v31, %v24501_v57  ;;  %v12226_v44 = vmul.f32 %v12066_v61, %v24502_v9  ;;  %v23130_v42 = vpop.permute.xlu0 %11923  ;;  %v24507_v6 = vld [vmem:[#allocation82_spill] sm:$0xff]  ;;  %v24508_v61 = vld [vmem:[#allocation89_spill] sm:$0xff] }
 0x685   : > { %v23124_v11 = vpop.permute.xlu1 %11913  ;;  %v12082_v59 = vmul.f32 %v23130_v42, %v24506_v2 }
 0x686   : > { %12537 = vmatprep.mubr.f32.mxu0 %v12227_v4  ;;  %v12072_v10 = vmul.f32 %v23124_v11, %v24410_v7  ;;  %v12071_v35 = vmul.f32 %v23124_v11, %v24503_v8  ;;  %17459 = vmatpush1.bf16.msra.mxu0 %v17458_v1 }
 0x687   : > { %12538 = vmatmul.mubr.f32.gmra.mrb[106].mxu0 %v12226_v44  ;;  %17460 = vmatprep.subr.bf16.mxu0 %v18669_v63  ;;  %v12081_v63 = vmul.f32 %v23130_v42, %v24507_v6  ;;  %v12242_v9 = vmul.f32 %v12082_v59, %v24506_v2 }
 0x688   : > { %v12232_v17 = vmul.f32 %v12072_v10, %v24410_v7  ;;  %v12231_v58 = vmul.f32 %v12071_v35, %v24503_v8  ;;  %v24509_v8 = vld [vmem:[#allocation84_spill] sm:$0xff] }
 0x689   : > { %v23134_v18 = vpop.permute.xlu1 %11918  ;;  %v12241_v10 = vmul.f32 %v12081_v63, %v24507_v6  ;;  %v24513_v63 = vld [vmem:[#allocation86_spill] sm:$0xff] }
 0x68a   : > { %12542 = vmatprep.mubr.f32.mxu0 %v12232_v17  ;;  %v12077_v34 = vmul.f32 %v23134_v18, %v24504_v21  ;;  %v12076_v15 = vmul.f32 %v23134_v18, %v24505_v14 }
 0x68b   : > { %12543 = vmatmul.mubr.f32.gmra.mrb[108].mxu0 %v12231_v58  ;;  %v24510_v58 = vld [vmem:[#allocation15_spill] sm:$0xff] }
 0x68c   : > { %v12237_v7 = vmul.f32 %v12077_v34, %v24504_v21  ;;  %v12236_v0 = vmul.f32 %v12076_v15, %v24505_v14  ;;  %v24511_v15 = vld [vmem:[#allocation9_spill] sm:$0xff] }
 0x68d   : > { %v18528_v47 = vpop.eup %18527  ;;  %v23145_v33 = vpop.permute.xlu1 %11928 }
 0x68e   : > { %v18530_v57 = vpop.eup %18529  ;;  %v11542_v31 = vadd.f32 1.0, %v18528_v47  ;;  %12547 = vmatprep.mubr.f32.mxu0 %v12237_v7  ;;  %v12087_v4 = vmul.f32 %v23145_v33, %v24508_v61  ;;  %v12086_v35 = vmul.f32 %v23145_v33, %v24509_v8  ;;  %v24512_v7 = vld [vmem:[#allocation91_spill] sm:$0xff] }
 0x68f   : > { %v11541_v44 = vadd.f32 1.0, %v18530_v57  ;;  %12548 = vmatmul.mubr.f32.gmra.mrb[110].mxu0 %v12236_v0 }
 0x690   : > { %18531 = vrcp.f32 %v11542_v31  ;;  %12552 = vmatprep.mubr.f32.mxu0 %v12242_v9  ;;  %v12247_v17 = vmul.f32 %v12087_v4, %v24508_v61  ;;  %v12246_v14 = vmul.f32 %v12086_v35, %v24509_v8  ;;  %v24514_v61 = vld [vmem:[#allocation17_spill] sm:$0xff] }
 0x691   : > { %18533 = vrcp.f32 %v11541_v44  ;;  %v23152_v1 = vpop.permute.xlu1 %11933 }
 0x692   : > { %v12092_v21 = vmul.f32 %v23152_v1, %v24510_v58  ;;  %v12091_v2 = vmul.f32 %v23152_v1, %v24511_v15 }
 0x693   : > { %12553 = vmatmul.mubr.f32.gmra.mrb[112].mxu0 %v12241_v10 }
 0x694   : > { %12557 = vmatprep.mubr.f32.mxu0 %v12247_v17  ;;  %v12252_v59 = vmul.f32 %v12092_v21, %v24510_v58  ;;  %v12251_v6 = vmul.f32 %v12091_v2, %v24511_v15  ;;  %v24515_v58 = vld [vmem:[#allocation13_spill] sm:$0xff] }
 0x695   : > { %v23160_v34 = vpop.permute.xlu1 %11938  ;;  %v24516_v15 = vld [vmem:[#allocation93_spill] sm:$0xff] }
 0x696   : > { %v12097_v0 = vmul.f32 %v23160_v34, %v24512_v7  ;;  %v12096_v57 = vmul.f32 %v23160_v34, %v24513_v63 }
 0x697   : > { %12558 = vmatmul.mubr.f32.gmra.mrb[114].mxu0 %v12246_v14 }
 0x698   : > { %12562 = vmatprep.mubr.f32.mxu0 %v12252_v59  ;;  %v12257_v9 = vmul.f32 %v12097_v0, %v24512_v7  ;;  %v12256_v17 = vmul.f32 %v12096_v57, %v24513_v63  ;;  %v23186_v59 = vpop.permute.xlu0 %11953  ;;  %v24517_v7 = vld [vmem:[#allocation88_spill] sm:$0xff]  ;;  %v24518_v63 = vld [vmem:[#allocation19_spill] sm:$0xff] }
 0x699   : > { %v23168_v47 = vpop.permute.xlu1 %11943  ;;  %v12112_v57 = vmul.f32 %v23186_v59, %v24518_v63 }
 0x69a   : > { %v18532_v31 = vpop.eup %18531  ;;  %v12102_v4 = vmul.f32 %v23168_v47, %v24514_v61  ;;  %v12101_v21 = vmul.f32 %v23168_v47, %v24515_v58 }
 0x69b   : > { %v18534_v44 = vpop.eup %18533  ;;  %12563 = vmatmul.mubr.f32.gmra.mrb[116].mxu0 %v12251_v6  ;;  %v11880_v10 = vmax.f32 %v18532_v31, %v22888_v3 }
 0x69c   : > { %12567 = vmatprep.mubr.f32.mxu0 %v12257_v9  ;;  %v11879_v8 = vmax.f32 %v18534_v44, %v22888_v3  ;;  %v12262_v14 = vmul.f32 %v12102_v4, %v24514_v61  ;;  %v12261_v3 = vmul.f32 %v12101_v21, %v24515_v58  ;;  %v12423_v9 = vld [vmem:[%s23919_s14 + $0x1f0] sm:$0xff]  ;;  %v12424_v61 = vld [vmem:[%s23919_s14 + $0x1f8] sm:$0xff] }
 0x69d   : > { %v23178_v35 = vpop.permute.xlu1 %11948  ;;  %12038 = vperm.xlu1 %18406, %v11880_v10   ;;  %v17461_v4 = vpack.c.bf16 %v12424_v61, %v12423_v9  ;;  %v24519_v10 = vld [vmem:[#allocation10_spill] sm:$0xff]  ;;  %v24520_v58 = vld [vmem:[#allocation95_spill] sm:$0xff] }
 0x69e   : > { %12033 = vperm.xlu0 %18405, %v11879_v8   ;;  %v12107_v2 = vmul.f32 %v23178_v35, %v24516_v15  ;;  %v12106_v0 = vmul.f32 %v23178_v35, %v24517_v7  ;;  %v12111_v8 = vmul.f32 %v23186_v59, %v24519_v10 }
 0x69f   : > { %12568 = vmatmul.mubr.f32.gmra.mrb[118].mxu0 %v12256_v17  ;;  %v12272_v17 = vmul.f32 %v12112_v57, %v24518_v63  ;;  %v24522_v57 = vld [vmem:[#allocation21_spill] sm:$0xff] }
 0x6a0   : > { %12572 = vmatprep.mubr.f32.mxu0 %v12262_v14  ;;  %v12267_v6 = vmul.f32 %v12107_v2, %v24516_v15  ;;  %v12266_v44 = vmul.f32 %v12106_v0, %v24517_v7  ;;  %17462 = vmatpush1.bf16.msra.mxu0 %v17461_v4  ;;  %v23208_v14 = vpop.permute.xlu0 %11963  ;;  %v12425_v15 = vld [vmem:[%s23919_s14 + $0x200] sm:$0xff]  ;;  %v12426_v2 = vld [vmem:[%s23919_s14 + $0x208] sm:$0xff]  ;;  %v24521_v7 = vld [vmem:[#allocation90_spill] sm:$0xff] }
 0x6a1   : > { %v23194_v31 = vpop.permute.xlu1 %11958  ;;  %v12122_v9 = vmul.f32 %v23208_v14, %v24522_v57 }
 0x6a2   : > { %v12117_v21 = vmul.f32 %v23194_v31, %v24520_v58  ;;  %v12116_v0 = vmul.f32 %v23194_v31, %v24521_v7 }
 0x6a3   : > { %12573 = vmatmul.mubr.f32.gmra.mrb[120].mxu0 %v12261_v3  ;;  %v12271_v3 = vmul.f32 %v12111_v8, %v24519_v10  ;;  %v12282_v8 = vmul.f32 %v12122_v9, %v24522_v57  ;;  %v24527_v9 = vld [vmem:[#allocation16_spill] sm:$0xff] }
 0x6a4   : > { %12577 = vmatprep.mubr.f32.mxu0 %v12267_v6  ;;  %v23219_v6 = vpack.c.bf16 %v12426_v2, %v12425_v15  ;;  %v12277_v63 = vmul.f32 %v12117_v21, %v24520_v58  ;;  %v12276_v4 = vmul.f32 %v12116_v0, %v24521_v7  ;;  %v23233_v58 = vpop.permute.xlu0 %11973  ;;  %v24525_v2 = vld [vmem:[#allocation92_spill] sm:$0xff]  ;;  %v24526_v7 = vld [vmem:[#allocation23_spill] sm:$0xff] }
 0x6a5   : > { %v23224_v61 = vpop.permute.xlu1 %11968  ;;  %v12132_v0 = vmul.f32 %v23233_v58, %v24526_v7 }
 0x6a6   : > { %17464 = vmatprep.subr.bf16.mxu0 %v23219_v6 }
 0x6a7   : > { %12578 = vmatmul.mubr.f32.gmra.mrb[122].mxu0 %v12266_v44  ;;  %v24523_v44 = vld [vmem:[#allocation14_spill] sm:$0xff] }
 0x6a8   : > { %12582 = vmatprep.mubr.f32.mxu0 %v12272_v17  ;;  %v12121_v10 = vmul.f32 %v23208_v14, %v24523_v44  ;;  %v24524_v17 = vld [vmem:[#allocation97_spill] sm:$0xff]  ;;  %v23249_v28 = vpop.permute.xlu0 %11983 }
 0x6a9   : > { %v12127_v15 = vmul.f32 %v23224_v61, %v24524_v17  ;;  %v23241_v29 = vpop.permute.xlu1 %11978 }
 0x6aa   : > { %v12281_v21 = vmul.f32 %v12121_v10, %v24523_v44  ;;  %v24528_v44 = vld [vmem:[#allocation102_spill] sm:$0xff] }
 0x6ab   : > { %12583 = vmatmul.mubr.f32.gmra.mrb[124].mxu0 %v12271_v3  ;;  %v12126_v3 = vmul.f32 %v23224_v61, %v24525_v2  ;;  %v12137_v10 = vmul.f32 %v23241_v29, %v24528_v44 }
 0x6ac   : > { %12587 = vmatprep.mubr.f32.mxu0 %v12277_v63  ;;  %v12287_v63 = vmul.f32 %v12127_v15, %v24524_v17  ;;  %v24529_v15 = vld [vmem:[#allocation94_spill] sm:$0xff]  ;;  %v23265_v23 = vpop.permute.xlu0 %11993 }
 0x6ad   : > { %v12286_v57 = vmul.f32 %v12126_v3, %v24525_v2  ;;  %v24530_v2 = vld [vmem:[#allocation24_spill] sm:$0xff]  ;;  %v23257_v39 = vpop.permute.xlu1 %11988 }
 0x6ae   : > { %v12142_v3 = vmul.f32 %v23249_v28, %v24530_v2 }
 0x6af   : > { %12588 = vmatmul.mubr.f32.gmra.mrb[126].mxu0 %v12276_v4  ;;  %v12131_v4 = vmul.f32 %v23233_v58, %v24527_v9 }
 0x6b0   : > { %12592 = vmatprep.mubr.f32.mxu0 %v12282_v8  ;;  %v12292_v8 = vmul.f32 %v12132_v0, %v24526_v7  ;;  %v24531_v0 = vld [vmem:[#allocation18_spill] sm:$0xff]  ;;  %v23281_v37 = vpop.permute.xlu0 %12003 }
 0x6b1   : > { %v12291_v17 = vmul.f32 %v12131_v4, %v24527_v9  ;;  %v24532_v9 = vld [vmem:[#allocation107_spill] sm:$0xff]  ;;  %v23273_v36 = vpop.permute.xlu1 %11998  ;;  %24537 = vst [vmem:[#allocation69_spill] sm:$0xff] %v23281_v37 }
 0x6b2   : > { %v12147_v4 = vmul.f32 %v23257_v39, %v24532_v9 }
 0x6b3   : > { %12593 = vmatmul.mubr.f32.gmra.mrb[128].mxu0 %v12281_v21  ;;  %v12136_v21 = vmul.f32 %v23241_v29, %v24529_v15 }
 0x6b4   : > { %12597 = vmatprep.mubr.f32.mxu0 %v12287_v63  ;;  %v12297_v63 = vmul.f32 %v12137_v10, %v24528_v44  ;;  %v24533_v10 = vld [vmem:[#allocation96_spill] sm:$0xff]  ;;  %v23297_v12 = vpop.permute.xlu0 %12013 }
 0x6b5   : > { %v12296_v7 = vmul.f32 %v12136_v21, %v24529_v15  ;;  %v24534_v15 = vld [vmem:[#allocation108_spill] sm:$0xff]  ;;  %v23289_v32 = vpop.permute.xlu1 %12008  ;;  %24543 = vst [vmem:[#allocation28_spill] sm:$0xff] %v23297_v12 }
 0x6b6   : > { %v12152_v21 = vmul.f32 %v23265_v23, %v24534_v15  ;;  %24540 = vst [vmem:[#allocation70_spill] sm:$0xff] %v23289_v32 }
 0x6b7   : > { %12598 = vmatmul.mubr.f32.gmra.mrb[130].mxu0 %v12286_v57  ;;  %v12141_v57 = vmul.f32 %v23249_v28, %v24531_v0 }
 0x6b8   : > { %12602 = vmatprep.mubr.f32.mxu0 %v12292_v8  ;;  %v12302_v8 = vmul.f32 %v12142_v3, %v24530_v2  ;;  %v24535_v3 = vld [vmem:[#allocation20_spill] sm:$0xff] }
 0x6b9   : > { %v12301_v44 = vmul.f32 %v12141_v57, %v24531_v0  ;;  %v24536_v0 = vld [vmem:[#allocation25_spill] sm:$0xff] }
 0x6ba   : > { %v12157_v57 = vmul.f32 %v23273_v36, %v24536_v0 }
 0x6bb   : > { %12603 = vmatmul.mubr.f32.gmra.mrb[132].mxu0 %v12291_v17  ;;  %v12146_v17 = vmul.f32 %v23257_v39, %v24533_v10 }
 0x6bc   : > { %12607 = vmatprep.mubr.f32.mxu0 %v12297_v63  ;;  %v12307_v63 = vmul.f32 %v12147_v4, %v24532_v9  ;;  %v24538_v4 = vld [vmem:[#allocation98_spill] sm:$0xff] }
 0x6bd   : > { %v12306_v2 = vmul.f32 %v12146_v17, %v24533_v10  ;;  %v24539_v10 = vld [vmem:[#allocation43_spill] sm:$0xff] }
 0x6be   : > { %v12162_v17 = vmul.f32 %v23281_v37, %v24539_v10 }
 0x6bf   : > { %12608 = vmatmul.mubr.f32.gmra.mrb[134].mxu0 %v12296_v7  ;;  %v12151_v7 = vmul.f32 %v23265_v23, %v24535_v3 }
 0x6c0   : > { %12612 = vmatprep.mubr.f32.mxu0 %v12302_v8  ;;  %v12312_v8 = vmul.f32 %v12152_v21, %v24534_v15  ;;  %v24541_v21 = vld [vmem:[#allocation101_spill] sm:$0xff] }
 0x6c1   : > { %v12311_v9 = vmul.f32 %v12151_v7, %v24535_v3  ;;  %v24542_v3 = vld [vmem:[#allocation29_spill] sm:$0xff] }
 0x6c2   : > { %v12167_v7 = vmul.f32 %v23289_v32, %v24542_v3 }
 0x6c3   : > { %12613 = vmatmul.mubr.f32.gmra.mrb[136].mxu0 %v12301_v44  ;;  %v12156_v44 = vmul.f32 %v23273_v36, %v24538_v4 }
 0x6c4   : > { %12617 = vmatprep.mubr.f32.mxu0 %v12307_v63  ;;  %v12317_v63 = vmul.f32 %v12157_v57, %v24536_v0  ;;  %v24544_v57 = vld [vmem:[#allocation103_spill] sm:$0xff] }
 0x6c5   : > { %v12316_v15 = vmul.f32 %v12156_v44, %v24538_v4  ;;  %v24545_v4 = vld [vmem:[#allocation42_spill] sm:$0xff] }
 0x6c6   : > { %v12172_v44 = vmul.f32 %v23297_v12, %v24545_v4 }
 0x6c7   : > { %12618 = vmatmul.mubr.f32.gmra.mrb[138].mxu0 %v12306_v2  ;;  %v12161_v2 = vmul.f32 %v23281_v37, %v24541_v21  ;;  %v23305_v37 = vpop.permute.xlu1 %12018 }
 0x6c8   : > { %12622 = vmatprep.mubr.f32.mxu0 %v12312_v8  ;;  %v12322_v8 = vmul.f32 %v12162_v17, %v24539_v10  ;;  %24546 = vst [vmem:[#allocation72_spill] sm:$0xff] %v23305_v37  ;;  %v24547_v17 = vld [vmem:[#allocation106_spill] sm:$0xff] }
 0x6c9   : > { %v12321_v0 = vmul.f32 %v12161_v2, %v24541_v21  ;;  %v24548_v21 = vld [vmem:[#allocation32_spill] sm:$0xff] }
 0x6ca   : > { %v12177_v2 = vmul.f32 %v23305_v37, %v24548_v21 }
 0x6cb   : > { %12623 = vmatmul.mubr.f32.gmra.mrb[140].mxu0 %v12311_v9  ;;  %v12166_v9 = vmul.f32 %v23289_v32, %v24544_v57  ;;  %v23313_v32 = vpop.permute.xlu0 %12023 }
 0x6cc   : > { %12627 = vmatprep.mubr.f32.mxu0 %v12317_v63  ;;  %v12327_v63 = vmul.f32 %v12167_v7, %v24542_v3  ;;  %24549 = vst [vmem:[#allocation79_spill] sm:$0xff] %v23313_v32  ;;  %v24550_v7 = vld [vmem:[#allocation31_spill] sm:$0xff] }
 0x6cd   : > { %v12326_v10 = vmul.f32 %v12166_v9, %v24544_v57  ;;  %v24551_v57 = vld [vmem:[#allocation36_spill] sm:$0xff] }
 0x6ce   : > { %v12182_v9 = vmul.f32 %v23313_v32, %v24551_v57 }
 0x6cf   : > { %12628 = vmatmul.mubr.f32.gmra.mrb[142].mxu0 %v12316_v15  ;;  %v12171_v15 = vmul.f32 %v23297_v12, %v24547_v17  ;;  %v23321_v12 = vpop.permute.xlu1 %12028 }
 0x6d0   : > { %12632 = vmatprep.mubr.f32.mxu0 %v12322_v8  ;;  %v12332_v8 = vmul.f32 %v12172_v44, %v24545_v4  ;;  %24552 = vst [vmem:[#allocation78_spill] sm:$0xff] %v23321_v12  ;;  %v24553_v44 = vld [vmem:[#allocation35_spill] sm:$0xff] }
 0x6d1   : > { %v12331_v3 = vmul.f32 %v12171_v15, %v24547_v17  ;;  %v24554_v17 = vld [vmem:[#allocation47_spill] sm:$0xff] }
 0x6d2   : > { %v12187_v15 = vmul.f32 %v23321_v12, %v24554_v17 }
 0x6d3   : > { %12633 = vmatmul.mubr.f32.gmra.mrb[144].mxu0 %v12321_v0  ;;  %v12176_v0 = vmul.f32 %v23305_v37, %v24550_v7 }
 0x6d4   : > { %12637 = vmatprep.mubr.f32.mxu0 %v12327_v63  ;;  %v12337_v63 = vmul.f32 %v12177_v2, %v24548_v21  ;;  %v24555_v2 = vld [vmem:[#allocation41_spill] sm:$0xff] }
 0x6d5   : > { %v12336_v4 = vmul.f32 %v12176_v0, %v24550_v7  ;;  %v12186_v37 = vmul.f32 %v23321_v12, %v24555_v2  ;;  %v24562_v12 = vld [vmem:[#allocation100_spill] sm:$0xff] }
 0x6d7   : > { %12638 = vmatmul.mubr.f32.gmra.mrb[146].mxu0 %v12326_v10  ;;  %v12181_v10 = vmul.f32 %v23313_v32, %v24553_v44  ;;  %v12346_v7 = vmul.f32 %v12186_v37, %v24555_v2  ;;  %v12043_v32 = vmul.f32 %v22972_v43, %v24562_v12 }
 0x6d8   : > { %12642 = vmatprep.mubr.f32.mxu0 %v12332_v8  ;;  %v12342_v8 = vmul.f32 %v12182_v9, %v24551_v57  ;;  %v24557_v57 = vld [vmem:[#allocation38_spill] sm:$0xff] }
 0x6d9   : > { %v12341_v21 = vmul.f32 %v12181_v10, %v24553_v44  ;;  %v24559_v10 = vld [vmem:[#allocation40_spill] sm:$0xff] }
 0x6db   : > { %12643 = vmatmul.mubr.f32.gmra.mrb[148].mxu0 %v12331_v3  ;;  %v12347_v3 = vmul.f32 %v12187_v15, %v24554_v17 }
 0x6dc   : > { %12647 = vmatprep.mubr.f32.mxu0 %v12337_v63 }
 0x6df   : > { %12648 = vmatmul.mubr.f32.gmra.mrb[150].mxu0 %v12336_v4  ;;  %v24558_v4 = vld [vmem:[#allocation39_spill] sm:$0xff] }
 0x6e0   : > { %12652 = vmatprep.mubr.f32.mxu0 %v12342_v8 }
 0x6e3   : > { %12653 = vmatmul.mubr.f32.gmra.mrb[152].mxu0 %v12341_v21  ;;  %v24560_v21 = vld [vmem:[#allocation37_spill] sm:$0xff] }
 0x6e4   : > { %12657 = vmatprep.mubr.f32.mxu0 %v12347_v3  ;;  %v24561_v3 = vld [vmem:[#allocation52_spill] sm:$0xff] }
 0x6e7   : > { %12658 = vmatmul.mubr.f32.gmra.mrb[154].mxu0 %v12346_v7  ;;  %v12044_v7 = vmul.f32 %v22972_v43, %v24561_v3 }
 0x71c   : > { %v23334_v0 = vpop.permute.xlu1 %12038 }
 0x71d   : > { %v23336_v63 = vpop.permute.xlu0 %12033  ;;  %v12197_v9 = vmul.f32 %v23334_v0, %v24557_v57  ;;  %v12196_v37 = vmul.f32 %v23334_v0, %v24560_v21 }
 0x71e   : > { %24556 = vst [vmem:[#allocation71_spill] sm:$0xff] %v23336_v63  ;;  %v12191_v44 = vmul.f32 %v23336_v63, %v24558_v4  ;;  %v12192_v8 = vmul.f32 %v23336_v63, %v24559_v10 }
 0x71f   : > { %v12357_v2 = vmul.f32 %v12197_v9, %v24557_v57  ;;  %v12356_v63 = vmul.f32 %v12196_v37, %v24560_v21  ;;  %v12428_v57 = vld [vmem:[%s23919_s14 + $0x218] sm:$0xff]  ;;  %v12203_v9 = vmul.f32 %v12043_v32, %v24562_v12 }
 0x720   : > { %v12352_v17 = vmul.f32 %v12192_v8, %v24559_v10  ;;  %v12351_v15 = vmul.f32 %v12191_v44, %v24558_v4  ;;  %v12204_v10 = vmul.f32 %v12044_v7, %v24561_v3  ;;  %v24563_v8 = vld [vmem:[#allocation53_spill] sm:$0xff]  ;;  %v12429_v7 = vld [vmem:[%s23919_s14 + $0x220] sm:$0xff]  ;;  %v24566_v12 = vld [vmem:[#allocation22_spill] sm:$0xff] }
 0x721   : > { %v12049_v4 = vmul.f32 %v22970_v41, %v24563_v8  ;;  %v12427_v44 = vld [vmem:[%s23919_s14 + $0x210] sm:$0xff] }
 0x722   : > { %12662 = vmatprep.mubr.f32.mxu0 %v12352_v17  ;;  %v24564_v17 = vld [vmem:[#allocation99_spill] sm:$0xff]  ;;  %v17467_v21 = vpack.c.bf16 %v12428_v57, %v12427_v44  ;;  %v24567_v44 = vld [vmem:[#allocation62_spill] sm:$0xff] }
 0x723   : > { %12663 = vmatmul.mubr.f32.gmra.mrb[156].mxu0 %v12351_v15  ;;  %v12048_v15 = vmul.f32 %v22970_v41, %v24564_v17  ;;  %v12209_v37 = vmul.f32 %v12049_v4, %v24563_v8  ;;  %v12059_v57 = vmul.f32 %v23001_v48, %v24567_v44  ;;  %v12431_v41 = vld [vmem:[%s23919_s14 + $0x230] sm:$0xff] }
 0x724   : > { %12667 = vmatprep.mubr.f32.mxu0 %v12357_v2  ;;  %v24565_v2 = vld [vmem:[#allocation55_spill] sm:$0xff] }
 0x725   : > { %v12054_v3 = vmul.f32 %v22988_v53, %v24565_v2  ;;  %v12208_v32 = vmul.f32 %v12048_v15, %v24564_v17  ;;  %v24568_v17 = vld [vmem:[#allocation104_spill] sm:$0xff] }
 0x726   : > { %v12058_v15 = vmul.f32 %v23001_v48, %v24568_v17 }
 0x727   : > { %12668 = vmatmul.mubr.f32.gmra.mrb[158].mxu0 %v12356_v63  ;;  %v12430_v63 = vld [vmem:[%s23919_s14 + $0x228] sm:$0xff]  ;;  %v12214_v4 = vmul.f32 %v12054_v3, %v24565_v2  ;;  %v12219_v2 = vmul.f32 %v12059_v57, %v24567_v44  ;;  %v24569_v3 = vld [vmem:[#allocation26_spill] sm:$0xff]  ;;  %v12069_v44 = vmul.f32 %v23109_v20, %v22439_v55 }
 0x728   : > { %12737 = vmatprep.mubr.f32.mxu0 %v12204_v10  ;;  %v12053_v10 = vmul.f32 %v22988_v53, %v24566_v12  ;;  %v17471_v8 = vpack.c.bf16 %v12430_v63, %v12429_v7  ;;  %v12064_v7 = vmul.f32 %v23016_v56, %v24569_v3  ;;  %v12433_v63 = vld [vmem:[%s23919_s14 + $0x240] sm:$0xff]  ;;  %v12435_v57 = vld [vmem:[%s23919_s14 + $0x250] sm:$0xff] }
 0x72b   : > { %12738 = vmatmul.mubr.f32.vlgmr.msra.gmra.mrb[96].mxu0 %v12203_v9  ;;  %v12213_v9 = vmul.f32 %v12053_v10, %v24566_v12  ;;  %v24570_v12 = vld [vmem:[#allocation105_spill] sm:$0xff] }
 0x72c   : > { %17466 = vmatpush3.bf16.msra.mxu0 %v23219_v6  ;;  %12742 = vmatprep.mubr.f32.mxu0 %v12209_v37  ;;  %v12432_v6 = vld [vmem:[%s23919_s14 + $0x238] sm:$0xff] }
 0x72d   : > { %17468 = vmatprep.subr.bf16.mxu0 %v17467_v21  ;;  %v17475_v37 = vpack.c.bf16 %v12432_v6, %v12431_v41  ;;  %v12063_v41 = vmul.f32 %v23016_v56, %v24570_v12 }
 0x72f   : > { %12743 = vmatmul.mubr.f32.gmra.mrb[98].mxu0 %v12208_v32  ;;  %v12218_v32 = vmul.f32 %v12058_v15, %v24568_v17  ;;  %v12223_v6 = vmul.f32 %v12063_v41, %v24570_v12  ;;  %v12079_v41 = vmul.f32 %v23134_v18, %v22463_v27 }
 0x730   : > { %12747 = vmatprep.mubr.f32.mxu0 %v12214_v4  ;;  %17470 = vmatpush3.bf16.msra.mxu0 %v17467_v21  ;;  %v12434_v21 = vld [vmem:[%s23919_s14 + $0x248] sm:$0xff]  ;;  %v12224_v4 = vmul.f32 %v12064_v7, %v24569_v3  ;;  %v12074_v3 = vmul.f32 %v23124_v11, %v22466_v62  ;;  %v12437_v7 = vld [vmem:[%s23919_s14 + $0x260] sm:$0xff] }
 0x731   : > { %17472 = vmatprep.subr.bf16.mxu0 %v17471_v8  ;;  %v17479_v10 = vpack.c.bf16 %v12434_v21, %v12433_v63  ;;  %v24572_v21 = vld [vmem:[#allocation110_spill] sm:$0xff] }
 0x732   : > { %v12234_v12 = vmul.f32 %v12074_v3, %v22466_v62 }
 0x733   : > { %12748 = vmatmul.mubr.f32.gmra.mrb[100].mxu0 %v12213_v9  ;;  %v24571_v9 = vld [vmem:[#allocation109_spill] sm:$0xff] }
 0x734   : > { %12752 = vmatprep.mubr.f32.mxu0 %v12219_v2  ;;  %17474 = vmatpush3.bf16.msra.mxu0 %v17471_v8  ;;  %v12436_v8 = vld [vmem:[%s23919_s14 + $0x258] sm:$0xff]  ;;  %v12068_v17 = vmul.f32 %v23109_v20, %v24571_v9  ;;  %v12229_v2 = vmul.f32 %v12069_v44, %v22439_v55 }
 0x735   : > { %17476 = vmatprep.subr.bf16.mxu0 %v17475_v37  ;;  %v17483_v15 = vpack.c.bf16 %v12436_v8, %v12435_v57  ;;  %v24573_v57 = vld [vmem:[#allocation111_spill] sm:$0xff] }
 0x736   : > { %v12228_v63 = vmul.f32 %v12068_v17, %v24571_v9  ;;  %v12078_v8 = vmul.f32 %v23134_v18, %v24573_v57  ;;  %v12084_v9 = vmul.f32 %v23130_v42, %v22488_v46 }
 0x737   : > { %12753 = vmatmul.mubr.f32.gmra.mrb[102].mxu0 %v12218_v32  ;;  %v12073_v32 = vmul.f32 %v23124_v11, %v24572_v21 }
 0x738   : > { %12757 = vmatprep.mubr.f32.mxu0 %v12224_v4  ;;  %17478 = vmatpush3.bf16.msra.mxu0 %v17475_v37  ;;  %v12438_v37 = vld [vmem:[%s23919_s14 + $0x268] sm:$0xff]  ;;  %v12439_v4 = vld [vmem:[%s23919_s14 + $0x270] sm:$0xff]  ;;  %v12238_v17 = vmul.f32 %v12078_v8, %v24573_v57  ;;  %v12244_v3 = vmul.f32 %v12084_v9, %v22488_v46  ;;  %v12104_v8 = vmul.f32 %v23168_v47, %v22536_v51 }
 0x739   : > { %17480 = vmatprep.subr.bf16.mxu0 %v17479_v10  ;;  %v17487_v55 = vpack.c.bf16 %v12438_v37, %v12437_v7  ;;  %v12233_v44 = vmul.f32 %v12073_v32, %v24572_v21  ;;  %v12089_v7 = vmul.f32 %v23145_v33, %v22485_v13  ;;  %v24575_v37 = vld [vmem:[#allocation45_spill] sm:$0xff]  ;;  %v12094_v32 = vmul.f32 %v23152_v1, %v22514_v19 }
 0x73a   : > { %v12264_v9 = vmul.f32 %v12104_v8, %v22536_v51  ;;  %v24580_v51 = vld [vmem:[#allocation46_spill] sm:$0xff] }
 0x73b   : > { %12758 = vmatmul.mubr.f32.gmra.mrb[104].mxu0 %v12223_v6  ;;  %v12239_v6 = vmul.f32 %v12079_v41, %v22463_v27  ;;  %v12249_v21 = vmul.f32 %v12089_v7, %v22485_v13  ;;  %v12254_v41 = vmul.f32 %v12094_v32, %v22514_v19  ;;  %v24577_v13 = vld [vmem:[#allocation30_spill] sm:$0xff]  ;;  %v24578_v19 = vld [vmem:[#allocation44_spill] sm:$0xff]  ;;  %v12114_v7 = vmul.f32 %v23186_v59, %v22559_v25 }
 0x73c   : > { %12762 = vmatprep.mubr.f32.mxu0 %v12229_v2  ;;  %17482 = vmatpush3.bf16.msra.mxu0 %v17479_v10  ;;  %v12440_v10 = vld [vmem:[%s23919_s14 + $0x278] sm:$0xff] }
 0x73d   : > { %17484 = vmatprep.subr.bf16.mxu0 %v17483_v15  ;;  %v17491_v62 = vpack.c.bf16 %v12440_v10, %v12439_v4  ;;  %v24574_v2 = vld [vmem:[#allocation27_spill] sm:$0xff]  ;;  %v12099_v4 = vmul.f32 %v23160_v34, %v22507_v60 }
 0x73f   : > { %12763 = vmatmul.mubr.f32.gmra.mrb[106].mxu0 %v12228_v63  ;;  %v12088_v63 = vmul.f32 %v23145_v33, %v24575_v37  ;;  %v12259_v57 = vmul.f32 %v12099_v4, %v22507_v60  ;;  %v24579_v60 = vld [vmem:[#allocation33_spill] sm:$0xff] }
 0x740   : > { %12767 = vmatprep.mubr.f32.mxu0 %v12234_v12  ;;  %17486 = vmatpush3.bf16.msra.mxu0 %v17483_v15  ;;  %v12083_v15 = vmul.f32 %v23130_v42, %v24574_v2 }
 0x741   : > { %17488 = vmatprep.subr.bf16.mxu0 %v17487_v55  ;;  %v12248_v46 = vmul.f32 %v12088_v63, %v24575_v37  ;;  %v12113_v37 = vmul.f32 %v23186_v59, %v24580_v51  ;;  %v12274_v63 = vmul.f32 %v12114_v7, %v22559_v25  ;;  %v24582_v25 = vld [vmem:[#allocation34_spill] sm:$0xff] }
 0x742   : > { %v12243_v27 = vmul.f32 %v12083_v15, %v24574_v2  ;;  %v12108_v15 = vmul.f32 %v23178_v35, %v24579_v60  ;;  %v12123_v4 = vmul.f32 %v23208_v14, %v24582_v25 }
 0x743   : > { %12768 = vmatmul.mubr.f32.gmra.mrb[108].mxu0 %v12233_v44  ;;  %v12098_v44 = vmul.f32 %v23160_v34, %v24577_v13  ;;  %v12273_v32 = vmul.f32 %v12113_v37, %v24580_v51  ;;  %v12149_v51 = vmul.f32 %v23257_v39, %v22621_v5 }
 0x744   : > { %12772 = vmatprep.mubr.f32.mxu0 %v12239_v6  ;;  %17490 = vmatpush3.bf16.msra.mxu0 %v17487_v55  ;;  %v24576_v55 = vld [vmem:[#allocation112_spill] sm:$0xff]  ;;  %v12103_v6 = vmul.f32 %v23168_v47, %v24578_v19 }
 0x745   : > { %17492 = vmatprep.subr.bf16.mxu0 %v17491_v62  ;;  %v12093_v12 = vmul.f32 %v23152_v1, %v24576_v55 }
 0x746   : > { %v12263_v2 = vmul.f32 %v12103_v6, %v24578_v19 }
 0x747   : > { %12773 = vmatmul.mubr.f32.gmra.mrb[110].mxu0 %v12238_v17  ;;  %v12253_v10 = vmul.f32 %v12093_v12, %v24576_v55  ;;  %v12109_v17 = vmul.f32 %v23178_v35, %v22532_v40  ;;  %v12124_v12 = vmul.f32 %v23208_v14, %v22582_v50 }
 0x748   : > { %12777 = vmatprep.mubr.f32.mxu0 %v12244_v3  ;;  %17494 = vmatpush3.bf16.msra.mxu0 %v17491_v62  ;;  %v12258_v62 = vmul.f32 %v12098_v44, %v24577_v13  ;;  %v12129_v13 = vmul.f32 %v23224_v61, %v22575_v54  ;;  %v12283_v44 = vmul.f32 %v12123_v4, %v24582_v25  ;;  %v24588_v25 = vld [vmem:[#allocation69_spill] sm:$0xff] }
 0x749   : > { %v12269_v3 = vmul.f32 %v12109_v17, %v22532_v40  ;;  %v24581_v40 = vld [vmem:[#allocation49_spill] sm:$0xff]  ;;  %v12139_v17 = vmul.f32 %v23241_v29, %v22598_v49 }
 0x74a   : > { %v12289_v8 = vmul.f32 %v12129_v13, %v22575_v54  ;;  %v24585_v54 = vld [vmem:[#allocation51_spill] sm:$0xff] }
 0x74b   : > { %12778 = vmatmul.mubr.f32.gmra.mrb[112].mxu0 %v12243_v27  ;;  %v12268_v27 = vmul.f32 %v12108_v15, %v24579_v60  ;;  %v12138_v60 = vmul.f32 %v23241_v29, %v24585_v54  ;;  %v12299_v15 = vmul.f32 %v12139_v17, %v22598_v49  ;;  %v24586_v49 = vld [vmem:[#allocation50_spill] sm:$0xff]  ;;  %v24595_v17 = vld [vmem:[#allocation56_spill] sm:$0xff] }
 0x74c   : > { %12782 = vmatprep.mubr.f32.mxu0 %v12249_v21  ;;  %v12119_v21 = vmul.f32 %v23194_v31, %v22554_v16 }
 0x74d   : > { %v12298_v7 = vmul.f32 %v12138_v60, %v24585_v54  ;;  %v24596_v60 = vld [vmem:[#allocation63_spill] sm:$0xff] }
 0x74e   : > { %v12279_v55 = vmul.f32 %v12119_v21, %v22554_v16  ;;  %v24583_v16 = vld [vmem:[#allocation48_spill] sm:$0xff]  ;;  %v12309_v21 = vmul.f32 %v12149_v51, %v22621_v5  ;;  %v12158_v5 = vmul.f32 %v23273_v36, %v22426_v22 }
 0x74f   : > { %12783 = vmatmul.mubr.f32.gmra.mrb[114].mxu0 %v12248_v46  ;;  %v12118_v46 = vmul.f32 %v23194_v31, %v24581_v40 }
 0x750   : > { %12787 = vmatprep.mubr.f32.mxu0 %v12254_v41 }
 0x751   : > { %v12278_v41 = vmul.f32 %v12118_v46, %v24581_v40 }
 0x753   : > { %12788 = vmatmul.mubr.f32.gmra.mrb[116].mxu0 %v12253_v10  ;;  %v12284_v10 = vmul.f32 %v12124_v12, %v22582_v50  ;;  %v24584_v50 = vld [vmem:[#allocation8_spill] sm:$0xff] }
 0x754   : > { %12792 = vmatprep.mubr.f32.mxu0 %v12259_v57  ;;  %v12128_v57 = vmul.f32 %v23224_v61, %v24583_v16  ;;  %v12133_v6 = vmul.f32 %v23233_v58, %v24584_v50 }
 0x756   : > { %v12288_v19 = vmul.f32 %v12128_v57, %v24583_v16  ;;  %v24590_v16 = vld [vmem:[#allocation58_spill] sm:$0xff] }
 0x757   : > { %12793 = vmatmul.mubr.f32.gmra.mrb[118].mxu0 %v12258_v62  ;;  %v12134_v62 = vmul.f32 %v23233_v58, %v22605_v45  ;;  %v24591_v57 = vld [vmem:[#allocation70_spill] sm:$0xff] }
 0x758   : > { %12797 = vmatprep.mubr.f32.mxu0 %v12264_v9 }
 0x759   : > { %v12294_v9 = vmul.f32 %v12134_v62, %v22605_v45  ;;  %v12143_v45 = vmul.f32 %v23249_v28, %v22298_v30 }
 0x75b   : > { %12798 = vmatmul.mubr.f32.gmra.mrb[120].mxu0 %v12263_v2  ;;  %v12293_v2 = vmul.f32 %v12133_v6, %v24584_v50  ;;  %v12303_v37 = vmul.f32 %v12143_v45, %v22298_v30  ;;  %v12159_v30 = vmul.f32 %v23273_v36, %v22641_v24  ;;  %v24593_v50 = vld [vmem:[#allocation113_spill] sm:$0xff]  ;;  %v24594_v6 = vld [vmem:[#allocation28_spill] sm:$0xff] }
 0x75c   : > { %12802 = vmatprep.mubr.f32.mxu0 %v12269_v3  ;;  %v12144_v3 = vmul.f32 %v23249_v28, %v22626_v38  ;;  %v24598_v45 = vld [vmem:[#allocation61_spill] sm:$0xff] }
 0x75d   : > { %v12319_v12 = vmul.f32 %v12159_v30, %v22641_v24  ;;  %v24592_v24 = vld [vmem:[#allocation57_spill] sm:$0xff]  ;;  %v24603_v30 = vld [vmem:[#allocation78_spill] sm:$0xff] }
 0x75e   : > { %v12168_v62 = vmul.f32 %v24591_v57, %v24592_v24 }
 0x75f   : > { %12803 = vmatmul.mubr.f32.gmra.mrb[122].mxu0 %v12268_v27  ;;  %v12304_v27 = vmul.f32 %v12144_v3, %v22626_v38  ;;  %v12153_v38 = vmul.f32 %v23265_v23, %v22379_v52 }
 0x760   : > { %12807 = vmatprep.mubr.f32.mxu0 %v12274_v63  ;;  %v12148_v63 = vmul.f32 %v23257_v39, %v24586_v49 }
 0x762   : > { %v12308_v40 = vmul.f32 %v12148_v63, %v24586_v49  ;;  %v24600_v49 = vld [vmem:[#allocation79_spill] sm:$0xff] }
 0x763   : > { %12808 = vmatmul.mubr.f32.gmra.mrb[124].mxu0 %v12273_v32  ;;  %v12154_v32 = vmul.f32 %v23265_v23, %v22646_v26 }
 0x764   : > { %12812 = vmatprep.mubr.f32.mxu0 %v12279_v55  ;;  %v12313_v55 = vmul.f32 %v12153_v38, %v22379_v52  ;;  %v12169_v52 = vmul.f32 %v24591_v57, %v24590_v16 }
 0x765   : > { %v12314_v46 = vmul.f32 %v12154_v32, %v22646_v26  ;;  %v24589_v26 = vld [vmem:[#allocation54_spill] sm:$0xff]  ;;  %v24601_v32 = vld [vmem:[#allocation65_spill] sm:$0xff] }
 0x766   : > { %v12163_v13 = vmul.f32 %v24588_v25, %v24589_v26 }
 0x767   : > { %12813 = vmatmul.mubr.f32.gmra.mrb[126].mxu0 %v12278_v41  ;;  %v24587_v41 = vld [vmem:[#allocation60_spill] sm:$0xff] }
 0x768   : > { %12817 = vmatprep.mubr.f32.mxu0 %v12284_v10  ;;  %v12164_v4 = vmul.f32 %v24588_v25, %v24587_v41  ;;  %v12318_v10 = vmul.f32 %v12158_v5, %v22426_v22  ;;  %v12174_v22 = vmul.f32 %v24594_v6, %v24593_v50 }
 0x76a   : > { %v12334_v54 = vmul.f32 %v12174_v22, %v24593_v50 }
 0x76b   : > { %12818 = vmatmul.mubr.f32.gmra.mrb[128].mxu0 %v12283_v44  ;;  %v12324_v44 = vmul.f32 %v12164_v4, %v24587_v41  ;;  %v24605_v4 = vld [vmem:[#allocation116_spill] sm:$0xff] }
 0x76c   : > { %12822 = vmatprep.mubr.f32.mxu0 %v12289_v8  ;;  %v12323_v8 = vmul.f32 %v12163_v13, %v24589_v26 }
 0x76f   : > { %12823 = vmatmul.mubr.f32.gmra.mrb[130].mxu0 %v12288_v19  ;;  %v12329_v19 = vmul.f32 %v12169_v52, %v24590_v16 }
 0x770   : > { %12827 = vmatprep.mubr.f32.mxu0 %v12294_v9  ;;  %v12328_v9 = vmul.f32 %v12168_v62, %v24592_v24 }
 0x773   : > { %12828 = vmatmul.mubr.f32.gmra.mrb[132].mxu0 %v12293_v2  ;;  %v12173_v2 = vmul.f32 %v24594_v6, %v24595_v17 }
 0x774   : > { %12832 = vmatprep.mubr.f32.mxu0 %v12299_v15  ;;  %v24597_v15 = vld [vmem:[#allocation72_spill] sm:$0xff] }
 0x775   : > { %v12179_v3 = vmul.f32 %v24597_v15, %v24596_v60 }
 0x777   : > { %12833 = vmatmul.mubr.f32.gmra.mrb[134].mxu0 %v12298_v7  ;;  %v12333_v7 = vmul.f32 %v12173_v2, %v24595_v17  ;;  %v12339_v51 = vmul.f32 %v12179_v3, %v24596_v60  ;;  %v23585_v17 = vld [vmem:[%s21838_s0] ss:$0 sm:$0xff]  ;;  %s527_s0 = sand.u32 1, %s18658_s26  }
 0x778   : > { %12837 = vmatprep.mubr.f32.mxu0 %v12304_v27  ;;  %v12178_v27 = vmul.f32 %v24597_v15, %v24598_v45  ;;  %v12045_v2 = vmul.f32 %v23585_v17, %v22972_v43  ;;  %s13276_s30 = sshll.u32 %s527_s0, 8  ;;  %s23865_s11 = scalar_lea.sflag [#allocation5], %s527_s0 }
 0x779   : > { %s23764_s20 = scalar_lea.vmem [#allocation4], %s13276_s30  ;;  %s18608_s30 = sshll.u32 %s18670_s17, 4  ;;  %s18609_s30 = int_to_ptr.vmem [resolvable:$false] %s18608_s30 }
 0x77a   : > { %s13201_s22 = sshll.u32 %s23764_s20, 4  ;;  %s18610_s21 = scalar_lea.vmem %s18609_s30, 8192  ;;  %s23859_s22 = int_to_ptr.vmem [resolvable:$true] %s13201_s22 }
 0x77b   : > { %12838 = vmatmul.mubr.f32.gmra.mrb[136].mxu0 %v12303_v37  ;;  %v24599_v37 = vld [vmem:[#allocation64_spill] sm:$0xff]  ;;  %s18604_s2 = scalar_lea.vmem %s23859_s22, 4096  ;;  %p18611_p0 = scmp.lt.s32.totalorder %s23859_s22, %s18609_s30 }
 0x77c   : > { %12842 = vmatprep.mubr.f32.mxu0 %v12309_v21  ;;  %v12184_v63 = vmul.f32 %v24600_v49, %v24599_v37  ;;  %v12338_v21 = vmul.f32 %v12178_v27, %v24598_v45  ;;  %v12055_v45 = vmul.f32 %v23585_v17, %v22988_v53  ;;  %p18605_p11 = scmp.ne.s32.totalorder %s23859_s22, %s18604_s2  ;;  %p18612_p1 = scmp.lt.s32.totalorder %s18610_s21, %s18604_s2 }
 0x77e   : > { %v12344_v38 = vmul.f32 %v12184_v63, %v24599_v37  ;;  %v12215_v43 = vmul.f32 %v23585_v17, %v12055_v45  ;;  %v12065_v37 = vmul.f32 %v23585_v17, %v23016_v56  ;;  %p18606_p12 = pnand %p18605_p11, %p18802_p5  ;;  %p18613_p2 = por %p18612_p1, %p18611_p0 }
 0x77f   : > { %12843 = vmatmul.mubr.f32.gmra.mrb[138].mxu0 %v12308_v40  ;;  %v12183_v40 = vmul.f32 %v24600_v49, %v24601_v32 }
 0x780   : > { %12847 = vmatprep.mubr.f32.mxu0 %v12314_v46  ;;  %v24602_v46 = vld [vmem:[#allocation114_spill] sm:$0xff]  ;;  %v12225_v53 = vmul.f32 %v23585_v17, %v12065_v37  ;;  %p18607_p13 = pneg %p18606_p12 }
 0x781   : > { %v12343_v5 = vmul.f32 %v12183_v40, %v24601_v32  ;;  %v12075_v32 = vmul.f32 %v23585_v17, %v23124_v11  ;;  %v12080_v40 = vmul.f32 %v23585_v17, %v23134_v18 }
 0x782   : > { %p18614_p3 = pnand %p18613_p2, %p18607_p13 }
 0x783   : > { %12848 = vmatmul.mubr.f32.gmra.mrb[140].mxu0 %v12313_v55  ;;  %v12189_v55 = vmul.f32 %v24603_v30, %v24602_v46  ;;  %v12235_v56 = vmul.f32 %v23585_v17, %v12075_v32 }
 0x784   : > { %12852 = vmatprep.mubr.f32.mxu0 %v12319_v12  ;;  %v24604_v12 = vld [vmem:[#allocation59_spill] sm:$0xff] }
 0x785   : > { %v12188_v41 = vmul.f32 %v24603_v30, %v24604_v12  ;;  %v12349_v13 = vmul.f32 %v12189_v55, %v24602_v46  ;;  %v12090_v46 = vmul.f32 %v23585_v17, %v23145_v33  ;;  %v12095_v55 = vmul.f32 %v23585_v17, %v23152_v1 }
 0x787   : > { %12853 = vmatmul.mubr.f32.gmra.mrb[142].mxu0 %v12318_v10  ;;  %v24606_v10 = vld [vmem:[#allocation71_spill] sm:$0xff]  ;;  %v12348_v52 = vmul.f32 %v12188_v41, %v24604_v12  ;;  %v12250_v18 = vmul.f32 %v23585_v17, %v12090_v46  ;;  %v12105_v12 = vmul.f32 %v23585_v17, %v23168_v47  ;;  %v12110_v41 = vmul.f32 %v23585_v17, %v23178_v35 }
 0x788   : > { %12857 = vmatprep.mubr.f32.mxu0 %v12324_v44  ;;  %v12194_v26 = vmul.f32 %v24606_v10, %v24605_v4  ;;  %v24607_v44 = vld [vmem:[#allocation67_spill] sm:$0xff] }
 0x789   : > { %v12193_v16 = vmul.f32 %v24606_v10, %v24607_v44  ;;  %v12265_v1 = vmul.f32 %v23585_v17, %v12105_v12 }
 0x78a   : > { %v12354_v62 = vmul.f32 %v12194_v26, %v24605_v4  ;;  %v12115_v4 = vmul.f32 %v23585_v17, %v23186_v59  ;;  %v12120_v26 = vmul.f32 %v23585_v17, %v23194_v31 }
 0x78b   : > { %12858 = vmatmul.mubr.f32.gmra.mrb[144].mxu0 %v12323_v8  ;;  %v24608_v8 = vld [vmem:[#allocation115_spill] sm:$0xff]  ;;  %v12353_v22 = vmul.f32 %v12193_v16, %v24607_v44  ;;  %v12130_v44 = vmul.f32 %v23585_v17, %v23224_v61  ;;  %v12135_v16 = vmul.f32 %v23585_v17, %v23233_v58 }
 0x78c   : > { %12862 = vmatprep.mubr.f32.mxu0 %v12329_v19  ;;  %v12199_v24 = vmul.f32 %v23334_v0, %v24608_v8  ;;  %v24609_v19 = vld [vmem:[#allocation66_spill] sm:$0xff]  ;;  %v12275_v47 = vmul.f32 %v23585_v17, %v12115_v4  ;;  %v12280_v35 = vmul.f32 %v23585_v17, %v12120_v26 }
 0x78d   : > { %v12198_v50 = vmul.f32 %v23334_v0, %v24609_v19  ;;  %v12290_v31 = vmul.f32 %v23585_v17, %v12130_v44 }
 0x78f   : > { %12863 = vmatmul.mubr.f32.gmra.mrb[146].mxu0 %v12328_v9  ;;  %v12359_v9 = vmul.f32 %v12199_v24, %v24608_v8  ;;  %v12358_v3 = vmul.f32 %v12198_v50, %v24609_v19  ;;  %v12145_v8 = vmul.f32 %v23585_v17, %v23249_v28  ;;  %v12150_v24 = vmul.f32 %v23585_v17, %v23257_v39 }
 0x790   : > { %12867 = vmatprep.mubr.f32.mxu0 %v12334_v54  ;;  %v24610_v54 = vld [vmem:[#allocation68_spill] sm:$0xff]  ;;  %v12160_v19 = vmul.f32 %v23585_v17, %v23273_v36  ;;  %v12165_v50 = vmul.f32 %v23585_v17, %v24588_v25 }
 0x791   : > { %v12050_v60 = vmul.f32 %v23585_v17, %v24610_v54  ;;  %v12305_v58 = vmul.f32 %v23585_v17, %v12145_v8  ;;  %v12185_v54 = vmul.f32 %v23585_v17, %v24600_v49 }
 0x792   : > { %v12320_v39 = vmul.f32 %v23585_v17, %v12160_v19 }
 0x793   : > { %12868 = vmatmul.mubr.f32.gmra.mrb[148].mxu0 %v12333_v7  ;;  %v12205_v7 = vmul.f32 %v23585_v17, %v12045_v2  ;;  %v12210_v27 = vmul.f32 %v23585_v17, %v12050_v60  ;;  %v12180_v2 = vmul.f32 %v23585_v17, %v24597_v15  ;;  %v12190_v60 = vmul.f32 %v23585_v17, %v24603_v30 }
 0x794   : > { %12872 = vmatprep.mubr.f32.mxu0 %v12339_v51  ;;  %v12060_v51 = vmul.f32 %v23585_v17, %v23001_v48  ;;  %v12200_v15 = vmul.f32 %v23585_v17, %v23334_v0 }
 0x796   : > { %v12220_v63 = vmul.f32 %v23585_v17, %v12060_v51  ;;  %v12360_v45 = vmul.f32 %v23585_v17, %v12200_v15 }
 0x797   : > { %12873 = vmatmul.mubr.f32.gmra.mrb[150].mxu0 %v12338_v21  ;;  %v12070_v21 = vmul.f32 %v23585_v17, %v23109_v20  ;;  %v12240_v20 = vmul.f32 %v23585_v17, %v12080_v40 }
 0x798   : > { %12877 = vmatprep.mubr.f32.mxu0 %v12344_v38  ;;  %v12085_v38 = vmul.f32 %v23585_v17, %v23130_v42  ;;  %v12255_v42 = vmul.f32 %v23585_v17, %v12095_v55 }
 0x799   : > { %v12230_v48 = vmul.f32 %v23585_v17, %v12070_v21 }
 0x79a   : > { %v12245_v11 = vmul.f32 %v23585_v17, %v12085_v38 }
 0x79b   : > { %12878 = vmatmul.mubr.f32.gmra.mrb[152].mxu0 %v12343_v5  ;;  %v12100_v5 = vmul.f32 %v23585_v17, %v23160_v34  ;;  %v12270_v34 = vmul.f32 %v23585_v17, %v12110_v41 }
 0x79c   : > { %12882 = vmatprep.mubr.f32.mxu0 %v12349_v13  ;;  %v12125_v13 = vmul.f32 %v23585_v17, %v23208_v14  ;;  %v12295_v14 = vmul.f32 %v23585_v17, %v12135_v16 }
 0x79d   : > { %v12260_v33 = vmul.f32 %v23585_v17, %v12100_v5 }
 0x79e   : > { %v12285_v59 = vmul.f32 %v23585_v17, %v12125_v13 }
 0x79f   : > { %12883 = vmatmul.mubr.f32.gmra.mrb[154].mxu0 %v12348_v52  ;;  %v12140_v52 = vmul.f32 %v23585_v17, %v23241_v29  ;;  %v12310_v29 = vmul.f32 %v23585_v17, %v12150_v24 }
 0x7a0   : > { %12887 = vmatprep.mubr.f32.mxu0 %v12354_v62  ;;  %v12155_v62 = vmul.f32 %v23585_v17, %v23265_v23  ;;  %v12325_v23 = vmul.f32 %v23585_v17, %v12165_v50 }
 0x7a1   : > { %v12300_v61 = vmul.f32 %v23585_v17, %v12140_v52 }
 0x7a2   : > { %v12315_v28 = vmul.f32 %v23585_v17, %v12155_v62 }
 0x7a3   : > { %12888 = vmatmul.mubr.f32.gmra.mrb[156].mxu0 %v12353_v22  ;;  %v12170_v22 = vmul.f32 %v23585_v17, %v24591_v57  ;;  %v12340_v57 = vmul.f32 %v23585_v17, %v12180_v2 }
 0x7a4   : > { %12892 = vmatprep.mubr.f32.mxu0 %v12359_v9  ;;  %v12175_v9 = vmul.f32 %v23585_v17, %v24594_v6  ;;  %v12195_v6 = vmul.f32 %v23585_v17, %v24606_v10 }
 0x7a5   : > { %v12330_v36 = vmul.f32 %v23585_v17, %v12170_v22 }
 0x7a6   : > { %v12335_v25 = vmul.f32 %v23585_v17, %v12175_v9  ;;  %v12355_v49 = vmul.f32 %v23585_v17, %v12195_v6 }
 0x7a7   : > { %12893 = vmatmul.mubr.f32.gmra.mrb[158].mxu0 %v12358_v3  ;;  %v12345_v3 = vmul.f32 %v23585_v17, %v12185_v54 }
 0x7a8   : > { %17319 = vmatprep.mubr.f32.mxu0 %v12205_v7  ;;  %v12350_v7 = vmul.f32 %v23585_v17, %v12190_v60 }
 0x7ab   : > { %17320 = vmatmul.mubr.f32.vlgmr.msra.gmra.mrb[160].mxu0 %v12210_v27 }
 0x7ac   : > { %17322 = vmatprep.mubr.f32.mxu0 %v12215_v43 }
 0x7af   : > { %17323 = vmatmul.mubr.f32.gmra.mrb[162].mxu0 %v12220_v63 }
 0x7b0   : > { %17325 = vmatprep.mubr.f32.mxu0 %v12225_v53 }
 0x7b3   : > { %17326 = vmatmul.mubr.f32.gmra.mrb[164].mxu0 %v12230_v48 }
 0x7b4   : > { %17328 = vmatprep.mubr.f32.mxu0 %v12235_v56 }
 0x7b7   : > { %17329 = vmatmul.mubr.f32.gmra.mrb[166].mxu0 %v12240_v20 }
 0x7b8   : > { %17331 = vmatprep.mubr.f32.mxu0 %v12245_v11 }
 0x7bb   : > { %17332 = vmatmul.mubr.f32.gmra.mrb[168].mxu0 %v12250_v18 }
 0x7bc   : > { %17334 = vmatprep.mubr.f32.mxu0 %v12255_v42 }
 0x7bf   : > { %17335 = vmatmul.mubr.f32.gmra.mrb[170].mxu0 %v12260_v33 }
 0x7c0   : > { %17337 = vmatprep.mubr.f32.mxu0 %v12265_v1 }
 0x7c3   : > { %17338 = vmatmul.mubr.f32.gmra.mrb[172].mxu0 %v12270_v34 }
 0x7c4   : > { %17340 = vmatprep.mubr.f32.mxu0 %v12275_v47 }
 0x7c7   : > { %17341 = vmatmul.mubr.f32.gmra.mrb[174].mxu0 %v12280_v35 }
 0x7c8   : > { %17343 = vmatprep.mubr.f32.mxu0 %v12285_v59 }
 0x7cb   : > { %17344 = vmatmul.mubr.f32.gmra.mrb[176].mxu0 %v12290_v31 }
 0x7cc   : > { %17346 = vmatprep.mubr.f32.mxu0 %v12295_v14 }
 0x7cf   : > { %17347 = vmatmul.mubr.f32.gmra.mrb[178].mxu0 %v12300_v61 }
 0x7d0   : > { %17349 = vmatprep.mubr.f32.mxu0 %v12305_v58 }
 0x7d3   : > { %17350 = vmatmul.mubr.f32.gmra.mrb[180].mxu0 %v12310_v29 }
 0x7d4   : > { %17352 = vmatprep.mubr.f32.mxu0 %v12315_v28 }
 0x7d7   : > { %17353 = vmatmul.mubr.f32.gmra.mrb[182].mxu0 %v12320_v39 }
 0x7d8   : > { %17355 = vmatprep.mubr.f32.mxu0 %v12325_v23 }
 0x7db   : > { %17356 = vmatmul.mubr.f32.gmra.mrb[184].mxu0 %v12330_v36 }
 0x7dc   : > { %17358 = vmatprep.mubr.f32.mxu0 %v12335_v25 }
 0x7df   : > { %17359 = vmatmul.mubr.f32.gmra.mrb[186].mxu0 %v12340_v57 }
 0x7e0   : > { %17361 = vmatprep.mubr.f32.mxu0 %v12345_v3 }
 0x7e3   : > { %17362 = vmatmul.mubr.f32.gmra.mrb[188].mxu0 %v12350_v7 }
 0x7e4   : > { %17364 = vmatprep.mubr.f32.mxu0 %v12355_v49 }
 0x7e7   : > { %17365 = vmatmul.mubr.f32.gmra.mrb[190].mxu0 %v12360_v45  ;;  %v23752_v45 = vld [vmem:[%s23920_s15] ss:$0 sm:$0xff] }
 0x7fe   : > { %v23684_v30 = vpop.f32.mrb[96].mxu0 }
 0x7ff   : > { %v12741_v27 = vpop.f32.mrb[97].mxu0 }
 0x802   : > { %v23686_v10 = vpop.f32.mrb[98].mxu0 }
 0x803   : > { %v12746_v51 = vpop.f32.mrb[99].mxu0 }
 0x804   : > { %v17530_v51 = vadd.f32 %v23752_v45, %v23686_v10 }
 0x806   : > { %v23688_v43 = vpop.f32.mrb[100].mxu0 }
 0x807   : > { %v12751_v37 = vpop.f32.mrb[101].mxu0 }
 0x808   : > { %v17529_v37 = vadd.f32 %v23752_v45, %v23684_v30 }
 0x80a   : > { %v23690_v63 = vpop.f32.mrb[102].mxu0 }
 0x80b   : > { %v12756_v0 = vpop.f32.mrb[103].mxu0 }
 0x80e   : > { %v23692_v21 = vpop.f32.mrb[104].mxu0 }
 0x80f   : > { %v12761_v53 = vpop.f32.mrb[105].mxu0 }
 0x812   : > { %v23694_v32 = vpop.f32.mrb[106].mxu0 }
 0x813   : > { %v12766_v48 = vpop.f32.mrb[107].mxu0 }
 0x816   : > { %v23696_v17 = vpop.f32.mrb[108].mxu0 }
 0x817   : > { %v12771_v40 = vpop.f32.mrb[109].mxu0 }
 0x81a   : > { %v23698_v56 = vpop.f32.mrb[110].mxu0 }
 0x81b   : > { %v12776_v38 = vpop.f32.mrb[111].mxu0 }
 0x81c   : > { %v17532_v38 = vadd.f32 %v23752_v45, %v23690_v63  ;;  %v17534_v63 = vadd.f32 %v23752_v45, %v23694_v32  ;;  %v17535_v32 = vadd.f32 %v23752_v45, %v23696_v17 }
 0x81e   : > { %v23700_v20 = vpop.f32.mrb[112].mxu0 }
 0x81f   : > { %v12781_v46 = vpop.f32.mrb[113].mxu0 }
 0x822   : > { %v23702_v11 = vpop.f32.mrb[114].mxu0 }
 0x823   : > { %v12786_v55 = vpop.f32.mrb[115].mxu0 }
 0x824   : > { %v17531_v55 = vadd.f32 %v23752_v45, %v23688_v43  ;;  %v17533_v43 = vadd.f32 %v23752_v45, %v23692_v21 }
 0x826   : > { %v23704_v18 = vpop.f32.mrb[116].mxu0 }
 0x827   : > { %v12791_v5 = vpop.f32.mrb[117].mxu0 }
 0x82a   : > { %v23706_v42 = vpop.f32.mrb[118].mxu0 }
 0x82b   : > { %v12796_v12 = vpop.f32.mrb[119].mxu0 }
 0x82e   : > { %v23708_v33 = vpop.f32.mrb[120].mxu0 }
 0x82f   : > { %v12801_v41 = vpop.f32.mrb[121].mxu0 }
 0x832   : > { %v23710_v1 = vpop.f32.mrb[122].mxu0 }
 0x833   : > { %v12806_v4 = vpop.f32.mrb[123].mxu0 }
 0x836   : > { %v23712_v34 = vpop.f32.mrb[124].mxu0 }
 0x837   : > { %v12811_v26 = vpop.f32.mrb[125].mxu0 }
 0x83a   : > { %v23714_v47 = vpop.f32.mrb[126].mxu0 }
 0x83b   : > { %v12816_v13 = vpop.f32.mrb[127].mxu0 }
 0x83e   : > { %v23716_v35 = vpop.f32.mrb[128].mxu0 }
 0x83f   : > { %v12821_v44 = vpop.f32.mrb[129].mxu0 }
 0x842   : > { %v23718_v59 = vpop.f32.mrb[130].mxu0 }
 0x843   : > { %v12826_v16 = vpop.f32.mrb[131].mxu0 }
 0x846   : > { %v23720_v31 = vpop.f32.mrb[132].mxu0 }
 0x847   : > { %v12831_v52 = vpop.f32.mrb[133].mxu0 }
 0x84a   : > { %v23722_v14 = vpop.f32.mrb[134].mxu0 }
 0x84b   : > { %v12836_v8 = vpop.f32.mrb[135].mxu0 }
 0x84c   : > { %v17536_v8 = vadd.f32 %v23752_v45, %v23698_v56  ;;  %v17537_v56 = vadd.f32 %v23752_v45, %v23700_v20 }
 0x84e   : > { %v23724_v61 = vpop.f32.mrb[136].mxu0 }
 0x84f   : > { %v12841_v24 = vpop.f32.mrb[137].mxu0 }
 0x852   : > { %v23726_v58 = vpop.f32.mrb[138].mxu0 }
 0x853   : > { %v12846_v62 = vpop.f32.mrb[139].mxu0 }
 0x856   : > { %v23728_v29 = vpop.f32.mrb[140].mxu0 }
 0x857   : > { %v12851_v19 = vpop.f32.mrb[141].mxu0 }
 0x85a   : > { %v23730_v28 = vpop.f32.mrb[142].mxu0 }
 0x85b   : > { %v12856_v50 = vpop.f32.mrb[143].mxu0 }
 0x85e   : > { %v23732_v39 = vpop.f32.mrb[144].mxu0 }
 0x85f   : > { %v12861_v22 = vpop.f32.mrb[145].mxu0 }
 0x862   : > { %v23734_v23 = vpop.f32.mrb[146].mxu0 }
 0x863   : > { %v12866_v9 = vpop.f32.mrb[147].mxu0 }
 0x864   : > { %v17538_v9 = vadd.f32 %v23752_v45, %v23702_v11  ;;  %v17539_v11 = vadd.f32 %v23752_v45, %v23704_v18 }
 0x866   : > { %v23736_v36 = vpop.f32.mrb[148].mxu0 }
 0x867   : > { %v12871_v2 = vpop.f32.mrb[149].mxu0 }
 0x86a   : > { %v23738_v25 = vpop.f32.mrb[150].mxu0 }
 0x86b   : > { %v12876_v54 = vpop.f32.mrb[151].mxu0 }
 0x86e   : > { %v23740_v57 = vpop.f32.mrb[152].mxu0 }
 0x86f   : > { %v12881_v60 = vpop.f32.mrb[153].mxu0 }
 0x872   : > { %v23742_v6 = vpop.f32.mrb[154].mxu0 }
 0x873   : > { %v12886_v3 = vpop.f32.mrb[155].mxu0 }
 0x876   : > { %v23744_v15 = vpop.f32.mrb[156].mxu0 }
 0x877   : > { %v12891_v7 = vpop.f32.mrb[157].mxu0 }
 0x87a   : > { %v23746_v49 = vpop.f32.mrb[158].mxu0 }
 0x87b   : > { %v12896_v27 = vpop.f32.mrb[159].mxu0 }
 0x87c   : > { %v17540_v27 = vadd.f32 %v23752_v45, %v23706_v42  ;;  %v17541_v42 = vadd.f32 %v23752_v45, %v23708_v33 }
 0x87e   : > { %v17321_v0 = vpop.f32.mrb[160].mxu0 }
 0x87f   : > { %v12970_v53 = vadd.f32 %v17530_v51, %v17321_v0  ;;  %v12964_v48 = vpop.f32.mrb[161].mxu0 }
 0x880   : > { %v12965_v40 = vadd.f32 %v17529_v37, %v12964_v48 }
 0x881   : > { %v13124_v46 = vmax.f32 %v12970_v53, 0.0 }
 0x882   : > { %v13123_v5 = vmax.f32 %v12965_v40, 0.0  ;;  %v17324_v12 = vpop.f32.mrb[162].mxu0  ;;  %v17542_v40 = vadd.f32 %v23752_v45, %v23710_v1  ;;  %v17543_v1 = vadd.f32 %v23752_v45, %v23712_v34 }
 0x883   : > { %13156 = vst [vmem:[%s23764_s20 + $0x8] sm:$0xff] %v13124_v46  ;;  %v12980_v30 = vadd.f32 %v17532_v38, %v17324_v12  ;;  %v12974_v10 = vpop.f32.mrb[163].mxu0 }
 0x884   : > { %13155 = vst [vmem:[%s23764_s20] sm:$0xff] %v13123_v5  ;;  %v12975_v41 = vadd.f32 %v17531_v55, %v12974_v10 }
 0x885   : > { %v13126_v4 = vmax.f32 %v12980_v30, 0.0  ;;  %v17544_v30 = vadd.f32 %v23752_v45, %v23714_v47  ;;  %v17545_v47 = vadd.f32 %v23752_v45, %v23716_v35 }
 0x886   : > { %v13125_v26 = vmax.f32 %v12975_v41, 0.0  ;;  %v17327_v13 = vpop.f32.mrb[164].mxu0 }
 0x887   : > { %13158 = vst [vmem:[%s23764_s20 + $0x18] sm:$0xff] %v13126_v4  ;;  %v12990_v44 = vadd.f32 %v17534_v63, %v17327_v13  ;;  %v12984_v16 = vpop.f32.mrb[165].mxu0 }
 0x888   : > { %13157 = vst [vmem:[%s23764_s20 + $0x10] sm:$0xff] %v13125_v26  ;;  %v12985_v52 = vadd.f32 %v17533_v43, %v12984_v16  ;;  %v17546_v26 = vadd.f32 %v23752_v45, %v23718_v59  ;;  %v17547_v59 = vadd.f32 %v23752_v45, %v23720_v31 }
 0x889   : > { %v13128_v24 = vmax.f32 %v12990_v44, 0.0 }
 0x88a   : > { %v13127_v62 = vmax.f32 %v12985_v52, 0.0  ;;  %v17330_v19 = vpop.f32.mrb[166].mxu0 }
 0x88b   : > { %13160 = vst [vmem:[%s23764_s20 + $0x28] sm:$0xff] %v13128_v24  ;;  %v13000_v21 = vadd.f32 %v17536_v8, %v17330_v19  ;;  %v12994_v50 = vpop.f32.mrb[167].mxu0  ;;  %v17548_v24 = vadd.f32 %v23752_v45, %v23722_v14  ;;  %v17549_v14 = vadd.f32 %v23752_v45, %v23724_v61 }
 0x88c   : > { %13159 = vst [vmem:[%s23764_s20 + $0x20] sm:$0xff] %v13127_v62  ;;  %v12995_v22 = vadd.f32 %v17535_v32, %v12994_v50 }
 0x88d   : > { %v13130_v2 = vmax.f32 %v13000_v21, 0.0 }
 0x88e   : > { %v13129_v54 = vmax.f32 %v12995_v22, 0.0  ;;  %v17333_v60 = vpop.f32.mrb[168].mxu0  ;;  %v17550_v22 = vadd.f32 %v23752_v45, %v23726_v58  ;;  %v17551_v58 = vadd.f32 %v23752_v45, %v23728_v29 }
 0x88f   : > { %13162 = vst [vmem:[%s23764_s20 + $0x38] sm:$0xff] %v13130_v2  ;;  %v13010_v17 = vadd.f32 %v17538_v9, %v17333_v60  ;;  %v13004_v3 = vpop.f32.mrb[169].mxu0 }
 0x890   : > { %13161 = vst [vmem:[%s23764_s20 + $0x30] sm:$0xff] %v13129_v54  ;;  %v13005_v7 = vadd.f32 %v17537_v56, %v13004_v3 }
 0x891   : > { %v13132_v51 = vmax.f32 %v13010_v17, 0.0  ;;  %v17552_v17 = vadd.f32 %v23752_v45, %v23730_v28  ;;  %v17553_v28 = vadd.f32 %v23752_v45, %v23732_v39 }
 0x892   : > { %v13131_v37 = vmax.f32 %v13005_v7, 0.0  ;;  %v17336_v0 = vpop.f32.mrb[170].mxu0 }
 0x893   : > { %13164 = vst [vmem:[%s23764_s20 + $0x48] sm:$0xff] %v13132_v51  ;;  %v13020_v20 = vadd.f32 %v17540_v27, %v17336_v0  ;;  %v13014_v53 = vpop.f32.mrb[171].mxu0 }
 0x894   : > { %13163 = vst [vmem:[%s23764_s20 + $0x40] sm:$0xff] %v13131_v37  ;;  %v13015_v48 = vadd.f32 %v17539_v11, %v13014_v53  ;;  %v17554_v37 = vadd.f32 %v23752_v45, %v23734_v23  ;;  %v17555_v23 = vadd.f32 %v23752_v45, %v23736_v36 }
 0x895   : > { %v13134_v38 = vmax.f32 %v13020_v20, 0.0 }
 0x896   : > { %v13133_v46 = vmax.f32 %v13015_v48, 0.0  ;;  %v17339_v55 = vpop.f32.mrb[172].mxu0 }
 0x897   : > { %13166 = vst [vmem:[%s23764_s20 + $0x58] sm:$0xff] %v13134_v38  ;;  %v13030_v18 = vadd.f32 %v17542_v40, %v17339_v55  ;;  %v13024_v5 = vpop.f32.mrb[173].mxu0  ;;  %v17556_v38 = vadd.f32 %v23752_v45, %v23738_v25  ;;  %v17557_v25 = vadd.f32 %v23752_v45, %v23740_v57 }
 0x898   : > { %13165 = vst [vmem:[%s23764_s20 + $0x50] sm:$0xff] %v13133_v46  ;;  %v13025_v12 = vadd.f32 %v17541_v42, %v13024_v5 }
 0x899   : > { %v13136_v10 = vmax.f32 %v13030_v18, 0.0 }
 0x89a   : > { %v13135_v41 = vmax.f32 %v13025_v12, 0.0  ;;  %v17342_v63 = vpop.f32.mrb[174].mxu0  ;;  %v17558_v12 = vadd.f32 %v23752_v45, %v23742_v6  ;;  %v17559_v6 = vadd.f32 %v23752_v45, %v23744_v15 }
 0x89b   : > { %13168 = vst [vmem:[%s23764_s20 + $0x68] sm:$0xff] %v13136_v10  ;;  %v13040_v33 = vadd.f32 %v17544_v30, %v17342_v63  ;;  %v13034_v4 = vpop.f32.mrb[175].mxu0 }
 0x89c   : > { %13167 = vst [vmem:[%s23764_s20 + $0x60] sm:$0xff] %v13135_v41  ;;  %v13035_v43 = vadd.f32 %v17543_v1, %v13034_v4 }
 0x89d   : > { %v13138_v13 = vmax.f32 %v13040_v33, 0.0  ;;  %v17560_v33 = vadd.f32 %v23752_v45, %v23746_v49 }
 0x89e   : > { %v13137_v44 = vmax.f32 %v13035_v43, 0.0  ;;  %v17345_v16 = vpop.f32.mrb[176].mxu0 }
 0x89f   : > { %13170 = vst [vmem:[%s23764_s20 + $0x78] sm:$0xff] %v13138_v13  ;;  %v13050_v34 = vadd.f32 %v17546_v26, %v17345_v16  ;;  %v13044_v52 = vpop.f32.mrb[177].mxu0 }
 0x8a0   : > { %13169 = vst [vmem:[%s23764_s20 + $0x70] sm:$0xff] %v13137_v44  ;;  %v13045_v8 = vadd.f32 %v17545_v47, %v13044_v52 }
 0x8a1   : > { %v13140_v32 = vmax.f32 %v13050_v34, 0.0 }
 0x8a2   : > { %v13139_v62 = vmax.f32 %v13045_v8, 0.0  ;;  %v17348_v19 = vpop.f32.mrb[178].mxu0 }
 0x8a3   : > { %13172 = vst [vmem:[%s23764_s20 + $0x88] sm:$0xff] %v13140_v32  ;;  %v13060_v35 = vadd.f32 %v17548_v24, %v17348_v19  ;;  %v13054_v21 = vpop.f32.mrb[179].mxu0 }
 0x8a4   : > { %13171 = vst [vmem:[%s23764_s20 + $0x80] sm:$0xff] %v13139_v62  ;;  %v13055_v50 = vadd.f32 %v17547_v59, %v13054_v21 }
 0x8a5   : > { %v13142_v9 = vmax.f32 %v13060_v35, 0.0 }
 0x8a6   : > { %v13141_v2 = vmax.f32 %v13055_v50, 0.0  ;;  %v17351_v56 = vpop.f32.mrb[180].mxu0 }
 0x8a7   : > { %13174 = vst [vmem:[%s23764_s20 + $0x98] sm:$0xff] %v13142_v9  ;;  %v13070_v31 = vadd.f32 %v17550_v22, %v17351_v56  ;;  %v13064_v54 = vpop.f32.mrb[181].mxu0 }
 0x8a8   : > { %13173 = vst [vmem:[%s23764_s20 + $0x90] sm:$0xff] %v13141_v2  ;;  %v13065_v60 = vadd.f32 %v17549_v14, %v13064_v54 }
 0x8a9   : > { %v13144_v3 = vmax.f32 %v13070_v31, 0.0 }
 0x8aa   : > { %v13143_v7 = vmax.f32 %v13065_v60, 0.0  ;;  %v17354_v27 = vpop.f32.mrb[182].mxu0 }
 0x8ab   : > { %13176 = vst [vmem:[%s23764_s20 + $0xa8] sm:$0xff] %v13144_v3  ;;  %v13080_v61 = vadd.f32 %v17552_v17, %v17354_v27  ;;  %v13074_v51 = vpop.f32.mrb[183].mxu0 }
 0x8ac   : > { %13175 = vst [vmem:[%s23764_s20 + $0xa0] sm:$0xff] %v13143_v7  ;;  %v13075_v11 = vadd.f32 %v17551_v58, %v13074_v51 }
 0x8ad   : > { %v13146_v0 = vmax.f32 %v13080_v61, 0.0 }
 0x8ae   : > { %v13145_v20 = vmax.f32 %v13075_v11, 0.0  ;;  %v17357_v53 = vpop.f32.mrb[184].mxu0 }
 0x8af   : > { %13178 = vst [vmem:[%s23764_s20 + $0xb8] sm:$0xff] %v13146_v0  ;;  %v13090_v29 = vadd.f32 %v17554_v37, %v17357_v53  ;;  %v13084_v48 = vpop.f32.mrb[185].mxu0 }
 0x8b0   : > { %13177 = vst [vmem:[%s23764_s20 + $0xb0] sm:$0xff] %v13145_v20  ;;  %v13085_v40 = vadd.f32 %v17553_v28, %v13084_v48 }
 0x8b1   : > { %v13148_v42 = vmax.f32 %v13090_v29, 0.0 }
 0x8b2   : > { %v13147_v46 = vmax.f32 %v13085_v40, 0.0  ;;  %v17360_v55 = vpop.f32.mrb[186].mxu0 }
 0x8b3   : > { %13180 = vst [vmem:[%s23764_s20 + $0xc8] sm:$0xff] %v13148_v42  ;;  %v13100_v39 = vadd.f32 %v17556_v38, %v17360_v55  ;;  %v13094_v18 = vpop.f32.mrb[187].mxu0 }
 0x8b4   : > { %13179 = vst [vmem:[%s23764_s20 + $0xc0] sm:$0xff] %v13147_v46  ;;  %v13095_v5 = vadd.f32 %v17555_v23, %v13094_v18 }
 0x8b5   : > { %v13150_v30 = vmax.f32 %v13100_v39, 0.0 }
 0x8b6   : > { %v13149_v10 = vmax.f32 %v13095_v5, 0.0  ;;  %v17363_v36 = vpop.f32.mrb[188].mxu0 }
 0x8b7   : > { %13182 = vst [vmem:[%s23764_s20 + $0xd8] sm:$0xff] %v13150_v30  ;;  %v13110_v1 = vadd.f32 %v17558_v12, %v17363_v36  ;;  %v13104_v41 = vpop.f32.mrb[189].mxu0 }
 0x8b8   : > { %13181 = vst [vmem:[%s23764_s20 + $0xd0] sm:$0xff] %v13149_v10  ;;  %v13105_v63 = vadd.f32 %v17557_v25, %v13104_v41 }
 0x8b9   : > { %v13152_v4 = vmax.f32 %v13110_v1, 0.0 }
 0x8ba   : > { %v13151_v43 = vmax.f32 %v13105_v63, 0.0  ;;  %v17366_v57 = vpop.f32.mrb[190].mxu0 }
 0x8bb   : > { %13184 = vst [vmem:[%s23764_s20 + $0xe8] sm:$0xff] %v13152_v4  ;;  %v13120_v26 = vadd.f32 %v17560_v33, %v17366_v57  ;;  %v13114_v13 = vpop.f32.mrb[191].mxu0 }
 0x8bc   : > { %13183 = vst [vmem:[%s23764_s20 + $0xe0] sm:$0xff] %v13151_v43  ;;  %v13115_v47 = vadd.f32 %v17559_v6, %v13114_v13 }
 0x8bd   : > { %v13154_v44 = vmax.f32 %v13120_v26, 0.0 }
 0x8be   : > { %v13153_v15 = vmax.f32 %v13115_v47, 0.0 }
 0x8bf   : > { %13186 = vst [vmem:[%s23764_s20 + $0xf8] sm:$0xff] %v13154_v44 }
 0x8c0   : > { %13185 = vst [vmem:[%s23764_s20 + $0xf0] sm:$0xff] %v13153_v15 }
 0x8c1   : > { %18617 = shalt.err (!%p18614_p3)
}
 0x8c2   : > { %s18618_s0 = scalar_lea.hbm %s23857_s13, 4096  ;;  %s18622_s24 = scalar_lea.hbm %s23921_s16, 8192 }
 0x8c3   : > { %p18619_p4 = scmp.ne.s32.totalorder %s23857_s13, %s18618_s0  ;;  %p18623_p9 = scmp.lt.u32.totalorder %s23857_s13, %s23921_s16 }
 0x8c4   : > { %p18624_p10 = scmp.lt.u32.totalorder %s18622_s24, %s18618_s0  ;;  %p18626_p12 = scmp.lt.u32.totalorder %s18618_s0, %s23857_s13 }
 0x8c5   : > { %p18620_p7 = pnand %p18619_p4, %p18802_p5 }
 0x8c6   : > { %p18625_p11 = por %p18624_p10, %p18623_p9 }
 0x8c7   : > { %p18621_p8 = pneg %p18620_p7 }
 0x8c8   : > { %p18627_p13 = por %p18626_p12, %p18625_p11 }
 0x8ca   : > { %p18628_p0 = pnand %p18627_p13, %p18621_p8 }
 0x8cc   : > { %18631 = shalt.err (!%p18628_p0)
}
 0x8cd   : > { %s18671_s2 = smov 128   ;;  %s18672_s21 = smov 8  }
 0x8ce   : > { %18362 = dma.vmem_to_hbm [thread:$0]  (%p18802_p5), %s23859_s22, 4096, %s23857_s13, %s23865_s11, %s18671_s2, %s18671_s2, %s18672_s21  }
 0x8cf PF: > { %p18368_p1 = scmp.ge.s32.totalorder %s18666_s28, 2  ;;  %s13216_s20 = sand.u32 1, %s18654_s25  }
 0x8d0   : > { %s13217_s0 = scalar_lea.sflag [#allocation5], %s13216_s20 }
 0x8d1   : > { %p18365_p2 = pnand %p18368_p1, %p18806_p6 }
 0x8d3   : > { %18649 = dma.done.wait (!%p18365_p2), %s13217_s0, 4096  }
 0x8d4   : > { %18651 = vsyncadd (!%p18365_p2), %s13217_s0, 4294963200  ;;  %s24611_s23 = sld [smem:[#allocation7_spill]]  ;;  %p30_p3 = scmp.ge.s32.totalorder %s18789_s29, 4  }
 0x8d5   : > { %s24612_s25 = smov %s18658_s26  ;;  %s24613_s26 = smov %s18662_s27 }
 0x8d6   : > { %s24615_s28 = smov %s18789_s29  ;;  %32 = sbr.rel (!%p30_p3) target bundleno = 6 (0x6), region = 152 }
 0x8da   : > { %s24614_s27 = smov %s24611_s23 }
 0x8dd   :  { %13222 = vsyncpa [#allocation5], 1 }
 0x8de   :  { %13224 = vsyncpa [#allocation5 + $0x1], 1 }

</bundles_post_ra>
